<compile_context>
chip_gen: v7x
topology: tpu7x:2x2x1
jax: 0.10.0
libtpu: 0.0.40
codegen_flags: <defaults>
</compile_context>

<pallas_src>
import jax
import jax.numpy as jnp
from jax.experimental import pallas as pl
from jax.experimental.pallas import tpu as pltpu


# ---------------------------------------------------------------------------
# Kernels
# ---------------------------------------------------------------------------

def _op1(x):
    """Operator1 math: exp(sin(x^2) + 1), computed in f32."""
    xf = x.astype(jnp.float32)
    return jnp.exp(jnp.sin(xf * xf) + 1.0)


def fused_small_kernel(x_ref, w_ref, o_ref):
    """Small-D fast path: whole W resident in VMEM, single grid axis over M.
    No K loop, no accumulator scratch, x tile read exactly once."""
    y = _op1(x_ref[...]).astype(w_ref.dtype)          # bf16 operand for the MXU
    acc = jnp.dot(y, w_ref[...], preferred_element_type=jnp.float32)
    o_ref[...] = (acc + 3.0).astype(o_ref.dtype)


def operator1_kernel(x_ref, y_ref):
    """Elementwise Operator1: writes y once to HBM (bf16), so the matmul's LHS
    streams at half the bytes and x is never re-DMA'd across the N axis."""
    y_ref[...] = _op1(x_ref[...]).astype(y_ref.dtype)


def matmul_bias_kernel_f32out(y_ref, w_ref, o_ref):
    """out = y @ W + 3 with direct f32 accumulation into the output block
    (resident across the K axis because its index_map is (i, j))."""
    k = pl.program_id(2)

    @pl.when(k == 0)
    def _init():
        o_ref[...] = jnp.zeros_like(o_ref)

    o_ref[...] += jnp.dot(y_ref[...], w_ref[...],
                          preferred_element_type=jnp.float32)

    @pl.when(k == pl.num_programs(2) - 1)
    def _finalize():
        o_ref[...] += 3.0


def matmul_bias_kernel_acc(y_ref, w_ref, o_ref, acc_ref):
    """Same as above but with an f32 VMEM accumulator (non-f32 outputs)."""
    k = pl.program_id(2)

    @pl.when(k == 0)
    def _init():
        acc_ref[...] = jnp.zeros_like(acc_ref)

    acc_ref[...] += jnp.dot(y_ref[...], w_ref[...],
                            preferred_element_type=jnp.float32)

    @pl.when(k == pl.num_programs(2) - 1)
    def _finalize():
        o_ref[...] = (acc_ref[...] + 3.0).astype(o_ref.dtype)


# ---------------------------------------------------------------------------
# Tile selection
# ---------------------------------------------------------------------------

def _pick_tile(dim, pref, align):
    """Largest tile <= pref that divides dim and is a multiple of align
    (or the full dim if dim itself is small / has no aligned divisor)."""
    if dim <= pref:
        return dim
    t = (pref // align) * align
    while t >= align:
        if dim % t == 0:
            return t
        t -= align
    return dim  # fallback: full extent (guarded by the VMEM check below)


def _pick_m_tile(dim, pref, align):
    """Like _pick_tile, but keep >= 2 blocks along the parallel M axis so both
    v7x TensorCores (and megacore on v5e/v6e) get work when possible."""
    tm = _pick_tile(dim, pref, align)
    if dim // tm < 2:
        start = (min(tm, dim // 2) // align) * align
        for cand in range(start, 0, -align):
            if dim % cand == 0:
                return cand
    return tm


# ---------------------------------------------------------------------------
# Wrapper
# ---------------------------------------------------------------------------

def operator2(x, w, *, use_bf16=True, small_d_fast_path=True,
              tm=None, tn=None, tk=None):
    """x: (B, D), w: (D, D) -> (B, D) = exp(sin(x^2)+1) @ w + 3."""
    B, D = x.shape
    assert w.shape == (D, D)

    # Feed the MXU in bf16 (accumulation stays f32 via preferred_element_type).
    mxu_dtype = jnp.bfloat16 if use_bf16 else x.dtype
    w_op = w.astype(mxu_dtype)

    x_bytes = jnp.dtype(x.dtype).itemsize
    out_bytes = x_bytes                      # output keeps x's dtype
    mxu_bytes = jnp.dtype(mxu_dtype).itemsize
    w_bytes = D * D * mxu_bytes

    # ------------------------- small-D fast path ---------------------------
    # W fully VMEM-resident (bf16), single sweep over M, Operator1 fused.
    if small_d_fast_path and D <= 2048 and w_bytes <= 8 * 1024 * 1024:
        tm_f = tm or _pick_m_tile(B, 256, 8)
        vmem_est = (2 * w_bytes + 2 * tm_f * D * (x_bytes + out_bytes)
                    + 2 * 1024 * 1024)
        return pl.pallas_call(
            fused_small_kernel,
            out_shape=jax.ShapeDtypeStruct((B, D), x.dtype),
            grid=(B // tm_f,),
            in_specs=[
                pl.BlockSpec((tm_f, D), lambda i: (i, 0)),   # x tile
                pl.BlockSpec((D, D), lambda i: (0, 0)),      # full W, resident
            ],
            out_specs=pl.BlockSpec((tm_f, D), lambda i: (i, 0)),
            compiler_params=pltpu.CompilerParams(
                dimension_semantics=("parallel",),
                vmem_limit_bytes=min(max(int(vmem_est), 32 * 1024 * 1024),
                                     48 * 1024 * 1024),
            ),
            cost_estimate=pl.CostEstimate(
                flops=2 * B * D * D + B * D,
                transcendentals=2 * B * D,
                bytes_accessed=B * D * x_bytes + w_bytes + B * D * out_bytes,
            ),
        )(x, w_op)

    # --------------------------- general path ------------------------------
    tm = tm or _pick_m_tile(B, 256, 16)      # 16-aligned: bf16 y packs 16 rows
    tn = tn or _pick_tile(D, 512, 128)       # lane-dense N tile
    tk = tk or _pick_tile(D, 512, 128)       # lane-dense K tile
    if B % tm or D % tn or D % tk:
        raise ValueError(
            f"shapes ({B}, {D}) not tileable with tiles ({tm}, {tn}, {tk})")

    # VMEM budget guard (v7x: 64 MiB physical; keep limit <= 48 MiB).
    vmem_est = (2 * tm * tk * mxu_bytes        # double-buffered y tiles
                + 2 * tk * tn * mxu_bytes      # double-buffered W tiles
                + 2 * tm * tn * out_bytes      # double-buffered out tiles
                + tm * tn * 4                  # (optional) acc scratch
                + 2 * 1024 * 1024)
    if vmem_est > 48 * 1024 * 1024:
        raise ValueError(
            f"tile config ({tm}, {tn}, {tk}) exceeds the 48 MiB VMEM budget")
    vmem_limit = min(max(2 * int(vmem_est), 32 * 1024 * 1024),
                     48 * 1024 * 1024)

    # Pass 1: y = exp(sin(x^2) + 1) in bf16, written to HBM exactly once.
    y = pl.pallas_call(
        operator1_kernel,
        out_shape=jax.ShapeDtypeStruct((B, D), mxu_dtype),
        grid=(B // tm, D // tk),
        in_specs=[pl.BlockSpec((tm, tk), lambda i, k: (i, k))],
        out_specs=pl.BlockSpec((tm, tk), lambda i, k: (i, k)),
        compiler_params=pltpu.CompilerParams(
            dimension_semantics=("parallel", "parallel"),
            vmem_limit_bytes=32 * 1024 * 1024,
        ),
        cost_estimate=pl.CostEstimate(
            flops=3 * B * D,
            transcendentals=2 * B * D,
            bytes_accessed=B * D * (x_bytes + mxu_bytes),
        ),
    )(x)

    # Pass 2: out = y @ W + 3 (plain tiled matmul, f32 accumulation).
    nm, nn, nk = B // tm, D // tn, D // tk
    out_is_f32 = jnp.dtype(x.dtype) == jnp.float32
    kernel = matmul_bias_kernel_f32out if out_is_f32 else matmul_bias_kernel_acc
    scratch = [] if out_is_f32 else [pltpu.VMEM((tm, tn), jnp.float32)]
    return pl.pallas_call(
        kernel,
        out_shape=jax.ShapeDtypeStruct((B, D), x.dtype),
        grid=(nm, nn, nk),
        in_specs=[
            pl.BlockSpec((tm, tk), lambda i, j, k: (i, k)),   # y tile (bf16)
            pl.BlockSpec((tk, tn), lambda i, j, k: (k, j)),   # W tile (bf16)
        ],
        out_specs=pl.BlockSpec((tm, tn), lambda i, j, k: (i, j)),
        scratch_shapes=scratch,
        compiler_params=pltpu.CompilerParams(
            dimension_semantics=("parallel", "parallel", "arbitrary"),
            vmem_limit_bytes=vmem_limit,
        ),
        cost_estimate=pl.CostEstimate(
            flops=2 * B * D * D + B * D,
            transcendentals=0,
            # Actual streamed traffic: y re-read per N tile, W per M tile.
            bytes_accessed=(B * D * mxu_bytes * nn
                            + D * D * mxu_bytes * nm
                            + B * D * out_bytes),
        ),
    )(y, w_op)


# ---------------------------------------------------------------------------
# Test
# ---------------------------------------------------------------------------

if __name__ == "__main__":
    key = jax.random.PRNGKey(0)
    kx, kw = jax.random.split(key)

    # Lane-dense shapes: batch=256, hidden=512.
    B, D = 256, 512
    x = jax.random.normal(kx, (B, D), dtype=jnp.float32)
    # Deterministic stand-in for torch.randn(D, D) drawn each forward pass.
    w = jax.random.normal(kw, (D, D), dtype=jnp.float32)

    # Reference with matched bf16 operand rounding (accumulation in f32).
    y_ref = jnp.exp(jnp.sin(x * x) + 1.0)
    yb = y_ref.astype(jnp.bfloat16).astype(jnp.float32)
    wb = w.astype(jnp.bfloat16).astype(jnp.float32)
    ref = jnp.dot(yb, wb, precision=jax.lax.Precision.HIGHEST) + 3.0

    # Fast path (W resident, single grid axis) — this is the default route.
    out_fast = operator2(x, w)
    jax.block_until_ready(out_fast)
    assert out_fast.shape == (B, D)
    assert jnp.allclose(out_fast, ref, rtol=1e-2, atol=1e-1), float(
        jnp.max(jnp.abs(out_fast - ref)))

    # General path (Operator1 pass + tiled matmul) — exercised with small tiles.
    out_gen = operator2(x, w, small_d_fast_path=False, tm=128, tn=256, tk=256)
    jax.block_until_ready(out_gen)
    assert out_gen.shape == (B, D)
    assert jnp.allclose(out_gen, ref, rtol=1e-2, atol=1e-1), float(
        jnp.max(jnp.abs(out_gen - ref)))

    print("KERNEL_OK")
</pallas_src>

<mosaic_0001>
module attributes {stable_mosaic.version = 11 : i64} {
  func.func @fused_small_kernel(%arg0: i32, %arg1: memref<128x512xf32, #tpu.memory_space<vmem>>, %arg2: memref<512x512xbf16, #tpu.memory_space<vmem>>, %arg3: memref<128x512xf32, #tpu.memory_space<vmem>>) attributes {dimension_semantics = [#tpu.dimension_semantics<parallel>], iteration_bounds = array<i64: 2>, scalar_prefetch = 0 : i64, scratch_operands = 0 : i64, tpu.core_type = #tpu.core_type<tc>, window_params = [{transform_indices = @transform_0, window_bounds = array<i64: 128, 512>}, {pipeline_mode = #tpu.pipeline_mode<synchronous>, transform_indices = @transform_1, window_bounds = array<i64: 512, 512>}, {transform_indices = @transform_2, window_bounds = array<i64: 128, 512>}]} {
    %c0 = arith.constant 0 : index
    %c0_0 = arith.constant 0 : index
    %0 = vector.load %arg1[%c0, %c0_0] : memref<128x512xf32, #tpu.memory_space<vmem>>, vector<128x512xf32>
    %1 = arith.mulf %0, %0 : vector<128x512xf32>
    %2 = math.sin %1 : vector<128x512xf32>
    %cst = arith.constant 1.000000e+00 : f32
    %3 = vector.broadcast %cst : f32 to vector<128x512xf32>
    %4 = arith.addf %2, %3 : vector<128x512xf32>
    %5 = math.exp %4 : vector<128x512xf32>
    %6 = arith.truncf %5 : vector<128x512xf32> to vector<128x512xbf16>
    %c0_1 = arith.constant 0 : index
    %c0_2 = arith.constant 0 : index
    %7 = vector.load %arg2[%c0_1, %c0_2] : memref<512x512xbf16, #tpu.memory_space<vmem>>, vector<512x512xbf16>
    %cst_3 = arith.constant dense<0.000000e+00> : vector<128x512xf32>
    %8 = tpu.matmul %6, %7, %cst_3 {dimension_numbers = #tpu.dot_dimension_numbers<[1], [0], [0], [1], [0, 0, 1, 1], [], []>} : vector<128x512xbf16>, vector<512x512xbf16>, vector<128x512xf32> -> vector<128x512xf32>
    %cst_4 = arith.constant 3.000000e+00 : f32
    %9 = vector.broadcast %cst_4 : f32 to vector<128x512xf32>
    %10 = arith.addf %8, %9 : vector<128x512xf32>
    %c0_5 = arith.constant 0 : index
    %c0_6 = arith.constant 0 : index
    %11 = vector.load %arg3[%c0_5, %c0_6] : memref<128x512xf32, #tpu.memory_space<vmem>>, vector<128x512xf32>
    tpu.vector_store %arg3[%c0_5, %c0_6], %10 {strides = array<i32>} : memref<128x512xf32, #tpu.memory_space<vmem>>, vector<128x512xf32>,
    return
  }
  func.func @transform_0(%arg0: i32) -> (i32, i32) {
    %c0_i32 = arith.constant 0 : i32
    %c0_i32_0 = arith.constant 0 : i32
    return %arg0, %c0_i32 : i32, i32
  }
  func.func @transform_1(%arg0: i32) -> (i32, i32) {
    %c0_i32 = arith.constant 0 : i32
    %c0_i32_0 = arith.constant 0 : i32
    %c0_i32_1 = arith.constant 0 : i32
    return %c0_i32, %c0_i32_0 : i32, i32
  }
  func.func @transform_2(%arg0: i32) -> (i32, i32) {
    %c0_i32 = arith.constant 0 : i32
    %c0_i32_0 = arith.constant 0 : i32
    return %arg0, %c0_i32 : i32, i32
  }
}

</mosaic_0001>

<bundles_post_ra>
// kernel: tpu_custom_call.1
= control target key start
LH: loop header
LB: loop body
LE: loop exit
PB: predicated region body
PF: predicated region fallthrough
CT: control target
= control target key end

     0   :  { %7 = vsyncpa [#allocation3], 0  ;;  %s15824_s0 = inlined_call_operand.hbm [shape: f32[256,512], index: 0, kind: input, shape index: {}]   ;;  %s15825_s1 = inlined_call_operand.hbm [shape: bf16[512,512], index: 1, kind: input, shape index: {}]   ;;  %s15826_s2 = inlined_call_operand.hbm [shape: f32[256,512], index: 2, kind: output, shape index: {}]  }
   0x1   :  { %9 = vsyncpa [#allocation3 + $0x1], 0 }
   0x2   :  { %10 = vsyncpa [#allocation6], 0 }
   0x3   :  { %11 = vsyncpa [#allocation4], 0 }
   0x4   :  { %13 = vsyncpa [#allocation4 + $0x1], 0  ;;  %s10165_s9 = smov 0   ;;  %s10167_s10 = smov 0  }
   0x5   :  { %s10169_s11 = smov 0   ;;  %s10171_s12 = smov 0  }
   0x6 LB: > { %s10186_s13 = sadd.s32 4294967295, %s10133_s12   ;;  %s8570_s14 = sadd.s32 4294967294, %s10133_s12   ;;  %s10133_s12 = sphi %s10171_s12, %s16022_s12   ;;  %s10129_s11 = sphi %s10169_s11, %s16021_s11   ;;  %s10125_s10 = sphi %s10167_s10, %s16020_s10   ;;  %s10121_s9 = sphi %s10165_s9, %s16019_s9  }
   0x7   : > { %p39_p0 = scmp.ne.s32.totalorder %s10125_s10, %s10121_s9  ;;  %p15827_p1 = scmp.eq.s32.totalorder %s10186_s13, 0 }
   0x8   : > { %p90_p3 = scmp.eq.s32.totalorder %s8570_s14, 1  ;;  %p8571_p5 = scmp.ge.s32.totalorder %s10133_s12, 1 }
   0x9   : > { %p10195_p4 = por %p15827_p1, %p39_p0  ;;  %p97_p7 = scmp.lt.s32.totalorder %s10133_s12, 3 }
   0xa   : > { %p10200_p6 = por %p90_p3, %p39_p0  ;;  %s10135_s18 = smov [#allocation5]  }
   0xb   : > { %s15851_s15 = scalar_select %p10195_p4, 1, 0 }
   0xc   : > { %s15852_s16 = scalar_select %p10200_p6, 1, 0 }
   0xd   : > { %p10205_p8 = pnand %p8571_p5, %p97_p7  ;;  %s109_s19 = sshll.u32 %s10135_s18, 4  ;;  %s10209_s19 = int_to_ptr.vmem [resolvable:$true] %s109_s19 }
   0xe   : > { %s10221_s21 = sadd.s32 1, %s10133_s12   ;;  %s26_s22 = sadd.s32 1, %s10129_s11 }
   0xf   : > { %s15853_s17 = scalar_select %p10205_p8, 1, 0 }
  0x10   : > { %p9368_p9 = pneg %p10205_p8  ;;  %s23_s23 = ssub.s32 %s10133_s12, %s10221_s21 }
  0x11   : > { %s10005_s26 = scalar_lea.hbm %s15825_s1, 16384 }
  0x12   : > { %p10216_p11 = pnand %p9368_p9, %p15827_p1  ;;  %p10006_p12 = scmp.ne.s32.totalorder %s15825_s1, %s10005_s26 }
  0x13   : > { %p10012_p5 = scmp.lt.u32.totalorder %s10005_s26, %s15825_s1 }
  0x14   : > { %p10007_p13 = pneg %p10216_p11 }
  0x16   : > { %p10008_p0 = pnand %p10007_p13, %p10006_p12 }
  0x18   : > { %p10009_p3 = pneg %p10008_p0 }
  0x1a   : > { %p10014_p7 = pnand %p10012_p5, %p10009_p3 }
  0x1c   : > { %10017 = shalt.err (!%p10014_p7)
}
  0x1d   : > { %s10018_s3 = scalar_lea.vmem %s10209_s19, 16384  ;;  %p10026_p2 = scmp.lt.s32.totalorder %s10209_s19, %s10209_s19 }
  0x1e   : > { %p10019_p9 = scmp.ne.s32.totalorder %s10209_s19, %s10018_s3  ;;  %p10027_p6 = scmp.lt.s32.totalorder %s10018_s3, %s10018_s3 }
  0x20   : > { %p10021_p10 = pnand %p10019_p9, %p10007_p13  ;;  %p10028_p4 = por %p10027_p6, %p10026_p2 }
  0x22   : > { %p10022_p1 = pneg %p10021_p10 }
  0x24   : > { %p10029_p8 = pnand %p10028_p4, %p10022_p1 }
  0x26   : > { %10032 = shalt.err (!%p10029_p8)
}
  0x27   : > { %s10136_s4 = smov 256   ;;  %s10137_s5 = smov 16  }
  0x28   : > { %9371 = dma.hbm_to_vmem [thread:$0]  (!%p10216_p11), %s15825_s1, 16384, %s10209_s19, [#allocation6], %s10136_s4, %s10136_s4, %s10137_s5  }
  0x29   : > { %p24_p2 = scmp.eq.s32.totalorder %s23_s23, 0  ;;  %p33_p1 = scmp.ne.s32.totalorder %s10129_s11, %s10125_s10 }
  0x2a   : > { %p34_p4 = scmp.eq.s32.totalorder %s10133_s12, 0  ;;  %p9381_p6 = scmp.lt.s32.totalorder %s10133_s12, 2 }
  0x2b   : > { %s10252_s8 = scalar_select %p24_p2, %s10129_s11, %s26_s22  }
  0x2c   : > { %p35_p8 = por %p34_p4, %p33_p1  ;;  %p15855_p10 = scmp.eq.s32.totalorder %s10186_s13, 1 }
  0x2d   : > { %s123_s18 = sand.u32 1, %s10129_s11   ;;  %s8973_s24 = sshll.u32 %s10133_s12, 13 }
  0x2e   : > { %p10256_p12 = por %p15855_p10, %p33_p1  ;;  %s8574_s25 = sshll.u32 %s123_s18, 9 }
  0x2f   : > { %s10265_s27 = scalar_lea.hbm %s15824_s0, %s8973_s24  ;;  %s127_s19 = scalar_lea.vmem [#allocation2], %s8574_s25 }
  0x30   : > { %s135_s22 = sshll.u32 %s127_s19, 4  ;;  %p10267_p11 = pnand %p9381_p6, %p35_p8  ;;  %s10271_s22 = int_to_ptr.vmem [resolvable:$true] %s135_s22 }
  0x31   : > { %s10273_s28 = scalar_lea.sflag [#allocation3], %s123_s18  ;;  %s10033_s29 = scalar_lea.hbm %s10265_s27, 8192 }
  0x32   : > { %p10034_p13 = scmp.ne.s32.totalorder %s10265_s27, %s10033_s29  ;;  %p10035_p0 = pneg %p10267_p11 }
  0x33   : > { %s10038_s4 = scalar_lea.hbm %s15824_s0, 16384  ;;  %p10039_p7 = scmp.lt.u32.totalorder %s10265_s27, %s15824_s0 }
  0x34   : > { %p10036_p3 = pnand %p10035_p0, %p10034_p13  ;;  %p10040_p9 = scmp.lt.u32.totalorder %s10038_s4, %s10033_s29 }
  0x35   : > { %p10042_p1 = scmp.lt.u32.totalorder %s10033_s29, %s10265_s27 }
  0x36   : > { %p10037_p5 = pneg %p10036_p3  ;;  %p10041_p2 = por %p10040_p9, %p10039_p7 }
  0x38   : > { %p10043_p4 = por %p10042_p1, %p10041_p2 }
  0x3a   : > { %p10044_p6 = pnand %p10043_p4, %p10037_p5 }
  0x3c   : > { %10047 = shalt.err (!%p10044_p6)
}
  0x3d   : > { %s10048_s7 = scalar_lea.vmem %s10271_s22, 8192  ;;  %s10138_s18 = smov [#allocation2]  }
  0x3e   : > { %p10049_p8 = scmp.ne.s32.totalorder %s10271_s22, %s10048_s7  ;;  %s10053_s24 = sshll.u32 %s10138_s18, 4  ;;  %s10054_s24 = int_to_ptr.vmem [resolvable:$false] %s10053_s24 }
  0x3f   : > { %s10055_s25 = scalar_lea.vmem %s10054_s24, 16384  ;;  %p10056_p3 = scmp.lt.s32.totalorder %s10271_s22, %s10054_s24 }
  0x40   : > { %p10051_p10 = pnand %p10049_p8, %p10035_p0  ;;  %p10057_p7 = scmp.lt.s32.totalorder %s10055_s25, %s10048_s7 }
  0x42   : > { %p10052_p13 = pneg %p10051_p10  ;;  %p10058_p9 = por %p10057_p7, %p10056_p3 }
  0x44   : > { %p10059_p2 = pnand %p10058_p9, %p10052_p13 }
  0x46   : > { %10062 = shalt.err (!%p10059_p2)
}
  0x47   : > { %s10139_s20 = smov 512   ;;  %s10140_s26 = smov 32  }
  0x48   : > { %9375 = dma.hbm_to_vmem [thread:$0]  (!%p10267_p11), %s10265_s27, 8192, %s10271_s22, %s10273_s28, %s10139_s20, %s10139_s20, %s10140_s26  }
  0x49   : > { %p15858_p0 = scmp.ne.s32.totalorder %s15853_s17, 0 }
  0x4b   : > { %147 = sbr.rel (%p15858_p0) target bundleno = 2050 (0x802), region = 28 }
  0x52   : > { %s10304_s19 = sand.u32 1, %s10125_s10   ;;  %p15859_p5 = scmp.ne.s32.totalorder %s15851_s15, 0 }
  0x53   : > { %s8579_s29 = sshll.u32 %s10304_s19, 9  ;;  %s150_s30 = scalar_lea.sflag [#allocation3], %s10304_s19 }
  0x54   : > { %s10310_s3 = scalar_lea.vmem [#allocation2], %s8579_s29 }
  0x55   : > { %10108 = dma.done.wait (%p15859_p5), %s150_s30, 8192  }
  0x56   : > { %10110 = vsyncadd (%p15859_p5), %s150_s30, 4294959104  ;;  %p15860_p11 = scmp.eq.s32.totalorder %s10186_s13, 0 }
  0x58   : > { %10112 = dma.done.wait (%p15860_p11), [#allocation6], 16384   ;;  %p15861_p1 = pmov %p15860_p11 }
  0x59   : > { %v9429_v0 = vld [vmem:[#allocation5 + $0x4] ss:$16 sps:$4 sm:$0xff]   ;;  %v9431_v1 = vld [vmem:[#allocation5 + $0xc] ss:$16 sps:$4 sm:$0xff]   ;;  %v9433_v2 = vld [vmem:[#allocation5] ss:$16 sps:$4 sm:$0xff]  }
  0x5a   : > { %10114 = vsyncadd (%p15861_p1), [#allocation6], 4294950912  ;;  %7956 = vmatprep.subr.bf16.mxu0 %v9429_v0  ;;  %v9434_v3 = vld [vmem:[#allocation5 + $0x8] ss:$16 sps:$4 sm:$0xff]   ;;  %8182 = vmatprep.subr.bf16.mxu1 %v9431_v1  ;;  %v9435_v4 = vld [vmem:[#allocation5 + $0x24] ss:$16 sps:$4 sm:$0xff]  }
  0x5b   : > { %7957 = vmatpush1.bf16.msra.mxu0 %v9433_v2  ;;  %8183 = vmatpush1.bf16.msra.mxu1 %v9434_v3  ;;  %v9437_v5 = vld [vmem:[#allocation5 + $0x2c] ss:$16 sps:$4 sm:$0xff]   ;;  %v9439_v6 = vld [vmem:[#allocation5 + $0x20] ss:$16 sps:$4 sm:$0xff]   ;;  %v9440_v7 = vld [vmem:[#allocation5 + $0x28] ss:$16 sps:$4 sm:$0xff]  }
  0x5c   : > { %7958 = vmatprep.subr.bf16.mxu0 %v9435_v4  ;;  %8184 = vmatprep.subr.bf16.mxu1 %v9437_v5  ;;  %v9441_v8 = vld [vmem:[#allocation5 + $0x44] ss:$16 sps:$4 sm:$0xff]   ;;  %v9443_v9 = vld [vmem:[#allocation5 + $0x4c] ss:$16 sps:$4 sm:$0xff]   ;;  %v9445_v10 = vld [vmem:[#allocation5 + $0x40] ss:$16 sps:$4 sm:$0xff]  }
  0x5d   : > { %v9446_v11 = vld [vmem:[#allocation5 + $0x48] ss:$16 sps:$4 sm:$0xff]   ;;  %v9447_v12 = vld [vmem:[#allocation5 + $0x64] ss:$16 sps:$4 sm:$0xff]   ;;  %v9449_v13 = vld [vmem:[#allocation5 + $0x6c] ss:$16 sps:$4 sm:$0xff]  }
  0x5e   : > { %v9451_v14 = vld [vmem:[#allocation5 + $0x60] ss:$16 sps:$4 sm:$0xff]   ;;  %v9452_v15 = vld [vmem:[#allocation5 + $0x68] ss:$16 sps:$4 sm:$0xff]   ;;  %v9453_v16 = vld [vmem:[#allocation5 + $0x84] ss:$16 sps:$4 sm:$0xff]  }
  0x5f   : > { %7959 = vmatpush1.bf16.msra.mxu0 %v9439_v6  ;;  %8185 = vmatpush1.bf16.msra.mxu1 %v9440_v7  ;;  %v9455_v17 = vld [vmem:[#allocation5 + $0x8c] ss:$16 sps:$4 sm:$0xff]   ;;  %v9457_v18 = vld [vmem:[#allocation5 + $0x80] ss:$16 sps:$4 sm:$0xff]   ;;  %v9458_v19 = vld [vmem:[#allocation5 + $0x88] ss:$16 sps:$4 sm:$0xff]  }
  0x60   : > { %7960 = vmatprep.subr.bf16.mxu0 %v9441_v8  ;;  %8186 = vmatprep.subr.bf16.mxu1 %v9443_v9  ;;  %v9459_v20 = vld [vmem:[#allocation5 + $0xa4] ss:$16 sps:$4 sm:$0xff]   ;;  %v9461_v21 = vld [vmem:[#allocation5 + $0xac] ss:$16 sps:$4 sm:$0xff]   ;;  %v9463_v22 = vld [vmem:[#allocation5 + $0xa0] ss:$16 sps:$4 sm:$0xff]  }
  0x61   : > { %v9464_v23 = vld [vmem:[#allocation5 + $0xa8] ss:$16 sps:$4 sm:$0xff]   ;;  %v9465_v24 = vld [vmem:[#allocation5 + $0xc4] ss:$16 sps:$4 sm:$0xff]   ;;  %v9467_v25 = vld [vmem:[#allocation5 + $0xcc] ss:$16 sps:$4 sm:$0xff]  }
  0x62   : > { %v9469_v26 = vld [vmem:[#allocation5 + $0xc0] ss:$16 sps:$4 sm:$0xff]   ;;  %v9470_v27 = vld [vmem:[#allocation5 + $0xc8] ss:$16 sps:$4 sm:$0xff]   ;;  %v9471_v28 = vld [vmem:[#allocation5 + $0xe4] ss:$16 sps:$4 sm:$0xff]  }
  0x63   : > { %7961 = vmatpush1.bf16.msra.mxu0 %v9445_v10  ;;  %8187 = vmatpush1.bf16.msra.mxu1 %v9446_v11  ;;  %v9473_v29 = vld [vmem:[#allocation5 + $0xec] ss:$16 sps:$4 sm:$0xff]   ;;  %v9475_v30 = vld [vmem:[#allocation5 + $0xe0] ss:$16 sps:$4 sm:$0xff]   ;;  %v9476_v31 = vld [vmem:[#allocation5 + $0xe8] ss:$16 sps:$4 sm:$0xff]  }
  0x64   : > { %7962 = vmatprep.subr.bf16.mxu0 %v9447_v12  ;;  %8188 = vmatprep.subr.bf16.mxu1 %v9449_v13  ;;  %v9477_v32 = vld [vmem:[#allocation5 + $0x104] ss:$16 sps:$4 sm:$0xff]   ;;  %v9479_v33 = vld [vmem:[#allocation5 + $0x10c] ss:$16 sps:$4 sm:$0xff]   ;;  %v9481_v34 = vld [vmem:[#allocation5 + $0x100] ss:$16 sps:$4 sm:$0xff]  }
  0x65   : > { %v9482_v35 = vld [vmem:[#allocation5 + $0x108] ss:$16 sps:$4 sm:$0xff]   ;;  %v9483_v36 = vld [vmem:[#allocation5 + $0x124] ss:$16 sps:$4 sm:$0xff]   ;;  %v9485_v37 = vld [vmem:[#allocation5 + $0x12c] ss:$16 sps:$4 sm:$0xff]  }
  0x66   : > { %v9487_v38 = vld [vmem:[#allocation5 + $0x120] ss:$16 sps:$4 sm:$0xff]   ;;  %v9488_v39 = vld [vmem:[#allocation5 + $0x128] ss:$16 sps:$4 sm:$0xff]   ;;  %v9489_v40 = vld [vmem:[#allocation5 + $0x144] ss:$16 sps:$4 sm:$0xff]  }
  0x67   : > { %7963 = vmatpush1.bf16.msra.mxu0 %v9451_v14  ;;  %8189 = vmatpush1.bf16.msra.mxu1 %v9452_v15  ;;  %v9491_v41 = vld [vmem:[#allocation5 + $0x14c] ss:$16 sps:$4 sm:$0xff]   ;;  %v9493_v42 = vld [vmem:[#allocation5 + $0x140] ss:$16 sps:$4 sm:$0xff]   ;;  %v9494_v43 = vld [vmem:[#allocation5 + $0x148] ss:$16 sps:$4 sm:$0xff]  }
  0x68   : > { %7964 = vmatprep.subr.bf16.mxu0 %v9453_v16  ;;  %8190 = vmatprep.subr.bf16.mxu1 %v9455_v17  ;;  %v9495_v44 = vld [vmem:[#allocation5 + $0x164] ss:$16 sps:$4 sm:$0xff]   ;;  %v9497_v45 = vld [vmem:[#allocation5 + $0x16c] ss:$16 sps:$4 sm:$0xff]   ;;  %v9499_v46 = vld [vmem:[#allocation5 + $0x160] ss:$16 sps:$4 sm:$0xff]  }
  0x69   : > { %v9500_v47 = vld [vmem:[#allocation5 + $0x168] ss:$16 sps:$4 sm:$0xff]   ;;  %v9501_v51 = vld [vmem:[#allocation5 + $0x184] ss:$16 sps:$4 sm:$0xff]   ;;  %v9503_v52 = vld [vmem:[#allocation5 + $0x18c] ss:$16 sps:$4 sm:$0xff]  }
  0x6a   : > { %v181_v48 = vld [vmem:[%s10310_s3 + $0x8] sm:$0xff]  ;;  %v180_v56 = vld [vmem:[%s10310_s3] sm:$0xff]  ;;  %s15547_s15 = scalar_lea.vmem [#allocation7], %s8579_s29  ;;  %s8975_s17 = sshll.u32 %s10186_s13, 13 }
  0x6b   : > { %7965 = vmatpush1.bf16.msra.mxu0 %v9457_v18  ;;  %8191 = vmatpush1.bf16.msra.mxu1 %v9458_v19  ;;  %v185_v49 = vld [vmem:[%s10310_s3 + $0x28] sm:$0xff]  ;;  %v10322_v50 = vmul.f32 %v181_v48, %v181_v48  ;;  %v9505_v59 = vld [vmem:[#allocation5 + $0x180] ss:$16 sps:$4 sm:$0xff]   ;;  %v10331_v62 = vmul.f32 %v180_v56, %v180_v56  ;;  %v9507_v2 = vld [vmem:[#allocation5 + $0x1a4] ss:$16 sps:$4 sm:$0xff]   ;;  %s8487_s27 = sshll.u32 %s15547_s15, 4  ;;  %s15772_s23 = scalar_lea.hbm %s15826_s2, %s8975_s17  ;;  %s15774_s27 = int_to_ptr.vmem [resolvable:$true] %s8487_s27 }
  0x6c   : > { %7966 = vmatprep.subr.bf16.mxu0 %v9459_v20  ;;  %8192 = vmatprep.subr.bf16.mxu1 %v9461_v21  ;;  %v10324_v53 = vmul.f32 %v185_v49, %v185_v49  ;;  %v9506_v60 = vld [vmem:[#allocation5 + $0x188] ss:$16 sps:$4 sm:$0xff]   ;;  %v9509_v3 = vld [vmem:[#allocation5 + $0x1ac] ss:$16 sps:$4 sm:$0xff]   ;;  %v9511_v7 = vld [vmem:[#allocation5 + $0x1a0] ss:$16 sps:$4 sm:$0xff]  }
  0x6d   : > { %v412_v54 = vand.u32 2147483647, %v10322_v50  ;;  %v415_v55 = vand.u32 2139095040, %v10322_v50  ;;  %v311_v6 = vand.u32 2139095040, %v10331_v62  ;;  %v9512_v8 = vld [vmem:[#allocation5 + $0x1a8] ss:$16 sps:$4 sm:$0xff]  }
  0x6e   : > { %v828_v57 = vand.u32 2147483647, %v10324_v53  ;;  %v831_v58 = vand.u32 2139095040, %v10324_v53  ;;  %v9513_v14 = vld [vmem:[#allocation5 + $0x1c4] ss:$16 sps:$4 sm:$0xff]   ;;  %vm414_vm13 = vcmp.lt.s32.totalorder %v10322_v50, 0 }
  0x6f   : > { %7967 = vmatpush1.bf16.msra.mxu0 %v9463_v22  ;;  %8193 = vmatpush1.bf16.msra.mxu1 %v9464_v23  ;;  %v416_v61 = vshrl.u32 %v415_v55, 23  ;;  %v419_v63 = vand.u32 8388607, %v412_v54  ;;  %v312_v13 = vshrl.u32 %v311_v6, 23  ;;  %v9515_v15 = vld [vmem:[#allocation5 + $0x1cc] ss:$16 sps:$4 sm:$0xff]  }
  0x70   : > { %7968 = vmatprep.subr.bf16.mxu0 %v9465_v24  ;;  %8194 = vmatprep.subr.bf16.mxu1 %v9467_v25  ;;  %v832_v0 = vshrl.u32 %v831_v58, 23  ;;  %v835_v1 = vand.u32 8388607, %v828_v57  ;;  %v9517_v16 = vld [vmem:[#allocation5 + $0x1c0] ss:$16 sps:$4 sm:$0xff]   ;;  %vm830_vm14 = vcmp.lt.s32.totalorder %v10324_v53, 0 }
  0x71   : > { %v8586_v4 = vadd.s32 4294967169, %v416_v61  ;;  %v420_v10 = vor.u32 8388608, %v419_v63  ;;  %v9518_v17 = vld [vmem:[#allocation5 + $0x1c8] ss:$16 sps:$4 sm:$0xff]   ;;  %v308_v19 = vand.u32 2147483647, %v10331_v62 }
  0x72   : > { %v8602_v5 = vadd.s32 4294967169, %v832_v0  ;;  %v836_v11 = vor.u32 8388608, %v835_v1  ;;  %v8582_v20 = vadd.s32 4294967169, %v312_v13  ;;  %v9519_v21 = vld [vmem:[#allocation5 + $0x1e4] ss:$16 sps:$4 sm:$0xff]   ;;  %s8473_s28 = scalar_lea.sflag [#allocation4], %s10304_s19 }
  0x73   : > { %7969 = vmatpush1.bf16.msra.mxu0 %v9469_v26  ;;  %8195 = vmatpush1.bf16.msra.mxu1 %v9470_v27  ;;  %v422_v9 = vadd.s32 1, %v8586_v4  ;;  %v10341_v25 = vshll.u32 %v420_v10, 8  ;;  %v9527_v48 = vld [vmem:[#allocation5 + $0x204] ss:$16 sps:$4 sm:$0xff]   ;;  %v9530_v55 = vld [vmem:[#allocation5 + $0x20c] ss:$16 sps:$4 sm:$0xff]  }
  0x74   : > { %7970 = vmatprep.subr.bf16.mxu0 %v9471_v28  ;;  %8196 = vmatprep.subr.bf16.mxu1 %v9473_v29  ;;  %v838_v12 = vadd.s32 1, %v8602_v5  ;;  %v10347_v28 = vshll.u32 %v836_v11, 8  ;;  %v9521_v29 = vld [vmem:[#allocation5 + $0x1ec] ss:$16 sps:$4 sm:$0xff]   ;;  %s10063_s4 = scalar_lea.vmem %s15774_s27, 8192  ;;  %s10147_s5 = smov [#allocation7]  }
  0x75   : > { %vm423_vm0 = vcmp.gt.s32.totalorder %v422_v9, 0  ;;  %p10064_p4 = scmp.ne.s32.totalorder %s15774_s27, %s10063_s4  ;;  %s10067_s6 = sshll.u32 %s10147_s5, 4  ;;  %s10068_s6 = int_to_ptr.vmem [resolvable:$false] %s10067_s6 }
  0x76   : > { %v424_v18 = vsel %vm423_vm0, %v422_v9, 0  ;;  %vm839_vm1 = vcmp.gt.s32.totalorder %v838_v12, 0  ;;  %s10069_s7 = scalar_lea.vmem %s10068_s6, 16384  ;;  %p10070_p10 = scmp.lt.s32.totalorder %s15774_s27, %s10068_s6 }
  0x77   : > { %7971 = vmatpush1.bf16.msra.mxu0 %v9475_v30  ;;  %8197 = vmatpush1.bf16.msra.mxu1 %v9476_v31  ;;  %v10339_v22 = vshrl.u32 %v424_v18, 5  ;;  %v426_v23 = vand.u32 31, %v424_v18  ;;  %v840_v24 = vsel %vm839_vm1, %v838_v12, 0  ;;  %v15844_v31 = vmov 683565275   ;;  %p10065_p6 = pnand %p10064_p4, %p10256_p12  ;;  %p10071_p13 = scmp.lt.s32.totalorder %s10069_s7, %s10063_s4 }
  0x78   : > { %7972 = vmatprep.subr.bf16.mxu0 %v9477_v32  ;;  %8198 = vmatprep.subr.bf16.mxu1 %v9479_v33  ;;  %v10343_v26 = vshrl.u32 %v840_v24, 5  ;;  %v10345_v27 = vand.u32 31, %v840_v24  ;;  %v15831_v33 = vmov 2475754826   ;;  %vm10481_vm1 = vcmp.le.f32.partialorder %v412_v54, 0.7853982 }
  0x79   : > { %v427_v30 = vsub.s32 32, %v426_v23  ;;  %v429_v32 = vshll.u32 %v15844_v31, %v426_v23  ;;  %vm444_vm2 = vcmp.lt.s32.totalorder %v10339_v22, 1  ;;  %vm445_vm3 = vcmp.lt.s32.totalorder %v10339_v22, 2  ;;  %p10066_p8 = pneg %p10065_p6  ;;  %p10072_p3 = por %p10071_p13, %p10070_p10 }
  0x7a   : > { %vm447_vm4 = vcmp.lt.s32.totalorder %v10339_v22, 4  ;;  %vm446_vm5 = vcmp.lt.s32.totalorder %v10339_v22, 3  ;;  %v845_v0 = vshll.u32 %v15844_v31, %v10345_v27  ;;  %vm860_vm6 = vcmp.lt.s32.totalorder %v10343_v26, 1 }
  0x7b   : > { %7973 = vmatpush1.bf16.msra.mxu0 %v9481_v34  ;;  %8199 = vmatpush1.bf16.msra.mxu1 %v9482_v35  ;;  %v432_v34 = vshll.u32 %v15831_v33, %v426_v23  ;;  %v15833_v35 = vmov 2131351028   ;;  %vm861_vm7 = vcmp.lt.s32.totalorder %v10343_v26, 2  ;;  %vm862_vm9 = vcmp.lt.s32.totalorder %v10343_v26, 3  ;;  %p10073_p7 = pnand %p10072_p3, %p10066_p8 }
  0x7c   : > { %7974 = vmatprep.subr.bf16.mxu0 %v9483_v36  ;;  %8200 = vmatprep.subr.bf16.mxu1 %v9485_v37  ;;  %v435_v36 = vshll.u32 %v15833_v35, %v426_v23  ;;  %v9523_v37 = vld [vmem:[#allocation5 + $0x1e0] ss:$16 sps:$4 sm:$0xff]   ;;  %vm863_vm10 = vcmp.lt.s32.totalorder %v10343_v26, 4  ;;  %v315_v26 = vand.u32 8388607, %v308_v19 }
  0x7f   : > { %7975 = vmatpush1.bf16.msra.mxu0 %v9487_v38  ;;  %8201 = vmatpush1.bf16.msra.mxu1 %v9488_v39  ;;  %v9524_v38 = vld [vmem:[#allocation5 + $0x1e8] ss:$16 sps:$4 sm:$0xff]   ;;  %v15835_v39 = vmov 2102212464  }
  0x80   : > { %7976 = vmatprep.subr.bf16.mxu0 %v9489_v40  ;;  %8202 = vmatprep.subr.bf16.mxu1 %v9491_v41  ;;  %v438_v40 = vshll.u32 %v15835_v39, %v426_v23  ;;  %v15842_v41 = vmov 920167782  }
  0x81   : > { %v439_v49 = vshrl.u32 %v15842_v41, %v427_v30 }
  0x83   : > { %7977 = vmatpush1.bf16.msra.mxu0 %v9493_v42  ;;  %8203 = vmatpush1.bf16.msra.mxu1 %v9494_v43  ;;  %v441_v42 = vshll.u32 %v15842_v41, %v426_v23  ;;  %v10355_v43 = vadd.s32 1, %v8582_v20  ;;  %v440_v61 = vor.u32 %v439_v49, %v438_v40 }
  0x84   : > { %7978 = vmatprep.subr.bf16.mxu0 %v9495_v44  ;;  %8204 = vmatprep.subr.bf16.mxu1 %v9497_v45  ;;  %v428_v44 = vshrl.u32 %v15844_v31, %v427_v30  ;;  %v430_v45 = vshrl.u32 %v15831_v33, %v427_v30 }
  0x85   : > { %v453_v6 = vsel %vm447_vm4, %v440_v61, 920167782  ;;  %vm319_vm11 = vcmp.gt.s32.totalorder %v10355_v43, 0 }
  0x86   : > { %v431_v56 = vor.u32 %v430_v45, %v429_v32 }
  0x87   : > { %7979 = vmatpush1.bf16.msra.mxu0 %v9499_v46  ;;  %8205 = vmatpush1.bf16.msra.mxu1 %v9500_v47  ;;  %v433_v46 = vshrl.u32 %v15833_v35, %v427_v30  ;;  %v436_v47 = vshrl.u32 %v15835_v39, %v427_v30 }
  0x88   : > { %7980 = vmatprep.subr.bf16.mxu0 %v9501_v51  ;;  %8206 = vmatprep.subr.bf16.mxu1 %v9503_v52  ;;  %v15838_v51 = vmov 1326507024   ;;  %v448_v1 = vsel %vm444_vm2, %v428_v44, %v431_v56 }
  0x89   : > { %v442_v52 = vshrl.u32 %v15838_v51, %v427_v30  ;;  %v434_v58 = vor.u32 %v433_v46, %v432_v34  ;;  %v854_v30 = vshll.u32 %v15835_v39, %v10345_v27  ;;  %v857_v34 = vshll.u32 %v15842_v41, %v10345_v27 }
  0x8b   : > { %7981 = vmatpush1.bf16.msra.mxu0 %v9505_v59  ;;  %8207 = vmatpush1.bf16.msra.mxu1 %v9506_v60  ;;  %v437_v59 = vor.u32 %v436_v47, %v435_v36  ;;  %v843_v60 = vsub.s32 32, %v10345_v27  ;;  %v443_v63 = vor.u32 %v442_v52, %v441_v42 }
  0x8c   : > { %7982 = vmatprep.subr.bf16.mxu0 %v9507_v2  ;;  %8208 = vmatprep.subr.bf16.mxu1 %v9509_v3  ;;  %v452_v3 = vsel %vm444_vm2, %v431_v56, %v434_v58 }
  0x8d   : > { %v449_v2 = vsel %vm447_vm4, %v437_v59, 2102212464  ;;  %v456_v4 = vsel %vm444_vm2, %v434_v58, %v437_v59  ;;  %v454_v9 = vsel %vm446_vm5, %v437_v59, %v453_v6  ;;  %v844_v11 = vshrl.u32 %v15844_v31, %v843_v60 }
  0x8e   : > { %v450_v5 = vsel %vm446_vm5, %v434_v58, %v449_v2  ;;  %v846_v12 = vshrl.u32 %v15831_v33, %v843_v60  ;;  %v852_v22 = vshrl.u32 %v15835_v39, %v843_v60  ;;  %v855_v32 = vshrl.u32 %v15842_v41, %v843_v60  ;;  %v184_v2 = vld [vmem:[%s10310_s3 + $0x20] sm:$0xff] }
  0x8f   : > { %7983 = vmatpush1.bf16.msra.mxu0 %v9511_v7  ;;  %8209 = vmatpush1.bf16.msra.mxu1 %v9512_v8  ;;  %v457_v7 = vsel %vm447_vm4, %v443_v63, 1326507024  ;;  %v848_v8 = vshll.u32 %v15831_v33, %v10345_v27  ;;  %v451_v13 = vsel %vm445_vm3, %v448_v1, %v450_v5  ;;  %v858_v36 = vshrl.u32 %v15838_v51, %v843_v60 }
  0x90   : > { %7984 = vmatprep.subr.bf16.mxu0 %v9513_v14  ;;  %8210 = vmatprep.subr.bf16.mxu1 %v9515_v15  ;;  %v458_v10 = vsel %vm446_vm5, %v440_v61, %v457_v7  ;;  %v455_v14 = vsel %vm445_vm3, %v452_v3, %v454_v9  ;;  %v847_v23 = vor.u32 %v846_v12, %v845_v0  ;;  %v320_v5 = vsel %vm319_vm11, %v10355_v43, 0 }
  0x91   : > { %v459_v15 = vsel %vm445_vm3, %v456_v4, %v458_v10  ;;  %v856_v42 = vor.u32 %v855_v32, %v854_v30  ;;  %v859_v44 = vor.u32 %v858_v36, %v857_v34  ;;  %v322_v7 = vand.u32 31, %v320_v5 }
  0x92   : > { %v10440_v9 = vmul.f32 %v184_v2, %v184_v2  ;;  %vm10491_vm5 = vcmp.le.f32.partialorder %v828_v57, 0.7853982 }
  0x93   : > { %7985 = vmatpush1.bf16.msra.mxu0 %v9517_v16  ;;  %8211 = vmatpush1.bf16.msra.mxu1 %v9518_v17  ;;  %v849_v16 = vshrl.u32 %v15833_v35, %v843_v60  ;;  %v10393_v17 = vmul.u32.u64.low %v10341_v25, %v459_v15  ;;  %v10394_v18 = vmul.u32.u64.high %v10341_v25, %v459_v15, %v10393_v17  ;;  %v869_v47 = vsel %vm863_vm10, %v856_v42, 920167782 }
  0x94   : > { %7986 = vmatprep.subr.bf16.mxu0 %v9519_v21  ;;  %8212 = vmatprep.subr.bf16.mxu1 %v9521_v29  ;;  %v10397_v20 = vmul.u32.u64.low %v10341_v25, %v455_v14  ;;  %v10398_v21 = vmul.u32.u64.high %v10341_v25, %v455_v14, %v10397_v20  ;;  %v851_v29 = vshll.u32 %v15833_v35, %v10345_v27  ;;  %v864_v27 = vsel %vm860_vm6, %v844_v11, %v847_v23 }
  0x95   : > { %v850_v24 = vor.u32 %v849_v16, %v848_v8  ;;  %v873_v56 = vsel %vm863_vm10, %v859_v44, 1326507024  ;;  %v323_v12 = vsub.s32 32, %v322_v7  ;;  %v316_v15 = vor.u32 8388608, %v315_v26 }
  0x96   : > { %vm469_vm8 = vc.u32 %v10394_v18, %v10397_v20  ;;  %v470_v40 = vadd.s32 1, %v10398_v21  ;;  %v874_v60 = vsel %vm862_vm9, %v856_v42, %v873_v56  ;;  %v727_v16 = vand.u32 2139095040, %v10440_v9 }
  0x97   : > { %7987 = vmatpush1.bf16.msra.mxu0 %v9523_v37  ;;  %8213 = vmatpush1.bf16.msra.mxu1 %v9524_v38  ;;  %v467_v37 = vmul.u32 %v10341_v25, %v451_v13  ;;  %v853_v38 = vor.u32 %v852_v22, %v851_v29  ;;  %v868_v45 = vsel %vm860_vm6, %v847_v23, %v850_v24 }
  0x98   : > { %8069 = vmatprep.subr.bf16.mxu0 %v9527_v48  ;;  %8295 = vmatprep.subr.bf16.mxu1 %v9530_v55  ;;  %v471_v25 = vsel %vm469_vm8, %v470_v40, %v10398_v21  ;;  %v10454_v21 = vshrl.u32 %v320_v5, 5  ;;  %v325_v23 = vshll.u32 %v15844_v31, %v322_v7  ;;  %v326_v22 = vshrl.u32 %v15831_v33, %v323_v12 }
  0x99   : > { %v865_v46 = vsel %vm863_vm10, %v853_v38, 2102212464  ;;  %v872_v48 = vsel %vm860_vm6, %v850_v24, %v853_v38  ;;  %v472_v49 = vadd.s32 %v471_v25, %v467_v37  ;;  %v870_v55 = vsel %vm862_vm9, %v853_v38, %v869_v47 }
  0x9a   : > { %v866_v52 = vsel %vm862_vm9, %v850_v24, %v865_v46  ;;  %v871_v59 = vsel %vm861_vm7, %v868_v45, %v870_v55  ;;  %v875_v63 = vsel %vm861_vm7, %v872_v48, %v874_v60  ;;  %v328_v24 = vshll.u32 %v15831_v33, %v322_v7 }
  0x9b   : > { %v867_v58 = vsel %vm861_vm7, %v864_v27, %v866_v52  ;;  %v473_v61 = vadd.s32 536870912, %v472_v49  ;;  %v10427_v0 = vmul.u32.u64.low %v10347_v28, %v871_v59  ;;  %v10428_v1 = vmul.u32.u64.high %v10347_v28, %v871_v59, %v10427_v0 }
  0x9c   : > { %v10433_v3 = vmul.u32.u64.low %v10347_v28, %v875_v63  ;;  %v10434_v4 = vmul.u32.u64.high %v10347_v28, %v875_v63, %v10433_v3  ;;  %v883_v8 = vmul.u32 %v10347_v28, %v867_v58  ;;  %v724_v28 = vand.u32 2147483647, %v10440_v9 }
  0x9d   : > { %v10437_v6 = vshrl.u32 %v473_v61, 30  ;;  %v886_v11 = vadd.s32 1, %v10428_v1  ;;  %v329_v30 = vshrl.u32 %v15833_v35, %v323_v12  ;;  %v331_v32 = vshll.u32 %v15833_v35, %v322_v7 }
  0x9e   : > { %vm885_vm12 = vc.u32 %v10434_v4, %v10427_v0  ;;  %v332_v36 = vshrl.u32 %v15835_v39, %v323_v12  ;;  %v334_v37 = vshll.u32 %v15835_v39, %v322_v7  ;;  %v335_v38 = vshrl.u32 %v15842_v41, %v323_v12 }
  0x9f   : > { %v475_v10 = vshll.u32 %v10437_v6, 30  ;;  %v887_v43 = vsel %vm885_vm12, %v886_v11, %v10428_v1  ;;  %v337_v42 = vshll.u32 %v15842_v41, %v322_v7  ;;  %v338_v44 = vshrl.u32 %v15838_v51, %v323_v12 }
  0xa0   : > { %v888_v14 = vadd.s32 %v887_v43, %v883_v8  ;;  %v10467_v27 = vshll.u32 %v316_v15, 8  ;;  %v468_v45 = vadd.s32 %v10397_v20, %v10394_v18  ;;  %v498_v46 = vsub.s32 4, %v10437_v6 }
  0xa1   : > { %v10448_v13 = vsub.s32 %v472_v49, %v475_v10  ;;  %v728_v47 = vshrl.u32 %v727_v16, 23  ;;  %v324_v49 = vshrl.u32 %v15844_v31, %v323_v12  ;;  %v327_v52 = vor.u32 %v326_v22, %v325_v23 }
  0xa2   : > { %v889_v29 = vadd.s32 536870912, %v888_v14  ;;  %v330_v55 = vor.u32 %v329_v30, %v328_v24  ;;  %v333_v58 = vor.u32 %v332_v36, %v331_v32  ;;  %v336_v59 = vor.u32 %v335_v38, %v334_v37 }
  0xa3   : > { %v478_v17 = vsub.s32 0, %v10448_v13  ;;  %vm340_vm15 = vcmp.lt.s32.totalorder %v10454_v21, 1  ;;  %v339_v18 = vor.u32 %v338_v44, %v337_v42  ;;  %vm343_vm0 = vcmp.lt.s32.totalorder %v10454_v21, 4 }
  0xa4   : > { %v890_v40 = vshrl.u32 %v889_v29, 30  ;;  %vm341_vm3 = vcmp.lt.s32.totalorder %v10454_v21, 2  ;;  %vm342_vm4 = vcmp.lt.s32.totalorder %v10454_v21, 3  ;;  %v345_v63 = vsel %vm343_vm0, %v333_v58, 2102212464 }
  0xa5   : > { %v8587_v34 = vmin.u32 %v478_v17, %v10448_v13  ;;  %v344_v3 = vsel %vm340_vm15, %v324_v49, %v327_v52  ;;  %v348_v5 = vsel %vm340_vm15, %v327_v52, %v330_v55  ;;  %v349_v10 = vsel %vm343_vm0, %v336_v59, 920167782 }
  0xa6   : > { %v891_v48 = vshll.u32 %v890_v40, 30  ;;  %v914_v61 = vsub.s32 4, %v890_v40  ;;  %v346_v11 = vsel %vm342_vm4, %v330_v55, %v345_v63  ;;  %v350_v12 = vsel %vm342_vm4, %v333_v58, %v349_v10 }
  0xa7   : > { %v480_v25 = vclz %v8587_v34  ;;  %v352_v43 = vsel %vm340_vm15, %v330_v55, %v333_v58  ;;  %v353_v16 = vsel %vm343_vm0, %v339_v18, 1326507024  ;;  %v499_v17 = vsel %vm414_vm13, %v498_v46, %v10437_v6 }
  0xa8   : > { %v10476_v60 = vsub.s32 %v888_v14, %v891_v48  ;;  %v915_v24 = vsel %vm830_vm14, %v914_v61, %v890_v40  ;;  %v8598_v29 = vadd.s32 4294967169, %v728_v47  ;;  %v347_v32 = vsel %vm341_vm3, %v344_v3, %v346_v11 }
  0xa9   : > { %v8588_v56 = vadd.s32 4294967294, %v480_v25  ;;  %v354_v34 = vsel %vm342_vm4, %v336_v59, %v353_v16  ;;  %v501_v25 = vsel %vm10481_vm1, 0, %v499_v17  ;;  %v884_v46 = vadd.s32 %v10427_v0, %v10434_v4 }
  0xaa   : > { %v894_v54 = vsub.s32 0, %v10476_v60  ;;  %v355_v37 = vsel %vm341_vm3, %v352_v43, %v354_v34  ;;  %v734_v21 = vadd.s32 1, %v8598_v29  ;;  %v917_v49 = vsel %vm10491_vm5, 0, %v915_v24 }
  0xab   : > { %vm8589_vm2 = vcmp.lt.s32.totalorder %v8588_v56, 0  ;;  %v363_v52 = vmul.u32 %v10467_v27, %v347_v32  ;;  %v505_v18 = vadd.s32 3, %v501_v25  ;;  %vm504_vm12 = vweird.f32 %v10322_v50 }
  0xac   : > { %v483_v1 = vsel %vm8589_vm2, 0, %v8588_v56  ;;  %v8603_v57 = vmin.u32 %v894_v54, %v10476_v60  ;;  %vm735_vm8 = vcmp.gt.s32.totalorder %v734_v21, 0 }
  0xad   : > { %v484_v7 = vsub.s32 32, %v483_v1  ;;  %v485_v8 = vshll.u32 %v10448_v13, %v483_v1  ;;  %v488_v26 = vsub.s32 4294967266, %v483_v1  ;;  %v351_v13 = vsel %vm341_vm3, %v348_v5, %v350_v12 }
  0xae   : > { %v896_v23 = vclz %v8603_v57  ;;  %v10526_v38 = vmul.u32.u64.low %v10467_v27, %v351_v13  ;;  %v10527_v6 = vmul.u32.u64.high %v10467_v27, %v351_v13, %v10526_v38  ;;  %v736_v1 = vsel %vm735_vm8, %v734_v21, 0 }
  0xaf   : > { %v486_v14 = vshrl.u32 %v468_v45, %v484_v7  ;;  %v489_v15 = vadd.s32 127, %v488_v26  ;;  %v10531_v44 = vmul.u32.u64.low %v10467_v27, %v355_v37  ;;  %v10532_v45 = vmul.u32.u64.high %v10467_v27, %v355_v37, %v10531_v44  ;;  %v189_v7 = vld [vmem:[%s10310_s3 + $0x48] sm:$0xff] }
  0xb0   : > { %v8604_v36 = vadd.s32 4294967294, %v896_v23  ;;  %v366_v59 = vadd.s32 1, %v10527_v6  ;;  %v921_v27 = vadd.s32 3, %v917_v49  ;;  %v738_v5 = vand.u32 31, %v736_v1 }
  0xb1   : > { %v487_v22 = vor.u32 %v486_v14, %v485_v8  ;;  %v490_v30 = vshll.u32 %v489_v15, 23  ;;  %vm365_vm7 = vc.u32 %v10532_v45, %v10526_v38  ;;  %v731_v26 = vand.u32 8388607, %v724_v28 }
  0xb2   : > { %vm8605_vm6 = vcmp.lt.s32.totalorder %v8604_v36, 0  ;;  %v367_v63 = vsel %vm365_vm7, %v366_v59, %v10527_v6  ;;  %v10551_v57 = vand.u32 3, %v505_v18  ;;  %v739_v12 = vsub.s32 32, %v738_v5 }
  0xb3   : > { %v491_v42 = vor.u32 4788187, %v490_v30  ;;  %v494_v40 = vcvt.s32.f32 %v487_v22  ;;  %v899_v48 = vsel %vm8605_vm6, 0, %v8604_v36  ;;  %v368_v3 = vadd.s32 %v367_v63, %v363_v52 }
  0xb4   : > { %v900_v55 = vsub.s32 32, %v899_v48  ;;  %v901_v56 = vshll.u32 %v10476_v60, %v899_v48  ;;  %v904_v58 = vsub.s32 4294967266, %v899_v48  ;;  %v10556_v13 = vmul.f32 %v189_v7, %v189_v7 }
  0xb5   : > { %v492_v47 = vand.u32 2147483647, %v491_v42  ;;  %v369_v11 = vadd.s32 536870912, %v368_v3  ;;  %v10558_v16 = vand.u32 3, %v921_v27  ;;  %v10562_v23 = vshrl.u32 %v736_v1, 5 }
  0xb6   : > { %v902_v0 = vshrl.u32 %v884_v46, %v900_v55  ;;  %v905_v4 = vadd.s32 127, %v904_v58  ;;  %v741_v29 = vshll.u32 %v15844_v31, %v738_v5  ;;  %v744_v22 = vshll.u32 %v15831_v33, %v738_v5 }
  0xb7   : > { %v495_v61 = vmul.f32 %v494_v40, %v492_v47  ;;  %v10560_v17 = vshrl.u32 %v369_v11, 30  ;;  %vm511_vm9 = vcmp.eq.s32.totalorder %v10551_v57, 2  ;;  %v742_v30 = vshrl.u32 %v15831_v33, %v739_v12 }
  0xb8   : > { %v903_v60 = vor.u32 %v902_v0, %v901_v56  ;;  %v906_v8 = vshll.u32 %v905_v4, 23  ;;  %v745_v32 = vshrl.u32 %v15833_v35, %v739_v12  ;;  %v747_v34 = vshll.u32 %v15833_v35, %v738_v5 }
  0xb9   : > { %v496_v54 = vxor.u32 2147483648, %v495_v61  ;;  %v371_v20 = vshll.u32 %v10560_v17, 30  ;;  %vm508_vm10 = vcmp.eq.s32.totalorder %v10551_v57, 0  ;;  %v748_v37 = vshrl.u32 %v15835_v39, %v739_v12 }
  0xba   : > { %v907_v14 = vor.u32 4788187, %v906_v8  ;;  %v910_v15 = vcvt.s32.f32 %v903_v60  ;;  %v750_v6 = vshll.u32 %v15835_v39, %v738_v5  ;;  %v751_v42 = vshrl.u32 %v15842_v41, %v739_v12 }
  0xbb   : > { %v497_v10 = vsel %vm414_vm13, %v496_v54, %v495_v61  ;;  %vm507_vm11 = vcmp.lt.s32.totalorder %v10551_v57, 2  ;;  %v10576_v40 = vsub.s32 %v368_v3, %v371_v20  ;;  %v732_v44 = vor.u32 8388608, %v731_v26 }
  0xbc   : > { %v500_v43 = vsel %vm10481_vm1, %v10322_v50, %v497_v10  ;;  %v908_v24 = vand.u32 2147483647, %v907_v14  ;;  %v753_v25 = vshll.u32 %v15842_v41, %v738_v5  ;;  %v1244_v46 = vand.u32 2147483647, %v10556_v13 }
  0xbd   : > { %9621 = vcosq.f32 %v500_v43  ;;  %v752_v47 = vor.u32 %v751_v42, %v750_v6  ;;  %v754_v48 = vshrl.u32 %v15838_v51, %v739_v12  ;;  %v1247_v49 = vand.u32 2139095040, %v10556_v13 }
  0xbe   : > { %9623 = vsinq.f32 %v500_v43  ;;  %v911_v36 = vmul.f32 %v910_v15, %v908_v24  ;;  %v364_v52 = vadd.s32 %v10526_v38, %v10532_v45  ;;  %v374_v55 = vsub.s32 0, %v10576_v40 }
  0xbf   : > { %v740_v56 = vshrl.u32 %v15844_v31, %v739_v12  ;;  %v743_v58 = vor.u32 %v742_v30, %v741_v29  ;;  %v746_v61 = vor.u32 %v745_v32, %v744_v22  ;;  %v749_v18 = vor.u32 %v748_v37, %v747_v34 }
  0xc0   : > { %v912_v21 = vxor.u32 2147483648, %v911_v36  ;;  %vm759_vm13 = vcmp.lt.s32.totalorder %v10562_v23, 4  ;;  %v8583_v4 = vmin.u32 %v374_v55, %v10576_v40  ;;  %v755_v63 = vor.u32 %v754_v48, %v753_v25 }
  0xc1   : > { %vm756_vm15 = vcmp.lt.s32.totalorder %v10562_v23, 1  ;;  %vm758_vm0 = vcmp.lt.s32.totalorder %v10562_v23, 3  ;;  %v761_v38 = vsel %vm759_vm13, %v749_v18, 2102212464  ;;  %v765_v45 = vsel %vm759_vm13, %v752_v47, 920167782 }
  0xc2   : > { %v913_v59 = vsel %vm830_vm14, %v912_v21, %v911_v36  ;;  %vm310_vm14 = vcmp.lt.s32.totalorder %v10331_v62, 0  ;;  %v376_v2 = vclz %v8583_v4  ;;  %v760_v54 = vsel %vm756_vm15, %v740_v56, %v743_v58 }
  0xc3   : > { %v916_v0 = vsel %vm10491_vm5, %v10324_v53, %v913_v59  ;;  %v10603_v27 = vshll.u32 %v732_v44, 8  ;;  %v394_v7 = vsub.s32 4, %v10560_v17  ;;  %vm757_vm1 = vcmp.lt.s32.totalorder %v10562_v23, 2 }
  0xc4   : > { %9625 = vcosq.f32 %v916_v0  ;;  %v762_v60 = vsel %vm758_vm0, %v746_v61, %v761_v38  ;;  %v8584_v26 = vadd.s32 4294967294, %v376_v2  ;;  %v764_v10 = vsel %vm756_vm15, %v743_v58, %v746_v61 }
  0xc5   : > { %9627 = vsinq.f32 %v916_v0  ;;  %v766_v11 = vsel %vm758_vm0, %v749_v18, %v765_v45  ;;  %vm923_vm2 = vcmp.lt.s32.totalorder %v10558_v16, 2  ;;  %v763_v43 = vsel %vm757_vm1, %v760_v54, %v762_v60 }
  0xc6   : > { %v768_v14 = vsel %vm756_vm15, %v746_v61, %v749_v18  ;;  %v769_v15 = vsel %vm759_vm13, %v755_v63, 1326507024  ;;  %vm920_vm3 = vweird.f32 %v10324_v53  ;;  %vm8585_vm4 = vcmp.lt.s32.totalorder %v8584_v26, 0 }
  0xc7   : > { %v9622_v1 = vpop.eup %9621  ;;  %v770_v29 = vsel %vm758_vm0, %v752_v47, %v769_v15  ;;  %v1248_v22 = vshrl.u32 %v1247_v49, 23  ;;  %v379_v30 = vsel %vm8585_vm4, 0, %v8584_v26  ;;  %v767_v32 = vsel %vm757_vm1, %v764_v10, %v766_v11 }
  0xc8   : > { %v9624_v3 = vpop.eup %9623  ;;  %v512_v5 = vxor.u32 2147483648, %v9622_v1  ;;  %v771_v34 = vsel %vm757_vm1, %v768_v14, %v770_v29  ;;  %v380_v37 = vsub.s32 32, %v379_v30  ;;  %v381_v6 = vshll.u32 %v10576_v40, %v379_v30  ;;  %v193_v29 = vld [vmem:[%s10310_s3 + $0x68] sm:$0xff] }
  0xc9   : > { %v509_v8 = vxor.u32 2147483648, %v9624_v3  ;;  %v384_v42 = vsub.s32 4294967266, %v379_v30  ;;  %v10637_v25 = vmul.u32.u64.low %v10603_v27, %v771_v34  ;;  %v10638_v21 = vmul.u32.u64.high %v10603_v27, %v771_v34, %v10637_v25 }
  0xca   : > { %v513_v12 = vsel %vm511_vm9, %v512_v5, %v9624_v3  ;;  %v8618_v57 = vadd.s32 4294967169, %v1248_v22  ;;  %v382_v47 = vshrl.u32 %v364_v52, %v380_v37  ;;  %vm924_vm5 = vcmp.eq.s32.totalorder %v10558_v16, 0 }
  0xcb   : > { %v510_v24 = vsel %vm508_vm10, %v9622_v1, %v509_v8  ;;  %v385_v48 = vadd.s32 127, %v384_v42  ;;  %v10641_v49 = vmul.u32.u64.low %v10603_v27, %v767_v32  ;;  %v10642_v55 = vmul.u32.u64.high %v10603_v27, %v767_v32, %v10641_v49 }
  0xcc   : > { %v514_v20 = vsel %vm507_vm11, %v510_v24, %v513_v12  ;;  %vm927_vm6 = vcmp.eq.s32.totalorder %v10558_v16, 2  ;;  %v395_v50 = vsel %vm310_vm14, %v394_v7, %v10560_v17  ;;  %v1254_v40 = vadd.s32 1, %v8618_v57 }
  0xcd   : > { %v515_v36 = vsel %vm504_vm12, nan, %v514_v20  ;;  %v383_v59 = vor.u32 %v382_v47, %v381_v6  ;;  %v386_v52 = vshll.u32 %v385_v48, 23  ;;  %v779_v61 = vmul.u32 %v10603_v27, %v763_v43 }
  0xce   : > { %v6965_v44 = vadd.f32 1.0, %v515_v36  ;;  %v9626_v23 = vpop.eup %9625  ;;  %vm781_vm7 = vc.u32 %v10638_v21, %v10641_v49  ;;  %v1251_v4 = vand.u32 8388607, %v1244_v46  ;;  %v782_v17 = vadd.s32 1, %v10642_v55 }
  0xcf   : > { %v9628_v56 = vpop.eup %9627  ;;  %v928_v58 = vxor.u32 2147483648, %v9626_v23  ;;  %v387_v38 = vor.u32 4788187, %v386_v52  ;;  %v390_v45 = vcvt.s32.f32 %v383_v59  ;;  %vm10660_vm8 = vcmp.le.f32.partialorder %v308_v19, 0.7853982 }
  0xd0   : > { %v925_v18 = vxor.u32 2147483648, %v9628_v56  ;;  %v7030_v0 = vmul.f32 1.442695, %v6965_v44  ;;  %vm1255_vm9 = vcmp.gt.s32.totalorder %v1254_v40, 0  ;;  %v783_v3 = vsel %vm781_vm7, %v782_v17, %v10642_v55 }
  0xd1   : > { %v929_v63 = vsel %vm927_vm6, %v928_v58, %v9628_v56  ;;  %v388_v27 = vand.u32 2147483647, %v387_v38  ;;  %v1256_v5 = vsel %vm1255_vm9, %v1254_v40, 0  ;;  %v397_v60 = vsel %vm10660_vm8, 0, %v395_v50 }
  0xd2   : > { %v926_v1 = vsel %vm924_vm5, %v9626_v23, %v925_v18  ;;  %v784_v8 = vadd.s32 %v783_v3, %v779_v61  ;;  %v1258_v19 = vand.u32 31, %v1256_v5  ;;  %9629 = vpow2.f32 %v7030_v0 }
  0xd3   : > { %v930_v54 = vsel %vm923_vm2, %v926_v1, %v929_v63  ;;  %v391_v10 = vmul.f32 %v390_v45, %v388_v27  ;;  %v1252_v11 = vor.u32 8388608, %v1251_v4  ;;  %v1257_v16 = vshrl.u32 %v1256_v5, 5 }
  0xd4   : > { %v931_v7 = vsel %vm920_vm3, nan, %v930_v54  ;;  %v785_v12 = vadd.s32 536870912, %v784_v8  ;;  %v1259_v43 = vsub.s32 32, %v1258_v19  ;;  %v1261_v14 = vshll.u32 %v15844_v31, %v1258_v19 }
  0xd5   : > { %v6969_v26 = vadd.f32 1.0, %v931_v7  ;;  %v392_v24 = vxor.u32 2147483648, %v391_v10  ;;  %v1264_v53 = vshll.u32 %v15831_v33, %v1258_v19  ;;  %v1267_v22 = vshll.u32 %v15833_v35, %v1258_v19 }
  0xd6   : > { %v786_v20 = vshrl.u32 %v785_v12, 30  ;;  %v1262_v30 = vshrl.u32 %v15831_v33, %v1259_v43  ;;  %v1265_v32 = vshrl.u32 %v15833_v35, %v1259_v43  ;;  %v1270_v34 = vshll.u32 %v15835_v39, %v1258_v19 }
  0xd7   : > { %v7038_v15 = vmul.f32 1.442695, %v6969_v26  ;;  %v393_v36 = vsel %vm310_vm14, %v392_v24, %v391_v10  ;;  %v1268_v37 = vshrl.u32 %v15835_v39, %v1259_v43  ;;  %v1271_v6 = vshrl.u32 %v15842_v41, %v1259_v43 }
  0xd8   : > { %v396_v42 = vsel %vm10660_vm8, %v10331_v62, %v393_v36  ;;  %v401_v44 = vadd.s32 3, %v397_v60  ;;  %v787_v25 = vshll.u32 %v786_v20, 30  ;;  %v10685_v57 = vmul.f32 %v193_v29, %v193_v29 }
  0xd9   : > { %9631 = vpow2.f32 %v7038_v15  ;;  %v1260_v47 = vshrl.u32 %v15844_v31, %v1259_v43  ;;  %v1263_v48 = vor.u32 %v1262_v30, %v1261_v14  ;;  %v1266_v55 = vor.u32 %v1265_v32, %v1264_v53 }
  0xda   : > { %9633 = vcosq.f32 %v396_v42  ;;  %v10688_v23 = vsub.s32 %v784_v8, %v787_v25  ;;  %v1272_v50 = vor.u32 %v1271_v6, %v1270_v34  ;;  %v1273_v40 = vshll.u32 %v15842_v41, %v1258_v19 }
  0xdb   : > { %9635 = vsinq.f32 %v396_v42  ;;  %v1269_v56 = vor.u32 %v1268_v37, %v1267_v22  ;;  %v1274_v58 = vshrl.u32 %v15838_v51, %v1259_v43  ;;  %vm1276_vm10 = vcmp.lt.s32.totalorder %v1257_v16, 1 }
  0xdc   : > { %v10692_v59 = vshll.u32 %v1252_v11, 8  ;;  %v790_v52 = vsub.s32 0, %v10688_v23  ;;  %vm1278_vm11 = vcmp.lt.s32.totalorder %v1257_v16, 3  ;;  %vm1279_vm12 = vcmp.lt.s32.totalorder %v1257_v16, 4  ;;  %v9630_v18 = vpop.eup %9629 }
  0xdd   : > { %v1663_v61 = vand.u32 2139095040, %v10685_v57  ;;  %v810_v0 = vsub.s32 4, %v786_v20  ;;  %v1275_v4 = vor.u32 %v1274_v58, %v1273_v40  ;;  %vm1277_vm13 = vcmp.lt.s32.totalorder %v1257_v16, 2 }
  0xde   : > { %v1281_v63 = vsel %vm1279_vm12, %v1269_v56, 2102212464  ;;  %v8599_v38 = vmin.u32 %v790_v52, %v10688_v23  ;;  %v1280_v45 = vsel %vm1276_vm10, %v1260_v47, %v1263_v48  ;;  %v1284_v17 = vsel %vm1276_vm10, %v1263_v48, %v1266_v55 }
  0xdf   : > { %v1285_v1 = vsel %vm1279_vm12, %v1272_v50, 920167782  ;;  %v1282_v2 = vsel %vm1278_vm11, %v1266_v55, %v1281_v63  ;;  %v1288_v27 = vsel %vm1276_vm10, %v1266_v55, %v1269_v56  ;;  %v1289_v3 = vsel %vm1279_vm12, %v1275_v4, 1326507024 }
  0xe0   : > { %v1286_v54 = vsel %vm1278_vm11, %v1269_v56, %v1285_v1  ;;  %v402_v5 = vand.u32 3, %v401_v44  ;;  %vm726_vm15 = vcmp.lt.s32.totalorder %v10440_v9, 0  ;;  %v792_v7 = vclz %v8599_v38 }
  0xe1   : > { %v811_v8 = vsel %vm726_vm15, %v810_v0, %v786_v20  ;;  %v1287_v19 = vsel %vm1277_vm13, %v1284_v17, %v1286_v54  ;;  %v1290_v26 = vsel %vm1278_vm11, %v1272_v50, %v1289_v3  ;;  %v1664_v10 = vshrl.u32 %v1663_v61, 23  ;;  %v188_v50 = vld [vmem:[%s10310_s3 + $0x40] sm:$0xff] }
  0xe2   : > { %v8600_v12 = vadd.s32 4294967294, %v792_v7  ;;  %v1283_v43 = vsel %vm1277_vm13, %v1280_v45, %v1282_v2  ;;  %v1291_v14 = vsel %vm1277_vm13, %v1288_v27, %v1290_v26  ;;  %vm10719_vm0 = vcmp.le.f32.partialorder %v724_v28, 0.7853982 }
  0xe3   : > { %v9632_v60 = vpop.eup %9631  ;;  %v10710_v24 = vmul.u32.u64.low %v10692_v59, %v1291_v14  ;;  %v10711_v29 = vmul.u32.u64.high %v10692_v59, %v1291_v14, %v10710_v24  ;;  %v10714_v53 = vmul.u32.u64.low %v10692_v59, %v1287_v19  ;;  %v10715_v22 = vmul.u32.u64.high %v10692_v59, %v1287_v19, %v10714_v53 }
  0xe4   : > { %v7157_v11 = vpack.c.bf16 %v9632_v60, %v9630_v18  ;;  %v9634_v15 = vpop.eup %9633  ;;  %v780_v16 = vadd.s32 %v10641_v49, %v10638_v21  ;;  %vm8601_vm14 = vcmp.lt.s32.totalorder %v8600_v12, 0  ;;  %v8634_v32 = vadd.s32 4294967169, %v1664_v10 }
  0xe5   : > { %v9636_v20 = vpop.eup %9635  ;;  %vm404_vm1 = vcmp.eq.s32.totalorder %v402_v5, 0  ;;  %vm407_vm2 = vcmp.eq.s32.totalorder %v402_v5, 2  ;;  %v795_v34 = vsel %vm8601_vm14, 0, %v8600_v12  ;;  %v813_v36 = vsel %vm10719_vm0, 0, %v811_v8 }
  0xe6   : > { %7988 = vmatprep.mubr.bf16.mxu0 %v7157_v11  ;;  %8214 = vmatprep.mubr.bf16.mxu1 %v7157_v11  ;;  %v796_v37 = vsub.s32 32, %v795_v34  ;;  %v797_v6 = vshll.u32 %v10688_v23, %v795_v34  ;;  %v800_v42 = vsub.s32 4294967266, %v795_v34  ;;  %v1299_v28 = vmul.u32 %v10692_v59, %v1283_v43 }
  0xe7   : > { %v405_v44 = vxor.u32 2147483648, %v9636_v20  ;;  %v408_v25 = vxor.u32 2147483648, %v9634_v15  ;;  %vm1301_vm3 = vc.u32 %v10711_v29, %v10714_v53  ;;  %v1302_v21 = vadd.s32 1, %v10715_v22 }
  0xe8   : > { %v798_v49 = vshrl.u32 %v780_v16, %v796_v37  ;;  %v801_v47 = vadd.s32 127, %v800_v42  ;;  %v1660_v48 = vand.u32 2147483647, %v10685_v57  ;;  %v1670_v55 = vadd.s32 1, %v8634_v32 }
  0xe9   : > { %vm403_vm4 = vcmp.lt.s32.totalorder %v402_v5, 2  ;;  %v1303_v40 = vsel %vm1301_vm3, %v1302_v21, %v10715_v22  ;;  %v817_v58 = vadd.s32 3, %v813_v36  ;;  %v406_v59 = vsel %vm404_vm1, %v9634_v15, %v405_v44 }
  0xea   : > { %v799_v56 = vor.u32 %v798_v49, %v797_v6  ;;  %v802_v23 = vshll.u32 %v801_v47, 23  ;;  %v1304_v52 = vadd.s32 %v1303_v40, %v1299_v28  ;;  %v409_v61 = vsel %vm407_vm2, %v408_v25, %v9636_v20 }
  0xeb   : > { %vm1671_vm5 = vcmp.gt.s32.totalorder %v1670_v55, 0  ;;  %v10736_v18 = vmul.f32 %v188_v50, %v188_v50  ;;  %v1667_v38 = vand.u32 8388607, %v1660_v48  ;;  %vm400_vm6 = vweird.f32 %v10331_v62 }
  0xec   : > { %v803_v0 = vor.u32 4788187, %v802_v23  ;;  %v806_v4 = vcvt.s32.f32 %v799_v56  ;;  %v1305_v63 = vadd.s32 536870912, %v1304_v52  ;;  %v1672_v45 = vsel %vm1671_vm5, %v1670_v55, 0 }
  0xed   : > { %v410_v17 = vsel %vm403_vm4, %v406_v59, %v409_v61  ;;  %v10744_v54 = vand.u32 3, %v817_v58  ;;  %v1674_v27 = vand.u32 31, %v1672_v45  ;;  %v1143_v3 = vand.u32 2139095040, %v10736_v18 }
  0xee   : > { %v804_v1 = vand.u32 2147483647, %v803_v0  ;;  %v10742_v2 = vshrl.u32 %v1305_v63, 30  ;;  %v1668_v8 = vor.u32 8388608, %v1667_v38  ;;  %v1673_v19 = vshrl.u32 %v1672_v45, 5 }
  0xef   : > { %v411_v26 = vsel %vm400_vm6, nan, %v410_v17  ;;  %v10749_v10 = vadd.s32 %v10714_v53, %v10711_v29  ;;  %v1675_v62 = vsub.s32 32, %v1674_v27  ;;  %v1677_v5 = vshll.u32 %v15844_v31, %v1674_v27 }
  0xf0   : > { %v807_v7 = vmul.f32 %v806_v4, %v804_v1  ;;  %v1307_v60 = vshll.u32 %v10742_v2, 30  ;;  %v1680_v43 = vshll.u32 %v15831_v33, %v1674_v27  ;;  %v1683_v14 = vshll.u32 %v15833_v35, %v1674_v27 }
  0xf1   : > { %v1678_v15 = vshrl.u32 %v15831_v33, %v1675_v62  ;;  %v1681_v24 = vshrl.u32 %v15833_v35, %v1675_v62  ;;  %v1686_v22 = vshll.u32 %v15835_v39, %v1674_v27  ;;  %v1144_v20 = vshrl.u32 %v1143_v3, 23  ;;  %v192_v3 = vld [vmem:[%s10310_s3 + $0x60] sm:$0xff] }
  0xf2   : > { %v808_v11 = vxor.u32 2147483648, %v807_v7  ;;  %v10752_v12 = vsub.s32 %v1304_v52, %v1307_v60  ;;  %v1684_v16 = vshrl.u32 %v15835_v39, %v1675_v62  ;;  %vm1692_vm7 = vcmp.lt.s32.totalorder %v1673_v19, 1 }
  0xf3   : > { %v1676_v34 = vshrl.u32 %v15844_v31, %v1675_v62  ;;  %v1679_v36 = vor.u32 %v1678_v15, %v1677_v5  ;;  %v1687_v37 = vshrl.u32 %v15842_v41, %v1675_v62  ;;  %v1682_v42 = vor.u32 %v1681_v24, %v1680_v43 }
  0xf4   : > { %v809_v29 = vsel %vm726_vm15, %v808_v11, %v807_v7  ;;  %v1310_v53 = vsub.s32 0, %v10752_v12  ;;  %v1685_v28 = vor.u32 %v1684_v16, %v1683_v14  ;;  %v1689_v25 = vshll.u32 %v15842_v41, %v1674_v27 }
  0xf5   : > { %v812_v32 = vsel %vm10719_vm0, %v10440_v9, %v809_v29  ;;  %v1688_v44 = vor.u32 %v1687_v37, %v1686_v22  ;;  %v1690_v21 = vshrl.u32 %v15838_v51, %v1675_v62  ;;  %vm823_vm8 = vcmp.eq.s32.totalorder %v10744_v54, 2 }
  0xf6   : > { %9637 = vcosq.f32 %v812_v32  ;;  %v8619_v6 = vmin.u32 %v1310_v53, %v10752_v12  ;;  %v6964_v30 = vadd.f32 1.0, %v411_v26  ;;  %v10772_v47 = vshll.u32 %v1668_v8, 8 }
  0xf7   : > { %9639 = vsinq.f32 %v812_v32  ;;  %v8614_v55 = vadd.s32 4294967169, %v1144_v20  ;;  %vm820_vm9 = vcmp.eq.s32.totalorder %v10744_v54, 0  ;;  %v1691_v50 = vor.u32 %v1690_v21, %v1689_v25 }
  0xf8   : > { %v1312_v49 = vclz %v8619_v6  ;;  %vm1693_vm10 = vcmp.lt.s32.totalorder %v1673_v19, 2  ;;  %vm1694_vm11 = vcmp.lt.s32.totalorder %v1673_v19, 3  ;;  %vm1695_vm12 = vcmp.lt.s32.totalorder %v1673_v19, 4 }
  0xf9   : > { %vm819_vm13 = vcmp.lt.s32.totalorder %v10744_v54, 2  ;;  %v1696_v56 = vsel %vm1692_vm7, %v1676_v34, %v1679_v36  ;;  %v1697_v23 = vsel %vm1695_vm12, %v1685_v28, 2102212464  ;;  %v1700_v58 = vsel %vm1692_vm7, %v1679_v36, %v1682_v42 }
  0xfa   : > { %v8620_v40 = vadd.s32 4294967294, %v1312_v49  ;;  %vm816_vm15 = vweird.f32 %v10440_v9  ;;  %v1698_v52 = vsel %vm1694_vm11, %v1682_v42, %v1697_v23  ;;  %v1701_v59 = vsel %vm1695_vm12, %v1688_v44, 920167782 }
  0xfb   : > { %v1704_v61 = vsel %vm1692_vm7, %v1682_v42, %v1685_v28  ;;  %v1705_v0 = vsel %vm1695_vm12, %v1691_v50, 1326507024  ;;  %vm1246_vm0 = vcmp.lt.s32.totalorder %v10556_v13, 0  ;;  %v1702_v4 = vsel %vm1694_vm11, %v1685_v28, %v1701_v59 }
  0xfc   : > { %vm8621_vm14 = vcmp.lt.s32.totalorder %v8620_v40, 0  ;;  %v1706_v63 = vsel %vm1694_vm11, %v1688_v44, %v1705_v0  ;;  %v1140_v38 = vand.u32 2147483647, %v10736_v18  ;;  %v1699_v17 = vsel %vm1693_vm10, %v1696_v56, %v1698_v52 }
  0xfd   : > { %v1315_v45 = vsel %vm8621_vm14, 0, %v8620_v40  ;;  %v1703_v1 = vsel %vm1693_vm10, %v1700_v58, %v1702_v4  ;;  %v1707_v27 = vsel %vm1693_vm10, %v1704_v61, %v1706_v63  ;;  %v1150_v26 = vadd.s32 1, %v8614_v55 }
  0xfe   : > { %v1316_v7 = vsub.s32 32, %v1315_v45  ;;  %v1317_v60 = vshll.u32 %v10752_v12, %v1315_v45  ;;  %v1320_v8 = vsub.s32 4294967266, %v1315_v45  ;;  %v10797_v24 = vmul.f32 %v192_v3, %v192_v3 }
  0xff   : > { %v10788_v62 = vmul.u32.u64.low %v10772_v47, %v1707_v27  ;;  %v10789_v5 = vmul.u32.u64.high %v10772_v47, %v1707_v27, %v10788_v62  ;;  %v10792_v11 = vmul.u32.u64.low %v10772_v47, %v1703_v1  ;;  %v10793_v43 = vmul.u32.u64.high %v10772_v47, %v1703_v1, %v10792_v11 }
 0x100   : > { %v9638_v14 = vpop.eup %9637  ;;  %v1318_v15 = vshrl.u32 %v10749_v10, %v1316_v7  ;;  %v1321_v19 = vadd.s32 127, %v1320_v8  ;;  %vm1151_vm1 = vcmp.gt.s32.totalorder %v1150_v26, 0  ;;  %v7028_v20 = vmul.f32 1.442695, %v6964_v30 }
 0x101   : > { %v9640_v22 = vpop.eup %9639  ;;  %v824_v12 = vxor.u32 2147483648, %v9638_v14  ;;  %v1330_v29 = vsub.s32 4, %v10742_v2  ;;  %v1152_v53 = vsel %vm1151_vm1, %v1150_v26, 0  ;;  %vm10802_vm2 = vcmp.le.f32.partialorder %v1244_v46, 0.7853982 }
 0x102   : > { %v821_v16 = vxor.u32 2147483648, %v9640_v22  ;;  %v1319_v34 = vor.u32 %v1318_v15, %v1317_v60  ;;  %v1322_v36 = vshll.u32 %v1321_v19, 23  ;;  %v1715_v10 = vmul.u32 %v10772_v47, %v1699_v17 }
 0x103   : > { %v825_v37 = vsel %vm823_vm8, %v824_v12, %v9640_v22  ;;  %vm1717_vm3 = vc.u32 %v10789_v5, %v10792_v11  ;;  %v1718_v6 = vadd.s32 1, %v10793_v43  ;;  %v1147_v42 = vand.u32 8388607, %v1140_v38 }
 0x104   : > { %v822_v46 = vsel %vm820_vm9, %v9638_v14, %v821_v16  ;;  %v1323_v28 = vor.u32 4788187, %v1322_v36  ;;  %v1326_v44 = vcvt.s32.f32 %v1319_v34  ;;  %v1154_v25 = vand.u32 31, %v1152_v53 }
 0x105   : > { %v826_v21 = vsel %vm819_vm13, %v822_v46, %v825_v37  ;;  %9641 = vpow2.f32 %v7028_v20  ;;  %v1331_v30 = vsel %vm1246_vm0, %v1330_v29, %v10742_v2  ;;  %v1719_v49 = vsel %vm1717_vm3, %v1718_v6, %v10793_v43 }
 0x106   : > { %v827_v47 = vsel %vm816_vm15, nan, %v826_v21  ;;  %v1324_v55 = vand.u32 2147483647, %v1323_v28  ;;  %v1720_v50 = vadd.s32 %v1719_v49, %v1715_v10  ;;  %v1155_v40 = vsub.s32 32, %v1154_v25 }
 0x107   : > { %v6968_v56 = vadd.f32 1.0, %v827_v47  ;;  %v10824_v23 = vshrl.u32 %v1152_v53, 5  ;;  %v1157_v58 = vshll.u32 %v15844_v31, %v1154_v25  ;;  %v1160_v54 = vshll.u32 %v15831_v33, %v1154_v25 }
 0x108   : > { %v1327_v52 = vmul.f32 %v1326_v44, %v1324_v55  ;;  %v1721_v59 = vadd.s32 536870912, %v1720_v50  ;;  %v1158_v61 = vshrl.u32 %v15831_v33, %v1155_v40  ;;  %v1163_v2 = vshll.u32 %v15833_v35, %v1154_v25 }
 0x109   : > { %v7036_v0 = vmul.f32 1.442695, %v6968_v56  ;;  %v1161_v9 = vshrl.u32 %v15833_v35, %v1155_v40  ;;  %v1164_v4 = vshrl.u32 %v15835_v39, %v1155_v40  ;;  %v1166_v63 = vshll.u32 %v15835_v39, %v1154_v25  ;;  %v9528_v56 = vld [vmem:[#allocation5 + $0x208] ss:$16 sps:$4 sm:$0xff]  }
 0x10a   : > { %v1328_v45 = vxor.u32 2147483648, %v1327_v52  ;;  %v1722_v17 = vshrl.u32 %v1721_v59, 30  ;;  %v1148_v1 = vor.u32 8388608, %v1147_v42  ;;  %v1167_v27 = vshrl.u32 %v15842_v41, %v1155_v40 }
 0x10b   : > { %9643 = vpow2.f32 %v7036_v0  ;;  %v1333_v3 = vsel %vm10802_vm2, 0, %v1331_v30  ;;  %vm1662_vm4 = vcmp.lt.s32.totalorder %v10685_v57, 0  ;;  %v1169_v7 = vshll.u32 %v15842_v41, %v1154_v25  ;;  %v9536_v0 = vld [vmem:[#allocation5 + $0x22c] ss:$16 sps:$4 sm:$0xff]  }
 0x10c   : > { %vm1172_vm5 = vcmp.lt.s32.totalorder %v10824_v23, 1  ;;  %v1329_v60 = vsel %vm1246_vm0, %v1328_v45, %v1327_v52  ;;  %v1723_v8 = vshll.u32 %v1722_v17, 30  ;;  %v1159_v26 = vor.u32 %v1158_v61, %v1157_v58 }
 0x10d   : > { %v1162_v62 = vor.u32 %v1161_v9, %v1160_v54  ;;  %v1332_v43 = vsel %vm10802_vm2, %v10556_v13, %v1329_v60  ;;  %v1165_v14 = vor.u32 %v1164_v4, %v1163_v2  ;;  %v1168_v15 = vor.u32 %v1167_v27, %v1166_v63  ;;  %v9533_v2 = vld [vmem:[#allocation5 + $0x224] ss:$16 sps:$4 sm:$0xff]  }
 0x10e   : > { %v1170_v19 = vshrl.u32 %v15838_v51, %v1155_v40  ;;  %v10845_v22 = vsub.s32 %v1720_v50, %v1723_v8  ;;  %v1156_v12 = vshrl.u32 %v15844_v31, %v1155_v40  ;;  %vm1173_vm6 = vcmp.lt.s32.totalorder %v10824_v23, 2  ;;  %v9525_v40 = vld [vmem:[#allocation5 + $0x200] ss:$16 sps:$4 sm:$0xff]  }
 0x10f   : > { %vm1175_vm7 = vcmp.lt.s32.totalorder %v10824_v23, 4  ;;  %v9642_v20 = vpop.eup %9641  ;;  %9645 = vcosq.f32 %v1332_v43  ;;  %v1746_v29 = vsub.s32 4, %v1722_v17  ;;  %vm1174_vm8 = vcmp.lt.s32.totalorder %v10824_v23, 3 }
 0x110   : > { %v1171_v53 = vor.u32 %v1170_v19, %v1169_v7  ;;  %9647 = vsinq.f32 %v1332_v43  ;;  %v1726_v16 = vsub.s32 0, %v10845_v22  ;;  %v1177_v32 = vsel %vm1175_vm7, %v1165_v14, 2102212464  ;;  %v9534_v7 = vld [vmem:[#allocation5 + $0x228] ss:$16 sps:$4 sm:$0xff]  }
 0x111   : > { %v1180_v34 = vsel %vm1172_vm5, %v1159_v26, %v1162_v62  ;;  %v1181_v36 = vsel %vm1175_vm7, %v1168_v15, 920167782  ;;  %v1184_v10 = vsel %vm1172_vm5, %v1162_v62, %v1165_v14  ;;  %v10856_v6 = vshll.u32 %v1148_v1, 8  ;;  %v9537_v19 = vld [vmem:[#allocation5 + $0x240] ss:$16 sps:$4 sm:$0xff]  }
 0x112   : > { %v1185_v37 = vsel %vm1175_vm7, %v1171_v53, 1326507024  ;;  %v1337_v42 = vadd.s32 3, %v1333_v3  ;;  %v8635_v46 = vmin.u32 %v1726_v16, %v10845_v22  ;;  %v1182_v28 = vsel %vm1174_vm8, %v1165_v14, %v1181_v36  ;;  %v9539_v14 = vld [vmem:[#allocation5 + $0x244] ss:$16 sps:$4 sm:$0xff]  }
 0x113   : > { %v1186_v44 = vsel %vm1174_vm8, %v1168_v15, %v1185_v37  ;;  %v1176_v25 = vsel %vm1172_vm5, %v1156_v12, %v1159_v26  ;;  %v1178_v21 = vsel %vm1174_vm8, %v1162_v62, %v1177_v32  ;;  %v1183_v30 = vsel %vm1173_vm6, %v1180_v34, %v1182_v28  ;;  %v9542_v15 = vld [vmem:[#allocation5 + $0x24c] ss:$16 sps:$4 sm:$0xff]   ;;  %v9540_v32 = vld [vmem:[#allocation5 + $0x248] ss:$16 sps:$4 sm:$0xff]   ;;  %v9545_v37 = vld [vmem:[#allocation5 + $0x264] ss:$16 sps:$4 sm:$0xff]  }
 0x114   : > { %v1187_v49 = vsel %vm1173_vm6, %v1184_v10, %v1186_v44  ;;  %v1728_v47 = vclz %v8635_v46  ;;  %v1747_v55 = vsel %vm1662_vm4, %v1746_v29, %v1722_v17  ;;  %v1179_v4 = vsel %vm1173_vm6, %v1176_v25, %v1178_v21  ;;  %v9531_v17 = vld [vmem:[#allocation5 + $0x220] ss:$16 sps:$4 sm:$0xff]   ;;  %v9548_v44 = vld [vmem:[#allocation5 + $0x26c] ss:$16 sps:$4 sm:$0xff]  }
 0x115   : > { %v9644_v50 = vpop.eup %9643  ;;  %v10868_v58 = vmul.u32.u64.low %v10856_v6, %v1187_v49  ;;  %v10869_v54 = vmul.u32.u64.high %v10856_v6, %v1187_v49, %v10868_v58  ;;  %v10872_v52 = vmul.u32.u64.low %v10856_v6, %v1183_v30  ;;  %v10873_v59 = vmul.u32.u64.high %v10856_v6, %v1183_v30, %v10872_v52  ;;  %v197_v25 = vld [vmem:[%s10310_s3 + $0x88] sm:$0xff] }
 0x116   : > { %v7156_v61 = vpack.c.bf16 %v9644_v50, %v9642_v20  ;;  %v8636_v9 = vadd.s32 4294967294, %v1728_v47  ;;  %v1559_v63 = vand.u32 2139095040, %v10797_v24  ;;  %v10879_v45 = vand.u32 3, %v1337_v42  ;;  %v9546_v58 = vld [vmem:[#allocation5 + $0x268] ss:$16 sps:$4 sm:$0xff]  }
 0x117   : > { %vm10883_vm9 = vcmp.le.f32.partialorder %v1660_v48, 0.7853982  ;;  %v1716_v27 = vadd.s32 %v10792_v11, %v10789_v5  ;;  %v1195_v26 = vmul.u32 %v10856_v6, %v1179_v4  ;;  %v1556_v48 = vand.u32 2147483647, %v10797_v24 }
 0x118   : > { %7989 = vmatmul.mubr.bf16.vlgmr.msra.gmra.mrb[0].mxu0 %v7156_v61  ;;  %8215 = vmatmul.mubr.bf16.vlgmr.msra.gmra.mrb[0].mxu1 %v7156_v61  ;;  %vm8637_vm10 = vcmp.lt.s32.totalorder %v8636_v9, 0  ;;  %v1560_v3 = vshrl.u32 %v1559_v63, 23  ;;  %v1749_v8 = vsel %vm10883_vm9, 0, %v1747_v55  ;;  %vm1197_vm11 = vc.u32 %v10869_v54, %v10872_v52 }
 0x119   : > { %v9646_v23 = vpop.eup %9645  ;;  %8070 = vmatpush1.bf16.msra.mxu0 %v9525_v40  ;;  %8296 = vmatpush1.bf16.msra.mxu1 %v9528_v56  ;;  %v1731_v60 = vsel %vm8637_vm10, 0, %v8636_v9  ;;  %vm1340_vm12 = vcmp.eq.s32.totalorder %v10879_v45, 0  ;;  %v1198_v12 = vadd.s32 1, %v10873_v59  ;;  %vm1343_vm13 = vcmp.eq.s32.totalorder %v10879_v45, 2  ;;  %v9543_v56 = vld [vmem:[#allocation5 + $0x260] ss:$16 sps:$4 sm:$0xff]  }
 0x11a   : > { %v9648_v62 = vpop.eup %9647  ;;  %8071 = vmatprep.subr.bf16.mxu0 %v9533_v2  ;;  %8297 = vmatprep.subr.bf16.mxu1 %v9536_v0  ;;  %v1732_v43 = vsub.s32 32, %v1731_v60  ;;  %v1733_v5 = vshll.u32 %v10845_v22, %v1731_v60  ;;  %v1736_v11 = vsub.s32 4294967266, %v1731_v60  ;;  %v8630_v20 = vadd.s32 4294967169, %v1560_v3 }
 0x11b   : > { %v1753_v16 = vadd.s32 3, %v1749_v8  ;;  %v1341_v22 = vxor.u32 2147483648, %v9648_v62  ;;  %v1344_v34 = vxor.u32 2147483648, %v9646_v23  ;;  %v1199_v36 = vsel %vm1197_vm11, %v1198_v12, %v10873_v59 }
 0x11c   : > { %v1734_v29 = vshrl.u32 %v1716_v27, %v1732_v43  ;;  %v1737_v53 = vadd.s32 127, %v1736_v11  ;;  %v1566_v10 = vadd.s32 1, %v8630_v20  ;;  %v1200_v46 = vadd.s32 %v1199_v36, %v1195_v26 }
 0x11d   : > { %8072 = vmatpush1.bf16.msra.mxu0 %v9531_v17  ;;  %8298 = vmatpush1.bf16.msra.mxu1 %v9534_v7  ;;  %v1563_v28 = vand.u32 8388607, %v1556_v48  ;;  %vm1336_vm15 = vweird.f32 %v10556_v13  ;;  %vm1339_vm0 = vcmp.lt.s32.totalorder %v10879_v45, 2  ;;  %v1342_v55 = vsel %vm1340_vm12, %v9646_v23, %v1341_v22 }
 0x11e   : > { %v1735_v6 = vor.u32 %v1734_v29, %v1733_v5  ;;  %v1738_v42 = vshll.u32 %v1737_v53, 23  ;;  %8073 = vmatprep.subr.bf16.mxu0 %v9539_v14  ;;  %8299 = vmatprep.subr.bf16.mxu1 %v9542_v15  ;;  %vm1567_vm14 = vcmp.gt.s32.totalorder %v1566_v10, 0  ;;  %v1201_v49 = vadd.s32 536870912, %v1200_v46 }
 0x11f   : > { %v1568_v47 = vsel %vm1567_vm14, %v1566_v10, 0  ;;  %v1345_v50 = vsel %vm1343_vm13, %v1344_v34, %v9648_v62  ;;  %v10909_v59 = vmul.f32 %v197_v25, %v197_v25  ;;  %v10911_v2 = vand.u32 3, %v1753_v16 }
 0x120   : > { %v1739_v21 = vor.u32 4788187, %v1738_v42  ;;  %v1742_v30 = vcvt.s32.f32 %v1735_v6  ;;  %v1570_v40 = vand.u32 31, %v1568_v47  ;;  %v10913_v0 = vshrl.u32 %v1201_v49, 30 }
 0x121   : > { %8074 = vmatpush1.bf16.msra.mxu0 %v9537_v19  ;;  %8300 = vmatpush1.bf16.msra.mxu1 %v9540_v32  ;;  %v1564_v9 = vor.u32 8388608, %v1563_v28  ;;  %v10917_v4 = vadd.s32 %v10872_v52, %v10869_v54  ;;  %v2076_v27 = vand.u32 2147483647, %v10909_v59  ;;  %v1346_v3 = vsel %vm1339_vm0, %v1342_v55, %v1345_v50 }
 0x122   : > { %v1740_v61 = vand.u32 2147483647, %v1739_v21  ;;  %8075 = vmatprep.subr.bf16.mxu0 %v9545_v37  ;;  %8301 = vmatprep.subr.bf16.mxu1 %v9548_v44  ;;  %v1571_v63 = vsub.s32 32, %v1570_v40  ;;  %v1573_v17 = vshll.u32 %v15844_v31, %v1570_v40  ;;  %v1203_v7 = vshll.u32 %v10913_v0, 30 }
 0x123   : > { %v1576_v60 = vshll.u32 %v15831_v33, %v1570_v40  ;;  %v1579_v54 = vshll.u32 %v15833_v35, %v1570_v40  ;;  %v1569_v5 = vshrl.u32 %v1568_v47, 5  ;;  %v1582_v45 = vshll.u32 %v15835_v39, %v1570_v40 }
 0x124   : > { %v1743_v23 = vmul.f32 %v1742_v30, %v1740_v61  ;;  %v1574_v8 = vshrl.u32 %v15831_v33, %v1571_v63  ;;  %v1577_v26 = vshrl.u32 %v15833_v35, %v1571_v63  ;;  %v1580_v52 = vshrl.u32 %v15835_v39, %v1571_v63 }
 0x125   : > { %8076 = vmatpush1.bf16.msra.mxu0 %v9543_v56  ;;  %v10929_v43 = vsub.s32 %v1200_v46, %v1203_v7  ;;  %8302 = vmatpush1.bf16.msra.mxu1 %v9546_v58  ;;  %v1347_v11 = vsel %vm1336_vm15, nan, %v1346_v3  ;;  %v1572_v14 = vshrl.u32 %v15844_v31, %v1571_v63  ;;  %v2079_v19 = vand.u32 2139095040, %v10909_v59 }
 0x126   : > { %v1744_v62 = vxor.u32 2147483648, %v1743_v23  ;;  %v1575_v15 = vor.u32 %v1574_v8, %v1573_v17  ;;  %v1578_v29 = vor.u32 %v1577_v26, %v1576_v60  ;;  %v1583_v53 = vshrl.u32 %v15842_v41, %v1571_v63  ;;  %v9549_v60 = vld [vmem:[#allocation5 + $0x280] ss:$16 sps:$4 sm:$0xff]   ;;  %v9552_v8 = vld [vmem:[#allocation5 + $0x288] ss:$16 sps:$4 sm:$0xff]  }
 0x127   : > { %v1206_v20 = vsub.s32 0, %v10929_v43  ;;  %v1581_v32 = vor.u32 %v1580_v52, %v1579_v54  ;;  %v1585_v13 = vshll.u32 %v15842_v41, %v1570_v40  ;;  %v1586_v22 = vshrl.u32 %v15838_v51, %v1571_v63  ;;  %v9554_v63 = vld [vmem:[#allocation5 + $0x28c] ss:$16 sps:$4 sm:$0xff]  }
 0x128   : > { %v1745_v12 = vsel %vm1662_vm4, %v1744_v62, %v1743_v23  ;;  %v1584_v36 = vor.u32 %v1583_v53, %v1582_v45  ;;  %vm1588_vm1 = vcmp.lt.s32.totalorder %v1569_v5, 1  ;;  %vm1142_vm2 = vcmp.lt.s32.totalorder %v10736_v18, 0  ;;  %8303 = vmatprep.subr.bf16.mxu1 %v9554_v63 }
 0x129   : > { %v1748_v16 = vsel %vm10883_vm9, %v10685_v57, %v1745_v12  ;;  %v8615_v34 = vmin.u32 %v1206_v20, %v10929_v43  ;;  %v1587_v10 = vor.u32 %v1586_v22, %v1585_v13  ;;  %v10947_v37 = vshll.u32 %v1564_v9, 8  ;;  %v9551_v9 = vld [vmem:[#allocation5 + $0x284] ss:$16 sps:$4 sm:$0xff]   ;;  %8304 = vmatpush1.bf16.msra.mxu1 %v9552_v8 }
 0x12a   : > { %9649 = vcosq.f32 %v1748_v16  ;;  %v2080_v6 = vshrl.u32 %v2079_v19, 23  ;;  %vm1759_vm3 = vcmp.eq.s32.totalorder %v10911_v2, 2  ;;  %v6973_v1 = vadd.f32 1.0, %v1347_v11  ;;  %8077 = vmatprep.subr.bf16.mxu0 %v9551_v9 }
 0x12b   : > { %9651 = vsinq.f32 %v1748_v16  ;;  %v1208_v42 = vclz %v8615_v34  ;;  %vm1590_vm4 = vcmp.lt.s32.totalorder %v1569_v5, 3  ;;  %v10952_v46 = vand.u32 8388607, %v2076_v27  ;;  %8078 = vmatpush1.bf16.msra.mxu0 %v9549_v60 }
 0x12c   : > { %vm1756_vm5 = vcmp.eq.s32.totalorder %v10911_v2, 0  ;;  %vm1589_vm6 = vcmp.lt.s32.totalorder %v1569_v5, 2  ;;  %vm1591_vm7 = vcmp.lt.s32.totalorder %v1569_v5, 4  ;;  %v1592_v28 = vsel %vm1588_vm1, %v1572_v14, %v1575_v15  ;;  %v201_v5 = vld [vmem:[%s10310_s3 + $0xa8] sm:$0xff] }
 0x12d   : > { %v1596_v44 = vsel %vm1588_vm1, %v1575_v15, %v1578_v29  ;;  %vm1755_vm8 = vcmp.lt.s32.totalorder %v10911_v2, 2  ;;  %vm10960_vm9 = vcmp.le.f32.partialorder %v1140_v38, 0.7853982  ;;  %v8616_v21 = vadd.s32 4294967294, %v1208_v42 }
 0x12e   : > { %v1593_v30 = vsel %vm1591_vm7, %v1581_v32, 2102212464  ;;  %v1597_v49 = vsel %vm1591_vm7, %v1584_v36, 920167782  ;;  %v1600_v47 = vsel %vm1588_vm1, %v1578_v29, %v1581_v32  ;;  %vm1752_vm10 = vweird.f32 %v10685_v57 }
 0x12f   : > { %v1594_v55 = vsel %vm1590_vm4, %v1578_v29, %v1593_v30  ;;  %v1598_v50 = vsel %vm1590_vm4, %v1581_v32, %v1597_v49  ;;  %v1601_v40 = vsel %vm1591_vm7, %v1587_v10, 1326507024  ;;  %v8650_v56 = vadd.s32 4294967169, %v2080_v6 }
 0x130   : > { %vm8617_vm11 = vcmp.lt.s32.totalorder %v8616_v21, 0  ;;  %v1226_v58 = vsub.s32 4, %v10913_v0  ;;  %v1599_v38 = vsel %vm1589_vm6, %v1596_v44, %v1598_v50  ;;  %v1602_v61 = vsel %vm1590_vm4, %v1584_v36, %v1601_v40 }
 0x131   : > { %v1211_v17 = vsel %vm8617_vm11, 0, %v8616_v21  ;;  %v1603_v3 = vsel %vm1589_vm6, %v1600_v47, %v1602_v61  ;;  %v10973_v23 = vmul.u32.u64.low %v10947_v37, %v1599_v38  ;;  %v10974_v7 = vmul.u32.u64.high %v10947_v37, %v1599_v38, %v10973_v23 }
 0x132   : > { %v1212_v26 = vsub.s32 32, %v1211_v17  ;;  %v1213_v54 = vshll.u32 %v10929_v43, %v1211_v17  ;;  %v1216_v52 = vsub.s32 4294967266, %v1211_v17  ;;  %v1595_v62 = vsel %vm1589_vm6, %v1592_v28, %v1594_v55 }
 0x133   : > { %v7046_v45 = vmul.f32 1.442695, %v6973_v1  ;;  %v10980_v11 = vmul.u32.u64.low %v10947_v37, %v1603_v3  ;;  %v10981_v14 = vmul.u32.u64.high %v10947_v37, %v1603_v3, %v10980_v11  ;;  %v2086_v15 = vadd.s32 1, %v8650_v56 }
 0x134   : > { %v9650_v19 = vpop.eup %9649  ;;  %v1214_v12 = vshrl.u32 %v10917_v4, %v1212_v26  ;;  %v1217_v20 = vadd.s32 127, %v1216_v52  ;;  %v1227_v43 = vsel %vm1142_vm2, %v1226_v58, %v10913_v0  ;;  %v2084_v29 = vor.u32 8388608, %v10952_v46 }
 0x135   : > { %v9652_v53 = vpop.eup %9651  ;;  %v1760_v16 = vxor.u32 2147483648, %v9650_v19  ;;  %v1611_v32 = vmul.u32 %v10947_v37, %v1595_v62  ;;  %v1614_v13 = vadd.s32 1, %v10974_v7  ;;  %vm2087_vm12 = vcmp.gt.s32.totalorder %v2086_v15, 0 }
 0x136   : > { %v1757_v22 = vxor.u32 2147483648, %v9652_v53  ;;  %v1215_v34 = vor.u32 %v1214_v12, %v1213_v54  ;;  %v1218_v36 = vshll.u32 %v1217_v20, 23  ;;  %v2088_v10 = vsel %vm2087_vm12, %v2086_v15, 0 }
 0x137   : > { %v1761_v4 = vsel %vm1759_vm3, %v1760_v16, %v9652_v53  ;;  %v1229_v0 = vsel %vm10960_vm9, 0, %v1227_v43  ;;  %vm1613_vm13 = vc.u32 %v10981_v14, %v10973_v23  ;;  %v10997_v6 = vmul.f32 %v201_v5, %v201_v5 }
 0x138   : > { %v1758_v37 = vsel %vm1756_vm5, %v9650_v19, %v1757_v22  ;;  %v1219_v1 = vor.u32 4788187, %v1218_v36  ;;  %v1222_v42 = vcvt.s32.f32 %v1215_v34  ;;  %v1615_v46 = vsel %vm1613_vm13, %v1614_v13, %v10974_v7 }
 0x139   : > { %v1762_v28 = vsel %vm1755_vm8, %v1758_v37, %v1761_v4  ;;  %9653 = vpow2.f32 %v7046_v45  ;;  %v1616_v44 = vadd.s32 %v1615_v46, %v1611_v32  ;;  %v2090_v21 = vand.u32 31, %v2088_v10 }
 0x13a   : > { %v1763_v30 = vsel %vm1752_vm10, nan, %v1762_v28  ;;  %v1220_v49 = vand.u32 2147483647, %v1219_v1  ;;  %v1233_v47 = vadd.s32 3, %v1229_v0  ;;  %v11006_v55 = vshll.u32 %v2084_v29, 8 }
 0x13b   : > { %v6977_v50 = vadd.f32 1.0, %v1763_v30  ;;  %v1617_v40 = vadd.s32 536870912, %v1616_v44  ;;  %v2089_v56 = vshrl.u32 %v2088_v10, 5  ;;  %v2091_v58 = vsub.s32 32, %v2090_v21 }
 0x13c   : > { %v1223_v38 = vmul.f32 %v1222_v42, %v1220_v49  ;;  %v2093_v61 = vshll.u32 %v15844_v31, %v2090_v21  ;;  %v2096_v2 = vshll.u32 %v15831_v33, %v2090_v21  ;;  %v2102_v9 = vshll.u32 %v15835_v39, %v2090_v21 }
 0x13d   : > { %v7054_v63 = vmul.f32 1.442695, %v6977_v50  ;;  %v1618_v17 = vshrl.u32 %v1617_v40, 30  ;;  %v2094_v57 = vshrl.u32 %v15831_v33, %v2091_v58  ;;  %v2099_v3 = vshll.u32 %v15833_v35, %v2090_v21 }
 0x13e   : > { %v1224_v7 = vxor.u32 2147483648, %v1223_v38  ;;  %v2097_v60 = vshrl.u32 %v15833_v35, %v2091_v58  ;;  %v2100_v8 = vshrl.u32 %v15835_v39, %v2091_v58  ;;  %v2103_v26 = vshrl.u32 %v15842_v41, %v2091_v58 }
 0x13f   : > { %9655 = vpow2.f32 %v7054_v63  ;;  %v1619_v54 = vshll.u32 %v1618_v17, 30  ;;  %v2092_v52 = vshrl.u32 %v15844_v31, %v2091_v58  ;;  %vm2108_vm15 = vcmp.lt.s32.totalorder %v2089_v56, 1 }
 0x140   : > { %v1225_v62 = vsel %vm1142_vm2, %v1224_v7, %v1223_v38  ;;  %v2095_v45 = vor.u32 %v2094_v57, %v2093_v61  ;;  %v2098_v11 = vor.u32 %v2097_v60, %v2096_v2  ;;  %v2104_v15 = vor.u32 %v2103_v26, %v2102_v9 }
 0x141   : > { %v1228_v19 = vsel %vm10960_vm9, %v10736_v18, %v1225_v62  ;;  %v11022_v12 = vsub.s32 %v1616_v44, %v1619_v54  ;;  %v2101_v20 = vor.u32 %v2100_v8, %v2099_v3  ;;  %v2105_v43 = vshll.u32 %v15842_v41, %v2090_v21 }
 0x142   : > { %9657 = vcosq.f32 %v1228_v19  ;;  %v2106_v5 = vshrl.u32 %v15838_v51, %v2091_v58  ;;  %vm2110_vm0 = vcmp.lt.s32.totalorder %v2089_v56, 3  ;;  %vm2111_vm14 = vcmp.lt.s32.totalorder %v2089_v56, 4 }
 0x143   : > { %v9654_v29 = vpop.eup %9653  ;;  %9659 = vsinq.f32 %v1228_v19  ;;  %v1622_v53 = vsub.s32 0, %v11022_v12  ;;  %vm2109_vm1 = vcmp.lt.s32.totalorder %v2089_v56, 2  ;;  %v2495_v16 = vand.u32 2139095040, %v10997_v6 }
 0x144   : > { %v2107_v32 = vor.u32 %v2106_v5, %v2105_v43  ;;  %v2113_v25 = vsel %vm2111_vm14, %v2101_v20, 2102212464  ;;  %v2116_v13 = vsel %vm2108_vm15, %v2095_v45, %v2098_v11  ;;  %v2117_v22 = vsel %vm2111_vm14, %v2104_v15, 920167782 }
 0x145   : > { %v8631_v34 = vmin.u32 %v1622_v53, %v11022_v12  ;;  %v1642_v36 = vsub.s32 4, %v1618_v17  ;;  %v2112_v10 = vsel %vm2108_vm15, %v2092_v52, %v2095_v45  ;;  %v2118_v4 = vsel %vm2110_vm0, %v2101_v20, %v2117_v22  ;;  %v196_v53 = vld [vmem:[%s10310_s3 + $0x80] sm:$0xff] }
 0x146   : > { %v2114_v0 = vsel %vm2110_vm0, %v2098_v11, %v2113_v25  ;;  %v2119_v37 = vsel %vm2109_vm1, %v2116_v13, %v2118_v4  ;;  %v2120_v1 = vsel %vm2108_vm15, %v2098_v11, %v2101_v20  ;;  %v2121_v42 = vsel %vm2111_vm14, %v2107_v32, 1326507024 }
 0x147   : > { %v1234_v46 = vand.u32 3, %v1233_v47  ;;  %vm1558_vm2 = vcmp.lt.s32.totalorder %v10797_v24, 0  ;;  %v1624_v28 = vclz %v8631_v34  ;;  %vm11041_vm3 = vcmp.le.f32.partialorder %v1556_v48, 0.7853982 }
 0x148   : > { %v2122_v21 = vsel %vm2110_vm0, %v2104_v15, %v2121_v42  ;;  %v11047_v30 = vmul.u32.u64.low %v11006_v55, %v2119_v37  ;;  %v11048_v49 = vmul.u32.u64.high %v11006_v55, %v2119_v37, %v11047_v30  ;;  %v2115_v47 = vsel %vm2109_vm1, %v2112_v10, %v2114_v0 }
 0x149   : > { %v9656_v50 = vpop.eup %9655  ;;  %v8632_v40 = vadd.s32 4294967294, %v1624_v28  ;;  %v2123_v58 = vsel %vm2109_vm1, %v2120_v1, %v2122_v21  ;;  %v2496_v38 = vshrl.u32 %v2495_v16, 23  ;;  %v1643_v48 = vsel %vm1558_vm2, %v1642_v36, %v1618_v17 }
 0x14a   : > { %v7161_v61 = vpack.c.bf16 %v9656_v50, %v9654_v29  ;;  %v11056_v2 = vmul.u32.u64.low %v11006_v55, %v2123_v58  ;;  %v11057_v9 = vmul.u32.u64.high %v11006_v55, %v2123_v58, %v11056_v2  ;;  %vm1236_vm4 = vcmp.eq.s32.totalorder %v1234_v46, 0 }
 0x14b   : > { %v1612_v63 = vadd.s32 %v10973_v23, %v10981_v14  ;;  %vm8633_vm5 = vcmp.lt.s32.totalorder %v8632_v40, 0  ;;  %v8666_v57 = vadd.s32 4294967169, %v2496_v38  ;;  %v2131_v7 = vmul.u32 %v11006_v55, %v2115_v47 }
 0x14c   : > { %v9658_v3 = vpop.eup %9657  ;;  %7998 = vmatprep.mubr.bf16.mxu0 %v7161_v61  ;;  %8224 = vmatprep.mubr.bf16.mxu1 %v7161_v61  ;;  %v1627_v56 = vsel %vm8633_vm5, 0, %v8632_v40  ;;  %v2134_v60 = vadd.s32 1, %v11048_v49  ;;  %v2492_v17 = vand.u32 2147483647, %v10997_v6  ;;  %v1645_v23 = vsel %vm11041_vm3, 0, %v1643_v48 }
 0x14d   : > { %v9660_v8 = vpop.eup %9659  ;;  %v1628_v26 = vsub.s32 32, %v1627_v56  ;;  %v1629_v54 = vshll.u32 %v11022_v12, %v1627_v56  ;;  %v1632_v52 = vsub.s32 4294967266, %v1627_v56  ;;  %v1240_v62 = vxor.u32 2147483648, %v9658_v3 }
 0x14e   : > { %v1237_v14 = vxor.u32 2147483648, %v9660_v8  ;;  %vm2133_vm6 = vc.u32 %v11057_v9, %v11047_v30  ;;  %v2502_v45 = vadd.s32 1, %v8666_v57  ;;  %vm1239_vm7 = vcmp.eq.s32.totalorder %v1234_v46, 2 }
 0x14f   : > { %v1630_v55 = vshrl.u32 %v1612_v63, %v1628_v26  ;;  %v1633_v11 = vadd.s32 127, %v1632_v52  ;;  %v2135_v15 = vsel %vm2133_vm6, %v2134_v60, %v11048_v49  ;;  %vm1235_vm8 = vcmp.lt.s32.totalorder %v1234_v46, 2 }
 0x150   : > { %v1649_v19 = vadd.s32 3, %v1645_v23  ;;  %v2136_v20 = vadd.s32 %v2135_v15, %v2131_v7  ;;  %vm2503_vm9 = vcmp.gt.s32.totalorder %v2502_v45, 0  ;;  %v2499_v5 = vand.u32 8388607, %v2492_v17 }
 0x151   : > { %v1631_v12 = vor.u32 %v1630_v55, %v1629_v54  ;;  %v1634_v43 = vshll.u32 %v1633_v11, 23  ;;  %v2504_v29 = vsel %vm2503_vm9, %v2502_v45, 0  ;;  %v1238_v16 = vsel %vm1236_vm4, %v9658_v3, %v1237_v14 }
 0x152   : > { %v1241_v32 = vsel %vm1239_vm7, %v1240_v62, %v9660_v8  ;;  %v2137_v25 = vadd.s32 536870912, %v2136_v20  ;;  %v2506_v13 = vand.u32 31, %v2504_v29  ;;  %vm1232_vm10 = vweird.f32 %v10736_v18 }
 0x153   : > { %v1635_v22 = vor.u32 4788187, %v1634_v43  ;;  %v1638_v34 = vcvt.s32.f32 %v1631_v12  ;;  %v11077_v4 = vmul.f32 %v196_v53, %v196_v53  ;;  %v1242_v0 = vsel %vm1235_vm8, %v1238_v16, %v1241_v32 }
 0x154   : > { %v11075_v36 = vshrl.u32 %v2137_v25, 30  ;;  %v2507_v10 = vsub.s32 32, %v2506_v13  ;;  %v11080_v1 = vand.u32 3, %v1649_v19  ;;  %v2500_v42 = vor.u32 8388608, %v2499_v5 }
 0x155   : > { %v1636_v37 = vand.u32 2147483647, %v1635_v22  ;;  %v11083_v21 = vshrl.u32 %v2504_v29, 5  ;;  %v2509_v49 = vshll.u32 %v15844_v31, %v2506_v13  ;;  %v2512_v47 = vshll.u32 %v15831_v33, %v2506_v13 }
 0x156   : > { %v2139_v28 = vshll.u32 %v11075_v36, 30  ;;  %v2510_v50 = vshrl.u32 %v15831_v33, %v2507_v10  ;;  %v2513_v58 = vshrl.u32 %v15833_v35, %v2507_v10  ;;  %v2518_v46 = vshll.u32 %v15835_v39, %v2506_v13 }
 0x157   : > { %v1639_v40 = vmul.f32 %v1638_v34, %v1636_v37  ;;  %v2515_v61 = vshll.u32 %v15833_v35, %v2506_v13  ;;  %v2516_v48 = vshrl.u32 %v15835_v39, %v2507_v10  ;;  %v2519_v2 = vshrl.u32 %v15842_v41, %v2507_v10  ;;  %v9555_v37 = vld [vmem:[#allocation5 + $0x2a0] ss:$16 sps:$4 sm:$0xff]  }
 0x158   : > { %v11090_v38 = vsub.s32 %v2136_v20, %v2139_v28  ;;  %v1243_v63 = vsel %vm1232_vm10, nan, %v1242_v0  ;;  %v2132_v3 = vadd.s32 %v11047_v30, %v11057_v9  ;;  %v11099_v56 = vshll.u32 %v2500_v42, 8  ;;  %v9557_v42 = vld [vmem:[#allocation5 + $0x2a4] ss:$16 sps:$4 sm:$0xff]  }
 0x159   : > { %v1640_v57 = vxor.u32 2147483648, %v1639_v40  ;;  %v2508_v60 = vshrl.u32 %v15844_v31, %v2507_v10  ;;  %v2511_v8 = vor.u32 %v2510_v50, %v2509_v49  ;;  %v2521_v26 = vshll.u32 %v15842_v41, %v2506_v13  ;;  %8079 = vmatprep.subr.bf16.mxu0 %v9557_v42 }
 0x15a   : > { %v2142_v7 = vsub.s32 0, %v11090_v38  ;;  %v2514_v52 = vor.u32 %v2513_v58, %v2512_v47  ;;  %v2520_v23 = vor.u32 %v2519_v2, %v2518_v46  ;;  %v2522_v18 = vshrl.u32 %v15838_v51, %v2507_v10  ;;  %v9558_v47 = vld [vmem:[#allocation5 + $0x2a8] ss:$16 sps:$4 sm:$0xff]   ;;  %v9560_v2 = vld [vmem:[#allocation5 + $0x2ac] ss:$16 sps:$4 sm:$0xff]   ;;  %8080 = vmatpush1.bf16.msra.mxu0 %v9555_v37 }
 0x15b   : > { %v1641_v54 = vsel %vm1558_vm2, %v1640_v57, %v1639_v40  ;;  %v2517_v14 = vor.u32 %v2516_v48, %v2515_v61  ;;  %vm2524_vm11 = vcmp.lt.s32.totalorder %v11083_v21, 1  ;;  %vm2526_vm12 = vcmp.lt.s32.totalorder %v11083_v21, 3  ;;  %8305 = vmatprep.subr.bf16.mxu1 %v9560_v2 }
 0x15c   : > { %v1644_v30 = vsel %vm11041_vm3, %v10797_v24, %v1641_v54  ;;  %v8651_v9 = vmin.u32 %v2142_v7, %v11090_v38  ;;  %v2523_v62 = vor.u32 %v2522_v18, %v2521_v26  ;;  %vm2527_vm13 = vcmp.lt.s32.totalorder %v11083_v21, 4  ;;  %v200_v18 = vld [vmem:[%s10310_s3 + $0xa0] sm:$0xff]  ;;  %8306 = vmatpush1.bf16.msra.mxu1 %v9558_v47 }
 0x15d   : > { %9661 = vcosq.f32 %v1644_v30  ;;  %v6972_v45 = vadd.f32 1.0, %v1243_v63  ;;  %vm2525_vm15 = vcmp.lt.s32.totalorder %v11083_v21, 2  ;;  %vm2078_vm0 = vcmp.lt.s32.totalorder %v10909_v59, 0 }
 0x15e   : > { %9663 = vsinq.f32 %v1644_v30  ;;  %v2144_v55 = vclz %v8651_v9  ;;  %v2162_v44 = vsub.s32 4, %v11075_v36  ;;  %v2529_v11 = vsel %vm2527_vm13, %v2517_v14, 2102212464 }
 0x15f   : > { %v2532_v15 = vsel %vm2524_vm11, %v2511_v8, %v2514_v52  ;;  %v2533_v19 = vsel %vm2527_vm13, %v2520_v23, 920167782  ;;  %v2528_v12 = vsel %vm2524_vm11, %v2508_v60, %v2511_v8  ;;  %v2536_v5 = vsel %vm2524_vm11, %v2514_v52, %v2517_v14 }
 0x160   : > { %v8652_v20 = vadd.s32 4294967294, %v2144_v55  ;;  %v2534_v43 = vsel %vm2526_vm12, %v2517_v14, %v2533_v19  ;;  %vm1651_vm14 = vcmp.lt.s32.totalorder %v11080_v1, 2  ;;  %v2530_v29 = vsel %vm2526_vm12, %v2514_v52, %v2529_v11 }
 0x161   : > { %v2535_v53 = vsel %vm2525_vm15, %v2532_v15, %v2534_v43  ;;  %v2537_v16 = vsel %vm2527_vm13, %v2523_v62, 1326507024  ;;  %v1975_v32 = vand.u32 2139095040, %v11077_v4  ;;  %vm1648_vm2 = vweird.f32 %v10797_v24 }
 0x162   : > { %vm8653_vm1 = vcmp.lt.s32.totalorder %v8652_v20, 0  ;;  %v2538_v25 = vsel %vm2526_vm12, %v2520_v23, %v2537_v16  ;;  %v11140_v13 = vmul.u32.u64.low %v11099_v56, %v2535_v53  ;;  %v11141_v22 = vmul.u32.u64.high %v11099_v56, %v2535_v53, %v11140_v13 }
 0x163   : > { %v2147_v34 = vsel %vm8653_vm1, 0, %v8652_v20  ;;  %v2539_v10 = vsel %vm2525_vm15, %v2536_v5, %v2538_v25  ;;  %v1976_v0 = vshrl.u32 %v1975_v32, 23  ;;  %v2531_v40 = vsel %vm2525_vm15, %v2528_v12, %v2530_v29 }
 0x164   : > { %v2148_v28 = vsub.s32 32, %v2147_v34  ;;  %v2149_v49 = vshll.u32 %v11090_v38, %v2147_v34  ;;  %v2152_v50 = vsub.s32 4294967266, %v2147_v34  ;;  %v1972_v61 = vand.u32 2147483647, %v11077_v4 }
 0x165   : > { %v11151_v58 = vmul.u32.u64.low %v11099_v56, %v2539_v10  ;;  %v11152_v46 = vmul.u32.u64.high %v11099_v56, %v2539_v10, %v11151_v58  ;;  %v8646_v48 = vadd.s32 4294967169, %v1976_v0  ;;  %vm1652_vm3 = vcmp.eq.s32.totalorder %v11080_v1, 0 }
 0x166   : > { %v2150_v63 = vshrl.u32 %v2132_v3, %v2148_v28  ;;  %v2153_v57 = vadd.s32 127, %v2152_v50  ;;  %v2550_v38 = vadd.s32 1, %v11141_v22  ;;  %vm1655_vm4 = vcmp.eq.s32.totalorder %v11080_v1, 2 }
 0x167   : > { %v9662_v21 = vpop.eup %9661  ;;  %v7044_v7 = vmul.f32 1.442695, %v6972_v45  ;;  %v2547_v60 = vmul.u32 %v11099_v56, %v2531_v40  ;;  %v1982_v8 = vadd.s32 1, %v8646_v48  ;;  %v11162_v3 = vsel %vm2078_vm0, %v2162_v44, %v11075_v36 }
 0x168   : > { %v9664_v26 = vpop.eup %9663  ;;  %v1656_v54 = vxor.u32 2147483648, %v9662_v21  ;;  %v2151_v52 = vor.u32 %v2150_v63, %v2149_v49  ;;  %v2154_v23 = vshll.u32 %v2153_v57, 23  ;;  %vm2549_vm5 = vc.u32 %v11152_v46, %v11140_v13 }
 0x169   : > { %v1653_v30 = vxor.u32 2147483648, %v9664_v26  ;;  %v1979_v56 = vand.u32 8388607, %v1972_v61  ;;  %vm1983_vm6 = vcmp.gt.s32.totalorder %v1982_v8, 0  ;;  %v2551_v45 = vsel %vm2549_vm5, %v2550_v38, %v11141_v22 }
 0x16a   : > { %v1657_v9 = vsel %vm1655_vm4, %v1656_v54, %v9664_v26  ;;  %v2155_v14 = vor.u32 4788187, %v2154_v23  ;;  %v2158_v62 = vcvt.s32.f32 %v2151_v52  ;;  %v2552_v55 = vadd.s32 %v2551_v45, %v2547_v60 }
 0x16b   : > { %v1654_v36 = vsel %vm1652_vm3, %v9662_v21, %v1653_v30  ;;  %v11174_v44 = vmul.f32 %v200_v18, %v200_v18  ;;  %v1984_v11 = vsel %vm1983_vm6, %v1982_v8, 0  ;;  %vm11180_vm7 = vcmp.le.f32.partialorder %v2076_v27, 0.7853982 }
 0x16c   : > { %v1658_v15 = vsel %vm1651_vm14, %v1654_v36, %v1657_v9  ;;  %v2156_v20 = vand.u32 2147483647, %v2155_v14  ;;  %v1986_v12 = vand.u32 31, %v1984_v11  ;;  %9665 = vpow2.f32 %v7044_v7 }
 0x16d   : > { %v1659_v43 = vsel %vm1648_vm2, nan, %v1658_v15  ;;  %v2165_v5 = vsel %vm11180_vm7, 0, %v11162_v3  ;;  %v2553_v29 = vadd.s32 536870912, %v2552_v55  ;;  %v1980_v16 = vor.u32 8388608, %v1979_v56 }
 0x16e   : > { %v6976_v53 = vadd.f32 1.0, %v1659_v43  ;;  %v2159_v1 = vmul.f32 %v2158_v62, %v2156_v20  ;;  %v1987_v32 = vsub.s32 32, %v1986_v12  ;;  %v1989_v27 = vshll.u32 %v15844_v31, %v1986_v12 }
 0x16f   : > { %v2554_v25 = vshrl.u32 %v2553_v29, 30  ;;  %v1992_v22 = vshll.u32 %v15831_v33, %v1986_v12  ;;  %v2391_v34 = vand.u32 2139095040, %v11174_v44  ;;  %vm2494_vm8 = vcmp.lt.s32.totalorder %v10997_v6, 0 }
 0x170   : > { %v7052_v10 = vmul.f32 1.442695, %v6976_v53  ;;  %v2160_v24 = vxor.u32 2147483648, %v2159_v1  ;;  %v1990_v0 = vshrl.u32 %v15831_v33, %v1987_v32  ;;  %v1998_v37 = vshll.u32 %v15835_v39, %v1986_v12 }
 0x171   : > { %v2555_v42 = vshll.u32 %v2554_v25, 30  ;;  %v1985_v28 = vshrl.u32 %v1984_v11, 5  ;;  %v1993_v49 = vshrl.u32 %v15833_v35, %v1987_v32  ;;  %v2388_v50 = vand.u32 2147483647, %v11174_v44 }
 0x172   : > { %9667 = vpow2.f32 %v7052_v10  ;;  %v1995_v40 = vshll.u32 %v15833_v35, %v1986_v12  ;;  %v1996_v47 = vshrl.u32 %v15835_v39, %v1987_v32  ;;  %v1999_v58 = vshrl.u32 %v15842_v41, %v1987_v32 }
 0x173   : > { %v2161_v48 = vsel %vm2078_vm0, %v2160_v24, %v2159_v1  ;;  %v2548_v2 = vadd.s32 %v11140_v13, %v11152_v46  ;;  %v11204_v63 = vsub.s32 %v2552_v55, %v2555_v42  ;;  %v11206_v57 = vshll.u32 %v1980_v16, 8 }
 0x174   : > { %v1991_v38 = vor.u32 %v1990_v0, %v1989_v27  ;;  %v1994_v21 = vor.u32 %v1993_v49, %v1992_v22  ;;  %v2000_v7 = vor.u32 %v1999_v58, %v1998_v37  ;;  %v2392_v60 = vshrl.u32 %v2391_v34, 23 }
 0x175   : > { %v2558_v8 = vsub.s32 0, %v11204_v63  ;;  %v2578_v26 = vsub.s32 4, %v2554_v25  ;;  %v1988_v54 = vshrl.u32 %v15844_v31, %v1987_v32  ;;  %v2001_v52 = vshll.u32 %v15842_v41, %v1986_v12 }
 0x176   : > { %v2164_v23 = vsel %vm11180_vm7, %v10909_v59, %v2161_v48  ;;  %v1997_v13 = vor.u32 %v1996_v47, %v1995_v40  ;;  %v2002_v46 = vshrl.u32 %v15838_v51, %v1987_v32  ;;  %vm2004_vm9 = vcmp.lt.s32.totalorder %v1985_v28, 1  ;;  %v9666_v18 = vpop.eup %9665 }
 0x177   : > { %v8667_v30 = vmin.u32 %v2558_v8, %v11204_v63  ;;  %vm2005_vm10 = vcmp.lt.s32.totalorder %v1985_v28, 2  ;;  %vm2006_vm11 = vcmp.lt.s32.totalorder %v1985_v28, 3  ;;  %vm2007_vm12 = vcmp.lt.s32.totalorder %v1985_v28, 4 }
 0x178   : > { %v2003_v56 = vor.u32 %v2002_v46, %v2001_v52  ;;  %v2009_v9 = vsel %vm2007_vm12, %v1997_v13, 2102212464  ;;  %v2012_v14 = vsel %vm2004_vm9, %v1991_v38, %v1994_v21  ;;  %v2013_v62 = vsel %vm2007_vm12, %v2000_v7, 920167782 }
 0x179   : > { %9669 = vcosq.f32 %v2164_v23  ;;  %v2560_v45 = vclz %v8667_v30  ;;  %v2579_v36 = vsel %vm2494_vm8, %v2578_v26, %v2554_v25  ;;  %v2008_v55 = vsel %vm2004_vm9, %v1988_v54, %v1991_v38 }
 0x17a   : > { %v2010_v11 = vsel %vm2006_vm11, %v1994_v21, %v2009_v9  ;;  %v2014_v15 = vsel %vm2006_vm11, %v1997_v13, %v2013_v62  ;;  %v2016_v20 = vsel %vm2004_vm9, %v1994_v21, %v1997_v13  ;;  %v2017_v12 = vsel %vm2007_vm12, %v2003_v56, 1326507024 }
 0x17b   : > { %9671 = vsinq.f32 %v2164_v23  ;;  %v8668_v43 = vadd.s32 4294967294, %v2560_v45  ;;  %v2015_v29 = vsel %vm2005_vm10, %v2012_v14, %v2014_v15  ;;  %v2018_v53 = vsel %vm2006_vm11, %v2000_v7, %v2017_v12 }
 0x17c   : > { %v9668_v1 = vpop.eup %9667  ;;  %v2011_v16 = vsel %vm2005_vm10, %v2008_v55, %v2010_v11  ;;  %v2019_v32 = vsel %vm2005_vm10, %v2016_v20, %v2018_v53  ;;  %v11228_v25 = vmul.u32.u64.low %v11206_v57, %v2015_v29  ;;  %v11229_v27 = vmul.u32.u64.high %v11206_v57, %v2015_v29, %v11228_v25 }
 0x17d   : > { %v7160_v22 = vpack.c.bf16 %v9668_v1, %v9666_v18  ;;  %vm8669_vm13 = vcmp.lt.s32.totalorder %v8668_v43, 0  ;;  %v11233_v34 = vmul.u32.u64.low %v11206_v57, %v2019_v32  ;;  %v11234_v10 = vmul.u32.u64.high %v11206_v57, %v2019_v32, %v11233_v34 }
 0x17e   : > { %v2169_v24 = vadd.s32 3, %v2165_v5  ;;  %v2563_v0 = vsel %vm8669_vm13, 0, %v8668_v43  ;;  %v8662_v37 = vadd.s32 4294967169, %v2392_v60  ;;  %vm11242_vm15 = vcmp.le.f32.partialorder %v2492_v17, 0.7853982 }
 0x17f   : > { %7999 = vmatmul.mubr.bf16.gmra.mrb[4].mxu0 %v7160_v22  ;;  %8225 = vmatmul.mubr.bf16.gmra.mrb[4].mxu1 %v7160_v22  ;;  %v2564_v28 = vsub.s32 32, %v2563_v0  ;;  %v2565_v49 = vshll.u32 %v11204_v63, %v2563_v0  ;;  %v2568_v40 = vsub.s32 4294967266, %v2563_v0  ;;  %v2581_v19 = vsel %vm11242_vm15, 0, %v2579_v36 }
 0x180   : > { %v2027_v3 = vmul.u32 %v11206_v57, %v2011_v16  ;;  %v2030_v5 = vadd.s32 1, %v11229_v27  ;;  %v2398_v47 = vadd.s32 1, %v8662_v37  ;;  %v2395_v17 = vand.u32 8388607, %v2388_v50 }
 0x181   : > { %v2566_v58 = vshrl.u32 %v2548_v2, %v2564_v28  ;;  %v2569_v48 = vadd.s32 127, %v2568_v40  ;;  %v11253_v38 = vand.u32 3, %v2169_v24  ;;  %vm2029_vm0 = vc.u32 %v11234_v10, %v11228_v25 }
 0x182   : > { %vm2399_vm14 = vcmp.gt.s32.totalorder %v2398_v47, 0  ;;  %v2585_v60 = vadd.s32 3, %v2581_v19  ;;  %v2031_v57 = vsel %vm2029_vm0, %v2030_v5, %v11229_v27  ;;  %v2396_v23 = vor.u32 8388608, %v2395_v17 }
 0x183   : > { %v9670_v63 = vpop.eup %9669  ;;  %v2567_v21 = vor.u32 %v2566_v58, %v2565_v49  ;;  %v2570_v7 = vshll.u32 %v2569_v48, 23  ;;  %v2032_v8 = vadd.s32 %v2031_v57, %v2027_v3  ;;  %v2400_v26 = vsel %vm2399_vm14, %v2398_v47, 0  ;;  %v205_v58 = vld [vmem:[%s10310_s3 + $0xc8] sm:$0xff] }
 0x184   : > { %vm2172_vm1 = vcmp.eq.s32.totalorder %v11253_v38, 0  ;;  %v2402_v46 = vand.u32 31, %v2400_v26  ;;  %vm2171_vm2 = vcmp.lt.s32.totalorder %v11253_v38, 2  ;;  %vm2175_vm3 = vcmp.eq.s32.totalorder %v11253_v38, 2 }
 0x185   : > { %v9672_v54 = vpop.eup %9671  ;;  %v2571_v2 = vor.u32 4788187, %v2570_v7  ;;  %v2574_v52 = vcvt.s32.f32 %v2567_v21  ;;  %v2033_v13 = vadd.s32 536870912, %v2032_v8  ;;  %v2176_v18 = vxor.u32 2147483648, %v9670_v63 }
 0x186   : > { %v11261_v56 = vand.u32 3, %v2585_v60  ;;  %v2173_v9 = vxor.u32 2147483648, %v9672_v54  ;;  %v11265_v62 = vshrl.u32 %v2400_v26, 5  ;;  %v2403_v45 = vsub.s32 32, %v2402_v46 }
 0x187   : > { %v2572_v30 = vand.u32 2147483647, %v2571_v2  ;;  %v11263_v14 = vshrl.u32 %v2033_v13, 30  ;;  %v2405_v55 = vshll.u32 %v15844_v31, %v2402_v46  ;;  %v2408_v11 = vshll.u32 %v15831_v33, %v2402_v46 }
 0x188   : > { %v11269_v15 = vshll.u32 %v2396_v23, 8  ;;  %vm2168_vm4 = vweird.f32 %v10909_v59  ;;  %v2406_v12 = vshrl.u32 %v15831_v33, %v2403_v45  ;;  %v2411_v43 = vshll.u32 %v15833_v35, %v2402_v46 }
 0x189   : > { %v2575_v36 = vmul.f32 %v2574_v52, %v2572_v30  ;;  %v2035_v20 = vshll.u32 %v11263_v14, 30  ;;  %v2414_v29 = vshll.u32 %v15835_v39, %v2402_v46  ;;  %v2409_v1 = vshrl.u32 %v15833_v35, %v2403_v45 }
 0x18a   : > { %v2412_v16 = vshrl.u32 %v15835_v39, %v2403_v45  ;;  %v2415_v32 = vshrl.u32 %v15842_v41, %v2403_v45  ;;  %v2174_v27 = vsel %vm2172_vm1, %v9670_v63, %v2173_v9  ;;  %v2177_v22 = vsel %vm2175_vm3, %v2176_v18, %v9672_v54 }
 0x18b   : > { %v2576_v53 = vxor.u32 2147483648, %v2575_v36  ;;  %v11283_v34 = vsub.s32 %v2032_v8, %v2035_v20  ;;  %vm2420_vm5 = vcmp.lt.s32.totalorder %v11265_v62, 1  ;;  %v2407_v0 = vor.u32 %v2406_v12, %v2405_v55  ;;  %v9561_v20 = vld [vmem:[#allocation5 + $0x2c0] ss:$16 sps:$4 sm:$0xff]  }
 0x18c   : > { %v2410_v37 = vor.u32 %v2409_v1, %v2408_v11  ;;  %v2417_v28 = vshll.u32 %v15842_v41, %v2402_v46  ;;  %v2404_v19 = vshrl.u32 %v15844_v31, %v2403_v45  ;;  %v2416_v3 = vor.u32 %v2415_v32, %v2414_v29 }
 0x18d   : > { %v2577_v24 = vsel %vm2494_vm8, %v2576_v53, %v2575_v36  ;;  %v2038_v40 = vsub.s32 0, %v11283_v34  ;;  %v2413_v5 = vor.u32 %v2412_v16, %v2411_v43  ;;  %v2418_v47 = vshrl.u32 %v15838_v51, %v2403_v45  ;;  %v9563_v36 = vld [vmem:[#allocation5 + $0x2c4] ss:$16 sps:$4 sm:$0xff]  }
 0x18e   : > { %v2580_v49 = vsel %vm11242_vm15, %v10997_v6, %v2577_v24  ;;  %vm2423_vm6 = vcmp.lt.s32.totalorder %v11265_v62, 4  ;;  %vm2421_vm7 = vcmp.lt.s32.totalorder %v11265_v62, 2  ;;  %vm2422_vm8 = vcmp.lt.s32.totalorder %v11265_v62, 3  ;;  %8081 = vmatprep.subr.bf16.mxu0 %v9563_v36 }
 0x18f   : > { %9673 = vcosq.f32 %v2580_v49  ;;  %v8647_v48 = vmin.u32 %v2038_v40, %v11283_v34  ;;  %v2419_v42 = vor.u32 %v2418_v47, %v2417_v28  ;;  %v2425_v17 = vsel %vm2423_vm6, %v2413_v5, 2102212464  ;;  %8082 = vmatpush1.bf16.msra.mxu0 %v9561_v20  ;;  %v209_v40 = vld [vmem:[%s10310_s3 + $0xe8] sm:$0xff] }
 0x190   : > { %9675 = vsinq.f32 %v2580_v49  ;;  %v2428_v63 = vsel %vm2420_vm5, %v2407_v0, %v2410_v37  ;;  %v2429_v21 = vsel %vm2423_vm6, %v2416_v3, 920167782  ;;  %v2178_v7 = vsel %vm2171_vm2, %v2174_v27, %v2177_v22 }
 0x191   : > { %vm1974_vm9 = vcmp.lt.s32.totalorder %v11077_v4, 0  ;;  %v2040_v60 = vclz %v8647_v48  ;;  %v2424_v57 = vsel %vm2420_vm5, %v2404_v19, %v2407_v0  ;;  %v11311_v8 = vmul.f32 %v205_v58, %v205_v58 }
 0x192   : > { %vm2587_vm10 = vcmp.lt.s32.totalorder %v11261_v56, 2  ;;  %v2426_v26 = vsel %vm2422_vm8, %v2410_v37, %v2425_v17  ;;  %v2430_v54 = vsel %vm2422_vm8, %v2413_v5, %v2429_v21  ;;  %v2432_v38 = vsel %vm2420_vm5, %v2410_v37, %v2413_v5 }
 0x193   : > { %v2433_v2 = vsel %vm2423_vm6, %v2419_v42, 1326507024  ;;  %vm2584_vm11 = vweird.f32 %v10997_v6  ;;  %v2028_v52 = vadd.s32 %v11228_v25, %v11234_v10  ;;  %v8648_v23 = vadd.s32 4294967294, %v2040_v60  ;;  %v9566_v25 = vld [vmem:[#allocation5 + $0x2cc] ss:$16 sps:$4 sm:$0xff]  }
 0x194   : > { %v2431_v13 = vsel %vm2421_vm7, %v2428_v63, %v2430_v54  ;;  %v2434_v46 = vsel %vm2422_vm8, %v2416_v3, %v2433_v2  ;;  %v2179_v18 = vsel %vm2168_vm4, nan, %v2178_v7  ;;  %vm11340_vm12 = vcmp.le.f32.partialorder %v1972_v61, 0.7853982  ;;  %v9564_v61 = vld [vmem:[#allocation5 + $0x2c8] ss:$16 sps:$4 sm:$0xff]   ;;  %8307 = vmatprep.subr.bf16.mxu1 %v9566_v25 }
 0x195   : > { %v2435_v30 = vsel %vm2421_vm7, %v2432_v38, %v2434_v46  ;;  %v11334_v9 = vmul.u32.u64.low %v11269_v15, %v2431_v13  ;;  %v11335_v45 = vmul.u32.u64.high %v11269_v15, %v2431_v13, %v11334_v9  ;;  %vm8649_vm13 = vcmp.lt.s32.totalorder %v8648_v23, 0  ;;  %8308 = vmatpush1.bf16.msra.mxu1 %v9564_v61 }
 0x196   : > { %v2427_v59 = vsel %vm2421_vm7, %v2424_v57, %v2426_v26  ;;  %v11347_v55 = vmul.u32.u64.low %v11269_v15, %v2435_v30  ;;  %v11348_v11 = vmul.u32.u64.high %v11269_v15, %v2435_v30, %v11347_v55  ;;  %vm2588_vm15 = vcmp.eq.s32.totalorder %v11261_v56, 0 }
 0x197   : > { %v2043_v12 = vsel %vm8649_vm13, 0, %v8648_v23  ;;  %v2058_v43 = vsub.s32 4, %v11263_v14  ;;  %v2911_v29 = vand.u32 2139095040, %v11311_v8  ;;  %vm2591_vm0 = vcmp.eq.s32.totalorder %v11261_v56, 2 }
 0x198   : > { %v2044_v62 = vsub.s32 32, %v2043_v12  ;;  %v2045_v53 = vshll.u32 %v11283_v34, %v2043_v12  ;;  %v2048_v1 = vsub.s32 4294967266, %v2043_v12  ;;  %v6981_v32 = vadd.f32 1.0, %v2179_v18 }
 0x199   : > { %v9674_v16 = vpop.eup %9673  ;;  %v2443_v27 = vmul.u32 %v11269_v15, %v2427_v59  ;;  %v2446_v22 = vadd.s32 1, %v11335_v45  ;;  %v2912_v24 = vshrl.u32 %v2911_v29, 23  ;;  %v2908_v19 = vand.u32 2147483647, %v11311_v8 }
 0x19a   : > { %v9676_v0 = vpop.eup %9675  ;;  %v2592_v37 = vxor.u32 2147483648, %v9674_v16  ;;  %v2046_v28 = vshrl.u32 %v2028_v52, %v2044_v62  ;;  %v2049_v49 = vadd.s32 127, %v2048_v1  ;;  %v2059_v34 = vsel %vm1974_vm9, %v2058_v43, %v11263_v14 }
 0x19b   : > { %v2589_v3 = vxor.u32 2147483648, %v9676_v0  ;;  %vm2445_vm14 = vc.u32 %v11348_v11, %v11334_v9  ;;  %v8682_v15 = vadd.s32 4294967169, %v2912_v24  ;;  %v11369_v63 = vmul.f32 %v209_v40, %v209_v40 }
 0x19c   : > { %v2593_v5 = vsel %vm2591_vm0, %v2592_v37, %v9676_v0  ;;  %v2047_v47 = vor.u32 %v2046_v28, %v2045_v53  ;;  %v2050_v58 = vshll.u32 %v2049_v49, 23  ;;  %v2447_v48 = vsel %vm2445_vm14, %v2446_v22, %v11335_v45 }
 0x19d   : > { %v2590_v42 = vsel %vm2588_vm15, %v9674_v16, %v2589_v3  ;;  %v2448_v17 = vadd.s32 %v2447_v48, %v2443_v27  ;;  %v2918_v21 = vadd.s32 1, %v8682_v15  ;;  %v7062_v7 = vmul.f32 1.442695, %v6981_v32 }
 0x19e   : > { %v2594_v14 = vsel %vm2587_vm10, %v2590_v42, %v2593_v5  ;;  %v2051_v60 = vor.u32 4788187, %v2050_v58  ;;  %v2054_v57 = vcvt.s32.f32 %v2047_v47  ;;  %v2061_v54 = vsel %vm11340_vm12, 0, %v2059_v34 }
 0x19f   : > { %v2595_v26 = vsel %vm2584_vm11, nan, %v2594_v14  ;;  %v2449_v38 = vadd.s32 536870912, %v2448_v17  ;;  %vm2919_vm1 = vcmp.gt.s32.totalorder %v2918_v21, 0  ;;  %v2915_v23 = vand.u32 8388607, %v2908_v19 }
 0x1a0   : > { %v6985_v2 = vadd.f32 1.0, %v2595_v26  ;;  %v2052_v52 = vand.u32 2147483647, %v2051_v60  ;;  %v2920_v13 = vsel %vm2919_vm1, %v2918_v21, 0  ;;  %9677 = vpow2.f32 %v7062_v7 }
 0x1a1   : > { %v11379_v46 = vshrl.u32 %v2449_v38, 30  ;;  %v2922_v56 = vand.u32 31, %v2920_v13  ;;  %v11381_v45 = vadd.s32 3, %v2061_v54  ;;  %v3324_v25 = vand.u32 2147483647, %v11369_v63 }
 0x1a2   : > { %v7070_v18 = vmul.f32 1.442695, %v6985_v2  ;;  %v2055_v30 = vmul.f32 %v2054_v57, %v2052_v52  ;;  %v3327_v59 = vand.u32 2139095040, %v11369_v63  ;;  %v2916_v20 = vor.u32 8388608, %v2915_v23 }
 0x1a3   : > { %v2451_v6 = vshll.u32 %v11379_v46, 30  ;;  %v2923_v36 = vsub.s32 32, %v2922_v56  ;;  %v2925_v12 = vshll.u32 %v15844_v31, %v2922_v56  ;;  %v2921_v29 = vshrl.u32 %v2920_v13, 5 }
 0x1a4   : > { %9679 = vpow2.f32 %v7070_v18  ;;  %v2056_v55 = vxor.u32 2147483648, %v2055_v30  ;;  %v2928_v62 = vshll.u32 %v15831_v33, %v2922_v56  ;;  %v2931_v16 = vshll.u32 %v15833_v35, %v2922_v56 }
 0x1a5   : > { %v11387_v43 = vsub.s32 %v2448_v17, %v2451_v6  ;;  %v2926_v61 = vshrl.u32 %v15831_v33, %v2923_v36  ;;  %v2929_v1 = vshrl.u32 %v15833_v35, %v2923_v36  ;;  %v2932_v32 = vshrl.u32 %v15835_v39, %v2923_v36 }
 0x1a6   : > { %v2057_v53 = vsel %vm1974_vm9, %v2056_v55, %v2055_v30  ;;  %v2444_v22 = vadd.s32 %v11334_v9, %v11348_v11  ;;  %v3328_v0 = vshrl.u32 %v3327_v59, 23  ;;  %v2924_v37 = vshrl.u32 %v15844_v31, %v2923_v36 }
 0x1a7   : > { %v2060_v27 = vsel %vm11340_vm12, %v11077_v4, %v2057_v53  ;;  %v2454_v24 = vsub.s32 0, %v11387_v43  ;;  %v2927_v28 = vor.u32 %v2926_v61, %v2925_v12  ;;  %v2934_v49 = vshll.u32 %v15835_v39, %v2922_v56 }
 0x1a8   : > { %v11404_v40 = vshll.u32 %v2916_v20, 8  ;;  %9681 = vcosq.f32 %v2060_v27  ;;  %v2930_v34 = vor.u32 %v2929_v1, %v2928_v62  ;;  %v2935_v10 = vshrl.u32 %v15842_v41, %v2923_v36 }
 0x1a9   : > { %v8663_v3 = vmin.u32 %v2454_v24, %v11387_v43  ;;  %vm2390_vm2 = vcmp.lt.s32.totalorder %v11174_v44, 0  ;;  %v2933_v15 = vor.u32 %v2932_v32, %v2931_v16  ;;  %v2937_v9 = vshll.u32 %v15842_v41, %v2922_v56 }
 0x1aa   : > { %v2938_v11 = vshrl.u32 %v15838_v51, %v2923_v36  ;;  %vm2940_vm3 = vcmp.lt.s32.totalorder %v2921_v29, 1  ;;  %9683 = vsinq.f32 %v2060_v27  ;;  %vm2941_vm4 = vcmp.lt.s32.totalorder %v2921_v29, 2  ;;  %v9678_v58 = vpop.eup %9677 }
 0x1ab   : > { %v2456_v5 = vclz %v8663_v3  ;;  %v8698_v47 = vadd.s32 4294967169, %v3328_v0  ;;  %v2936_v48 = vor.u32 %v2935_v10, %v2934_v49  ;;  %vm2942_vm5 = vcmp.lt.s32.totalorder %v2921_v29, 3 }
 0x1ac   : > { %v2939_v42 = vor.u32 %v2938_v11, %v2937_v9  ;;  %vm2943_vm6 = vcmp.lt.s32.totalorder %v2921_v29, 4  ;;  %v2944_v21 = vsel %vm2940_vm3, %v2924_v37, %v2927_v28  ;;  %v2948_v7 = vsel %vm2940_vm3, %v2927_v28, %v2930_v34 }
 0x1ad   : > { %v8664_v17 = vadd.s32 4294967294, %v2456_v5  ;;  %v2945_v14 = vsel %vm2943_vm6, %v2933_v15, 2102212464  ;;  %v2949_v26 = vsel %vm2943_vm6, %v2936_v48, 920167782  ;;  %v2952_v54 = vsel %vm2940_vm3, %v2930_v34, %v2933_v15 }
 0x1ae   : > { %v9680_v60 = vpop.eup %9679  ;;  %v2946_v57 = vsel %vm2942_vm5, %v2930_v34, %v2945_v14  ;;  %v2953_v38 = vsel %vm2943_vm6, %v2939_v42, 1326507024  ;;  %v2474_v52 = vsub.s32 4, %v11379_v46  ;;  %v2950_v23 = vsel %vm2942_vm5, %v2933_v15, %v2949_v26 }
 0x1af   : > { %v7165_v2 = vpack.c.bf16 %v9680_v60, %v9678_v58  ;;  %vm8665_vm7 = vcmp.lt.s32.totalorder %v8664_v17, 0  ;;  %v2947_v56 = vsel %vm2941_vm4, %v2944_v21, %v2946_v57  ;;  %v2951_v18 = vsel %vm2941_vm4, %v2948_v7, %v2950_v23 }
 0x1b0   : > { %v2459_v13 = vsel %vm8665_vm7, 0, %v8664_v17  ;;  %v2954_v30 = vsel %vm2942_vm5, %v2936_v48, %v2953_v38  ;;  %v11427_v61 = vmul.u32.u64.low %v11404_v40, %v2951_v18  ;;  %v11428_v62 = vmul.u32.u64.high %v11404_v40, %v2951_v18, %v11427_v61 }
 0x1b1   : > { %8008 = vmatprep.mubr.bf16.mxu0 %v7165_v2  ;;  %8234 = vmatprep.mubr.bf16.mxu1 %v7165_v2  ;;  %v2460_v6 = vsub.s32 32, %v2459_v13  ;;  %v2461_v36 = vshll.u32 %v11387_v43, %v2459_v13  ;;  %v2464_v59 = vsub.s32 4294967266, %v2459_v13  ;;  %v2955_v55 = vsel %vm2941_vm4, %v2952_v54, %v2954_v30 }
 0x1b2   : > { %v11423_v20 = vmul.u32.u64.low %v11404_v40, %v2955_v55  ;;  %v11424_v12 = vmul.u32.u64.high %v11404_v40, %v2955_v55, %v11423_v20  ;;  %v9682_v53 = vpop.eup %9681  ;;  %v2475_v32 = vsel %vm2390_vm2, %v2474_v52, %v11379_v46  ;;  %v3334_v43 = vadd.s32 1, %v8698_v47 }
 0x1b3   : > { %v2462_v1 = vshrl.u32 %v2444_v22, %v2460_v6  ;;  %v2465_v16 = vadd.s32 127, %v2464_v59  ;;  %v11435_v29 = vand.u32 3, %v11381_v45  ;;  %vm11439_vm8 = vcmp.le.f32.partialorder %v2388_v50, 0.7853982 }
 0x1b4   : > { %v11445_v24 = vand.u32 8388607, %v3324_v25  ;;  %v9684_v22 = vpop.eup %9683  ;;  %v2963_v28 = vmul.u32 %v11404_v40, %v2947_v56  ;;  %vm3335_vm9 = vcmp.gt.s32.totalorder %v3334_v43, 0  ;;  %v2477_v46 = vsel %vm11439_vm8, 0, %v2475_v32  ;;  %v204_v32 = vld [vmem:[%s10310_s3 + $0xc0] sm:$0xff] }
 0x1b5   : > { %v2463_v0 = vor.u32 %v2462_v1, %v2461_v36  ;;  %v2466_v37 = vshll.u32 %v2465_v16, 23  ;;  %vm2965_vm10 = vc.u32 %v11424_v12, %v11427_v61  ;;  %v2966_v50 = vadd.s32 1, %v11428_v62 }
 0x1b6   : > { %v3336_v3 = vsel %vm3335_vm9, %v3334_v43, 0  ;;  %vm2068_vm11 = vcmp.eq.s32.totalorder %v11435_v29, 0  ;;  %vm2071_vm12 = vcmp.eq.s32.totalorder %v11435_v29, 2  ;;  %v2481_v15 = vadd.s32 3, %v2477_v46 }
 0x1b7   : > { %v2467_v45 = vor.u32 4788187, %v2466_v37  ;;  %v2470_v49 = vcvt.s32.f32 %v2463_v0  ;;  %v2967_v34 = vsel %vm2965_vm10, %v2966_v50, %v11428_v62  ;;  %v3338_v10 = vand.u32 31, %v3336_v3 }
 0x1b8   : > { %v2968_v9 = vadd.s32 %v2967_v34, %v2963_v28  ;;  %v3332_v11 = vor.u32 8388608, %v11445_v24  ;;  %vm2067_vm13 = vcmp.lt.s32.totalorder %v11435_v29, 2  ;;  %v2069_v5 = vxor.u32 2147483648, %v9684_v22 }
 0x1b9   : > { %v2468_v40 = vand.u32 2147483647, %v2467_v45  ;;  %v2072_v47 = vxor.u32 2147483648, %v9682_v53  ;;  %v11458_v58 = vshrl.u32 %v3336_v3, 5  ;;  %v3339_v48 = vsub.s32 32, %v3338_v10 }
 0x1ba   : > { %v2969_v17 = vadd.s32 536870912, %v2968_v9  ;;  %v3341_v21 = vshll.u32 %v15844_v31, %v3338_v10  ;;  %v3344_v14 = vshll.u32 %v15831_v33, %v3338_v10  ;;  %v3347_v57 = vshll.u32 %v15833_v35, %v3338_v10 }
 0x1bb   : > { %v2471_v42 = vmul.f32 %v2470_v49, %v2468_v40  ;;  %v3342_v7 = vshrl.u32 %v15831_v33, %v3339_v48  ;;  %v3345_v60 = vshrl.u32 %v15833_v35, %v3339_v48  ;;  %v3350_v26 = vshll.u32 %v15835_v39, %v3338_v10 }
 0x1bc   : > { %vm2064_vm15 = vweird.f32 %v11077_v4  ;;  %v11467_v38 = vshrl.u32 %v2969_v17, 30  ;;  %v3348_v2 = vshrl.u32 %v15835_v39, %v3339_v48  ;;  %v3351_v52 = vshrl.u32 %v15842_v41, %v3339_v48 }
 0x1bd   : > { %v2472_v54 = vxor.u32 2147483648, %v2471_v42  ;;  %v2070_v23 = vsel %vm2068_vm11, %v9682_v53, %v2069_v5  ;;  %v2073_v13 = vsel %vm2071_vm12, %v2072_v47, %v9684_v22  ;;  %v11475_v56 = vand.u32 3, %v2481_v15 }
 0x1be   : > { %v3353_v18 = vshll.u32 %v15842_v41, %v3338_v10  ;;  %v2971_v6 = vshll.u32 %v11467_v38, 30  ;;  %v3340_v36 = vshrl.u32 %v15844_v31, %v3339_v48  ;;  %v3343_v59 = vor.u32 %v3342_v7, %v3341_v21 }
 0x1bf   : > { %v2473_v30 = vsel %vm2390_vm2, %v2472_v54, %v2471_v42  ;;  %v3346_v20 = vor.u32 %v3345_v60, %v3344_v14  ;;  %v3352_v62 = vor.u32 %v3351_v52, %v3350_v26  ;;  %v3354_v53 = vshrl.u32 %v15838_v51, %v3339_v48  ;;  %v9567_v14 = vld [vmem:[#allocation5 + $0x2e0] ss:$16 sps:$4 sm:$0xff]   ;;  %v9569_v26 = vld [vmem:[#allocation5 + $0x2e4] ss:$16 sps:$4 sm:$0xff]   ;;  %v9570_v54 = vld [vmem:[#allocation5 + $0x2e8] ss:$16 sps:$4 sm:$0xff]  }
 0x1c0   : > { %v2476_v55 = vsel %vm11439_vm8, %v11174_v44, %v2473_v30  ;;  %v11486_v1 = vsub.s32 %v2968_v9, %v2971_v6  ;;  %v3349_v16 = vor.u32 %v3348_v2, %v3347_v57  ;;  %vm3356_vm0 = vcmp.lt.s32.totalorder %v11458_v58, 1  ;;  %8083 = vmatprep.subr.bf16.mxu0 %v9569_v26 }
 0x1c1   : > { %9685 = vcosq.f32 %v2476_v55  ;;  %v3355_v43 = vor.u32 %v3354_v53, %v3353_v18  ;;  %vm3358_vm14 = vcmp.lt.s32.totalorder %v11458_v58, 3  ;;  %vm3359_vm1 = vcmp.lt.s32.totalorder %v11458_v58, 4  ;;  %8084 = vmatpush1.bf16.msra.mxu0 %v9567_v14 }
 0x1c2   : > { %9687 = vsinq.f32 %v2476_v55  ;;  %vm2910_vm2 = vcmp.lt.s32.totalorder %v11311_v8, 0  ;;  %v2974_v27 = vsub.s32 0, %v11486_v1  ;;  %vm3357_vm3 = vcmp.lt.s32.totalorder %v11458_v58, 2 }
 0x1c3   : > { %v3361_v24 = vsel %vm3359_vm1, %v3349_v16, 2102212464  ;;  %v3364_v22 = vsel %vm3356_vm0, %v3343_v59, %v3346_v20  ;;  %v3365_v0 = vsel %vm3359_vm1, %v3352_v62, 920167782  ;;  %v11501_v37 = vshll.u32 %v3332_v11, 8 }
 0x1c4   : > { %v11503_v28 = vmul.f32 %v204_v32, %v204_v32  ;;  %v2074_v46 = vsel %vm2067_vm13, %v2070_v23, %v2073_v13  ;;  %vm2483_vm4 = vcmp.lt.s32.totalorder %v11475_v56, 2  ;;  %v8683_v50 = vmin.u32 %v2974_v27, %v11486_v1  ;;  %v9572_v13 = vld [vmem:[#allocation5 + $0x2ec] ss:$16 sps:$4 sm:$0xff]  }
 0x1c5   : > { %v3360_v45 = vsel %vm3356_vm0, %v3340_v36, %v3343_v59  ;;  %v3366_v49 = vsel %vm3358_vm14, %v3349_v16, %v3365_v0  ;;  %vm2480_vm5 = vweird.f32 %v11174_v44  ;;  %v3362_v3 = vsel %vm3358_vm14, %v3346_v20, %v3361_v24  ;;  %8309 = vmatprep.subr.bf16.mxu1 %v9572_v13 }
 0x1c6   : > { %v3367_v34 = vsel %vm3357_vm3, %v3364_v22, %v3366_v49  ;;  %v3368_v29 = vsel %vm3356_vm0, %v3346_v20, %v3349_v16  ;;  %v3369_v10 = vsel %vm3359_vm1, %v3355_v43, 1326507024  ;;  %vm2484_vm6 = vcmp.eq.s32.totalorder %v11475_v56, 0  ;;  %8310 = vmatpush1.bf16.msra.mxu1 %v9570_v54 }
 0x1c7   : > { %vm2487_vm7 = vcmp.eq.s32.totalorder %v11475_v56, 2  ;;  %v2976_v40 = vclz %v8683_v50  ;;  %v2994_v15 = vsub.s32 4, %v11467_v38  ;;  %v2075_v9 = vsel %vm2064_vm15, nan, %v2074_v46 }
 0x1c8   : > { %v3370_v11 = vsel %vm3358_vm14, %v3352_v62, %v3369_v10  ;;  %v11530_v5 = vmul.u32.u64.low %v11501_v37, %v3367_v34  ;;  %v11531_v47 = vmul.u32.u64.high %v11501_v37, %v3367_v34, %v11530_v5  ;;  %vm11536_vm8 = vcmp.le.f32.partialorder %v2908_v19, 0.7853982  ;;  %v208_v62 = vld [vmem:[%s10310_s3 + $0xe0] sm:$0xff] }
 0x1c9   : > { %v8684_v42 = vadd.s32 4294967294, %v2976_v40  ;;  %v3363_v17 = vsel %vm3357_vm3, %v3360_v45, %v3362_v3  ;;  %v3371_v4 = vsel %vm3357_vm3, %v3368_v29, %v3370_v11  ;;  %v2807_v21 = vand.u32 2139095040, %v11503_v28 }
 0x1ca   : > { %v2964_v7 = vadd.s32 %v11427_v61, %v11424_v12  ;;  %v11548_v60 = vmul.u32.u64.low %v11501_v37, %v3371_v4  ;;  %v11549_v57 = vmul.u32.u64.high %v11501_v37, %v3371_v4, %v11548_v60  ;;  %v2804_v19 = vand.u32 2147483647, %v11503_v28 }
 0x1cb   : > { %v9686_v2 = vpop.eup %9685  ;;  %v6980_v52 = vadd.f32 1.0, %v2075_v9  ;;  %vm8685_vm9 = vcmp.lt.s32.totalorder %v8684_v42, 0  ;;  %v2995_v58 = vsel %vm2910_vm2, %v2994_v15, %v11467_v38  ;;  %v2808_v23 = vshrl.u32 %v2807_v21, 23 }
 0x1cc   : > { %v9688_v18 = vpop.eup %9687  ;;  %v2488_v12 = vxor.u32 2147483648, %v9686_v2  ;;  %v2979_v61 = vsel %vm8685_vm9, 0, %v8684_v42  ;;  %v3379_v30 = vmul.u32 %v11501_v37, %v3363_v17  ;;  %v3382_v6 = vadd.s32 1, %v11531_v47 }
 0x1cd   : > { %v2485_v36 = vxor.u32 2147483648, %v9688_v18  ;;  %v2980_v59 = vsub.s32 32, %v2979_v61  ;;  %v2981_v55 = vshll.u32 %v11486_v1, %v2979_v61  ;;  %v2984_v20 = vsub.s32 4294967266, %v2979_v61 }
 0x1ce   : > { %v2489_v38 = vsel %vm2487_vm7, %v2488_v12, %v9688_v18  ;;  %vm3381_vm10 = vc.u32 %v11549_v57, %v11530_v5  ;;  %v8678_v53 = vadd.s32 4294967169, %v2808_v23  ;;  %v2811_v16 = vand.u32 8388607, %v2804_v19 }
 0x1cf   : > { %v2486_v32 = vsel %vm2484_vm6, %v9686_v2, %v2485_v36  ;;  %v2982_v43 = vshrl.u32 %v2964_v7, %v2980_v59  ;;  %v2985_v1 = vadd.s32 127, %v2984_v20  ;;  %v3383_v27 = vsel %vm3381_vm10, %v3382_v6, %v11531_v47 }
 0x1d0   : > { %v2490_v24 = vsel %vm2483_vm4, %v2486_v32, %v2489_v38  ;;  %v7060_v22 = vmul.f32 1.442695, %v6980_v52  ;;  %v3384_v0 = vadd.s32 %v3383_v27, %v3379_v30  ;;  %v2814_v37 = vadd.s32 1, %v8678_v53 }
 0x1d1   : > { %v2491_v46 = vsel %vm2480_vm5, nan, %v2490_v24  ;;  %v2983_v50 = vor.u32 %v2982_v43, %v2981_v55  ;;  %v2986_v45 = vshll.u32 %v2985_v1, 23  ;;  %v11572_v49 = vmul.f32 %v208_v62, %v208_v62 }
 0x1d2   : > { %v6984_v3 = vadd.f32 1.0, %v2491_v46  ;;  %v2997_v34 = vsel %vm11536_vm8, 0, %v2995_v58  ;;  %v3385_v29 = vadd.s32 536870912, %v3384_v0  ;;  %vm2815_vm11 = vcmp.gt.s32.totalorder %v2814_v37, 0 }
 0x1d3   : > { %v2987_v10 = vor.u32 4788187, %v2986_v45  ;;  %v2990_v40 = vcvt.s32.f32 %v2983_v50  ;;  %v2812_v56 = vor.u32 8388608, %v2811_v16  ;;  %v2816_v15 = vsel %vm2815_vm11, %v2814_v37, 0 }
 0x1d4   : > { %9689 = vpow2.f32 %v7060_v22  ;;  %v7068_v9 = vmul.f32 1.442695, %v6984_v3  ;;  %v3386_v11 = vshrl.u32 %v3385_v29, 30  ;;  %v2818_v47 = vand.u32 31, %v2816_v15 }
 0x1d5   : > { %v2988_v44 = vand.u32 2147483647, %v2987_v10  ;;  %v11576_v42 = vadd.s32 3, %v2997_v34  ;;  %vm3326_vm12 = vcmp.lt.s32.totalorder %v11369_v63, 0  ;;  %v3220_v17 = vand.u32 2147483647, %v11572_v49 }
 0x1d6   : > { %9691 = vpow2.f32 %v7068_v9  ;;  %v3387_v4 = vshll.u32 %v3386_v11, 30  ;;  %v2819_v21 = vsub.s32 32, %v2818_v47  ;;  %v3223_v14 = vand.u32 2139095040, %v11572_v49 }
 0x1d7   : > { %v2991_v7 = vmul.f32 %v2990_v40, %v2988_v44  ;;  %v3380_v60 = vadd.s32 %v11530_v5, %v11549_v57  ;;  %v2821_v26 = vshll.u32 %v15844_v31, %v2818_v47  ;;  %v11584_v54 = vshll.u32 %v2812_v56, 8 }
 0x1d8   : > { %v11586_v2 = vsub.s32 %v3384_v0, %v3387_v4  ;;  %v2817_v52 = vshrl.u32 %v2816_v15, 5  ;;  %v2822_v58 = vshrl.u32 %v15831_v33, %v2819_v21  ;;  %v2824_v23 = vshll.u32 %v15831_v33, %v2818_v47 }
 0x1d9   : > { %v2992_v13 = vxor.u32 2147483648, %v2991_v7  ;;  %v2825_v18 = vshrl.u32 %v15833_v35, %v2819_v21  ;;  %v2827_v12 = vshll.u32 %v15833_v35, %v2818_v47  ;;  %v2828_v61 = vshrl.u32 %v15835_v39, %v2819_v21 }
 0x1da   : > { %v3390_v5 = vsub.s32 0, %v11586_v2  ;;  %v3410_v57 = vsub.s32 4, %v3386_v11  ;;  %v2830_v30 = vshll.u32 %v15835_v39, %v2818_v47  ;;  %v3224_v6 = vshrl.u32 %v3223_v14, 23 }
 0x1db   : > { %v2993_v36 = vsel %vm2910_vm2, %v2992_v13, %v2991_v7  ;;  %v2820_v59 = vshrl.u32 %v15844_v31, %v2819_v21  ;;  %v2823_v55 = vor.u32 %v2822_v58, %v2821_v26  ;;  %v2831_v20 = vshrl.u32 %v15842_v41, %v2819_v21 }
 0x1dc   : > { %v2996_v38 = vsel %vm11536_vm8, %v11311_v8, %v2993_v36  ;;  %v8699_v62 = vmin.u32 %v3390_v5, %v11586_v2  ;;  %v2826_v53 = vor.u32 %v2825_v18, %v2824_v23  ;;  %v2833_v16 = vshll.u32 %v15842_v41, %v2818_v47 }
 0x1dd   : > { %vm11606_vm13 = vcmp.le.f32.partialorder %v3324_v25, 0.7853982  ;;  %v2829_v43 = vor.u32 %v2828_v61, %v2827_v12  ;;  %v2832_v1 = vor.u32 %v2831_v20, %v2830_v30  ;;  %v2834_v27 = vshrl.u32 %v15838_v51, %v2819_v21 }
 0x1de   : > { %vm2836_vm15 = vcmp.lt.s32.totalorder %v2817_v52, 1  ;;  %v9690_v24 = vpop.eup %9689  ;;  %9693 = vcosq.f32 %v2996_v38  ;;  %v3392_v48 = vclz %v8699_v62  ;;  %v3411_v22 = vsel %vm3326_vm12, %v3410_v57, %v3386_v11 }
 0x1df   : > { %v8694_v0 = vadd.s32 4294967169, %v3224_v6  ;;  %9695 = vsinq.f32 %v2996_v38  ;;  %v2835_v37 = vor.u32 %v2834_v27, %v2833_v16  ;;  %vm2837_vm0 = vcmp.lt.s32.totalorder %v2817_v52, 2 }
 0x1e0   : > { %vm2838_vm14 = vcmp.lt.s32.totalorder %v2817_v52, 3  ;;  %v9692_v25 = vpop.eup %9691  ;;  %v8700_v46 = vadd.s32 4294967294, %v3392_v48  ;;  %vm2839_vm1 = vcmp.lt.s32.totalorder %v2817_v52, 4  ;;  %v2840_v50 = vsel %vm2836_vm15, %v2820_v59, %v2823_v55 }
 0x1e1   : > { %v2844_v45 = vsel %vm2836_vm15, %v2823_v55, %v2826_v53  ;;  %v7164_v3 = vpack.c.bf16 %v9692_v25, %v9690_v24  ;;  %v2841_v34 = vsel %vm2839_vm1, %v2829_v43, 2102212464  ;;  %v2845_v29 = vsel %vm2839_vm1, %v2832_v1, 920167782 }
 0x1e2   : > { %v2848_v10 = vsel %vm2836_vm15, %v2826_v53, %v2829_v43  ;;  %vm8701_vm2 = vcmp.lt.s32.totalorder %v8700_v46, 0  ;;  %v2842_v40 = vsel %vm2838_vm14, %v2826_v53, %v2841_v34  ;;  %v2846_v56 = vsel %vm2838_vm14, %v2829_v43, %v2845_v29 }
 0x1e3   : > { %v2849_v15 = vsel %vm2839_vm1, %v2835_v37, 1326507024  ;;  %8009 = vmatmul.mubr.bf16.gmra.mrb[8].mxu0 %v7164_v3  ;;  %8235 = vmatmul.mubr.bf16.gmra.mrb[8].mxu1 %v7164_v3  ;;  %v3395_v9 = vsel %vm8701_vm2, 0, %v8700_v46  ;;  %v2843_v11 = vsel %vm2837_vm0, %v2840_v50, %v2842_v40  ;;  %v2847_v47 = vsel %vm2837_vm0, %v2844_v45, %v2846_v56 }
 0x1e4   : > { %v2850_v44 = vsel %vm2838_vm14, %v2832_v1, %v2849_v15  ;;  %v3396_v4 = vsub.s32 32, %v3395_v9  ;;  %v3397_v21 = vshll.u32 %v11586_v2, %v3395_v9  ;;  %v3400_v14 = vsub.s32 4294967266, %v3395_v9 }
 0x1e5   : > { %v2851_v7 = vsel %vm2837_vm0, %v2848_v10, %v2850_v44  ;;  %v11628_v23 = vmul.u32.u64.low %v11584_v54, %v2847_v47  ;;  %v11629_v13 = vmul.u32.u64.high %v11584_v54, %v2847_v47, %v11628_v23  ;;  %v3413_v61 = vsel %vm11606_vm13, 0, %v3411_v22 }
 0x1e6   : > { %v11624_v26 = vmul.u32.u64.low %v11584_v54, %v2851_v7  ;;  %v11625_v58 = vmul.u32.u64.high %v11584_v54, %v2851_v7, %v11624_v26  ;;  %v3398_v18 = vshrl.u32 %v3380_v60, %v3396_v4  ;;  %v3401_v12 = vadd.s32 127, %v3400_v14 }
 0x1e7   : > { %v3230_v5 = vadd.s32 1, %v8694_v0  ;;  %v11635_v2 = vand.u32 3, %v11576_v42  ;;  %v3227_v52 = vand.u32 8388607, %v3220_v17  ;;  %v2859_v36 = vmul.u32 %v11584_v54, %v2843_v11 }
 0x1e8   : > { %v9694_v57 = vpop.eup %9693  ;;  %v3399_v30 = vor.u32 %v3398_v18, %v3397_v21  ;;  %v3402_v6 = vshll.u32 %v3401_v12, 23  ;;  %v3417_v55 = vadd.s32 3, %v3413_v61  ;;  %vm2861_vm4 = vc.u32 %v11625_v58, %v11628_v23 }
 0x1e9   : > { %vm3231_vm3 = vcmp.gt.s32.totalorder %v3230_v5, 0  ;;  %v9696_v59 = vpop.eup %9695  ;;  %v2862_v60 = vadd.s32 1, %v11629_v13  ;;  %vm3004_vm5 = vcmp.eq.s32.totalorder %v11635_v2, 0  ;;  %vm3003_vm6 = vcmp.lt.s32.totalorder %v11635_v2, 2 }
 0x1ea   : > { %v3403_v20 = vor.u32 4788187, %v3402_v6  ;;  %v3406_v38 = vcvt.s32.f32 %v3399_v30  ;;  %v3232_v42 = vsel %vm3231_vm3, %v3230_v5, 0  ;;  %vm3007_vm7 = vcmp.eq.s32.totalorder %v11635_v2, 2 }
 0x1eb   : > { %v2863_v62 = vsel %vm2861_vm4, %v2862_v60, %v11629_v13  ;;  %v3234_v53 = vand.u32 31, %v3232_v42  ;;  %v3228_v43 = vor.u32 8388608, %v3227_v52  ;;  %v3005_v1 = vxor.u32 2147483648, %v9696_v59  ;;  %v213_v52 = vld [vmem:[%s10310_s3 + $0x108] sm:$0xff] }
 0x1ec   : > { %v3404_v54 = vand.u32 2147483647, %v3403_v20  ;;  %v2864_v16 = vadd.s32 %v2863_v62, %v2859_v36  ;;  %v3008_v27 = vxor.u32 2147483648, %v9694_v57  ;;  %v11647_v24 = vand.u32 3, %v3417_v55 }
 0x1ed   : > { %v3235_v48 = vsub.s32 32, %v3234_v53  ;;  %v3237_v37 = vshll.u32 %v15844_v31, %v3234_v53  ;;  %v3240_v25 = vshll.u32 %v15831_v33, %v3234_v53  ;;  %vm3000_vm8 = vweird.f32 %v11311_v8 }
 0x1ee   : > { %v3407_v22 = vmul.f32 %v3406_v38, %v3404_v54  ;;  %v2865_v0 = vadd.s32 536870912, %v2864_v16  ;;  %v3233_v46 = vshrl.u32 %v3232_v42, 5  ;;  %v3243_v3 = vshll.u32 %v15833_v35, %v3234_v53 }
 0x1ef   : > { %v3238_v50 = vshrl.u32 %v15831_v33, %v3235_v48  ;;  %v3241_v45 = vshrl.u32 %v15833_v35, %v3235_v48  ;;  %v3244_v10 = vshrl.u32 %v15835_v39, %v3235_v48  ;;  %v3246_v40 = vshll.u32 %v15835_v39, %v3234_v53 }
 0x1f0   : > { %v3408_v34 = vxor.u32 2147483648, %v3407_v22  ;;  %v11655_v29 = vshrl.u32 %v2865_v0, 30  ;;  %v3006_v56 = vsel %vm3004_vm5, %v9694_v57, %v3005_v1  ;;  %v3009_v15 = vsel %vm3007_vm7, %v3008_v27, %v9696_v59 }
 0x1f1   : > { %v3236_v9 = vshrl.u32 %v15844_v31, %v3235_v48  ;;  %v3247_v11 = vshrl.u32 %v15842_v41, %v3235_v48  ;;  %v3239_v4 = vor.u32 %v3238_v50, %v3237_v37  ;;  %v3242_v21 = vor.u32 %v3241_v45, %v3240_v25  ;;  %v9575_v25 = vld [vmem:[#allocation5 + $0x304] ss:$16 sps:$4 sm:$0xff]  }
 0x1f2   : > { %v3409_v47 = vsel %vm3326_vm12, %v3408_v34, %v3407_v22  ;;  %v2867_v44 = vshll.u32 %v11655_v29, 30  ;;  %v3249_v26 = vshll.u32 %v15842_v41, %v3234_v53  ;;  %v3250_v13 = vshrl.u32 %v15838_v51, %v3235_v48  ;;  %8085 = vmatprep.subr.bf16.mxu0 %v9575_v25 }
 0x1f3   : > { %v3412_v14 = vsel %vm11606_vm13, %v11369_v63, %v3409_v47  ;;  %v3248_v7 = vor.u32 %v3247_v11, %v3246_v40  ;;  %v3245_v12 = vor.u32 %v3244_v10, %v3243_v3  ;;  %vm3252_vm9 = vcmp.lt.s32.totalorder %v3233_v46, 1  ;;  %v9573_v10 = vld [vmem:[#allocation5 + $0x300] ss:$16 sps:$4 sm:$0xff]  }
 0x1f4   : > { %9697 = vcosq.f32 %v3412_v14  ;;  %v11673_v18 = vsub.s32 %v2864_v16, %v2867_v44  ;;  %vm2806_vm10 = vcmp.lt.s32.totalorder %v11503_v28, 0  ;;  %v3251_v61 = vor.u32 %v3250_v13, %v3249_v26  ;;  %v9578_v44 = vld [vmem:[#allocation5 + $0x30c] ss:$16 sps:$4 sm:$0xff]   ;;  %8086 = vmatpush1.bf16.msra.mxu0 %v9573_v10 }
 0x1f5   : > { %9699 = vsinq.f32 %v3412_v14  ;;  %v11676_v5 = vshll.u32 %v3228_v43, 8  ;;  %vm3253_vm11 = vcmp.lt.s32.totalorder %v3233_v46, 2  ;;  %vm3254_vm12 = vcmp.lt.s32.totalorder %v3233_v46, 3  ;;  %v217_v26 = vld [vmem:[%s10310_s3 + $0x128] sm:$0xff]  ;;  %8311 = vmatprep.subr.bf16.mxu1 %v9578_v44 }
 0x1f6   : > { %v2870_v32 = vsub.s32 0, %v11673_v18  ;;  %vm3255_vm13 = vcmp.lt.s32.totalorder %v3233_v46, 4  ;;  %v3010_v57 = vsel %vm3003_vm6, %v3006_v56, %v3009_v15  ;;  %v3260_v6 = vsel %vm3252_vm9, %v3239_v4, %v3242_v21  ;;  %v9576_v46 = vld [vmem:[#allocation5 + $0x308] ss:$16 sps:$4 sm:$0xff]  }
 0x1f7   : > { %v3257_v30 = vsel %vm3255_vm13, %v3245_v12, 2102212464  ;;  %v3261_v36 = vsel %vm3255_vm13, %v3248_v7, 920167782  ;;  %vm3419_vm15 = vcmp.lt.s32.totalorder %v11647_v24, 2  ;;  %v3256_v55 = vsel %vm3252_vm9, %v3236_v9, %v3239_v4  ;;  %8312 = vmatpush1.bf16.msra.mxu1 %v9576_v46 }
 0x1f8   : > { %v8679_v59 = vmin.u32 %v2870_v32, %v11673_v18  ;;  %v3258_v60 = vsel %vm3254_vm12, %v3242_v21, %v3257_v30  ;;  %v3262_v20 = vsel %vm3254_vm12, %v3245_v12, %v3261_v36  ;;  %vm3416_vm0 = vweird.f32 %v11369_v63 }
 0x1f9   : > { %v3263_v38 = vsel %vm3253_vm11, %v3260_v6, %v3262_v20  ;;  %v3264_v2 = vsel %vm3252_vm9, %v3242_v21, %v3245_v12  ;;  %v3265_v42 = vsel %vm3255_vm13, %v3251_v61, 1326507024  ;;  %v11691_v62 = vmul.f32 %v213_v52, %v213_v52 }
 0x1fa   : > { %v3011_v53 = vsel %vm3000_vm8, nan, %v3010_v57  ;;  %vm3420_vm14 = vcmp.eq.s32.totalorder %v11647_v24, 0  ;;  %v2872_v54 = vclz %v8679_v59  ;;  %v2890_v16 = vsub.s32 4, %v11655_v29 }
 0x1fb   : > { %v3259_v43 = vsel %vm3253_vm11, %v3256_v55, %v3258_v60  ;;  %v3266_v1 = vsel %vm3254_vm12, %v3248_v7, %v3265_v42  ;;  %v11700_v27 = vmul.u32.u64.low %v11676_v5, %v3263_v38  ;;  %v11701_v48 = vmul.u32.u64.high %v11676_v5, %v3263_v38, %v11700_v27 }
 0x1fc   : > { %vm3423_vm1 = vcmp.eq.s32.totalorder %v11647_v24, 2  ;;  %vm11707_vm2 = vcmp.le.f32.partialorder %v2804_v19, 0.7853982  ;;  %v2860_v22 = vadd.s32 %v11628_v23, %v11625_v58  ;;  %v8680_v0 = vadd.s32 4294967294, %v2872_v54 }
 0x1fd   : > { %v3267_v37 = vsel %vm3253_vm11, %v3264_v2, %v3266_v1  ;;  %v3740_v3 = vand.u32 2147483647, %v11691_v62  ;;  %v3743_v34 = vand.u32 2139095040, %v11691_v62  ;;  %v6989_v40 = vadd.f32 1.0, %v3011_v53 }
 0x1fe   : > { %v11715_v50 = vmul.u32.u64.low %v11676_v5, %v3267_v37  ;;  %v11716_v45 = vmul.u32.u64.high %v11676_v5, %v3267_v37, %v11715_v50  ;;  %v9698_v19 = vpop.eup %9697  ;;  %vm8681_vm3 = vcmp.lt.s32.totalorder %v8680_v0, 0  ;;  %v2891_v58 = vsel %vm2806_vm10, %v2890_v16, %v11655_v29 }
 0x1ff   : > { %v3275_v23 = vmul.u32 %v11676_v5, %v3259_v43  ;;  %v9700_v56 = vpop.eup %9699  ;;  %v3424_v15 = vxor.u32 2147483648, %v9698_v19  ;;  %v2875_v9 = vsel %vm8681_vm3, 0, %v8680_v0  ;;  %v3278_v11 = vadd.s32 1, %v11701_v48 }
 0x200   : > { %v3744_v47 = vshrl.u32 %v3743_v34, 23  ;;  %v3421_v4 = vxor.u32 2147483648, %v9700_v56  ;;  %v2876_v21 = vsub.s32 32, %v2875_v9  ;;  %v2877_v14 = vshll.u32 %v11673_v18, %v2875_v9 }
 0x201   : > { %v2880_v7 = vsub.s32 4294967266, %v2875_v9  ;;  %v3425_v29 = vsel %vm3423_vm1, %v3424_v15, %v9700_v56  ;;  %vm3277_vm4 = vc.u32 %v11716_v45, %v11700_v27  ;;  %v3747_v12 = vand.u32 8388607, %v3740_v3 }
 0x202   : > { %v8714_v13 = vadd.s32 4294967169, %v3744_v47  ;;  %v3422_v61 = vsel %vm3420_vm14, %v9698_v19, %v3421_v4  ;;  %v2878_v5 = vshrl.u32 %v2860_v22, %v2876_v21  ;;  %v3279_v18 = vsel %vm3277_vm4, %v3278_v11, %v11701_v48 }
 0x203   : > { %v2881_v32 = vadd.s32 127, %v2880_v7  ;;  %v3426_v52 = vsel %vm3419_vm15, %v3422_v61, %v3425_v29  ;;  %v7078_v57 = vmul.f32 1.442695, %v6989_v40  ;;  %v3280_v30 = vadd.s32 %v3279_v18, %v3275_v23 }
 0x204   : > { %v3750_v6 = vadd.s32 1, %v8714_v13  ;;  %v3427_v36 = vsel %vm3416_vm0, nan, %v3426_v52  ;;  %v2879_v59 = vor.u32 %v2878_v5, %v2877_v14  ;;  %v11740_v60 = vmul.f32 %v217_v26, %v217_v26 }
 0x205   : > { %v2882_v55 = vshll.u32 %v2881_v32, 23  ;;  %v6993_v20 = vadd.f32 1.0, %v3427_v36  ;;  %v2893_v38 = vsel %vm11707_vm2, 0, %v2891_v58  ;;  %v3281_v2 = vadd.s32 536870912, %v3280_v30 }
 0x206   : > { %vm3751_vm5 = vcmp.gt.s32.totalorder %v3750_v6, 0  ;;  %v2886_v53 = vcvt.s32.f32 %v2879_v59  ;;  %v3748_v24 = vor.u32 8388608, %v3747_v12  ;;  %9701 = vpow2.f32 %v7078_v57 }
 0x207   : > { %v2883_v42 = vor.u32 4788187, %v2882_v55  ;;  %v3752_v54 = vsel %vm3751_vm5, %v3750_v6, 0  ;;  %v7086_v16 = vmul.f32 1.442695, %v6993_v20  ;;  %v3282_v43 = vshrl.u32 %v3281_v2, 30 }
 0x208   : > { %v3754_v1 = vand.u32 31, %v3752_v54  ;;  %v11744_v48 = vadd.s32 3, %v2893_v38  ;;  %vm3222_vm6 = vcmp.lt.s32.totalorder %v11572_v49, 0  ;;  %v4156_v37 = vand.u32 2147483647, %v11740_v60 }
 0x209   : > { %v2884_v63 = vand.u32 2147483647, %v2883_v42  ;;  %9703 = vpow2.f32 %v7086_v16  ;;  %v3283_v22 = vshll.u32 %v3282_v43, 30  ;;  %v3276_v50 = vadd.s32 %v11700_v27, %v11716_v45 }
 0x20a   : > { %v3755_v0 = vsub.s32 32, %v3754_v1  ;;  %v3757_v34 = vshll.u32 %v15844_v31, %v3754_v1  ;;  %v11751_v10 = vshll.u32 %v3748_v24, 8  ;;  %v3753_v40 = vshrl.u32 %v3752_v54, 5 }
 0x20b   : > { %v2887_v25 = vmul.f32 %v2886_v53, %v2884_v63  ;;  %v11753_v19 = vsub.s32 %v3280_v30, %v3283_v22  ;;  %v3760_v23 = vshll.u32 %v15831_v33, %v3754_v1  ;;  %v3763_v15 = vshll.u32 %v15833_v35, %v3754_v1 }
 0x20c   : > { %v3758_v58 = vshrl.u32 %v15831_v33, %v3755_v0  ;;  %v3761_v56 = vshrl.u32 %v15833_v35, %v3755_v0  ;;  %v3764_v9 = vshrl.u32 %v15835_v39, %v3755_v0  ;;  %v3306_v45 = vsub.s32 4, %v3282_v43 }
 0x20d   : > { %v2888_v46 = vxor.u32 2147483648, %v2887_v25  ;;  %v3286_v27 = vsub.s32 0, %v11753_v19  ;;  %v3766_v11 = vshll.u32 %v15835_v39, %v3754_v1  ;;  %v4159_v47 = vand.u32 2139095040, %v11740_v60 }
 0x20e   : > { %v3756_v4 = vshrl.u32 %v15844_v31, %v3755_v0  ;;  %v3759_v21 = vor.u32 %v3758_v58, %v3757_v34  ;;  %v3767_v14 = vshrl.u32 %v15842_v41, %v3755_v0  ;;  %v3762_v26 = vor.u32 %v3761_v56, %v3760_v23 }
 0x20f   : > { %v2889_v44 = vsel %vm2806_vm10, %v2888_v46, %v2887_v25  ;;  %v8695_v29 = vmin.u32 %v3286_v27, %v11753_v19  ;;  %v3769_v13 = vshll.u32 %v15842_v41, %v3754_v1  ;;  %v3765_v12 = vor.u32 %v3764_v9, %v3763_v15 }
 0x210   : > { %v2892_v7 = vsel %vm11707_vm2, %v11503_v28, %v2889_v44  ;;  %v3768_v61 = vor.u32 %v3767_v14, %v3766_v11  ;;  %v3770_v5 = vshrl.u32 %v15838_v51, %v3755_v0  ;;  %vm3772_vm7 = vcmp.lt.s32.totalorder %v3753_v40, 1  ;;  %v9702_v32 = vpop.eup %9701 }
 0x211   : > { %9705 = vcosq.f32 %v2892_v7  ;;  %v3288_v18 = vclz %v8695_v29  ;;  %v3307_v52 = vsel %vm3222_vm6, %v3306_v45, %v3282_v43  ;;  %v4160_v57 = vshrl.u32 %v4159_v47, 23  ;;  %v212_v29 = vld [vmem:[%s10310_s3 + $0x100] sm:$0xff] }
 0x212   : > { %9707 = vsinq.f32 %v2892_v7  ;;  %v3771_v8 = vor.u32 %v3770_v5, %v3769_v13  ;;  %vm3773_vm8 = vcmp.lt.s32.totalorder %v3753_v40, 2  ;;  %vm3774_vm9 = vcmp.lt.s32.totalorder %v3753_v40, 3 }
 0x213   : > { %v9704_v30 = vpop.eup %9703  ;;  %v8696_v6 = vadd.s32 4294967294, %v3288_v18  ;;  %vm3775_vm10 = vcmp.lt.s32.totalorder %v3753_v40, 4  ;;  %v3776_v36 = vsel %vm3772_vm7, %v3756_v4, %v3759_v21  ;;  %v3780_v59 = vsel %vm3772_vm7, %v3759_v21, %v3762_v26 }
 0x214   : > { %v7169_v55 = vpack.c.bf16 %v9704_v30, %v9702_v32  ;;  %v3777_v20 = vsel %vm3775_vm10, %v3765_v12, 2102212464  ;;  %v3781_v38 = vsel %vm3775_vm10, %v3768_v61, 920167782  ;;  %v3784_v2 = vsel %vm3772_vm7, %v3762_v26, %v3765_v12 }
 0x215   : > { %vm8697_vm11 = vcmp.lt.s32.totalorder %v8696_v6, 0  ;;  %v3778_v42 = vsel %vm3774_vm9, %v3762_v26, %v3777_v20  ;;  %v3782_v53 = vsel %vm3774_vm9, %v3765_v12, %v3781_v38  ;;  %v3785_v24 = vsel %vm3775_vm10, %v3771_v8, 1326507024 }
 0x216   : > { %8018 = vmatprep.mubr.bf16.mxu0 %v7169_v55  ;;  %8244 = vmatprep.mubr.bf16.mxu1 %v7169_v55  ;;  %v3291_v54 = vsel %vm8697_vm11, 0, %v8696_v6  ;;  %v3779_v16 = vsel %vm3773_vm8, %v3776_v36, %v3778_v42  ;;  %v3783_v43 = vsel %vm3773_vm8, %v3780_v59, %v3782_v53  ;;  %v3786_v1 = vsel %vm3774_vm9, %v3768_v61, %v3785_v24 }
 0x217   : > { %v3292_v63 = vsub.s32 32, %v3291_v54  ;;  %v3293_v22 = vshll.u32 %v11753_v19, %v3291_v54  ;;  %v3296_v0 = vsub.s32 4294967266, %v3291_v54  ;;  %v3787_v25 = vsel %vm3773_vm8, %v3784_v2, %v3786_v1 }
 0x218   : > { %v11786_v34 = vmul.u32.u64.low %v11751_v10, %v3787_v25  ;;  %v11787_v58 = vmul.u32.u64.high %v11751_v10, %v3787_v25, %v11786_v34  ;;  %v11790_v23 = vmul.u32.u64.low %v11751_v10, %v3783_v43  ;;  %v11791_v46 = vmul.u32.u64.high %v11751_v10, %v3783_v43, %v11790_v23 }
 0x219   : > { %vm11796_vm12 = vcmp.le.f32.partialorder %v3220_v17, 0.7853982  ;;  %v3294_v15 = vshrl.u32 %v3276_v50, %v3292_v63  ;;  %v3297_v19 = vadd.s32 127, %v3296_v0  ;;  %v8730_v9 = vadd.s32 4294967169, %v4160_v57 }
 0x21a   : > { %v11801_v40 = vand.u32 3, %v11744_v48  ;;  %v3309_v27 = vsel %vm11796_vm12, 0, %v3307_v52  ;;  %v3795_v44 = vmul.u32 %v11751_v10, %v3779_v16  ;;  %vm3797_vm13 = vc.u32 %v11787_v58, %v11790_v23 }
 0x21b   : > { %v9706_v45 = vpop.eup %9705  ;;  %v3295_v11 = vor.u32 %v3294_v15, %v3293_v22  ;;  %v3298_v47 = vshll.u32 %v3297_v19, 23  ;;  %v4166_v4 = vadd.s32 1, %v8730_v9  ;;  %v3798_v50 = vadd.s32 1, %v11791_v46 }
 0x21c   : > { %v9708_v17 = vpop.eup %9707  ;;  %v4163_v21 = vand.u32 8388607, %v4156_v37  ;;  %v3313_v7 = vadd.s32 3, %v3309_v27  ;;  %v2904_v26 = vxor.u32 2147483648, %v9706_v45  ;;  %vm2903_vm0 = vcmp.eq.s32.totalorder %v11801_v40, 2 }
 0x21d   : > { %v3299_v48 = vor.u32 4788187, %v3298_v47  ;;  %v3302_v14 = vcvt.s32.f32 %v3295_v11  ;;  %vm4167_vm15 = vcmp.gt.s32.totalorder %v4166_v4, 0  ;;  %v3799_v13 = vsel %vm3797_vm13, %v3798_v50, %v11791_v46 }
 0x21e   : > { %v4168_v12 = vsel %vm4167_vm15, %v4166_v4, 0  ;;  %v2901_v10 = vxor.u32 2147483648, %v9708_v17  ;;  %v3800_v5 = vadd.s32 %v3799_v13, %v3795_v44  ;;  %vm2899_vm14 = vcmp.lt.s32.totalorder %v11801_v40, 2 }
 0x21f   : > { %v3300_v61 = vand.u32 2147483647, %v3299_v48  ;;  %vm2900_vm1 = vcmp.eq.s32.totalorder %v11801_v40, 0  ;;  %v4170_v32 = vand.u32 31, %v4168_v12  ;;  %v11816_v18 = vmul.f32 %v212_v29, %v212_v29 }
 0x220   : > { %v11818_v57 = vand.u32 3, %v3313_v7  ;;  %v3801_v8 = vadd.s32 536870912, %v3800_v5  ;;  %v4164_v30 = vor.u32 8388608, %v4163_v21  ;;  %v2905_v6 = vsel %vm2903_vm0, %v2904_v26, %v9708_v17 }
 0x221   : > { %v3303_v52 = vmul.f32 %v3302_v14, %v3300_v61  ;;  %v4169_v36 = vshrl.u32 %v4168_v12, 5  ;;  %v4171_v59 = vsub.s32 32, %v4170_v32  ;;  %v4173_v55 = vshll.u32 %v15844_v31, %v4170_v32 }
 0x222   : > { %vm2896_vm2 = vweird.f32 %v11503_v28  ;;  %v2902_v20 = vsel %vm2900_vm1, %v9706_v45, %v2901_v10  ;;  %v11822_v2 = vshrl.u32 %v3801_v8, 30  ;;  %v4176_v42 = vshll.u32 %v15831_v33, %v4170_v32  ;;  %v9579_v28 = vld [vmem:[#allocation5 + $0x320] ss:$16 sps:$4 sm:$0xff]  }
 0x223   : > { %v3304_v38 = vxor.u32 2147483648, %v3303_v52  ;;  %v4174_v53 = vshrl.u32 %v15831_v33, %v4171_v59  ;;  %v4177_v24 = vshrl.u32 %v15833_v35, %v4171_v59  ;;  %v4179_v54 = vshll.u32 %v15833_v35, %v4170_v32 }
 0x224   : > { %v4180_v16 = vshrl.u32 %v15835_v39, %v4171_v59  ;;  %v3803_v1 = vshll.u32 %v11822_v2, 30  ;;  %v4182_v63 = vshll.u32 %v15835_v39, %v4170_v32  ;;  %v11833_v22 = vshll.u32 %v4164_v30, 8 }
 0x225   : > { %v3305_v43 = vsel %vm3222_vm6, %v3304_v38, %v3303_v52  ;;  %v4172_v25 = vshrl.u32 %v15844_v31, %v4171_v59  ;;  %v4175_v34 = vor.u32 %v4174_v53, %v4173_v55  ;;  %vm4188_vm3 = vcmp.lt.s32.totalorder %v4169_v36, 1 }
 0x226   : > { %v3308_v0 = vsel %vm11796_vm12, %v11572_v49, %v3305_v43  ;;  %v11839_v46 = vsub.s32 %v3800_v5, %v3803_v1  ;;  %v4178_v15 = vor.u32 %v4177_v24, %v4176_v42  ;;  %v4183_v19 = vshrl.u32 %v15842_v41, %v4171_v59  ;;  %v9584_v42 = vld [vmem:[#allocation5 + $0x32c] ss:$16 sps:$4 sm:$0xff]  }
 0x227   : > { %9709 = vcosq.f32 %v3308_v0  ;;  %v4181_v9 = vor.u32 %v4180_v16, %v4179_v54  ;;  %v4185_v27 = vshll.u32 %v15842_v41, %v4170_v32  ;;  %v4186_v45 = vshrl.u32 %v15838_v51, %v4171_v59  ;;  %8313 = vmatprep.subr.bf16.mxu1 %v9584_v42 }
 0x228   : > { %9711 = vsinq.f32 %v3308_v0  ;;  %v2906_v56 = vsel %vm2899_vm14, %v2902_v20, %v2905_v6  ;;  %v3806_v11 = vsub.s32 0, %v11839_v46  ;;  %v4184_v47 = vor.u32 %v4183_v19, %v4182_v63  ;;  %v9581_v6 = vld [vmem:[#allocation5 + $0x324] ss:$16 sps:$4 sm:$0xff]  }
 0x229   : > { %v3639_v44 = vand.u32 2139095040, %v11816_v18  ;;  %v4187_v4 = vor.u32 %v4186_v45, %v4185_v27  ;;  %vm4189_vm4 = vcmp.lt.s32.totalorder %v4169_v36, 2  ;;  %vm4190_vm5 = vcmp.lt.s32.totalorder %v4169_v36, 3  ;;  %8087 = vmatprep.subr.bf16.mxu0 %v9581_v6 }
 0x22a   : > { %vm4191_vm6 = vcmp.lt.s32.totalorder %v4169_v36, 4  ;;  %v8715_v17 = vmin.u32 %v3806_v11, %v11839_v46  ;;  %v4192_v50 = vsel %vm4188_vm3, %v4172_v25, %v4175_v34  ;;  %v4196_v48 = vsel %vm4188_vm3, %v4175_v34, %v4178_v15  ;;  %8088 = vmatpush1.bf16.msra.mxu0 %v9579_v28 }
 0x22b   : > { %v4193_v21 = vsel %vm4191_vm6, %v4181_v9, 2102212464  ;;  %vm3312_vm7 = vweird.f32 %v11572_v49  ;;  %vm3742_vm8 = vcmp.lt.s32.totalorder %v11691_v62, 0  ;;  %v4197_v14 = vsel %vm4191_vm6, %v4184_v47, 920167782 }
 0x22c   : > { %v4194_v40 = vsel %vm4190_vm5, %v4178_v15, %v4193_v21  ;;  %v4200_v7 = vsel %vm4188_vm3, %v4178_v15, %v4181_v9  ;;  %v4201_v29 = vsel %vm4191_vm6, %v4187_v4, 1326507024  ;;  %vm3315_vm9 = vcmp.lt.s32.totalorder %v11818_v57, 2 }
 0x22d   : > { %vm3316_vm10 = vcmp.eq.s32.totalorder %v11818_v57, 0  ;;  %vm3319_vm11 = vcmp.eq.s32.totalorder %v11818_v57, 2  ;;  %v3808_v26 = vclz %v8715_v17  ;;  %v2907_v13 = vsel %vm2896_vm2, nan, %v2906_v56 }
 0x22e   : > { %v4198_v12 = vsel %vm4190_vm5, %v4181_v9, %v4197_v14  ;;  %v4202_v10 = vsel %vm4190_vm5, %v4184_v47, %v4201_v29  ;;  %v3640_v61 = vshrl.u32 %v3639_v44, 23  ;;  %vm11864_vm12 = vcmp.le.f32.partialorder %v3740_v3, 0.7853982  ;;  %v9582_v3 = vld [vmem:[#allocation5 + $0x328] ss:$16 sps:$4 sm:$0xff]  }
 0x22f   : > { %v8716_v32 = vadd.s32 4294967294, %v3808_v26  ;;  %v4195_v52 = vsel %vm4189_vm4, %v4192_v50, %v4194_v40  ;;  %v4199_v8 = vsel %vm4189_vm4, %v4196_v48, %v4198_v12  ;;  %v4203_v30 = vsel %vm4189_vm4, %v4200_v7, %v4202_v10  ;;  %8314 = vmatpush1.bf16.msra.mxu1 %v9582_v3  ;;  %v216_v48 = vld [vmem:[%s10310_s3 + $0x120] sm:$0xff] }
 0x230   : > { %v11872_v59 = vmul.u32.u64.low %v11833_v22, %v4203_v30  ;;  %v11873_v55 = vmul.u32.u64.high %v11833_v22, %v4203_v30, %v11872_v59  ;;  %v11876_v20 = vmul.u32.u64.low %v11833_v22, %v4199_v8  ;;  %v11877_v38 = vmul.u32.u64.high %v11833_v22, %v4199_v8, %v11876_v20 }
 0x231   : > { %v9710_v53 = vpop.eup %9709  ;;  %v6988_v24 = vadd.f32 1.0, %v2907_v13  ;;  %v3796_v54 = vadd.s32 %v11790_v23, %v11787_v58  ;;  %vm8717_vm13 = vcmp.lt.s32.totalorder %v8716_v32, 0  ;;  %v3826_v36 = vsub.s32 4, %v11822_v2 }
 0x232   : > { %v9712_v16 = vpop.eup %9711  ;;  %v3320_v43 = vxor.u32 2147483648, %v9710_v53  ;;  %v3811_v1 = vsel %vm8717_vm13, 0, %v8716_v32  ;;  %v4211_v63 = vmul.u32 %v11833_v22, %v4195_v52  ;;  %v8710_v0 = vadd.s32 4294967169, %v3640_v61 }
 0x233   : > { %v3317_v25 = vxor.u32 2147483648, %v9712_v16  ;;  %v3812_v34 = vsub.s32 32, %v3811_v1  ;;  %v3813_v15 = vshll.u32 %v11839_v46, %v3811_v1  ;;  %v3816_v19 = vsub.s32 4294967266, %v3811_v1 }
 0x234   : > { %v3321_v58 = vsel %vm3319_vm11, %v3320_v43, %v9712_v16  ;;  %vm4213_vm15 = vc.u32 %v11873_v55, %v11876_v20  ;;  %v4214_v23 = vadd.s32 1, %v11877_v38  ;;  %v3636_v22 = vand.u32 2147483647, %v11816_v18 }
 0x235   : > { %v3318_v9 = vsel %vm3316_vm10, %v9710_v53, %v3317_v25  ;;  %v3814_v27 = vshrl.u32 %v3796_v54, %v3812_v34  ;;  %v3817_v45 = vadd.s32 127, %v3816_v19  ;;  %v3827_v46 = vsel %vm3742_vm8, %v3826_v36, %v11822_v2 }
 0x236   : > { %v3322_v56 = vsel %vm3315_vm9, %v3318_v9, %v3321_v58  ;;  %v7076_v11 = vmul.f32 1.442695, %v6988_v24  ;;  %v4215_v47 = vsel %vm4213_vm15, %v4214_v23, %v11877_v38  ;;  %v3646_v44 = vadd.s32 1, %v8710_v0 }
 0x237   : > { %v3323_v4 = vsel %vm3312_vm7, nan, %v3322_v56  ;;  %v3815_v17 = vor.u32 %v3814_v27, %v3813_v15  ;;  %v3818_v50 = vshll.u32 %v3817_v45, 23  ;;  %v4216_v21 = vadd.s32 %v4215_v47, %v4211_v63 }
 0x238   : > { %v6992_v40 = vadd.f32 1.0, %v3323_v4  ;;  %v3829_v14 = vsel %vm11864_vm12, 0, %v3827_v46  ;;  %v3643_v2 = vand.u32 8388607, %v3636_v22  ;;  %vm3647_vm0 = vcmp.gt.s32.totalorder %v3646_v44, 0 }
 0x239   : > { %v3819_v57 = vor.u32 4788187, %v3818_v50  ;;  %v3822_v7 = vcvt.s32.f32 %v3815_v17  ;;  %v4217_v29 = vadd.s32 536870912, %v4216_v21  ;;  %v3648_v26 = vsel %vm3647_vm0, %v3646_v44, 0 }
 0x23a   : > { %9713 = vpow2.f32 %v7076_v11  ;;  %v7084_v13 = vmul.f32 1.442695, %v6992_v40  ;;  %v11906_v49 = vmul.f32 %v216_v48, %v216_v48  ;;  %v3650_v12 = vand.u32 31, %v3648_v26 }
 0x23b   : > { %v3820_v10 = vand.u32 2147483647, %v3819_v57  ;;  %v11908_v61 = vadd.s32 3, %v3829_v14  ;;  %v4218_v32 = vshrl.u32 %v4217_v29, 30  ;;  %v3644_v59 = vor.u32 8388608, %v3643_v2 }
 0x23c   : > { %9715 = vpow2.f32 %v7084_v13  ;;  %v3651_v52 = vsub.s32 32, %v3650_v12  ;;  %v3653_v8 = vshll.u32 %v15844_v31, %v3650_v12  ;;  %v4052_v30 = vand.u32 2147483647, %v11906_v49 }
 0x23d   : > { %v3823_v28 = vmul.f32 %v3822_v7, %v3820_v10  ;;  %v4219_v6 = vshll.u32 %v4218_v32, 30  ;;  %v3656_v38 = vshll.u32 %v15831_v33, %v3650_v12  ;;  %v3659_v53 = vshll.u32 %v15833_v35, %v3650_v12 }
 0x23e   : > { %v3654_v3 = vshrl.u32 %v15831_v33, %v3651_v52  ;;  %v3657_v42 = vshrl.u32 %v15833_v35, %v3651_v52  ;;  %v3660_v24 = vshrl.u32 %v15835_v39, %v3651_v52  ;;  %v3649_v16 = vshrl.u32 %v3648_v26, 5 }
 0x23f   : > { %v3824_v54 = vxor.u32 2147483648, %v3823_v28  ;;  %v11917_v36 = vsub.s32 %v4216_v21, %v4219_v6  ;;  %v3662_v43 = vshll.u32 %v15835_v39, %v3650_v12  ;;  %vm4158_vm14 = vcmp.lt.s32.totalorder %v11740_v60, 0 }
 0x240   : > { %v4212_v1 = vadd.s32 %v11876_v20, %v11873_v55  ;;  %v3652_v63 = vshrl.u32 %v15844_v31, %v3651_v52  ;;  %v3655_v0 = vor.u32 %v3654_v3, %v3653_v8  ;;  %v4055_v25 = vand.u32 2139095040, %v11906_v49 }
 0x241   : > { %v3825_v34 = vsel %vm3742_vm8, %v3824_v54, %v3823_v28  ;;  %v4222_v15 = vsub.s32 0, %v11917_v36  ;;  %v3658_v19 = vor.u32 %v3657_v42, %v3656_v38  ;;  %v3663_v58 = vshrl.u32 %v15842_v41, %v3651_v52 }
 0x242   : > { %v3828_v23 = vsel %vm11864_vm12, %v11691_v62, %v3825_v34  ;;  %v3661_v9 = vor.u32 %v3660_v24, %v3659_v53  ;;  %v3665_v55 = vshll.u32 %v15842_v41, %v3650_v12  ;;  %v3666_v20 = vshrl.u32 %v15838_v51, %v3651_v52 }
 0x243   : > { %vm11936_vm1 = vcmp.le.f32.partialorder %v4156_v37, 0.7853982  ;;  %v8731_v45 = vmin.u32 %v4222_v15, %v11917_v36  ;;  %v3664_v46 = vor.u32 %v3663_v58, %v3662_v43  ;;  %vm3668_vm2 = vcmp.lt.s32.totalorder %v3649_v16, 1 }
 0x244   : > { %v11941_v56 = vshll.u32 %v3644_v59, 8  ;;  %v9714_v11 = vpop.eup %9713  ;;  %9717 = vcosq.f32 %v3828_v23  ;;  %v4242_v5 = vsub.s32 4, %v4218_v32  ;;  %v3667_v47 = vor.u32 %v3666_v20, %v3665_v55 }
 0x245   : > { %v4056_v44 = vshrl.u32 %v4055_v25, 23  ;;  %9719 = vsinq.f32 %v3828_v23  ;;  %v4224_v4 = vclz %v8731_v45  ;;  %vm3669_vm3 = vcmp.lt.s32.totalorder %v3649_v16, 2 }
 0x246   : > { %vm3670_vm4 = vcmp.lt.s32.totalorder %v3649_v16, 3  ;;  %v9716_v17 = vpop.eup %9715  ;;  %vm3671_vm5 = vcmp.lt.s32.totalorder %v3649_v16, 4  ;;  %v3672_v37 = vsel %vm3668_vm2, %v3652_v63, %v3655_v0  ;;  %v3676_v50 = vsel %vm3668_vm2, %v3655_v0, %v3658_v19 }
 0x247   : > { %v3680_v21 = vsel %vm3668_vm2, %v3658_v19, %v3661_v9  ;;  %v7168_v48 = vpack.c.bf16 %v9716_v17, %v9714_v11  ;;  %v8732_v40 = vadd.s32 4294967294, %v4224_v4  ;;  %v3673_v14 = vsel %vm3671_vm5, %v3661_v9, 2102212464 }
 0x248   : > { %v3677_v2 = vsel %vm3671_vm5, %v3664_v46, 920167782  ;;  %v3674_v57 = vsel %vm3670_vm4, %v3658_v19, %v3673_v14  ;;  %v3681_v29 = vsel %vm3671_vm5, %v3667_v47, 1326507024  ;;  %v8726_v26 = vadd.s32 4294967169, %v4056_v44 }
 0x249   : > { %v3678_v7 = vsel %vm3670_vm4, %v3661_v9, %v3677_v2  ;;  %8019 = vmatmul.mubr.bf16.gmra.mrb[12].mxu0 %v7168_v48  ;;  %8245 = vmatmul.mubr.bf16.gmra.mrb[12].mxu1 %v7168_v48  ;;  %vm8733_vm6 = vcmp.lt.s32.totalorder %v8732_v40, 0  ;;  %v4243_v13 = vsel %vm4158_vm14, %v4242_v5, %v4218_v32  ;;  %v3682_v10 = vsel %vm3670_vm4, %v3664_v46, %v3681_v29 }
 0x24a   : > { %v3679_v12 = vsel %vm3669_vm3, %v3676_v50, %v3678_v7  ;;  %v4227_v52 = vsel %vm8733_vm6, 0, %v8732_v40  ;;  %v3683_v8 = vsel %vm3669_vm3, %v3680_v21, %v3682_v10  ;;  %v3675_v42 = vsel %vm3669_vm3, %v3672_v37, %v3674_v57 }
 0x24b   : > { %v11951_v28 = vmul.u32.u64.low %v11941_v56, %v3679_v12  ;;  %v11952_v6 = vmul.u32.u64.high %v11941_v56, %v3679_v12, %v11951_v28  ;;  %v4228_v59 = vsub.s32 32, %v4227_v52  ;;  %v4229_v38 = vshll.u32 %v11917_v36, %v4227_v52 }
 0x24c   : > { %v4232_v3 = vsub.s32 4294967266, %v4227_v52  ;;  %v4245_v32 = vsel %vm11936_vm1, 0, %v4243_v13  ;;  %v11960_v53 = vmul.u32.u64.low %v11941_v56, %v3683_v8  ;;  %v11961_v24 = vmul.u32.u64.high %v11941_v56, %v3683_v8, %v11960_v53 }
 0x24d   : > { %v4062_v54 = vadd.s32 1, %v8726_v26  ;;  %v11964_v43 = vand.u32 3, %v11908_v61  ;;  %v4230_v63 = vshrl.u32 %v4212_v1, %v4228_v59  ;;  %v3691_v36 = vmul.u32 %v11941_v56, %v3675_v42  ;;  %v221_v61 = vld [vmem:[%s10310_s3 + $0x148] sm:$0xff] }
 0x24e   : > { %v4233_v0 = vadd.s32 127, %v4232_v3  ;;  %v9718_v25 = vpop.eup %9717  ;;  %v3694_v16 = vadd.s32 1, %v11952_v6  ;;  %v4059_v34 = vand.u32 8388607, %v4052_v30  ;;  %v4249_v23 = vadd.s32 3, %v4245_v32 }
 0x24f   : > { %vm4063_vm7 = vcmp.gt.s32.totalorder %v4062_v54, 0  ;;  %v9720_v15 = vpop.eup %9719  ;;  %v4231_v19 = vor.u32 %v4230_v63, %v4229_v38  ;;  %vm3693_vm8 = vc.u32 %v11961_v24, %v11951_v28  ;;  %vm3836_vm9 = vcmp.eq.s32.totalorder %v11964_v43, 0 }
 0x250   : > { %v4234_v58 = vshll.u32 %v4233_v0, 23  ;;  %v4064_v9 = vsel %vm4063_vm7, %v4062_v54, 0  ;;  %v3695_v20 = vsel %vm3693_vm8, %v3694_v16, %v11952_v6  ;;  %vm3839_vm10 = vcmp.eq.s32.totalorder %v11964_v43, 2 }
 0x251   : > { %v4238_v55 = vcvt.s32.f32 %v4231_v19  ;;  %v3840_v45 = vxor.u32 2147483648, %v9718_v25  ;;  %v3696_v46 = vadd.s32 %v3695_v20, %v3691_v36  ;;  %v4066_v56 = vand.u32 31, %v4064_v9 }
 0x252   : > { %v4235_v1 = vor.u32 4788187, %v4234_v58  ;;  %vm3835_vm11 = vcmp.lt.s32.totalorder %v11964_v43, 2  ;;  %v11977_v5 = vand.u32 3, %v4249_v23  ;;  %v4060_v47 = vor.u32 8388608, %v4059_v34 }
 0x253   : > { %v11979_v44 = vmul.f32 %v221_v61, %v221_v61  ;;  %v3837_v4 = vxor.u32 2147483648, %v9720_v15  ;;  %v3697_v17 = vadd.s32 536870912, %v3696_v46  ;;  %v4065_v37 = vshrl.u32 %v4064_v9, 5 }
 0x254   : > { %v4236_v11 = vand.u32 2147483647, %v4235_v1  ;;  %v4067_v50 = vsub.s32 32, %v4066_v56  ;;  %v4069_v48 = vshll.u32 %v15844_v31, %v4066_v56  ;;  %v4072_v40 = vshll.u32 %v15831_v33, %v4066_v56 }
 0x255   : > { %v4078_v14 = vshll.u32 %v15835_v39, %v4066_v56  ;;  %vm3832_vm12 = vweird.f32 %v11691_v62  ;;  %v3841_v2 = vsel %vm3839_vm10, %v3840_v45, %v9720_v15  ;;  %v11987_v57 = vshrl.u32 %v3697_v17, 30 }
 0x256   : > { %v4239_v21 = vmul.f32 %v4238_v55, %v4236_v11  ;;  %v4070_v7 = vshrl.u32 %v15831_v33, %v4067_v50  ;;  %v4075_v29 = vshll.u32 %v15833_v35, %v4066_v56  ;;  %v4073_v13 = vshrl.u32 %v15833_v35, %v4067_v50 }
 0x257   : > { %v4076_v12 = vshrl.u32 %v15835_v39, %v4067_v50  ;;  %v4079_v10 = vshrl.u32 %v15842_v41, %v4067_v50  ;;  %v3838_v52 = vsel %vm3836_vm9, %v9718_v25, %v3837_v4  ;;  %v3699_v8 = vshll.u32 %v11987_v57, 30 }
 0x258   : > { %v4240_v26 = vxor.u32 2147483648, %v4239_v21  ;;  %v4068_v6 = vshrl.u32 %v15844_v31, %v4067_v50  ;;  %vm4084_vm13 = vcmp.lt.s32.totalorder %v4065_v37, 1  ;;  %v4071_v38 = vor.u32 %v4070_v7, %v4069_v48 }
 0x259   : > { %v4074_v3 = vor.u32 %v4073_v13, %v4072_v40  ;;  %v4080_v42 = vor.u32 %v4079_v10, %v4078_v14  ;;  %v12003_v53 = vsub.s32 %v3696_v46, %v3699_v8  ;;  %v4077_v54 = vor.u32 %v4076_v12, %v4075_v29  ;;  %v9587_v40 = vld [vmem:[#allocation5 + $0x344] ss:$16 sps:$4 sm:$0xff]   ;;  %v9590_v14 = vld [vmem:[#allocation5 + $0x34c] ss:$16 sps:$4 sm:$0xff]  }
 0x25a   : > { %v4241_v59 = vsel %vm4158_vm14, %v4240_v26, %v4239_v21  ;;  %v4081_v63 = vshll.u32 %v15842_v41, %v4066_v56  ;;  %v4082_v0 = vshrl.u32 %v15838_v51, %v4067_v50  ;;  %vm4086_vm15 = vcmp.lt.s32.totalorder %v4065_v37, 3  ;;  %8089 = vmatprep.subr.bf16.mxu0 %v9587_v40  ;;  %8315 = vmatprep.subr.bf16.mxu1 %v9590_v14 }
 0x25b   : > { %v4244_v32 = vsel %vm11936_vm1, %v11740_v60, %v4241_v59  ;;  %vm4087_vm0 = vcmp.lt.s32.totalorder %v4065_v37, 4  ;;  %v3702_v25 = vsub.s32 0, %v12003_v53  ;;  %vm4085_vm14 = vcmp.lt.s32.totalorder %v4065_v37, 2 }
 0x25c   : > { %9721 = vcosq.f32 %v4244_v32  ;;  %v4100_v36 = vshll.u32 %v4060_v47, 8  ;;  %v4083_v16 = vor.u32 %v4082_v0, %v4081_v63  ;;  %v4089_v34 = vsel %vm4087_vm0, %v4077_v54, 2102212464 }
 0x25d   : > { %9723 = vsinq.f32 %v4244_v32  ;;  %v4092_v27 = vsel %vm4084_vm13, %v4071_v38, %v4074_v3  ;;  %v4093_v15 = vsel %vm4087_vm0, %v4080_v42, 920167782  ;;  %v3842_v19 = vsel %vm3835_vm11, %v3838_v52, %v3841_v2 }
 0x25e   : > { %v8711_v58 = vmin.u32 %v3702_v25, %v12003_v53  ;;  %v4088_v23 = vsel %vm4084_vm13, %v4068_v6, %v4071_v38  ;;  %v4094_v9 = vsel %vm4086_vm15, %v4077_v54, %v4093_v15  ;;  %v4090_v61 = vsel %vm4086_vm15, %v4074_v3, %v4089_v34  ;;  %v9585_v38 = vld [vmem:[#allocation5 + $0x340] ss:$16 sps:$4 sm:$0xff]  }
 0x25f   : > { %v4095_v1 = vsel %vm4085_vm14, %v4092_v27, %v4094_v9  ;;  %v4096_v55 = vsel %vm4084_vm13, %v4074_v3, %v4077_v54  ;;  %v4097_v20 = vsel %vm4087_vm0, %v4083_v16, 1326507024  ;;  %vm4248_vm1 = vweird.f32 %v11740_v60  ;;  %8090 = vmatpush1.bf16.msra.mxu0 %v9585_v38 }
 0x260   : > { %vm4251_vm2 = vcmp.lt.s32.totalorder %v11977_v5, 2  ;;  %vm3638_vm3 = vcmp.lt.s32.totalorder %v11816_v18, 0  ;;  %v3704_v43 = vclz %v8711_v58  ;;  %v3843_v45 = vsel %vm3832_vm12, nan, %v3842_v19  ;;  %v225_v19 = vld [vmem:[%s10310_s3 + $0x168] sm:$0xff] }
 0x261   : > { %vm12027_vm4 = vcmp.le.f32.partialorder %v3636_v22, 0.7853982  ;;  %v4098_v56 = vsel %vm4086_vm15, %v4080_v42, %v4097_v20  ;;  %v12032_v11 = vmul.u32.u64.low %v4100_v36, %v4095_v1  ;;  %v12033_v47 = vmul.u32.u64.high %v4100_v36, %v4095_v1, %v12032_v11  ;;  %v9588_v42 = vld [vmem:[#allocation5 + $0x348] ss:$16 sps:$4 sm:$0xff]  }
 0x262   : > { %vm4252_vm5 = vcmp.eq.s32.totalorder %v11977_v5, 0  ;;  %v8712_v4 = vadd.s32 4294967294, %v3704_v43  ;;  %v4091_v17 = vsel %vm4085_vm14, %v4088_v23, %v4090_v61  ;;  %v4099_v62 = vsel %vm4085_vm14, %v4096_v55, %v4098_v56  ;;  %8316 = vmatpush1.bf16.msra.mxu1 %v9588_v42 }
 0x263   : > { %v3722_v50 = vsub.s32 4, %v11987_v57  ;;  %v12040_v21 = vmul.u32.u64.low %v4100_v36, %v4099_v62  ;;  %v12041_v22 = vmul.u32.u64.high %v4100_v36, %v4099_v62, %v12040_v21  ;;  %v4575_v48 = vand.u32 2139095040, %v11979_v44 }
 0x264   : > { %vm4255_vm6 = vcmp.eq.s32.totalorder %v11977_v5, 2  ;;  %v6997_v2 = vadd.f32 1.0, %v3843_v45  ;;  %v3692_v7 = vadd.s32 %v11951_v28, %v11961_v24  ;;  %vm8713_vm7 = vcmp.lt.s32.totalorder %v8712_v4, 0 }
 0x265   : > { %v3707_v26 = vsel %vm8713_vm7, 0, %v8712_v4  ;;  %v4107_v37 = vmul.u32 %v4100_v36, %v4091_v17  ;;  %v4110_v13 = vadd.s32 1, %v12033_v47  ;;  %v4576_v12 = vshrl.u32 %v4575_v48, 23 }
 0x266   : > { %v9722_v29 = vpop.eup %9721  ;;  %v3708_v8 = vsub.s32 32, %v3707_v26  ;;  %v3709_v6 = vshll.u32 %v12003_v53, %v3707_v26  ;;  %v3712_v59 = vsub.s32 4294967266, %v3707_v26  ;;  %v3723_v28 = vsel %vm3638_vm3, %v3722_v50, %v11987_v57 }
 0x267   : > { %v9724_v10 = vpop.eup %9723  ;;  %v4256_v52 = vxor.u32 2147483648, %v9722_v29  ;;  %vm4109_vm8 = vc.u32 %v12041_v22, %v12032_v11  ;;  %v8746_v24 = vadd.s32 4294967169, %v4576_v12  ;;  %v7094_v25 = vmul.f32 1.442695, %v6997_v2 }
 0x268   : > { %v4253_v3 = vxor.u32 2147483648, %v9724_v10  ;;  %v3710_v54 = vshrl.u32 %v3692_v7, %v3708_v8  ;;  %v3713_v63 = vadd.s32 127, %v3712_v59  ;;  %v4111_v53 = vsel %vm4109_vm8, %v4110_v13, %v12033_v47 }
 0x269   : > { %v4257_v32 = vsel %vm4255_vm6, %v4256_v52, %v9724_v10  ;;  %v4112_v36 = vadd.s32 %v4111_v53, %v4107_v37  ;;  %v4582_v57 = vadd.s32 1, %v8746_v24  ;;  %v3725_v15 = vsel %vm12027_vm4, 0, %v3723_v28 }
 0x26a   : > { %v4254_v0 = vsel %vm4252_vm5, %v9722_v29, %v4253_v3  ;;  %v3711_v34 = vor.u32 %v3710_v54, %v3709_v6  ;;  %v3714_v27 = vshll.u32 %v3713_v63, 23  ;;  %v4572_v9 = vand.u32 2147483647, %v11979_v44 }
 0x26b   : > { %v4258_v16 = vsel %vm4251_vm2, %v4254_v0, %v4257_v32  ;;  %v4113_v23 = vadd.s32 536870912, %v4112_v36  ;;  %vm4583_vm9 = vcmp.gt.s32.totalorder %v4582_v57, 0  ;;  %v12069_v5 = vmul.f32 %v225_v19, %v225_v19 }
 0x26c   : > { %v4259_v58 = vsel %vm4248_vm1, nan, %v4258_v16  ;;  %v3715_v1 = vor.u32 4788187, %v3714_v27  ;;  %v3718_v55 = vcvt.s32.f32 %v3711_v34  ;;  %v4584_v20 = vsel %vm4583_vm9, %v4582_v57, 0 }
 0x26d   : > { %v7001_v61 = vadd.f32 1.0, %v4259_v58  ;;  %v12067_v43 = vshrl.u32 %v4113_v23, 30  ;;  %v4586_v45 = vand.u32 31, %v4584_v20  ;;  %9725 = vpow2.f32 %v7094_v25 }
 0x26e   : > { %v3716_v47 = vand.u32 2147483647, %v3715_v1  ;;  %v12071_v4 = vadd.s32 3, %v3725_v15  ;;  %v4579_v17 = vand.u32 8388607, %v4572_v9  ;;  %v4108_v14 = vadd.s32 %v12032_v11, %v12041_v22 }
 0x26f   : > { %v7102_v56 = vmul.f32 1.442695, %v7001_v61  ;;  %v4115_v60 = vshll.u32 %v12067_v43, 30  ;;  %v4587_v62 = vsub.s32 32, %v4586_v45  ;;  %v4988_v50 = vand.u32 2147483647, %v12069_v5 }
 0x270   : > { %v3719_v21 = vmul.f32 %v3718_v55, %v3716_v47  ;;  %v4589_v48 = vshll.u32 %v15844_v31, %v4586_v45  ;;  %v4592_v40 = vshll.u32 %v15831_v33, %v4586_v45  ;;  %v4595_v29 = vshll.u32 %v15833_v35, %v4586_v45 }
 0x271   : > { %9727 = vpow2.f32 %v7102_v56  ;;  %v12081_v2 = vsub.s32 %v4112_v36, %v4115_v60  ;;  %v4590_v7 = vshrl.u32 %v15831_v33, %v4587_v62  ;;  %v4585_v37 = vshrl.u32 %v4584_v20, 5 }
 0x272   : > { %v3720_v26 = vxor.u32 2147483648, %v3719_v21  ;;  %v4593_v13 = vshrl.u32 %v15833_v35, %v4587_v62  ;;  %v4596_v12 = vshrl.u32 %v15835_v39, %v4587_v62  ;;  %v4580_v52 = vor.u32 8388608, %v4579_v17 }
 0x273   : > { %v4118_v10 = vsub.s32 0, %v12081_v2  ;;  %v4588_v8 = vshrl.u32 %v15844_v31, %v4587_v62  ;;  %v4598_v6 = vshll.u32 %v15835_v39, %v4586_v45  ;;  %v4591_v22 = vor.u32 %v4590_v7, %v4589_v48 }
 0x274   : > { %v3721_v11 = vsel %vm3638_vm3, %v3720_v26, %v3719_v21  ;;  %v4594_v59 = vor.u32 %v4593_v13, %v4592_v40  ;;  %v4599_v38 = vshrl.u32 %v15842_v41, %v4587_v62  ;;  %v4597_v24 = vor.u32 %v4596_v12, %v4595_v29 }
 0x275   : > { %v3724_v3 = vsel %vm12027_vm4, %v11816_v18, %v3721_v11  ;;  %v8727_v28 = vmin.u32 %v4118_v10, %v12081_v2  ;;  %v4601_v42 = vshll.u32 %v15842_v41, %v4586_v45  ;;  %vm4054_vm10 = vcmp.lt.s32.totalorder %v11906_v49, 0 }
 0x276   : > { %9729 = vcosq.f32 %v3724_v3  ;;  %v4600_v32 = vor.u32 %v4599_v38, %v4598_v6  ;;  %v4602_v54 = vshrl.u32 %v15838_v51, %v4587_v62  ;;  %vm4604_vm11 = vcmp.lt.s32.totalorder %v4585_v37, 1 }
 0x277   : > { %9731 = vsinq.f32 %v3724_v3  ;;  %v4120_v63 = vclz %v8727_v28  ;;  %v4620_v53 = vshll.u32 %v4580_v52, 8  ;;  %v4991_v0 = vand.u32 2139095040, %v12069_v5  ;;  %v9726_v25 = vpop.eup %9725 }
 0x278   : > { %v4138_v46 = vsub.s32 4, %v12067_v43  ;;  %v4603_v36 = vor.u32 %v4602_v54, %v4601_v42  ;;  %vm4605_vm12 = vcmp.lt.s32.totalorder %v4585_v37, 2  ;;  %vm4606_vm13 = vcmp.lt.s32.totalorder %v4585_v37, 3 }
 0x279   : > { %v8728_v57 = vadd.s32 4294967294, %v4120_v63  ;;  %vm4607_vm15 = vcmp.lt.s32.totalorder %v4585_v37, 4  ;;  %v4608_v16 = vsel %vm4604_vm11, %v4588_v8, %v4591_v22  ;;  %v4612_v34 = vsel %vm4604_vm11, %v4591_v22, %v4594_v59 }
 0x27a   : > { %v4609_v15 = vsel %vm4607_vm15, %v4597_v24, 2102212464  ;;  %v4613_v19 = vsel %vm4607_vm15, %v4600_v32, 920167782  ;;  %v4616_v58 = vsel %vm4604_vm11, %v4594_v59, %v4597_v24  ;;  %v4617_v23 = vsel %vm4607_vm15, %v4603_v36, 1326507024 }
 0x27b   : > { %v9728_v27 = vpop.eup %9727  ;;  %vm8729_vm0 = vcmp.lt.s32.totalorder %v8728_v57, 0  ;;  %v4610_v1 = vsel %vm4606_vm13, %v4594_v59, %v4609_v15  ;;  %v4614_v55 = vsel %vm4606_vm13, %v4597_v24, %v4613_v19  ;;  %v4618_v47 = vsel %vm4606_vm13, %v4600_v32, %v4617_v23 }
 0x27c   : > { %v7173_v61 = vpack.c.bf16 %v9728_v27, %v9726_v25  ;;  %v4123_v20 = vsel %vm8729_vm0, 0, %v8728_v57  ;;  %v4611_v45 = vsel %vm4605_vm12, %v4608_v16, %v4610_v1  ;;  %v4615_v56 = vsel %vm4605_vm12, %v4612_v34, %v4614_v55  ;;  %v220_v25 = vld [vmem:[%s10310_s3 + $0x140] sm:$0xff] }
 0x27d   : > { %v4124_v60 = vsub.s32 32, %v4123_v20  ;;  %v4125_v17 = vshll.u32 %v12081_v2, %v4123_v20  ;;  %v4128_v62 = vsub.s32 4294967266, %v4123_v20  ;;  %v4619_v21 = vsel %vm4605_vm12, %v4616_v58, %v4618_v47 }
 0x27e   : > { %8028 = vmatprep.mubr.bf16.mxu0 %v7173_v61  ;;  %8254 = vmatprep.mubr.bf16.mxu1 %v7173_v61  ;;  %v12112_v48 = vmul.u32.u64.low %v4620_v53, %v4619_v21  ;;  %v12113_v40 = vmul.u32.u64.high %v4620_v53, %v4619_v21, %v12112_v48  ;;  %v12115_v7 = vmul.u32.u64.low %v4620_v53, %v4615_v56  ;;  %v12116_v29 = vmul.u32.u64.high %v4620_v53, %v4615_v56, %v12115_v7 }
 0x27f   : > { %v4126_v26 = vshrl.u32 %v4108_v14, %v4124_v60  ;;  %v4129_v13 = vadd.s32 127, %v4128_v62  ;;  %v4139_v12 = vsel %vm4054_vm10, %v4138_v46, %v12067_v43  ;;  %v4992_v10 = vshrl.u32 %v4991_v0, 23 }
 0x280   : > { %v9730_v52 = vpop.eup %9729  ;;  %v3730_v8 = vand.u32 3, %v12071_v4  ;;  %vm12124_vm14 = vcmp.le.f32.partialorder %v4052_v30, 0.7853982  ;;  %v4995_v37 = vand.u32 8388607, %v4988_v50  ;;  %v4627_v22 = vmul.u32 %v4620_v53, %v4611_v45 }
 0x281   : > { %v9732_v6 = vpop.eup %9731  ;;  %v4127_v14 = vor.u32 %v4126_v26, %v4125_v17  ;;  %v4130_v11 = vshll.u32 %v4129_v13, 23  ;;  %v8762_v59 = vadd.s32 4294967169, %v4992_v10  ;;  %v3736_v38 = vxor.u32 2147483648, %v9730_v52 }
 0x282   : > { %v4141_v43 = vsel %vm12124_vm14, 0, %v4139_v12  ;;  %vm4629_vm1 = vc.u32 %v12113_v40, %v12115_v7  ;;  %v4630_v30 = vadd.s32 1, %v12116_v29  ;;  %v3733_v4 = vxor.u32 2147483648, %v9732_v6 }
 0x283   : > { %v4131_v3 = vor.u32 4788187, %v4130_v11  ;;  %v4134_v28 = vcvt.s32.f32 %v4127_v14  ;;  %v4998_v24 = vadd.s32 1, %v8762_v59  ;;  %vm3732_vm2 = vcmp.eq.s32.totalorder %v3730_v8, 0 }
 0x284   : > { %vm3735_vm3 = vcmp.eq.s32.totalorder %v3730_v8, 2  ;;  %v4631_v42 = vsel %vm4629_vm1, %v4630_v30, %v12116_v29  ;;  %v4145_v54 = vadd.s32 3, %v4141_v43  ;;  %vm3731_vm5 = vcmp.lt.s32.totalorder %v3730_v8, 2 }
 0x285   : > { %v4132_v32 = vand.u32 2147483647, %v4131_v3  ;;  %v4632_v63 = vadd.s32 %v4631_v42, %v4627_v22  ;;  %vm4999_vm4 = vcmp.gt.s32.totalorder %v4998_v24, 0  ;;  %v4996_v53 = vor.u32 8388608, %v4995_v37 }
 0x286   : > { %v5000_v0 = vsel %vm4999_vm4, %v4998_v24, 0  ;;  %v3734_v46 = vsel %vm3732_vm2, %v9730_v52, %v3733_v4  ;;  %v3737_v36 = vsel %vm3735_vm3, %v3736_v38, %v9732_v6  ;;  %vm3728_vm6 = vweird.f32 %v11816_v18 }
 0x287   : > { %v4135_v57 = vmul.f32 %v4134_v28, %v4132_v32  ;;  %v4633_v16 = vadd.s32 536870912, %v4632_v63  ;;  %v5002_v34 = vand.u32 31, %v5000_v0  ;;  %v12137_v15 = vand.u32 3, %v4145_v54 }
 0x288   : > { %v12141_v58 = vmul.f32 %v220_v25, %v220_v25  ;;  %v3738_v23 = vsel %vm3731_vm5, %v3734_v46, %v3737_v36  ;;  %v12144_v61 = vadd.s32 %v12115_v7, %v12113_v40  ;;  %v12146_v55 = vshll.u32 %v4996_v53, 8 }
 0x289   : > { %v4136_v27 = vxor.u32 2147483648, %v4135_v57  ;;  %v12139_v19 = vshrl.u32 %v4633_v16, 30  ;;  %v5003_v1 = vsub.s32 32, %v5002_v34  ;;  %v5005_v56 = vshll.u32 %v15844_v31, %v5002_v34  ;;  %v9593_v16 = vld [vmem:[#allocation5 + $0x364] ss:$16 sps:$4 sm:$0xff]  }
 0x28a   : > { %v5008_v47 = vshll.u32 %v15831_v33, %v5002_v34  ;;  %v5011_v21 = vshll.u32 %v15833_v35, %v5002_v34  ;;  %v5001_v40 = vshrl.u32 %v5000_v0, 5  ;;  %v3739_v29 = vsel %vm3728_vm6, nan, %v3738_v23  ;;  %8091 = vmatprep.subr.bf16.mxu0 %v9593_v16 }
 0x28b   : > { %v4137_v20 = vsel %vm4054_vm10, %v4136_v27, %v4135_v57  ;;  %v4635_v45 = vshll.u32 %v12139_v19, 30  ;;  %v5006_v17 = vshrl.u32 %v15831_v33, %v5003_v1  ;;  %v5009_v62 = vshrl.u32 %v15833_v35, %v5003_v1  ;;  %v9591_v57 = vld [vmem:[#allocation5 + $0x360] ss:$16 sps:$4 sm:$0xff]  }
 0x28c   : > { %v4140_v60 = vsel %vm12124_vm14, %v11906_v49, %v4137_v20  ;;  %v5012_v7 = vshrl.u32 %v15835_v39, %v5003_v1  ;;  %v5004_v26 = vshrl.u32 %v15844_v31, %v5003_v1  ;;  %v4468_v13 = vand.u32 2147483647, %v12141_v58  ;;  %v9594_v20 = vld [vmem:[#allocation5 + $0x368] ss:$16 sps:$4 sm:$0xff]   ;;  %8092 = vmatpush1.bf16.msra.mxu0 %v9591_v57 }
 0x28d   : > { %9733 = vcosq.f32 %v4140_v60  ;;  %v12159_v48 = vsub.s32 %v4632_v63, %v4635_v45  ;;  %vm4151_vm7 = vcmp.eq.s32.totalorder %v12137_v15, 2  ;;  %v5007_v10 = vor.u32 %v5006_v17, %v5005_v56  ;;  %v9596_v45 = vld [vmem:[#allocation5 + $0x36c] ss:$16 sps:$4 sm:$0xff]  }
 0x28e   : > { %9735 = vsinq.f32 %v4140_v60  ;;  %v5010_v52 = vor.u32 %v5009_v62, %v5008_v47  ;;  %v5014_v8 = vshll.u32 %v15835_v39, %v5002_v34  ;;  %vm4148_vm8 = vcmp.eq.s32.totalorder %v12137_v15, 0  ;;  %8317 = vmatprep.subr.bf16.mxu1 %v9596_v45 }
 0x28f   : > { %v4638_v12 = vsub.s32 0, %v12159_v48  ;;  %v5013_v2 = vor.u32 %v5012_v7, %v5011_v21  ;;  %v5015_v37 = vshrl.u32 %v15842_v41, %v5003_v1  ;;  %v5017_v18 = vshll.u32 %v15842_v41, %v5002_v34  ;;  %8318 = vmatpush1.bf16.msra.mxu1 %v9594_v20 }
 0x290   : > { %v5018_v6 = vshrl.u32 %v15838_v51, %v5003_v1  ;;  %vm4147_vm9 = vcmp.lt.s32.totalorder %v12137_v15, 2  ;;  %vm5020_vm10 = vcmp.lt.s32.totalorder %v5001_v40, 1  ;;  %vm5023_vm11 = vcmp.lt.s32.totalorder %v5001_v40, 4 }
 0x291   : > { %v8747_v14 = vmin.u32 %v4638_v12, %v12159_v48  ;;  %v4471_v11 = vand.u32 2139095040, %v12141_v58  ;;  %vm4144_vm12 = vweird.f32 %v11906_v49  ;;  %v5016_v22 = vor.u32 %v5015_v37, %v5014_v8 }
 0x292   : > { %v5019_v59 = vor.u32 %v5018_v6, %v5017_v18  ;;  %vm5022_vm13 = vcmp.lt.s32.totalorder %v5001_v40, 3  ;;  %v5025_v38 = vsel %vm5023_vm11, %v5013_v2, 2102212464  ;;  %v6996_v43 = vadd.f32 1.0, %v3739_v29 }
 0x293   : > { %v4640_v30 = vclz %v8747_v14  ;;  %vm5021_vm15 = vcmp.lt.s32.totalorder %v5001_v40, 2  ;;  %v5024_v4 = vsel %vm5020_vm10, %v5004_v26, %v5007_v10  ;;  %v5026_v3 = vsel %vm5022_vm13, %v5010_v52, %v5025_v38 }
 0x294   : > { %v5028_v28 = vsel %vm5020_vm10, %v5007_v10, %v5010_v52  ;;  %v5029_v24 = vsel %vm5023_vm11, %v5016_v22, 920167782  ;;  %v5032_v42 = vsel %vm5020_vm10, %v5010_v52, %v5013_v2  ;;  %vm4574_vm0 = vcmp.lt.s32.totalorder %v11979_v44, 0 }
 0x295   : > { %v8748_v32 = vadd.s32 4294967294, %v4640_v30  ;;  %v5030_v54 = vsel %vm5022_vm13, %v5013_v2, %v5029_v24  ;;  %v5033_v63 = vsel %vm5023_vm11, %v5019_v59, 1326507024  ;;  %v12185_v53 = vand.u32 8388607, %v4468_v13 }
 0x296   : > { %v5027_v0 = vsel %vm5021_vm15, %v5024_v4, %v5026_v3  ;;  %v5031_v25 = vsel %vm5021_vm15, %v5028_v28, %v5030_v54  ;;  %v5034_v46 = vsel %vm5022_vm13, %v5016_v22, %v5033_v63  ;;  %v4472_v36 = vshrl.u32 %v4471_v11, 23 }
 0x297   : > { %v9734_v34 = vpop.eup %9733  ;;  %vm8749_vm14 = vcmp.lt.s32.totalorder %v8748_v32, 0  ;;  %v5035_v27 = vsel %vm5021_vm15, %v5032_v42, %v5034_v46  ;;  %v12192_v23 = vmul.u32.u64.low %v12146_v55, %v5031_v25  ;;  %v12193_v1 = vmul.u32.u64.high %v12146_v55, %v5031_v25, %v12192_v23 }
 0x298   : > { %v9736_v56 = vpop.eup %9735  ;;  %v4152_v47 = vxor.u32 2147483648, %v9734_v34  ;;  %v4643_v60 = vsel %vm8749_vm14, 0, %v8748_v32  ;;  %v12197_v17 = vmul.u32.u64.low %v12146_v55, %v5035_v27  ;;  %v12198_v62 = vmul.u32.u64.high %v12146_v55, %v5035_v27, %v12197_v17 }
 0x299   : > { %v4149_v21 = vxor.u32 2147483648, %v9736_v56  ;;  %v4644_v7 = vsub.s32 32, %v4643_v60  ;;  %v4645_v40 = vshll.u32 %v12159_v48, %v4643_v60  ;;  %v4648_v29 = vsub.s32 4294967266, %v4643_v60 }
 0x29a   : > { %v4153_v26 = vsel %vm4151_vm7, %v4152_v47, %v9736_v56  ;;  %v4658_v12 = vsub.s32 4, %v12139_v19  ;;  %v5043_v10 = vmul.u32 %v12146_v55, %v5027_v0  ;;  %v8742_v52 = vadd.s32 4294967169, %v4472_v36  ;;  %v224_v0 = vld [vmem:[%s10310_s3 + $0x160] sm:$0xff] }
 0x29b   : > { %v4150_v8 = vsel %vm4148_vm8, %v9734_v34, %v4149_v21  ;;  %v4646_v2 = vshrl.u32 %v12144_v61, %v4644_v7  ;;  %v4649_v37 = vadd.s32 127, %v4648_v29  ;;  %v5046_v48 = vadd.s32 1, %v12193_v1 }
 0x29c   : > { %v4154_v18 = vsel %vm4147_vm9, %v4150_v8, %v4153_v26  ;;  %v7092_v6 = vmul.f32 1.442695, %v6996_v43  ;;  %vm5045_vm1 = vc.u32 %v12198_v62, %v12192_v23  ;;  %v4478_v14 = vadd.s32 1, %v8742_v52 }
 0x29d   : > { %v4155_v55 = vsel %vm4144_vm12, nan, %v4154_v18  ;;  %v4647_v11 = vor.u32 %v4646_v2, %v4645_v40  ;;  %v4650_v22 = vshll.u32 %v4649_v37, 23  ;;  %v5047_v59 = vsel %vm5045_vm1, %v5046_v48, %v12193_v1 }
 0x29e   : > { %v7000_v38 = vadd.f32 1.0, %v4155_v55  ;;  %v4659_v61 = vsel %vm4574_vm0, %v4658_v12, %v12139_v19  ;;  %v5048_v30 = vadd.s32 %v5047_v59, %v5043_v10  ;;  %vm4479_vm2 = vcmp.gt.s32.totalorder %v4478_v14, 0 }
 0x29f   : > { %vm12221_vm3 = vcmp.le.f32.partialorder %v4572_v9, 0.7853982  ;;  %v4651_v49 = vor.u32 4788187, %v4650_v22  ;;  %v4654_v43 = vcvt.s32.f32 %v4647_v11  ;;  %v4480_v4 = vsel %vm4479_vm2, %v4478_v14, 0 }
 0x2a0   : > { %9737 = vpow2.f32 %v7092_v6  ;;  %v7100_v3 = vmul.f32 1.442695, %v7000_v38  ;;  %v5049_v28 = vadd.s32 536870912, %v5048_v30  ;;  %v4482_v24 = vand.u32 31, %v4480_v4 }
 0x2a1   : > { %v4652_v42 = vand.u32 2147483647, %v4651_v49  ;;  %v4661_v19 = vsel %vm12221_vm3, 0, %v4659_v61  ;;  %v4476_v54 = vor.u32 8388608, %v12185_v53  ;;  %v4481_v25 = vshrl.u32 %v4480_v4, 5 }
 0x2a2   : > { %9739 = vpow2.f32 %v7100_v3  ;;  %v12227_v32 = vshrl.u32 %v5049_v28, 30  ;;  %v4483_v9 = vsub.s32 32, %v4482_v24  ;;  %v4485_v46 = vshll.u32 %v15844_v31, %v4482_v24 }
 0x2a3   : > { %v4655_v63 = vmul.f32 %v4654_v43, %v4652_v42  ;;  %v4488_v36 = vshll.u32 %v15831_v33, %v4482_v24  ;;  %v4491_v34 = vshll.u32 %v15833_v35, %v4482_v24  ;;  %v4494_v27 = vshll.u32 %v15835_v39, %v4482_v24 }
 0x2a4   : > { %v5051_v57 = vshll.u32 %v12227_v32, 30  ;;  %v4486_v16 = vshrl.u32 %v15831_v33, %v4483_v9  ;;  %v4489_v20 = vshrl.u32 %v15833_v35, %v4483_v9  ;;  %v4492_v53 = vshrl.u32 %v15835_v39, %v4483_v9 }
 0x2a5   : > { %v4656_v1 = vxor.u32 2147483648, %v4655_v63  ;;  %v4495_v45 = vshrl.u32 %v15842_v41, %v4483_v9  ;;  %v12240_v56 = vadd.s32 3, %v4661_v19  ;;  %v5044_v47 = vadd.s32 %v12192_v23, %v12198_v62 }
 0x2a6   : > { %v12244_v60 = vsub.s32 %v5048_v30, %v5051_v57  ;;  %v12246_v17 = vmul.f32 %v224_v0, %v224_v0  ;;  %v4484_v7 = vshrl.u32 %v15844_v31, %v4483_v9  ;;  %v4497_v40 = vshll.u32 %v15842_v41, %v4482_v24 }
 0x2a7   : > { %v4657_v21 = vsel %vm4574_vm0, %v4656_v1, %v4655_v63  ;;  %v12252_v29 = vshll.u32 %v4476_v54, 8  ;;  %vm4990_vm4 = vcmp.lt.s32.totalorder %v12069_v5, 0  ;;  %v4487_v62 = vor.u32 %v4486_v16, %v4485_v46 }
 0x2a8   : > { %v4660_v26 = vsel %vm12221_vm3, %v11979_v44, %v4657_v21  ;;  %v5054_v23 = vsub.s32 0, %v12244_v60  ;;  %v4490_v12 = vor.u32 %v4489_v20, %v4488_v36  ;;  %v4493_v10 = vor.u32 %v4492_v53, %v4491_v34 }
 0x2a9   : > { %v4496_v52 = vor.u32 %v4495_v45, %v4494_v27  ;;  %v4498_v8 = vshrl.u32 %v15838_v51, %v4483_v9  ;;  %vm4500_vm5 = vcmp.lt.s32.totalorder %v4481_v25, 1  ;;  %9741 = vcosq.f32 %v4660_v26 }
 0x2aa   : > { %v9738_v2 = vpop.eup %9737  ;;  %v8763_v37 = vmin.u32 %v5054_v23, %v12244_v60  ;;  %v5074_v48 = vsub.s32 4, %v12227_v32  ;;  %v4887_v18 = vand.u32 2139095040, %v12246_v17  ;;  %9743 = vsinq.f32 %v4660_v26 }
 0x2ab   : > { %v4499_v6 = vor.u32 %v4498_v8, %v4497_v40  ;;  %vm4502_vm6 = vcmp.lt.s32.totalorder %v4481_v25, 3  ;;  %vm4503_vm7 = vcmp.lt.s32.totalorder %v4481_v25, 4  ;;  %vm4501_vm8 = vcmp.lt.s32.totalorder %v4481_v25, 2 }
 0x2ac   : > { %v9740_v14 = vpop.eup %9739  ;;  %v5056_v55 = vclz %v8763_v37  ;;  %v4504_v11 = vsel %vm4500_vm5, %v4484_v7, %v4487_v62  ;;  %v4508_v22 = vsel %vm4500_vm5, %v4487_v62, %v4490_v12  ;;  %v4505_v38 = vsel %vm4503_vm7, %v4493_v10, 2102212464 }
 0x2ad   : > { %v7172_v59 = vpack.c.bf16 %v9740_v14, %v9738_v2  ;;  %v4509_v61 = vsel %vm4503_vm7, %v4496_v52, 920167782  ;;  %v4512_v30 = vsel %vm4500_vm5, %v4490_v12, %v4493_v10  ;;  %v4506_v49 = vsel %vm4502_vm6, %v4490_v12, %v4505_v38 }
 0x2ae   : > { %v8764_v15 = vadd.s32 4294967294, %v5056_v55  ;;  %v4510_v43 = vsel %vm4502_vm6, %v4493_v10, %v4509_v61  ;;  %v4513_v4 = vsel %vm4503_vm7, %v4499_v6, 1326507024  ;;  %v4507_v3 = vsel %vm4501_vm8, %v4504_v11, %v4506_v49  ;;  %v229_v10 = vld [vmem:[%s10310_s3 + $0x188] sm:$0xff] }
 0x2af   : > { %8029 = vmatmul.mubr.bf16.gmra.mrb[16].mxu0 %v7172_v59  ;;  %8255 = vmatmul.mubr.bf16.gmra.mrb[16].mxu1 %v7172_v59  ;;  %v4511_v28 = vsel %vm4501_vm8, %v4508_v22, %v4510_v43  ;;  %v4514_v24 = vsel %vm4502_vm6, %v4496_v52, %v4513_v4  ;;  %v4888_v42 = vshrl.u32 %v4887_v18, 23  ;;  %v5075_v0 = vsel %vm4990_vm4, %v5074_v48, %v12227_v32 }
 0x2b0   : > { %vm8765_vm9 = vcmp.lt.s32.totalorder %v8764_v15, 0  ;;  %v4515_v19 = vsel %vm4501_vm8, %v4512_v30, %v4514_v24  ;;  %v12273_v54 = vmul.u32.u64.low %v12252_v29, %v4511_v28  ;;  %v12274_v9 = vmul.u32.u64.high %v12252_v29, %v4511_v28, %v12273_v54 }
 0x2b1   : > { %v5059_v63 = vsel %vm8765_vm9, 0, %v8764_v15  ;;  %v12281_v46 = vmul.u32.u64.low %v12252_v29, %v4515_v19  ;;  %v12282_v36 = vmul.u32.u64.high %v12252_v29, %v4515_v19, %v12281_v46  ;;  %v8758_v25 = vadd.s32 4294967169, %v4888_v42 }
 0x2b2   : > { %v5060_v57 = vsub.s32 32, %v5059_v63  ;;  %v5061_v16 = vshll.u32 %v12244_v60, %v5059_v63  ;;  %v5064_v34 = vsub.s32 4294967266, %v5059_v63  ;;  %vm12287_vm10 = vcmp.le.f32.partialorder %v4988_v50, 0.7853982 }
 0x2b3   : > { %v4523_v1 = vmul.u32 %v12252_v29, %v4507_v3  ;;  %v9742_v20 = vpop.eup %9741  ;;  %v5077_v45 = vsel %vm12287_vm10, 0, %v5075_v0  ;;  %v4526_v21 = vadd.s32 1, %v12274_v9  ;;  %v4666_v7 = vand.u32 3, %v12240_v56 }
 0x2b4   : > { %v5062_v53 = vshrl.u32 %v5044_v47, %v5060_v57  ;;  %v5065_v32 = vadd.s32 127, %v5064_v34  ;;  %v9744_v60 = vpop.eup %9743  ;;  %vm4525_vm11 = vc.u32 %v12282_v36, %v12273_v54  ;;  %v4894_v50 = vadd.s32 1, %v8758_v25 }
 0x2b5   : > { %v4527_v29 = vsel %vm4525_vm11, %v4526_v21, %v12274_v9  ;;  %v4884_v47 = vand.u32 2147483647, %v12246_v17  ;;  %v4672_v23 = vxor.u32 2147483648, %v9742_v20  ;;  %v5081_v62 = vadd.s32 3, %v5077_v45 }
 0x2b6   : > { %v5063_v40 = vor.u32 %v5062_v53, %v5061_v16  ;;  %v5066_v26 = vshll.u32 %v5065_v32, 23  ;;  %v4528_v12 = vadd.s32 %v4527_v29, %v4523_v1  ;;  %vm4895_vm12 = vcmp.gt.s32.totalorder %v4894_v50, 0 }
 0x2b7   : > { %v4669_v52 = vxor.u32 2147483648, %v9744_v60  ;;  %v4896_v37 = vsel %vm4895_vm12, %v4894_v50, 0  ;;  %vm4668_vm13 = vcmp.eq.s32.totalorder %v4666_v7, 0  ;;  %vm4671_vm15 = vcmp.eq.s32.totalorder %v4666_v7, 2 }
 0x2b8   : > { %v5067_v8 = vor.u32 4788187, %v5066_v26  ;;  %v5070_v2 = vcvt.s32.f32 %v5063_v40  ;;  %v4529_v56 = vadd.s32 536870912, %v4528_v12  ;;  %v4898_v48 = vand.u32 31, %v4896_v37 }
 0x2b9   : > { %vm4664_vm0 = vweird.f32 %v11979_v44  ;;  %vm4667_vm14 = vcmp.lt.s32.totalorder %v4666_v7, 2  ;;  %v12302_v6 = vmul.f32 %v229_v10, %v229_v10  ;;  %v12304_v14 = vand.u32 3, %v5081_v62 }
 0x2ba   : > { %v5068_v18 = vand.u32 2147483647, %v5067_v8  ;;  %v12306_v55 = vshrl.u32 %v4529_v56, 30  ;;  %v4891_v11 = vand.u32 8388607, %v4884_v47  ;;  %v4899_v22 = vsub.s32 32, %v4898_v48 }
 0x2bb   : > { %v4670_v59 = vsel %vm4668_vm13, %v9742_v20, %v4669_v52  ;;  %v4673_v38 = vsel %vm4671_vm15, %v4672_v23, %v9744_v60  ;;  %v4901_v30 = vshll.u32 %v15844_v31, %v4898_v48  ;;  %v4904_v43 = vshll.u32 %v15831_v33, %v4898_v48 }
 0x2bc   : > { %v5071_v61 = vmul.f32 %v5070_v2, %v5068_v18  ;;  %v4531_v15 = vshll.u32 %v12306_v55, 30  ;;  %v4902_v49 = vshrl.u32 %v15831_v33, %v4899_v22  ;;  %v4907_v4 = vshll.u32 %v15833_v35, %v4898_v48 }
 0x2bd   : > { %v4905_v28 = vshrl.u32 %v15833_v35, %v4899_v22  ;;  %v4908_v24 = vshrl.u32 %v15835_v39, %v4899_v22  ;;  %v4910_v42 = vshll.u32 %v15835_v39, %v4898_v48  ;;  %v4892_v9 = vor.u32 8388608, %v4891_v11 }
 0x2be   : > { %v5072_v3 = vxor.u32 2147483648, %v5071_v61  ;;  %v12318_v19 = vsub.s32 %v4528_v12, %v4531_v15  ;;  %v4897_v63 = vshrl.u32 %v4896_v37, 5  ;;  %v4911_v0 = vshrl.u32 %v15842_v41, %v4899_v22 }
 0x2bf   : > { %v4674_v46 = vsel %vm4667_vm14, %v4670_v59, %v4673_v38  ;;  %v4900_v16 = vshrl.u32 %v15844_v31, %v4899_v22  ;;  %v4903_v34 = vor.u32 %v4902_v49, %v4901_v30  ;;  %v4906_v20 = vor.u32 %v4905_v28, %v4904_v43  ;;  %v9602_v59 = vld [vmem:[#allocation5 + $0x38c] ss:$16 sps:$4 sm:$0xff]   ;;  %v9597_v49 = vld [vmem:[#allocation5 + $0x380] ss:$16 sps:$4 sm:$0xff]   ;;  %v9600_v43 = vld [vmem:[#allocation5 + $0x388] ss:$16 sps:$4 sm:$0xff]  }
 0x2c0   : > { %v5073_v57 = vsel %vm4990_vm4, %v5072_v3, %v5071_v61  ;;  %v4534_v1 = vsub.s32 0, %v12318_v19  ;;  %v4909_v53 = vor.u32 %v4908_v24, %v4907_v4  ;;  %v4912_v32 = vor.u32 %v4911_v0, %v4910_v42  ;;  %8319 = vmatprep.subr.bf16.mxu1 %v9602_v59 }
 0x2c1   : > { %v5076_v25 = vsel %vm12287_vm10, %v12069_v5, %v5073_v57  ;;  %v4913_v45 = vshll.u32 %v15842_v41, %v4898_v48  ;;  %v4914_v21 = vshrl.u32 %v15838_v51, %v4899_v22  ;;  %v4524_v60 = vadd.s32 %v12273_v54, %v12282_v36  ;;  %8320 = vmatpush1.bf16.msra.mxu1 %v9600_v43 }
 0x2c2   : > { %9745 = vcosq.f32 %v5076_v25  ;;  %v8743_v7 = vmin.u32 %v4534_v1, %v12318_v19  ;;  %vm4916_vm1 = vcmp.lt.s32.totalorder %v4897_v63, 1  ;;  %vm4918_vm2 = vcmp.lt.s32.totalorder %v4897_v63, 3 }
 0x2c3   : > { %9747 = vsinq.f32 %v5076_v25  ;;  %v4915_v50 = vor.u32 %v4914_v21, %v4913_v45  ;;  %vm4919_vm3 = vcmp.lt.s32.totalorder %v4897_v63, 4  ;;  %v12334_v27 = vshll.u32 %v4892_v9, 8 }
 0x2c4   : > { %v4675_v40 = vsel %vm4664_vm0, nan, %v4674_v46  ;;  %vm5084_vm4 = vcmp.eq.s32.totalorder %v12304_v14, 0  ;;  %vm4470_vm5 = vcmp.lt.s32.totalorder %v12141_v58, 0  ;;  %v4536_v26 = vclz %v8743_v7 }
 0x2c5   : > { %vm4917_vm6 = vcmp.lt.s32.totalorder %v4897_v63, 2  ;;  %v4920_v29 = vsel %vm4916_vm1, %v4900_v16, %v4903_v34  ;;  %vm5083_vm7 = vcmp.lt.s32.totalorder %v12304_v14, 2  ;;  %v4921_v54 = vsel %vm4919_vm3, %v4909_v53, 2102212464 }
 0x2c6   : > { %v4924_v36 = vsel %vm4916_vm1, %v4903_v34, %v4906_v20  ;;  %v4925_v23 = vsel %vm4919_vm3, %v4912_v32, 920167782  ;;  %v4928_v62 = vsel %vm4916_vm1, %v4906_v20, %v4909_v53  ;;  %vm5080_vm8 = vweird.f32 %v12069_v5 }
 0x2c7   : > { %v8744_v12 = vadd.s32 4294967294, %v4536_v26  ;;  %v4922_v44 = vsel %vm4918_vm2, %v4906_v20, %v4921_v54  ;;  %v4926_v10 = vsel %vm4918_vm2, %v4909_v53, %v4925_v23  ;;  %v4929_v52 = vsel %vm4919_vm3, %v4915_v50, 1326507024 }
 0x2c8   : > { %vm12349_vm9 = vcmp.le.f32.partialorder %v4468_v13, 0.7853982  ;;  %v4923_v2 = vsel %vm4917_vm6, %v4920_v29, %v4922_v44  ;;  %v4927_v37 = vsel %vm4917_vm6, %v4924_v36, %v4926_v10  ;;  %v4930_v56 = vsel %vm4918_vm2, %v4912_v32, %v4929_v52  ;;  %v9599_v13 = vld [vmem:[#allocation5 + $0x384] ss:$16 sps:$4 sm:$0xff]  }
 0x2c9   : > { %v5407_v48 = vand.u32 2139095040, %v12302_v6  ;;  %vm8745_vm10 = vcmp.lt.s32.totalorder %v8744_v12, 0  ;;  %v4931_v18 = vsel %vm4917_vm6, %v4928_v62, %v4930_v56  ;;  %v4554_v61 = vsub.s32 4, %v12306_v55  ;;  %8093 = vmatprep.subr.bf16.mxu0 %v9599_v13 }
 0x2ca   : > { %v12359_v11 = vmul.u32.u64.low %v12334_v27, %v4927_v37  ;;  %v12360_v22 = vmul.u32.u64.high %v12334_v27, %v4927_v37, %v12359_v11  ;;  %v4539_v38 = vsel %vm8745_vm10, 0, %v8744_v12  ;;  %vm5087_vm11 = vcmp.eq.s32.totalorder %v12304_v14, 2  ;;  %8094 = vmatpush1.bf16.msra.mxu0 %v9597_v49 }
 0x2cb   : > { %v12365_v30 = vmul.u32.u64.low %v12334_v27, %v4931_v18  ;;  %v12366_v15 = vmul.u32.u64.high %v12334_v27, %v4931_v18, %v12365_v30  ;;  %v4540_v4 = vsub.s32 32, %v4539_v38  ;;  %v4541_v3 = vshll.u32 %v12318_v19, %v4539_v38 }
 0x2cc   : > { %v4544_v28 = vsub.s32 4294967266, %v4539_v38  ;;  %v5408_v24 = vshrl.u32 %v5407_v48, 23  ;;  %v9746_v42 = vpop.eup %9745  ;;  %v7005_v9 = vadd.f32 1.0, %v4675_v40  ;;  %v4939_v63 = vmul.u32 %v12334_v27, %v4923_v2  ;;  %v233_v27 = vld [vmem:[%s10310_s3 + $0x1a8] sm:$0xff] }
 0x2cd   : > { %v5404_v0 = vand.u32 2147483647, %v12302_v6  ;;  %v9748_v46 = vpop.eup %9747  ;;  %v5088_v57 = vxor.u32 2147483648, %v9746_v42  ;;  %v4542_v16 = vshrl.u32 %v4524_v60, %v4540_v4  ;;  %v4942_v19 = vadd.s32 1, %v12360_v22 }
 0x2ce   : > { %v4545_v34 = vadd.s32 127, %v4544_v28  ;;  %v5085_v25 = vxor.u32 2147483648, %v9748_v46  ;;  %v4555_v1 = vsel %vm4470_vm5, %v4554_v61, %v12306_v55  ;;  %vm4941_vm12 = vc.u32 %v12366_v15, %v12359_v11 }
 0x2cf   : > { %v8778_v20 = vadd.s32 4294967169, %v5408_v24  ;;  %v5089_v53 = vsel %vm5087_vm11, %v5088_v57, %v9748_v46  ;;  %v4543_v32 = vor.u32 %v4542_v16, %v4541_v3  ;;  %v4943_v21 = vsel %vm4941_vm12, %v4942_v19, %v12360_v22 }
 0x2d0   : > { %v4546_v45 = vshll.u32 %v4545_v34, 23  ;;  %v5086_v60 = vsel %vm5084_vm4, %v9746_v42, %v5085_v25  ;;  %v7110_v7 = vmul.f32 1.442695, %v7005_v9  ;;  %v4944_v50 = vadd.s32 %v4943_v21, %v4939_v63 }
 0x2d1   : > { %v5414_v40 = vadd.s32 1, %v8778_v20  ;;  %v5090_v55 = vsel %vm5083_vm7, %v5086_v60, %v5089_v53  ;;  %v4550_v29 = vcvt.s32.f32 %v4543_v32  ;;  %v4557_v54 = vsel %vm12349_vm9, 0, %v4555_v1 }
 0x2d2   : > { %v4547_v26 = vor.u32 4788187, %v4546_v45  ;;  %v5091_v36 = vsel %vm5080_vm8, nan, %v5090_v55  ;;  %v4945_v23 = vadd.s32 536870912, %v4944_v50  ;;  %v5411_v62 = vand.u32 8388607, %v5404_v0 }
 0x2d3   : > { %vm5415_vm13 = vcmp.gt.s32.totalorder %v5414_v40, 0  ;;  %v7009_v12 = vadd.f32 1.0, %v5091_v36  ;;  %v12392_v10 = vmul.f32 %v233_v27, %v233_v27  ;;  %9749 = vpow2.f32 %v7110_v7 }
 0x2d4   : > { %v4548_v44 = vand.u32 2147483647, %v4547_v26  ;;  %v5416_v52 = vsel %vm5415_vm13, %v5414_v40, 0  ;;  %v4946_v14 = vshrl.u32 %v4945_v23, 30  ;;  %v12394_v48 = vadd.s32 3, %v4557_v54 }
 0x2d5   : > { %v5418_v2 = vand.u32 31, %v5416_v52  ;;  %v7118_v37 = vmul.f32 1.442695, %v7009_v12  ;;  %v5412_v5 = vor.u32 8388608, %v5411_v62  ;;  %v5820_v13 = vand.u32 2147483647, %v12392_v10 }
 0x2d6   : > { %v4551_v56 = vmul.f32 %v4550_v29, %v4548_v44  ;;  %v4947_v18 = vshll.u32 %v4946_v14, 30  ;;  %v5823_v61 = vand.u32 2139095040, %v12392_v10  ;;  %v5417_v49 = vshrl.u32 %v5416_v52, 5 }
 0x2d7   : > { %v5419_v22 = vsub.s32 32, %v5418_v2  ;;  %9751 = vpow2.f32 %v7118_v37  ;;  %v5421_v38 = vshll.u32 %v15844_v31, %v5418_v2  ;;  %v5424_v4 = vshll.u32 %v15831_v33, %v5418_v2 }
 0x2d8   : > { %v4552_v59 = vxor.u32 2147483648, %v4551_v56  ;;  %v12399_v30 = vsub.s32 %v4944_v50, %v4947_v18  ;;  %vm4886_vm15 = vcmp.lt.s32.totalorder %v12246_v17, 0  ;;  %v5427_v24 = vshll.u32 %v15833_v35, %v5418_v2 }
 0x2d9   : > { %v5422_v43 = vshrl.u32 %v15831_v33, %v5419_v22  ;;  %v5425_v28 = vshrl.u32 %v15833_v35, %v5419_v22  ;;  %v5428_v42 = vshrl.u32 %v15835_v39, %v5419_v22  ;;  %v4940_v63 = vadd.s32 %v12359_v11, %v12366_v15 }
 0x2da   : > { %v4553_v3 = vsel %vm4470_vm5, %v4552_v59, %v4551_v56  ;;  %v4950_v46 = vsub.s32 0, %v12399_v30  ;;  %v12415_v57 = vshll.u32 %v5412_v5, 8  ;;  %v5420_v16 = vshrl.u32 %v15844_v31, %v5419_v22 }
 0x2db   : > { %v4556_v9 = vsel %vm12349_vm9, %v12141_v58, %v4553_v3  ;;  %v5423_v34 = vor.u32 %v5422_v43, %v5421_v38  ;;  %v5430_v19 = vshll.u32 %v15835_v39, %v5418_v2  ;;  %v5824_v25 = vshrl.u32 %v5823_v61, 23 }
 0x2dc   : > { %9753 = vcosq.f32 %v4556_v9  ;;  %v8759_v1 = vmin.u32 %v4950_v46, %v12399_v30  ;;  %v5426_v20 = vor.u32 %v5425_v28, %v5424_v4  ;;  %v5431_v8 = vshrl.u32 %v15842_v41, %v5419_v22 }
 0x2dd   : > { %vm12423_vm0 = vcmp.le.f32.partialorder %v4884_v47, 0.7853982  ;;  %v5429_v15 = vor.u32 %v5428_v42, %v5427_v24  ;;  %v5433_v53 = vshll.u32 %v15842_v41, %v5418_v2  ;;  %v5434_v32 = vshrl.u32 %v15838_v51, %v5419_v22  ;;  %v9750_v60 = vpop.eup %9749 }
 0x2de   : > { %vm5436_vm14 = vcmp.lt.s32.totalorder %v5417_v49, 1  ;;  %9755 = vsinq.f32 %v4556_v9  ;;  %v4952_v45 = vclz %v8759_v1  ;;  %v4970_v21 = vsub.s32 4, %v4946_v14 }
 0x2df   : > { %vm5437_vm1 = vcmp.lt.s32.totalorder %v5417_v49, 2  ;;  %v5432_v7 = vor.u32 %v5431_v8, %v5430_v19  ;;  %v5435_v50 = vor.u32 %v5434_v32, %v5433_v53  ;;  %vm5438_vm2 = vcmp.lt.s32.totalorder %v5417_v49, 3 }
 0x2e0   : > { %vm5439_vm3 = vcmp.lt.s32.totalorder %v5417_v49, 4  ;;  %v8760_v27 = vadd.s32 4294967294, %v4952_v45  ;;  %v5440_v47 = vsel %vm5436_vm14, %v5420_v16, %v5423_v34  ;;  %v5444_v55 = vsel %vm5436_vm14, %v5423_v34, %v5426_v20 }
 0x2e1   : > { %v5441_v40 = vsel %vm5439_vm3, %v5429_v15, 2102212464  ;;  %v9752_v26 = vpop.eup %9751  ;;  %v5445_v54 = vsel %vm5439_vm3, %v5432_v7, 920167782  ;;  %v5448_v36 = vsel %vm5436_vm14, %v5426_v20, %v5429_v15  ;;  %v5449_v23 = vsel %vm5439_vm3, %v5435_v50, 1326507024 }
 0x2e2   : > { %v5442_v29 = vsel %vm5438_vm2, %v5426_v20, %v5441_v40  ;;  %v7177_v62 = vpack.c.bf16 %v9752_v26, %v9750_v60  ;;  %vm8761_vm4 = vcmp.lt.s32.totalorder %v8760_v27, 0  ;;  %v4971_v12 = vsel %vm4886_vm15, %v4970_v21, %v4946_v14 }
 0x2e3   : > { %v5446_v44 = vsel %vm5438_vm2, %v5429_v15, %v5445_v54  ;;  %v4955_v52 = vsel %vm8761_vm4, 0, %v8760_v27  ;;  %v5443_v2 = vsel %vm5437_vm1, %v5440_v47, %v5442_v29  ;;  %v5450_v56 = vsel %vm5438_vm2, %v5432_v7, %v5449_v23 }
 0x2e4   : > { %v5447_v37 = vsel %vm5437_vm1, %v5444_v55, %v5446_v44  ;;  %8038 = vmatprep.mubr.bf16.mxu0 %v7177_v62  ;;  %8264 = vmatprep.mubr.bf16.mxu1 %v7177_v62  ;;  %v4956_v18 = vsub.s32 32, %v4955_v52  ;;  %v4957_v5 = vshll.u32 %v12399_v30, %v4955_v52  ;;  %v4960_v22 = vsub.s32 4294967266, %v4955_v52 }
 0x2e5   : > { %v5451_v59 = vsel %vm5437_vm1, %v5448_v36, %v5450_v56  ;;  %v12446_v61 = vmul.u32.u64.low %v12415_v57, %v5447_v37  ;;  %v12447_v43 = vmul.u32.u64.high %v12415_v57, %v5447_v37, %v12446_v61  ;;  %v4973_v24 = vsel %vm12423_vm0, 0, %v4971_v12 }
 0x2e6   : > { %v12442_v38 = vmul.u32.u64.low %v12415_v57, %v5451_v59  ;;  %v12443_v14 = vmul.u32.u64.high %v12415_v57, %v5451_v59, %v12442_v38  ;;  %v9754_v4 = vpop.eup %9753  ;;  %v4958_v3 = vshrl.u32 %v4940_v63, %v4956_v18  ;;  %v4961_v28 = vadd.s32 127, %v4960_v22 }
 0x2e7   : > { %v8794_v42 = vadd.s32 4294967169, %v5824_v25  ;;  %v4562_v30 = vand.u32 3, %v12394_v48  ;;  %v5459_v16 = vmul.u32 %v12415_v57, %v5443_v2  ;;  %v4977_v19 = vadd.s32 3, %v4973_v24  ;;  %v228_v57 = vld [vmem:[%s10310_s3 + $0x180] sm:$0xff] }
 0x2e8   : > { %v9756_v49 = vpop.eup %9755  ;;  %v4959_v9 = vor.u32 %v4958_v3, %v4957_v5  ;;  %v4962_v46 = vshll.u32 %v4961_v28, 23  ;;  %vm5461_vm5 = vc.u32 %v12443_v14, %v12446_v61  ;;  %v5462_v63 = vadd.s32 1, %v12447_v43 }
 0x2e9   : > { %v5830_v34 = vadd.s32 1, %v8794_v42  ;;  %v5827_v1 = vand.u32 8388607, %v5820_v13  ;;  %v4568_v20 = vxor.u32 2147483648, %v9754_v4  ;;  %v4565_v48 = vxor.u32 2147483648, %v9756_v49 }
 0x2ea   : > { %v4963_v25 = vor.u32 4788187, %v4962_v46  ;;  %v4966_v8 = vcvt.s32.f32 %v4959_v9  ;;  %vm4567_vm7 = vcmp.eq.s32.totalorder %v4562_v30, 2  ;;  %v5463_v15 = vsel %vm5461_vm5, %v5462_v63, %v12447_v43 }
 0x2eb   : > { %vm5831_vm6 = vcmp.gt.s32.totalorder %v5830_v34, 0  ;;  %vm4564_vm8 = vcmp.eq.s32.totalorder %v4562_v30, 0  ;;  %v5464_v45 = vadd.s32 %v5463_v15, %v5459_v16  ;;  %vm4563_vm9 = vcmp.lt.s32.totalorder %v4562_v30, 2 }
 0x2ec   : > { %v5832_v53 = vsel %vm5831_vm6, %v5830_v34, 0  ;;  %v4964_v32 = vand.u32 2147483647, %v4963_v25  ;;  %v12461_v21 = vand.u32 3, %v4977_v19  ;;  %v5828_v60 = vor.u32 8388608, %v5827_v1 }
 0x2ed   : > { %v5834_v7 = vand.u32 31, %v5832_v53  ;;  %v4569_v50 = vsel %vm4567_vm7, %v4568_v20, %v9756_v49  ;;  %v5465_v47 = vadd.s32 536870912, %v5464_v45  ;;  %v12463_v40 = vmul.f32 %v228_v57, %v228_v57 }
 0x2ee   : > { %v4967_v27 = vmul.f32 %v4966_v8, %v4964_v32  ;;  %v4566_v55 = vsel %vm4564_vm8, %v9754_v4, %v4565_v48  ;;  %v5833_v26 = vshrl.u32 %v5832_v53, 5  ;;  %vm4560_vm10 = vweird.f32 %v12141_v58  ;;  %v9603_v58 = vld [vmem:[#allocation5 + $0x3a0] ss:$16 sps:$4 sm:$0xff]  }
 0x2ef   : > { %v5835_v29 = vsub.s32 32, %v5834_v7  ;;  %v5837_v54 = vshll.u32 %v15844_v31, %v5834_v7  ;;  %v12467_v23 = vshrl.u32 %v5465_v47, 30  ;;  %v5840_v62 = vshll.u32 %v15831_v33, %v5834_v7 }
 0x2f0   : > { %v4968_v36 = vxor.u32 2147483648, %v4967_v27  ;;  %v5846_v12 = vshll.u32 %v15835_v39, %v5834_v7  ;;  %v5843_v2 = vshll.u32 %v15833_v35, %v5834_v7  ;;  %v4570_v56 = vsel %vm4563_vm9, %v4566_v55, %v4569_v50  ;;  %v9605_v55 = vld [vmem:[#allocation5 + $0x3a4] ss:$16 sps:$4 sm:$0xff]  }
 0x2f1   : > { %v5838_v44 = vshrl.u32 %v15831_v33, %v5835_v29  ;;  %v5841_v52 = vshrl.u32 %v15833_v35, %v5835_v29  ;;  %v5844_v37 = vshrl.u32 %v15835_v39, %v5835_v29  ;;  %v5467_v5 = vshll.u32 %v12467_v23, 30  ;;  %8095 = vmatprep.subr.bf16.mxu0 %v9605_v55 }
 0x2f2   : > { %v4969_v18 = vsel %vm4886_vm15, %v4968_v36, %v4967_v27  ;;  %v5847_v22 = vshrl.u32 %v15842_v41, %v5835_v29  ;;  %v5836_v38 = vshrl.u32 %v15844_v31, %v5835_v29  ;;  %vm5852_vm11 = vcmp.lt.s32.totalorder %v5833_v26, 1  ;;  %v9606_v36 = vld [vmem:[#allocation5 + $0x3a8] ss:$16 sps:$4 sm:$0xff]   ;;  %8096 = vmatpush1.bf16.msra.mxu0 %v9603_v58 }
 0x2f3   : > { %v4972_v59 = vsel %vm12423_vm0, %v12246_v17, %v4969_v18  ;;  %v5839_v43 = vor.u32 %v5838_v44, %v5837_v54  ;;  %v12484_v4 = vsub.s32 %v5464_v45, %v5467_v5  ;;  %v5842_v3 = vor.u32 %v5841_v52, %v5840_v62  ;;  %v9608_v62 = vld [vmem:[#allocation5 + $0x3ac] ss:$16 sps:$4 sm:$0xff]  }
 0x2f4   : > { %9757 = vcosq.f32 %v4972_v59  ;;  %v5848_v28 = vor.u32 %v5847_v22, %v5846_v12  ;;  %v5845_v24 = vor.u32 %v5844_v37, %v5843_v2  ;;  %v5849_v42 = vshll.u32 %v15842_v41, %v5834_v7  ;;  %8321 = vmatprep.subr.bf16.mxu1 %v9608_v62 }
 0x2f5   : > { %9759 = vsinq.f32 %v4972_v59  ;;  %v5850_v30 = vshrl.u32 %v15838_v51, %v5835_v29  ;;  %v5470_v49 = vsub.s32 0, %v12484_v4  ;;  %vm5854_vm12 = vcmp.lt.s32.totalorder %v5833_v26, 3  ;;  %8322 = vmatpush1.bf16.msra.mxu1 %v9606_v36 }
 0x2f6   : > { %v12489_v11 = vshll.u32 %v5828_v60, 8  ;;  %v5303_v9 = vand.u32 2139095040, %v12463_v40  ;;  %vm5853_vm13 = vcmp.lt.s32.totalorder %v5833_v26, 2  ;;  %vm5855_vm15 = vcmp.lt.s32.totalorder %v5833_v26, 4 }
 0x2f7   : > { %v5851_v46 = vor.u32 %v5850_v30, %v5849_v42  ;;  %v5856_v16 = vsel %vm5852_vm11, %v5836_v38, %v5839_v43  ;;  %v8779_v34 = vmin.u32 %v5470_v49, %v12484_v4  ;;  %v5857_v19 = vsel %vm5855_vm15, %v5845_v24, 2102212464 }
 0x2f8   : > { %v5860_v63 = vsel %vm5852_vm11, %v5839_v43, %v5842_v3  ;;  %v5861_v1 = vsel %vm5855_vm15, %v5848_v28, 920167782  ;;  %vm4976_vm0 = vweird.f32 %v12246_v17  ;;  %v5858_v20 = vsel %vm5854_vm12, %v5842_v3, %v5857_v19 }
 0x2f9   : > { %v5862_v25 = vsel %vm5854_vm12, %v5845_v24, %v5861_v1  ;;  %v5864_v8 = vsel %vm5852_vm11, %v5842_v3, %v5845_v24  ;;  %v5865_v48 = vsel %vm5855_vm15, %v5851_v46, 1326507024  ;;  %vm4979_vm14 = vcmp.lt.s32.totalorder %v12461_v21, 2 }
 0x2fa   : > { %vm4980_vm1 = vcmp.eq.s32.totalorder %v12461_v21, 0  ;;  %vm5406_vm2 = vcmp.lt.s32.totalorder %v12302_v6, 0  ;;  %v5472_v15 = vclz %v8779_v34  ;;  %v4571_v53 = vsel %vm4560_vm10, nan, %v4570_v56 }
 0x2fb   : > { %v5859_v57 = vsel %vm5853_vm13, %v5856_v16, %v5858_v20  ;;  %v5863_v32 = vsel %vm5853_vm13, %v5860_v63, %v5862_v25  ;;  %v5866_v45 = vsel %vm5854_vm12, %v5848_v28, %v5865_v48  ;;  %vm12509_vm3 = vcmp.le.f32.partialorder %v5404_v0, 0.7853982  ;;  %v232_v63 = vld [vmem:[%s10310_s3 + $0x1a0] sm:$0xff] }
 0x2fc   : > { %v8780_v7 = vadd.s32 4294967294, %v5472_v15  ;;  %v5867_v50 = vsel %vm5853_vm13, %v5864_v8, %v5866_v45  ;;  %v12515_v27 = vmul.u32.u64.low %v12489_v11, %v5863_v32  ;;  %v12516_v47 = vmul.u32.u64.high %v12489_v11, %v5863_v32, %v12515_v27 }
 0x2fd   : > { %vm4983_vm4 = vcmp.eq.s32.totalorder %v12461_v21, 2  ;;  %v12521_v29 = vmul.u32.u64.low %v12489_v11, %v5867_v50  ;;  %v12522_v54 = vmul.u32.u64.high %v12489_v11, %v5867_v50, %v12521_v29  ;;  %v5304_v0 = vshrl.u32 %v5303_v9, 23 }
 0x2fe   : > { %v9758_v12 = vpop.eup %9757  ;;  %v7004_v44 = vadd.f32 1.0, %v4571_v53  ;;  %v5460_v26 = vadd.s32 %v12446_v61, %v12443_v14  ;;  %vm8781_vm5 = vcmp.lt.s32.totalorder %v8780_v7, 0  ;;  %v5490_v52 = vsub.s32 4, %v12467_v23 }
 0x2ff   : > { %v9760_v2 = vpop.eup %9759  ;;  %v4984_v37 = vxor.u32 2147483648, %v9758_v12  ;;  %v5475_v56 = vsel %vm8781_vm5, 0, %v8780_v7  ;;  %v5875_v18 = vmul.u32 %v12489_v11, %v5859_v57  ;;  %v8774_v5 = vadd.s32 4294967169, %v5304_v0 }
 0x300   : > { %v4981_v22 = vxor.u32 2147483648, %v9760_v2  ;;  %v5476_v59 = vsub.s32 32, %v5475_v56  ;;  %v5477_v38 = vshll.u32 %v12484_v4, %v5475_v56  ;;  %v5480_v43 = vsub.s32 4294967266, %v5475_v56 }
 0x301   : > { %v4985_v14 = vsel %vm4983_vm4, %v4984_v37, %v9760_v2  ;;  %vm5877_vm6 = vc.u32 %v12522_v54, %v12515_v27  ;;  %v5878_v61 = vadd.s32 1, %v12516_v47  ;;  %v5300_v3 = vand.u32 2147483647, %v12463_v40 }
 0x302   : > { %v4982_v28 = vsel %vm4980_vm1, %v9758_v12, %v4981_v22  ;;  %v5478_v24 = vshrl.u32 %v5460_v26, %v5476_v59  ;;  %v5481_v42 = vadd.s32 127, %v5480_v43  ;;  %v5491_v4 = vsel %vm5406_vm2, %v5490_v52, %v12467_v23 }
 0x303   : > { %v4986_v30 = vsel %vm4979_vm14, %v4982_v28, %v4985_v14  ;;  %v7108_v49 = vmul.f32 1.442695, %v7004_v44  ;;  %v5879_v11 = vsel %vm5877_vm6, %v5878_v61, %v12516_v47  ;;  %v5310_v9 = vadd.s32 1, %v8774_v5 }
 0x304   : > { %v4987_v46 = vsel %vm4976_vm0, nan, %v4986_v30  ;;  %v5479_v16 = vor.u32 %v5478_v24, %v5477_v38  ;;  %v5482_v34 = vshll.u32 %v5481_v42, 23  ;;  %v5880_v19 = vadd.s32 %v5879_v11, %v5875_v18 }
 0x305   : > { %v7008_v1 = vadd.f32 1.0, %v4987_v46  ;;  %v5493_v20 = vsel %vm12509_vm3, 0, %v5491_v4  ;;  %v5307_v23 = vand.u32 8388607, %v5300_v3  ;;  %vm5311_vm7 = vcmp.gt.s32.totalorder %v5310_v9, 0 }
 0x306   : > { %v5483_v21 = vor.u32 4788187, %v5482_v34  ;;  %v5486_v25 = vcvt.s32.f32 %v5479_v16  ;;  %v5881_v8 = vadd.s32 536870912, %v5880_v19  ;;  %v5312_v48 = vsel %vm5311_vm7, %v5310_v9, 0 }
 0x307   : > { %9761 = vpow2.f32 %v7108_v49  ;;  %v7116_v15 = vmul.f32 1.442695, %v7008_v1  ;;  %v12550_v17 = vmul.f32 %v232_v63, %v232_v63  ;;  %v5314_v53 = vand.u32 31, %v5312_v48 }
 0x308   : > { %v5484_v57 = vand.u32 2147483647, %v5483_v21  ;;  %v12552_v32 = vadd.s32 3, %v5493_v20  ;;  %v5882_v45 = vshrl.u32 %v5881_v8, 30  ;;  %v5308_v29 = vor.u32 8388608, %v5307_v23 }
 0x309   : > { %9763 = vpow2.f32 %v7116_v15  ;;  %v5315_v7 = vsub.s32 32, %v5314_v53  ;;  %v5317_v50 = vshll.u32 %v15844_v31, %v5314_v53  ;;  %v5716_v47 = vand.u32 2147483647, %v12550_v17 }
 0x30a   : > { %v5487_v58 = vmul.f32 %v5486_v25, %v5484_v57  ;;  %v5883_v55 = vshll.u32 %v5882_v45, 30  ;;  %v5320_v0 = vshll.u32 %v15831_v33, %v5314_v53  ;;  %v5323_v12 = vshll.u32 %v15833_v35, %v5314_v53 }
 0x30b   : > { %v5318_v36 = vshrl.u32 %v15831_v33, %v5315_v7  ;;  %v5321_v62 = vshrl.u32 %v15833_v35, %v5315_v7  ;;  %v5324_v44 = vshrl.u32 %v15835_v39, %v5315_v7  ;;  %v5313_v2 = vshrl.u32 %v5312_v48, 5 }
 0x30c   : > { %v5488_v26 = vxor.u32 2147483648, %v5487_v58  ;;  %v12561_v52 = vsub.s32 %v5880_v19, %v5883_v55  ;;  %v5326_v37 = vshll.u32 %v15835_v39, %v5314_v53  ;;  %vm5822_vm8 = vcmp.lt.s32.totalorder %v12392_v10, 0 }
 0x30d   : > { %v5876_v56 = vadd.s32 %v12515_v27, %v12522_v54  ;;  %v5316_v18 = vshrl.u32 %v15844_v31, %v5315_v7  ;;  %v5319_v5 = vor.u32 %v5318_v36, %v5317_v50  ;;  %v5719_v22 = vand.u32 2139095040, %v12550_v17 }
 0x30e   : > { %v5489_v59 = vsel %vm5406_vm2, %v5488_v26, %v5487_v58  ;;  %v5886_v38 = vsub.s32 0, %v12561_v52  ;;  %v5322_v43 = vor.u32 %v5321_v62, %v5320_v0  ;;  %v5327_v14 = vshrl.u32 %v15842_v41, %v5315_v7 }
 0x30f   : > { %v5492_v61 = vsel %vm12509_vm3, %v12302_v6, %v5489_v59  ;;  %v5325_v28 = vor.u32 %v5324_v44, %v5323_v12  ;;  %v5329_v27 = vshll.u32 %v15842_v41, %v5314_v53  ;;  %v5330_v54 = vshrl.u32 %v15838_v51, %v5315_v7 }
 0x310   : > { %vm12580_vm9 = vcmp.le.f32.partialorder %v5820_v13, 0.7853982  ;;  %v8795_v42 = vmin.u32 %v5886_v38, %v12561_v52  ;;  %v5328_v4 = vor.u32 %v5327_v14, %v5326_v37  ;;  %vm5332_vm10 = vcmp.lt.s32.totalorder %v5313_v2, 1 }
 0x311   : > { %v12585_v30 = vshll.u32 %v5308_v29, 8  ;;  %v9762_v49 = vpop.eup %9761  ;;  %9765 = vcosq.f32 %v5492_v61  ;;  %v5906_v60 = vsub.s32 4, %v5882_v45  ;;  %v5331_v11 = vor.u32 %v5330_v54, %v5329_v27 }
 0x312   : > { %v5720_v9 = vshrl.u32 %v5719_v22, 23  ;;  %9767 = vsinq.f32 %v5492_v61  ;;  %v5888_v46 = vclz %v8795_v42  ;;  %vm5333_vm11 = vcmp.lt.s32.totalorder %v5313_v2, 2 }
 0x313   : > { %vm5334_vm12 = vcmp.lt.s32.totalorder %v5313_v2, 3  ;;  %v9764_v16 = vpop.eup %9763  ;;  %vm5335_vm13 = vcmp.lt.s32.totalorder %v5313_v2, 4  ;;  %v5336_v13 = vsel %vm5332_vm10, %v5316_v18, %v5319_v5  ;;  %v5340_v34 = vsel %vm5332_vm10, %v5319_v5, %v5322_v43 }
 0x314   : > { %v5344_v19 = vsel %vm5332_vm10, %v5322_v43, %v5325_v28  ;;  %v7176_v63 = vpack.c.bf16 %v9764_v16, %v9762_v49  ;;  %v8796_v1 = vadd.s32 4294967294, %v5888_v46  ;;  %v5337_v20 = vsel %vm5335_vm13, %v5325_v28, 2102212464 }
 0x315   : > { %v5341_v23 = vsel %vm5335_vm13, %v5328_v4, 920167782  ;;  %v5338_v21 = vsel %vm5334_vm12, %v5322_v43, %v5337_v20  ;;  %v5345_v8 = vsel %vm5335_vm13, %v5331_v11, 1326507024  ;;  %v8790_v48 = vadd.s32 4294967169, %v5720_v9 }
 0x316   : > { %v5342_v25 = vsel %vm5334_vm12, %v5325_v28, %v5341_v23  ;;  %8039 = vmatmul.mubr.bf16.gmra.mrb[20].mxu0 %v7176_v63  ;;  %8265 = vmatmul.mubr.bf16.gmra.mrb[20].mxu1 %v7176_v63  ;;  %vm8797_vm15 = vcmp.lt.s32.totalorder %v8796_v1, 0  ;;  %v5907_v15 = vsel %vm5822_vm8, %v5906_v60, %v5882_v45  ;;  %v5346_v57 = vsel %vm5334_vm12, %v5328_v4, %v5345_v8 }
 0x317   : > { %v5343_v53 = vsel %vm5333_vm11, %v5340_v34, %v5342_v25  ;;  %v5891_v7 = vsel %vm8797_vm15, 0, %v8796_v1  ;;  %v5347_v50 = vsel %vm5333_vm11, %v5344_v19, %v5346_v57  ;;  %v5339_v62 = vsel %vm5333_vm11, %v5336_v13, %v5338_v21 }
 0x318   : > { %v12595_v58 = vmul.u32.u64.low %v12585_v30, %v5343_v53  ;;  %v12596_v55 = vmul.u32.u64.high %v12585_v30, %v5343_v53, %v12595_v58  ;;  %v5892_v29 = vsub.s32 32, %v5891_v7  ;;  %v5893_v0 = vshll.u32 %v12561_v52, %v5891_v7 }
 0x319   : > { %v5896_v36 = vsub.s32 4294967266, %v5891_v7  ;;  %v5909_v45 = vsel %vm12580_vm9, 0, %v5907_v15  ;;  %v12604_v12 = vmul.u32.u64.low %v12585_v30, %v5347_v50  ;;  %v12605_v44 = vmul.u32.u64.high %v12585_v30, %v5347_v50, %v12604_v12 }
 0x31a   : > { %v5726_v26 = vadd.s32 1, %v8790_v48  ;;  %v12608_v37 = vand.u32 3, %v12552_v32  ;;  %v5894_v18 = vshrl.u32 %v5876_v56, %v5892_v29  ;;  %v5355_v52 = vmul.u32 %v12585_v30, %v5339_v62  ;;  %v237_v32 = vld [vmem:[%s10310_s3 + $0x1c8] sm:$0xff] }
 0x31b   : > { %v5897_v5 = vadd.s32 127, %v5896_v36  ;;  %v9766_v22 = vpop.eup %9765  ;;  %v5358_v2 = vadd.s32 1, %v12596_v55  ;;  %v5723_v59 = vand.u32 8388607, %v5716_v47  ;;  %v5913_v61 = vadd.s32 3, %v5909_v45 }
 0x31c   : > { %vm5727_vm0 = vcmp.gt.s32.totalorder %v5726_v26, 0  ;;  %v9768_v38 = vpop.eup %9767  ;;  %v5895_v43 = vor.u32 %v5894_v18, %v5893_v0  ;;  %vm5357_vm14 = vc.u32 %v12605_v44, %v12595_v58  ;;  %vm5500_vm1 = vcmp.eq.s32.totalorder %v12608_v37, 0 }
 0x31d   : > { %v5898_v14 = vshll.u32 %v5897_v5, 23  ;;  %v5728_v28 = vsel %vm5727_vm0, %v5726_v26, 0  ;;  %v5359_v54 = vsel %vm5357_vm14, %v5358_v2, %v12596_v55  ;;  %vm5503_vm2 = vcmp.eq.s32.totalorder %v12608_v37, 2 }
 0x31e   : > { %v5902_v27 = vcvt.s32.f32 %v5895_v43  ;;  %v5504_v42 = vxor.u32 2147483648, %v9766_v22  ;;  %v5360_v4 = vadd.s32 %v5359_v54, %v5355_v52  ;;  %v5730_v30 = vand.u32 31, %v5728_v28 }
 0x31f   : > { %v5899_v56 = vor.u32 4788187, %v5898_v14  ;;  %vm5499_vm3 = vcmp.lt.s32.totalorder %v12608_v37, 2  ;;  %v12621_v60 = vand.u32 3, %v5913_v61  ;;  %v5724_v11 = vor.u32 8388608, %v5723_v59 }
 0x320   : > { %v12623_v9 = vmul.f32 %v237_v32, %v237_v32  ;;  %v5501_v46 = vxor.u32 2147483648, %v9768_v38  ;;  %v5361_v16 = vadd.s32 536870912, %v5360_v4  ;;  %v5729_v13 = vshrl.u32 %v5728_v28, 5 }
 0x321   : > { %v5900_v49 = vand.u32 2147483647, %v5899_v56  ;;  %v5731_v34 = vsub.s32 32, %v5730_v30  ;;  %v5733_v63 = vshll.u32 %v15844_v31, %v5730_v30  ;;  %v5736_v1 = vshll.u32 %v15831_v33, %v5730_v30 }
 0x322   : > { %v5742_v20 = vshll.u32 %v15835_v39, %v5730_v30  ;;  %vm5496_vm4 = vweird.f32 %v12302_v6  ;;  %v5505_v23 = vsel %vm5503_vm2, %v5504_v42, %v9768_v38  ;;  %v12631_v21 = vshrl.u32 %v5361_v16, 30 }
 0x323   : > { %v5903_v19 = vmul.f32 %v5902_v27, %v5900_v49  ;;  %v5734_v25 = vshrl.u32 %v15831_v33, %v5731_v34  ;;  %v5739_v8 = vshll.u32 %v15833_v35, %v5730_v30  ;;  %v5737_v15 = vshrl.u32 %v15833_v35, %v5731_v34 }
 0x324   : > { %v5740_v53 = vshrl.u32 %v15835_v39, %v5731_v34  ;;  %v5743_v57 = vshrl.u32 %v15842_v41, %v5731_v34  ;;  %v5502_v7 = vsel %vm5500_vm1, %v9766_v22, %v5501_v46  ;;  %v5363_v50 = vshll.u32 %v12631_v21, 30 }
 0x325   : > { %v5904_v48 = vxor.u32 2147483648, %v5903_v19  ;;  %v5732_v55 = vshrl.u32 %v15844_v31, %v5731_v34  ;;  %vm5748_vm5 = vcmp.lt.s32.totalorder %v5729_v13, 1  ;;  %v5735_v0 = vor.u32 %v5734_v25, %v5733_v63 }
 0x326   : > { %v5738_v36 = vor.u32 %v5737_v15, %v5736_v1  ;;  %v5744_v62 = vor.u32 %v5743_v57, %v5742_v20  ;;  %v12647_v12 = vsub.s32 %v5360_v4, %v5363_v50  ;;  %v5741_v26 = vor.u32 %v5740_v53, %v5739_v8  ;;  %v9611_v1 = vld [vmem:[#allocation5 + $0x3c4] ss:$16 sps:$4 sm:$0xff]   ;;  %v9614_v20 = vld [vmem:[#allocation5 + $0x3cc] ss:$16 sps:$4 sm:$0xff]  }
 0x327   : > { %v5905_v29 = vsel %vm5822_vm8, %v5904_v48, %v5903_v19  ;;  %v5745_v18 = vshll.u32 %v15842_v41, %v5730_v30  ;;  %v5746_v5 = vshrl.u32 %v15838_v51, %v5731_v34  ;;  %vm5750_vm6 = vcmp.lt.s32.totalorder %v5729_v13, 3  ;;  %8097 = vmatprep.subr.bf16.mxu0 %v9611_v1  ;;  %8323 = vmatprep.subr.bf16.mxu1 %v9614_v20 }
 0x328   : > { %v5908_v45 = vsel %vm12580_vm9, %v12392_v10, %v5905_v29  ;;  %vm5751_vm7 = vcmp.lt.s32.totalorder %v5729_v13, 4  ;;  %v5366_v22 = vsub.s32 0, %v12647_v12  ;;  %vm5749_vm8 = vcmp.lt.s32.totalorder %v5729_v13, 2 }
 0x329   : > { %9769 = vcosq.f32 %v5908_v45  ;;  %v5764_v52 = vshll.u32 %v5724_v11, 8  ;;  %v5747_v2 = vor.u32 %v5746_v5, %v5745_v18  ;;  %v5753_v59 = vsel %vm5751_vm7, %v5741_v26, 2102212464 }
 0x32a   : > { %9771 = vsinq.f32 %v5908_v45  ;;  %v5756_v24 = vsel %vm5748_vm5, %v5735_v0, %v5738_v36  ;;  %v5757_v38 = vsel %vm5751_vm7, %v5744_v62, 920167782  ;;  %v5506_v43 = vsel %vm5499_vm3, %v5502_v7, %v5505_v23 }
 0x32b   : > { %v8775_v14 = vmin.u32 %v5366_v22, %v12647_v12  ;;  %v5752_v61 = vsel %vm5748_vm5, %v5732_v55, %v5735_v0  ;;  %v5758_v28 = vsel %vm5750_vm6, %v5741_v26, %v5757_v38  ;;  %v5754_v32 = vsel %vm5750_vm6, %v5738_v36, %v5753_v59  ;;  %v9609_v0 = vld [vmem:[#allocation5 + $0x3c0] ss:$16 sps:$4 sm:$0xff]  }
 0x32c   : > { %v5759_v56 = vsel %vm5749_vm8, %v5756_v24, %v5758_v28  ;;  %v5760_v27 = vsel %vm5748_vm5, %v5738_v36, %v5741_v26  ;;  %v5761_v54 = vsel %vm5751_vm7, %v5747_v2, 1326507024  ;;  %vm5912_vm9 = vweird.f32 %v12392_v10  ;;  %8098 = vmatpush1.bf16.msra.mxu0 %v9609_v0 }
 0x32d   : > { %vm5915_vm10 = vcmp.lt.s32.totalorder %v12621_v60, 2  ;;  %vm5302_vm11 = vcmp.lt.s32.totalorder %v12463_v40, 0  ;;  %v5368_v37 = vclz %v8775_v14  ;;  %v5507_v42 = vsel %vm5496_vm4, nan, %v5506_v43  ;;  %v241_v43 = vld [vmem:[%s10310_s3 + $0x1e8] sm:$0xff] }
 0x32e   : > { %vm12671_vm12 = vcmp.le.f32.partialorder %v5300_v3, 0.7853982  ;;  %v5762_v30 = vsel %vm5750_vm6, %v5744_v62, %v5761_v54  ;;  %v12676_v49 = vmul.u32.u64.low %v5764_v52, %v5759_v56  ;;  %v12677_v11 = vmul.u32.u64.high %v5764_v52, %v5759_v56, %v12676_v49  ;;  %v9612_v62 = vld [vmem:[#allocation5 + $0x3c8] ss:$16 sps:$4 sm:$0xff]  }
 0x32f   : > { %vm5916_vm13 = vcmp.eq.s32.totalorder %v12621_v60, 0  ;;  %v8776_v46 = vadd.s32 4294967294, %v5368_v37  ;;  %v5755_v16 = vsel %vm5749_vm8, %v5752_v61, %v5754_v32  ;;  %v5763_v6 = vsel %vm5749_vm8, %v5760_v27, %v5762_v30  ;;  %8324 = vmatpush1.bf16.msra.mxu1 %v9612_v62 }
 0x330   : > { %v5386_v34 = vsub.s32 4, %v12631_v21  ;;  %v12684_v19 = vmul.u32.u64.low %v5764_v52, %v5763_v6  ;;  %v12685_v3 = vmul.u32.u64.high %v5764_v52, %v5763_v6, %v12684_v19  ;;  %v6239_v63 = vand.u32 2139095040, %v12623_v9 }
 0x331   : > { %vm5919_vm15 = vcmp.eq.s32.totalorder %v12621_v60, 2  ;;  %v7013_v23 = vadd.f32 1.0, %v5507_v42  ;;  %v5356_v25 = vadd.s32 %v12595_v58, %v12605_v44  ;;  %vm8777_vm0 = vcmp.lt.s32.totalorder %v8776_v46, 0 }
 0x332   : > { %v5371_v48 = vsel %vm8777_vm0, 0, %v8776_v46  ;;  %v5771_v13 = vmul.u32 %v5764_v52, %v5755_v16  ;;  %v5774_v15 = vadd.s32 1, %v12677_v11  ;;  %v6240_v53 = vshrl.u32 %v6239_v63, 23 }
 0x333   : > { %v9770_v8 = vpop.eup %9769  ;;  %v5372_v50 = vsub.s32 32, %v5371_v48  ;;  %v5373_v55 = vshll.u32 %v12647_v12, %v5371_v48  ;;  %v5376_v29 = vsub.s32 4294967266, %v5371_v48  ;;  %v5387_v58 = vsel %vm5302_vm11, %v5386_v34, %v12631_v21 }
 0x334   : > { %v9772_v57 = vpop.eup %9771  ;;  %v5920_v7 = vxor.u32 2147483648, %v9770_v8  ;;  %vm5773_vm14 = vc.u32 %v12685_v3, %v12676_v49  ;;  %v8810_v44 = vadd.s32 4294967169, %v6240_v53  ;;  %v7126_v22 = vmul.f32 1.442695, %v7013_v23 }
 0x335   : > { %v5917_v36 = vxor.u32 2147483648, %v9772_v57  ;;  %v5374_v26 = vshrl.u32 %v5356_v25, %v5372_v50  ;;  %v5377_v18 = vadd.s32 127, %v5376_v29  ;;  %v5775_v12 = vsel %vm5773_vm14, %v5774_v15, %v12677_v11 }
 0x336   : > { %v5921_v45 = vsel %vm5919_vm15, %v5920_v7, %v9772_v57  ;;  %v5776_v52 = vadd.s32 %v5775_v12, %v5771_v13  ;;  %v6246_v21 = vadd.s32 1, %v8810_v44  ;;  %v5389_v38 = vsel %vm12671_vm12, 0, %v5387_v58 }
 0x337   : > { %v5918_v5 = vsel %vm5916_vm13, %v9770_v8, %v5917_v36  ;;  %v5375_v59 = vor.u32 %v5374_v26, %v5373_v55  ;;  %v5378_v24 = vshll.u32 %v5377_v18, 23  ;;  %v6236_v28 = vand.u32 2147483647, %v12623_v9 }
 0x338   : > { %v5922_v2 = vsel %vm5915_vm10, %v5918_v5, %v5921_v45  ;;  %v5777_v61 = vadd.s32 536870912, %v5776_v52  ;;  %vm6247_vm1 = vcmp.gt.s32.totalorder %v6246_v21, 0  ;;  %v12713_v60 = vmul.f32 %v241_v43, %v241_v43 }
 0x339   : > { %v5923_v14 = vsel %vm5912_vm9, nan, %v5922_v2  ;;  %v5379_v56 = vor.u32 4788187, %v5378_v24  ;;  %v5382_v27 = vcvt.s32.f32 %v5375_v59  ;;  %v6248_v54 = vsel %vm6247_vm1, %v6246_v21, 0 }
 0x33a   : > { %v7017_v32 = vadd.f32 1.0, %v5923_v14  ;;  %v12711_v37 = vshrl.u32 %v5777_v61, 30  ;;  %v6250_v42 = vand.u32 31, %v6248_v54  ;;  %9773 = vpow2.f32 %v7126_v22 }
 0x33b   : > { %v5380_v11 = vand.u32 2147483647, %v5379_v56  ;;  %v12715_v46 = vadd.s32 3, %v5389_v38  ;;  %v6243_v16 = vand.u32 8388607, %v6236_v28  ;;  %v5772_v20 = vadd.s32 %v12676_v49, %v12685_v3 }
 0x33c   : > { %v7134_v30 = vmul.f32 1.442695, %v7017_v32  ;;  %v5779_v10 = vshll.u32 %v12711_v37, 30  ;;  %v6251_v6 = vsub.s32 32, %v6250_v42  ;;  %v6652_v34 = vand.u32 2147483647, %v12713_v60 }
 0x33d   : > { %v5383_v19 = vmul.f32 %v5382_v27, %v5380_v11  ;;  %v6253_v63 = vshll.u32 %v15844_v31, %v6250_v42  ;;  %v6256_v1 = vshll.u32 %v15831_v33, %v6250_v42  ;;  %v6259_v8 = vshll.u32 %v15833_v35, %v6250_v42 }
 0x33e   : > { %9775 = vpow2.f32 %v7134_v30  ;;  %v12725_v23 = vsub.s32 %v5776_v52, %v5779_v10  ;;  %v6254_v25 = vshrl.u32 %v15831_v33, %v6251_v6  ;;  %v6249_v13 = vshrl.u32 %v6248_v54, 5 }
 0x33f   : > { %v5384_v48 = vxor.u32 2147483648, %v5383_v19  ;;  %v6257_v15 = vshrl.u32 %v15833_v35, %v6251_v6  ;;  %v6260_v53 = vshrl.u32 %v15835_v39, %v6251_v6  ;;  %v6244_v7 = vor.u32 8388608, %v6243_v16 }
 0x340   : > { %v5782_v57 = vsub.s32 0, %v12725_v23  ;;  %v6252_v50 = vshrl.u32 %v15844_v31, %v6251_v6  ;;  %v6262_v55 = vshll.u32 %v15835_v39, %v6250_v42  ;;  %v6255_v3 = vor.u32 %v6254_v25, %v6253_v63 }
 0x341   : > { %v5385_v49 = vsel %vm5302_vm11, %v5384_v48, %v5383_v19  ;;  %v6258_v29 = vor.u32 %v6257_v15, %v6256_v1  ;;  %v6263_v0 = vshrl.u32 %v15842_v41, %v6251_v6  ;;  %v6261_v44 = vor.u32 %v6260_v53, %v6259_v8 }
 0x342   : > { %v5388_v36 = vsel %vm12671_vm12, %v12463_v40, %v5385_v49  ;;  %v8791_v58 = vmin.u32 %v5782_v57, %v12725_v23  ;;  %v6265_v62 = vshll.u32 %v15842_v41, %v6250_v42  ;;  %vm5718_vm2 = vcmp.lt.s32.totalorder %v12550_v17, 0 }
 0x343   : > { %9777 = vcosq.f32 %v5388_v36  ;;  %v6264_v45 = vor.u32 %v6263_v0, %v6262_v55  ;;  %v6266_v26 = vshrl.u32 %v15838_v51, %v6251_v6  ;;  %vm6268_vm3 = vcmp.lt.s32.totalorder %v6249_v13, 1 }
 0x344   : > { %9779 = vsinq.f32 %v5388_v36  ;;  %v5784_v18 = vclz %v8791_v58  ;;  %v6284_v12 = vshll.u32 %v6244_v7, 8  ;;  %v6655_v5 = vand.u32 2139095040, %v12713_v60  ;;  %v9774_v22 = vpop.eup %9773 }
 0x345   : > { %v5802_v4 = vsub.s32 4, %v12711_v37  ;;  %v6267_v52 = vor.u32 %v6266_v26, %v6265_v62  ;;  %vm6269_vm4 = vcmp.lt.s32.totalorder %v6249_v13, 2  ;;  %vm6270_vm5 = vcmp.lt.s32.totalorder %v6249_v13, 3 }
 0x346   : > { %v8792_v21 = vadd.s32 4294967294, %v5784_v18  ;;  %vm6271_vm6 = vcmp.lt.s32.totalorder %v6249_v13, 4  ;;  %v6272_v2 = vsel %vm6268_vm3, %v6252_v50, %v6255_v3  ;;  %v6276_v59 = vsel %vm6268_vm3, %v6255_v3, %v6258_v29 }
 0x347   : > { %v6273_v38 = vsel %vm6271_vm6, %v6261_v44, 2102212464  ;;  %v6277_v43 = vsel %vm6271_vm6, %v6264_v45, 920167782  ;;  %v6280_v14 = vsel %vm6268_vm3, %v6258_v29, %v6261_v44  ;;  %v6281_v61 = vsel %vm6271_vm6, %v6267_v52, 1326507024 }
 0x348   : > { %v9776_v24 = vpop.eup %9775  ;;  %vm8793_vm7 = vcmp.lt.s32.totalorder %v8792_v21, 0  ;;  %v6274_v56 = vsel %vm6270_vm5, %v6258_v29, %v6273_v38  ;;  %v6278_v27 = vsel %vm6270_vm5, %v6261_v44, %v6277_v43  ;;  %v6282_v11 = vsel %vm6270_vm5, %v6264_v45, %v6281_v61 }
 0x349   : > { %v7181_v32 = vpack.c.bf16 %v9776_v24, %v9774_v22  ;;  %v5787_v54 = vsel %vm8793_vm7, 0, %v8792_v21  ;;  %v6275_v42 = vsel %vm6269_vm4, %v6272_v2, %v6274_v56  ;;  %v6279_v30 = vsel %vm6269_vm4, %v6276_v59, %v6278_v27  ;;  %v236_v22 = vld [vmem:[%s10310_s3 + $0x1c0] sm:$0xff] }
 0x34a   : > { %v5788_v10 = vsub.s32 32, %v5787_v54  ;;  %v5789_v16 = vshll.u32 %v12725_v23, %v5787_v54  ;;  %v5792_v6 = vsub.s32 4294967266, %v5787_v54  ;;  %v6283_v19 = vsel %vm6269_vm4, %v6280_v14, %v6282_v11 }
 0x34b   : > { %8048 = vmatprep.mubr.bf16.mxu0 %v7181_v32  ;;  %8274 = vmatprep.mubr.bf16.mxu1 %v7181_v32  ;;  %v12756_v63 = vmul.u32.u64.low %v6284_v12, %v6283_v19  ;;  %v12757_v1 = vmul.u32.u64.high %v6284_v12, %v6283_v19, %v12756_v63  ;;  %v12759_v25 = vmul.u32.u64.low %v6284_v12, %v6279_v30  ;;  %v12760_v8 = vmul.u32.u64.high %v6284_v12, %v6279_v30, %v12759_v25 }
 0x34c   : > { %v5790_v48 = vshrl.u32 %v5772_v20, %v5788_v10  ;;  %v5793_v15 = vadd.s32 127, %v5792_v6  ;;  %v5803_v53 = vsel %vm5718_vm2, %v5802_v4, %v12711_v37  ;;  %v6656_v57 = vshrl.u32 %v6655_v5, 23 }
 0x34d   : > { %v9778_v7 = vpop.eup %9777  ;;  %v5394_v50 = vand.u32 3, %v12715_v46  ;;  %vm12768_vm8 = vcmp.le.f32.partialorder %v5716_v47, 0.7853982  ;;  %v6659_v13 = vand.u32 8388607, %v6652_v34  ;;  %v6291_v3 = vmul.u32 %v6284_v12, %v6275_v42 }
 0x34e   : > { %v9780_v55 = vpop.eup %9779  ;;  %v5791_v20 = vor.u32 %v5790_v48, %v5789_v16  ;;  %v5794_v49 = vshll.u32 %v5793_v15, 23  ;;  %v8826_v29 = vadd.s32 4294967169, %v6656_v57  ;;  %v5400_v0 = vxor.u32 2147483648, %v9778_v7 }
 0x34f   : > { %v5805_v37 = vsel %vm12768_vm8, 0, %v5803_v53  ;;  %vm6293_vm9 = vc.u32 %v12757_v1, %v12759_v25  ;;  %v6294_v47 = vadd.s32 1, %v12760_v8  ;;  %v5397_v46 = vxor.u32 2147483648, %v9780_v55 }
 0x350   : > { %v5795_v36 = vor.u32 4788187, %v5794_v49  ;;  %v5798_v58 = vcvt.s32.f32 %v5791_v20  ;;  %v6662_v44 = vadd.s32 1, %v8826_v29  ;;  %vm5396_vm10 = vcmp.eq.s32.totalorder %v5394_v50, 0 }
 0x351   : > { %vm5399_vm11 = vcmp.eq.s32.totalorder %v5394_v50, 2  ;;  %v6295_v62 = vsel %vm6293_vm9, %v6294_v47, %v12760_v8  ;;  %v5809_v26 = vadd.s32 3, %v5805_v37  ;;  %vm5395_vm13 = vcmp.lt.s32.totalorder %v5394_v50, 2 }
 0x352   : > { %v5796_v45 = vand.u32 2147483647, %v5795_v36  ;;  %v6296_v18 = vadd.s32 %v6295_v62, %v6291_v3  ;;  %vm6663_vm12 = vcmp.gt.s32.totalorder %v6662_v44, 0  ;;  %v6660_v12 = vor.u32 8388608, %v6659_v13 }
 0x353   : > { %v6664_v5 = vsel %vm6663_vm12, %v6662_v44, 0  ;;  %v5398_v4 = vsel %vm5396_vm10, %v9778_v7, %v5397_v46  ;;  %v5401_v52 = vsel %vm5399_vm11, %v5400_v0, %v9780_v55  ;;  %vm5392_vm15 = vweird.f32 %v12463_v40 }
 0x354   : > { %v5799_v21 = vmul.f32 %v5798_v58, %v5796_v45  ;;  %v6297_v2 = vadd.s32 536870912, %v6296_v18  ;;  %v6666_v59 = vand.u32 31, %v6664_v5  ;;  %v12781_v38 = vand.u32 3, %v5809_v26 }
 0x355   : > { %v12785_v14 = vmul.f32 %v236_v22, %v236_v22  ;;  %v5402_v61 = vsel %vm5395_vm13, %v5398_v4, %v5401_v52  ;;  %v12788_v32 = vadd.s32 %v12759_v25, %v12757_v1  ;;  %v12790_v27 = vshll.u32 %v6660_v12, 8 }
 0x356   : > { %v5800_v24 = vxor.u32 2147483648, %v5799_v21  ;;  %v12783_v43 = vshrl.u32 %v6297_v2, 30  ;;  %v6667_v56 = vsub.s32 32, %v6666_v59  ;;  %v6669_v30 = vshll.u32 %v15844_v31, %v6666_v59  ;;  %v9617_v2 = vld [vmem:[#allocation5 + $0x3e4] ss:$16 sps:$4 sm:$0xff]  }
 0x357   : > { %v6672_v11 = vshll.u32 %v15831_v33, %v6666_v59  ;;  %v6675_v19 = vshll.u32 %v15833_v35, %v6666_v59  ;;  %v6665_v1 = vshrl.u32 %v6664_v5, 5  ;;  %v5403_v8 = vsel %vm5392_vm15, nan, %v5402_v61  ;;  %8099 = vmatprep.subr.bf16.mxu0 %v9617_v2 }
 0x358   : > { %v5801_v54 = vsel %vm5718_vm2, %v5800_v24, %v5799_v21  ;;  %v6299_v42 = vshll.u32 %v12783_v43, 30  ;;  %v6670_v16 = vshrl.u32 %v15831_v33, %v6667_v56  ;;  %v6673_v6 = vshrl.u32 %v15833_v35, %v6667_v56  ;;  %v9615_v21 = vld [vmem:[#allocation5 + $0x3e0] ss:$16 sps:$4 sm:$0xff]  }
 0x359   : > { %v5804_v10 = vsel %vm12768_vm8, %v12550_v17, %v5801_v54  ;;  %v6676_v25 = vshrl.u32 %v15835_v39, %v6667_v56  ;;  %v6668_v48 = vshrl.u32 %v15844_v31, %v6667_v56  ;;  %v6132_v15 = vand.u32 2147483647, %v12785_v14  ;;  %v9618_v54 = vld [vmem:[#allocation5 + $0x3e8] ss:$16 sps:$4 sm:$0xff]   ;;  %8100 = vmatpush1.bf16.msra.mxu0 %v9615_v21 }
 0x35a   : > { %9781 = vcosq.f32 %v5804_v10  ;;  %v12803_v63 = vsub.s32 %v6296_v18, %v6299_v42  ;;  %vm5815_vm0 = vcmp.eq.s32.totalorder %v12781_v38, 2  ;;  %v6671_v57 = vor.u32 %v6670_v16, %v6669_v30  ;;  %v9620_v42 = vld [vmem:[#allocation5 + $0x3ec] ss:$16 sps:$4 sm:$0xff]  }
 0x35b   : > { %9783 = vsinq.f32 %v5804_v10  ;;  %v6674_v7 = vor.u32 %v6673_v6, %v6672_v11  ;;  %v6678_v50 = vshll.u32 %v15835_v39, %v6666_v59  ;;  %vm5812_vm14 = vcmp.eq.s32.totalorder %v12781_v38, 0  ;;  %8325 = vmatprep.subr.bf16.mxu1 %v9620_v42 }
 0x35c   : > { %v6302_v53 = vsub.s32 0, %v12803_v63  ;;  %v6677_v23 = vor.u32 %v6676_v25, %v6675_v19  ;;  %v6679_v13 = vshrl.u32 %v15842_v41, %v6667_v56  ;;  %v6681_v40 = vshll.u32 %v15842_v41, %v6666_v59  ;;  %8326 = vmatpush1.bf16.msra.mxu1 %v9618_v54 }
 0x35d   : > { %v6682_v55 = vshrl.u32 %v15838_v51, %v6667_v56  ;;  %vm5811_vm1 = vcmp.lt.s32.totalorder %v12781_v38, 2  ;;  %vm6684_vm2 = vcmp.lt.s32.totalorder %v6665_v1, 1  ;;  %vm6687_vm3 = vcmp.lt.s32.totalorder %v6665_v1, 4 }
 0x35e   : > { %v8811_v20 = vmin.u32 %v6302_v53, %v12803_v63  ;;  %v6135_v49 = vand.u32 2139095040, %v12785_v14  ;;  %vm5808_vm4 = vweird.f32 %v12550_v17  ;;  %v6680_v3 = vor.u32 %v6679_v13, %v6678_v50 }
 0x35f   : > { %v6683_v29 = vor.u32 %v6682_v55, %v6681_v40  ;;  %vm6686_vm5 = vcmp.lt.s32.totalorder %v6665_v1, 3  ;;  %v6689_v0 = vsel %vm6687_vm3, %v6677_v23, 2102212464  ;;  %v7012_v37 = vadd.f32 1.0, %v5403_v8 }
 0x360   : > { %v6304_v47 = vclz %v8811_v20  ;;  %vm6685_vm6 = vcmp.lt.s32.totalorder %v6665_v1, 2  ;;  %v6688_v46 = vsel %vm6684_vm2, %v6668_v48, %v6671_v57  ;;  %v6690_v36 = vsel %vm6686_vm5, %v6674_v7, %v6689_v0 }
 0x361   : > { %v6692_v58 = vsel %vm6684_vm2, %v6671_v57, %v6674_v7  ;;  %v6693_v44 = vsel %vm6687_vm3, %v6680_v3, 920167782  ;;  %v6696_v62 = vsel %vm6684_vm2, %v6674_v7, %v6677_v23  ;;  %vm6238_vm7 = vcmp.lt.s32.totalorder %v12623_v9, 0 }
 0x362   : > { %v8812_v45 = vadd.s32 4294967294, %v6304_v47  ;;  %v6694_v26 = vsel %vm6686_vm5, %v6677_v23, %v6693_v44  ;;  %v6697_v18 = vsel %vm6687_vm3, %v6683_v29, 1326507024  ;;  %v12829_v12 = vand.u32 8388607, %v6132_v15 }
 0x363   : > { %v6691_v5 = vsel %vm6685_vm6, %v6688_v46, %v6690_v36  ;;  %v6695_v22 = vsel %vm6685_vm6, %v6692_v58, %v6694_v26  ;;  %v6698_v4 = vsel %vm6686_vm5, %v6680_v3, %v6697_v18  ;;  %v6136_v52 = vshrl.u32 %v6135_v49, 23 }
 0x364   : > { %v9782_v59 = vpop.eup %9781  ;;  %vm8813_vm8 = vcmp.lt.s32.totalorder %v8812_v45, 0  ;;  %v6699_v24 = vsel %vm6685_vm6, %v6696_v62, %v6698_v4  ;;  %v12836_v61 = vmul.u32.u64.low %v12790_v27, %v6695_v22  ;;  %v12837_v56 = vmul.u32.u64.high %v12790_v27, %v6695_v22, %v12836_v61 }
 0x365   : > { %v9784_v30 = vpop.eup %9783  ;;  %v5816_v11 = vxor.u32 2147483648, %v9782_v59  ;;  %v6307_v10 = vsel %vm8813_vm8, 0, %v8812_v45  ;;  %v12841_v16 = vmul.u32.u64.low %v12790_v27, %v6699_v24  ;;  %v12842_v6 = vmul.u32.u64.high %v12790_v27, %v6699_v24, %v12841_v16 }
 0x366   : > { %v5813_v19 = vxor.u32 2147483648, %v9784_v30  ;;  %v6308_v25 = vsub.s32 32, %v6307_v10  ;;  %v6309_v1 = vshll.u32 %v12803_v63, %v6307_v10  ;;  %v6312_v8 = vsub.s32 4294967266, %v6307_v10 }
 0x367   : > { %v5817_v48 = vsel %vm5815_vm0, %v5816_v11, %v9784_v30  ;;  %v6322_v53 = vsub.s32 4, %v12783_v43  ;;  %v6707_v57 = vmul.u32 %v12790_v27, %v6691_v5  ;;  %v8806_v7 = vadd.s32 4294967169, %v6136_v52  ;;  %v240_v5 = vld [vmem:[%s10310_s3 + $0x1e0] sm:$0xff] }
 0x368   : > { %v5814_v50 = vsel %vm5812_vm14, %v9782_v59, %v5813_v19  ;;  %v6310_v23 = vshrl.u32 %v12788_v32, %v6308_v25  ;;  %v6313_v13 = vadd.s32 127, %v6312_v8  ;;  %v6710_v63 = vadd.s32 1, %v12837_v56 }
 0x369   : > { %v5818_v40 = vsel %vm5811_vm1, %v5814_v50, %v5817_v48  ;;  %v7124_v55 = vmul.f32 1.442695, %v7012_v37  ;;  %vm6709_vm9 = vc.u32 %v12842_v6, %v12836_v61  ;;  %v6142_v20 = vadd.s32 1, %v8806_v7 }
 0x36a   : > { %v5819_v27 = vsel %vm5808_vm4, nan, %v5818_v40  ;;  %v6311_v49 = vor.u32 %v6310_v23, %v6309_v1  ;;  %v6314_v3 = vshll.u32 %v6313_v13, 23  ;;  %v6711_v29 = vsel %vm6709_vm9, %v6710_v63, %v12837_v56 }
 0x36b   : > { %v7016_v0 = vadd.f32 1.0, %v5819_v27  ;;  %v6323_v32 = vsel %vm6238_vm7, %v6322_v53, %v12783_v43  ;;  %v6712_v47 = vadd.s32 %v6711_v29, %v6707_v57  ;;  %vm6143_vm10 = vcmp.gt.s32.totalorder %v6142_v20, 0 }
 0x36c   : > { %vm12865_vm11 = vcmp.le.f32.partialorder %v6236_v28, 0.7853982  ;;  %v6315_v17 = vor.u32 4788187, %v6314_v3  ;;  %v6318_v37 = vcvt.s32.f32 %v6311_v49  ;;  %v6144_v46 = vsel %vm6143_vm10, %v6142_v20, 0 }
 0x36d   : > { %9785 = vpow2.f32 %v7124_v55  ;;  %v7132_v36 = vmul.f32 1.442695, %v7016_v0  ;;  %v6713_v58 = vadd.s32 536870912, %v6712_v47  ;;  %v6146_v44 = vand.u32 31, %v6144_v46 }
 0x36e   : > { %v6316_v62 = vand.u32 2147483647, %v6315_v17  ;;  %v6325_v43 = vsel %vm12865_vm11, 0, %v6323_v32  ;;  %v6140_v26 = vor.u32 8388608, %v12829_v12  ;;  %v6145_v22 = vshrl.u32 %v6144_v46, 5 }
 0x36f   : > { %9787 = vpow2.f32 %v7132_v36  ;;  %v12871_v45 = vshrl.u32 %v6713_v58, 30  ;;  %v6147_v28 = vsub.s32 32, %v6146_v44  ;;  %v6149_v4 = vshll.u32 %v15844_v31, %v6146_v44 }
 0x370   : > { %v6319_v18 = vmul.f32 %v6318_v37, %v6316_v62  ;;  %v6152_v52 = vshll.u32 %v15831_v33, %v6146_v44  ;;  %v6155_v59 = vshll.u32 %v15833_v35, %v6146_v44  ;;  %v6158_v24 = vshll.u32 %v15835_v39, %v6146_v44 }
 0x371   : > { %v6715_v21 = vshll.u32 %v12871_v45, 30  ;;  %v6150_v2 = vshrl.u32 %v15831_v33, %v6147_v28  ;;  %v6153_v54 = vshrl.u32 %v15833_v35, %v6147_v28  ;;  %v6156_v12 = vshrl.u32 %v15835_v39, %v6147_v28 }
 0x372   : > { %v6320_v56 = vxor.u32 2147483648, %v6319_v18  ;;  %v6159_v42 = vshrl.u32 %v15842_v41, %v6147_v28  ;;  %v12884_v30 = vadd.s32 3, %v6325_v43  ;;  %v6708_v11 = vadd.s32 %v12836_v61, %v12842_v6 }
 0x373   : > { %v12888_v10 = vsub.s32 %v6712_v47, %v6715_v21  ;;  %v12890_v16 = vmul.f32 %v240_v5, %v240_v5  ;;  %v6148_v25 = vshrl.u32 %v15844_v31, %v6147_v28  ;;  %v6161_v1 = vshll.u32 %v15842_v41, %v6146_v44 }
 0x374   : > { %v6321_v19 = vsel %vm6238_vm7, %v6320_v56, %v6319_v18  ;;  %v12896_v8 = vshll.u32 %v6140_v26, 8  ;;  %vm6654_vm12 = vcmp.lt.s32.totalorder %v12713_v60, 0  ;;  %v6151_v6 = vor.u32 %v6150_v2, %v6149_v4 }
 0x375   : > { %v6324_v48 = vsel %vm12865_vm11, %v12623_v9, %v6321_v19  ;;  %v6718_v61 = vsub.s32 0, %v12888_v10  ;;  %v6154_v53 = vor.u32 %v6153_v54, %v6152_v52  ;;  %v6157_v57 = vor.u32 %v6156_v12, %v6155_v59 }
 0x376   : > { %v6160_v7 = vor.u32 %v6159_v42, %v6158_v24  ;;  %v6162_v50 = vshrl.u32 %v15838_v51, %v6147_v28  ;;  %vm6164_vm13 = vcmp.lt.s32.totalorder %v6145_v22, 1  ;;  %9789 = vcosq.f32 %v6324_v48 }
 0x377   : > { %v9786_v23 = vpop.eup %9785  ;;  %v8827_v13 = vmin.u32 %v6718_v61, %v12888_v10  ;;  %v6738_v63 = vsub.s32 4, %v12871_v45  ;;  %v6551_v40 = vand.u32 2139095040, %v12890_v16  ;;  %9791 = vsinq.f32 %v6324_v48 }
 0x378   : > { %v6163_v55 = vor.u32 %v6162_v50, %v6161_v1  ;;  %vm6166_vm15 = vcmp.lt.s32.totalorder %v6145_v22, 3  ;;  %vm6167_vm0 = vcmp.lt.s32.totalorder %v6145_v22, 4  ;;  %vm6165_vm14 = vcmp.lt.s32.totalorder %v6145_v22, 2 }
 0x379   : > { %v9788_v20 = vpop.eup %9787  ;;  %v6720_v27 = vclz %v8827_v13  ;;  %v6168_v49 = vsel %vm6164_vm13, %v6148_v25, %v6151_v6  ;;  %v6172_v3 = vsel %vm6164_vm13, %v6151_v6, %v6154_v53  ;;  %v6169_v0 = vsel %vm6167_vm0, %v6157_v57, 2102212464 }
 0x37a   : > { %v7180_v29 = vpack.c.bf16 %v9788_v20, %v9786_v23  ;;  %v6173_v32 = vsel %vm6167_vm0, %v6160_v7, 920167782  ;;  %v6176_v47 = vsel %vm6164_vm13, %v6154_v53, %v6157_v57  ;;  %v6170_v17 = vsel %vm6166_vm15, %v6154_v53, %v6169_v0 }
 0x37b   : > { %v8828_v38 = vadd.s32 4294967294, %v6720_v27  ;;  %v6174_v37 = vsel %vm6166_vm15, %v6157_v57, %v6173_v32  ;;  %v6177_v46 = vsel %vm6167_vm0, %v6163_v55, 1326507024  ;;  %v6171_v36 = vsel %vm6165_vm14, %v6168_v49, %v6170_v17  ;;  %v183_v57 = vld [vmem:[%s10310_s3 + $0x18] sm:$0xff] }
 0x37c   : > { %8049 = vmatmul.mubr.bf16.gmra.mrb[24].mxu0 %v7180_v29  ;;  %8275 = vmatmul.mubr.bf16.gmra.mrb[24].mxu1 %v7180_v29  ;;  %v6175_v58 = vsel %vm6165_vm14, %v6172_v3, %v6174_v37  ;;  %v6178_v44 = vsel %vm6166_vm15, %v6160_v7, %v6177_v46  ;;  %v6552_v62 = vshrl.u32 %v6551_v40, 23  ;;  %v6739_v5 = vsel %vm6654_vm12, %v6738_v63, %v12871_v45 }
 0x37d   : > { %vm8829_vm1 = vcmp.lt.s32.totalorder %v8828_v38, 0  ;;  %v6179_v43 = vsel %vm6165_vm14, %v6176_v47, %v6178_v44  ;;  %v12917_v26 = vmul.u32.u64.low %v12896_v8, %v6175_v58  ;;  %v12918_v28 = vmul.u32.u64.high %v12896_v8, %v6175_v58, %v12917_v26 }
 0x37e   : > { %v6723_v18 = vsel %vm8829_vm1, 0, %v8828_v38  ;;  %v12925_v4 = vmul.u32.u64.low %v12896_v8, %v6179_v43  ;;  %v12926_v52 = vmul.u32.u64.high %v12896_v8, %v6179_v43, %v12925_v4  ;;  %v8822_v22 = vadd.s32 4294967169, %v6552_v62 }
 0x37f   : > { %v6724_v21 = vsub.s32 32, %v6723_v18  ;;  %v6725_v2 = vshll.u32 %v12888_v10, %v6723_v18  ;;  %v6728_v59 = vsub.s32 4294967266, %v6723_v18  ;;  %vm12931_vm2 = vcmp.le.f32.partialorder %v6652_v34, 0.7853982 }
 0x380   : > { %v6187_v56 = vmul.u32 %v12896_v8, %v6171_v36  ;;  %v9790_v54 = vpop.eup %9789  ;;  %v6741_v42 = vsel %vm12931_vm2, 0, %v6739_v5  ;;  %v6190_v19 = vadd.s32 1, %v12918_v28  ;;  %v6330_v25 = vand.u32 3, %v12884_v30 }
 0x381   : > { %v6726_v12 = vshrl.u32 %v6708_v11, %v6724_v21  ;;  %v6729_v45 = vadd.s32 127, %v6728_v59  ;;  %v9792_v10 = vpop.eup %9791  ;;  %vm6189_vm3 = vc.u32 %v12926_v52, %v12917_v26  ;;  %v6558_v34 = vadd.s32 1, %v8822_v22 }
 0x382   : > { %v6191_v8 = vsel %vm6189_vm3, %v6190_v19, %v12918_v28  ;;  %v6548_v11 = vand.u32 2147483647, %v12890_v16  ;;  %v6336_v61 = vxor.u32 2147483648, %v9790_v54  ;;  %v6745_v6 = vadd.s32 3, %v6741_v42 }
 0x383   : > { %v6727_v1 = vor.u32 %v6726_v12, %v6725_v2  ;;  %v6730_v48 = vshll.u32 %v6729_v45, 23  ;;  %v6192_v53 = vadd.s32 %v6191_v8, %v6187_v56  ;;  %vm6559_vm4 = vcmp.gt.s32.totalorder %v6558_v34, 0 }
 0x384   : > { %v6333_v7 = vxor.u32 2147483648, %v9792_v10  ;;  %v6560_v13 = vsel %vm6559_vm4, %v6558_v34, 0  ;;  %vm6332_vm5 = vcmp.eq.s32.totalorder %v6330_v25, 0  ;;  %vm6335_vm6 = vcmp.eq.s32.totalorder %v6330_v25, 2 }
 0x385   : > { %v6731_v50 = vor.u32 4788187, %v6730_v48  ;;  %v6734_v23 = vcvt.s32.f32 %v6727_v1  ;;  %v6193_v30 = vadd.s32 536870912, %v6192_v53  ;;  %v6562_v63 = vand.u32 31, %v6560_v13 }
 0x386   : > { %vm6328_vm7 = vweird.f32 %v12623_v9  ;;  %vm6331_vm8 = vcmp.lt.s32.totalorder %v6330_v25, 2  ;;  %v12946_v55 = vmul.f32 %v183_v57, %v183_v57  ;;  %v12948_v20 = vand.u32 3, %v6745_v6 }
 0x387   : > { %v6732_v40 = vand.u32 2147483647, %v6731_v50  ;;  %v12950_v27 = vshrl.u32 %v6193_v30, 30  ;;  %v6555_v49 = vand.u32 8388607, %v6548_v11  ;;  %v6563_v3 = vsub.s32 32, %v6562_v63 }
 0x388   : > { %v6334_v29 = vsel %vm6332_vm5, %v9790_v54, %v6333_v7  ;;  %v6337_v0 = vsel %vm6335_vm6, %v6336_v61, %v9792_v10  ;;  %v6565_v47 = vshll.u32 %v15844_v31, %v6562_v63  ;;  %v6568_v37 = vshll.u32 %v15831_v33, %v6562_v63 }
 0x389   : > { %v6735_v32 = vmul.f32 %v6734_v23, %v6732_v40  ;;  %v6195_v38 = vshll.u32 %v12950_v27, 30  ;;  %v6566_v17 = vshrl.u32 %v15831_v33, %v6563_v3  ;;  %v6571_v46 = vshll.u32 %v15833_v35, %v6562_v63 }
 0x38a   : > { %v6569_v58 = vshrl.u32 %v15833_v35, %v6563_v3  ;;  %v6572_v44 = vshrl.u32 %v15835_v39, %v6563_v3  ;;  %v6574_v62 = vshll.u32 %v15835_v39, %v6562_v63  ;;  %v6556_v28 = vor.u32 8388608, %v6555_v49 }
 0x38b   : > { %v6736_v36 = vxor.u32 2147483648, %v6735_v32  ;;  %v12962_v43 = vsub.s32 %v6192_v53, %v6195_v38  ;;  %v6561_v18 = vshrl.u32 %v6560_v13, 5  ;;  %v6575_v5 = vshrl.u32 %v15842_v41, %v6563_v3 }
 0x38c   : > { %v6338_v4 = vsel %vm6331_vm8, %v6334_v29, %v6337_v0  ;;  %v6564_v2 = vshrl.u32 %v15844_v31, %v6563_v3  ;;  %v6567_v59 = vor.u32 %v6566_v17, %v6565_v47  ;;  %v6570_v54 = vor.u32 %v6569_v58, %v6568_v37 }
 0x38d   : > { %v6737_v21 = vsel %vm6654_vm12, %v6736_v36, %v6735_v32  ;;  %v6198_v56 = vsub.s32 0, %v12962_v43  ;;  %v6573_v12 = vor.u32 %v6572_v44, %v6571_v46  ;;  %v6576_v45 = vor.u32 %v6575_v5, %v6574_v62 }
 0x38e   : > { %v6740_v22 = vsel %vm12931_vm2, %v12713_v60, %v6737_v21  ;;  %v6577_v42 = vshll.u32 %v15842_v41, %v6562_v63  ;;  %v6578_v19 = vshrl.u32 %v15838_v51, %v6563_v3  ;;  %v6188_v10 = vadd.s32 %v12917_v26, %v12926_v52 }
 0x38f   : > { %9793 = vcosq.f32 %v6740_v22  ;;  %v8807_v25 = vmin.u32 %v6198_v56, %v12962_v43  ;;  %vm6580_vm9 = vcmp.lt.s32.totalorder %v6561_v18, 1  ;;  %vm6582_vm10 = vcmp.lt.s32.totalorder %v6561_v18, 3 }
 0x390   : > { %9795 = vsinq.f32 %v6740_v22  ;;  %v6579_v34 = vor.u32 %v6578_v19, %v6577_v42  ;;  %vm6583_vm11 = vcmp.lt.s32.totalorder %v6561_v18, 4  ;;  %v6596_v24 = vshll.u32 %v6556_v28, 8  ;;  %v187_v19 = vld [vmem:[%s10310_s3 + $0x38] sm:$0xff] }
 0x391   : > { %v6339_v1 = vsel %vm6328_vm7, nan, %v6338_v4  ;;  %vm6748_vm12 = vcmp.eq.s32.totalorder %v12948_v20, 0  ;;  %vm6134_vm13 = vcmp.lt.s32.totalorder %v12785_v14, 0  ;;  %v6200_v48 = vclz %v8807_v25 }
 0x392   : > { %vm6581_vm15 = vcmp.lt.s32.totalorder %v6561_v18, 2  ;;  %v6584_v8 = vsel %vm6580_vm9, %v6564_v2, %v6567_v59  ;;  %vm6747_vm0 = vcmp.lt.s32.totalorder %v12948_v20, 2  ;;  %v6585_v26 = vsel %vm6583_vm11, %v6573_v12, 2102212464 }
 0x393   : > { %v6588_v52 = vsel %vm6580_vm9, %v6567_v59, %v6570_v54  ;;  %v6589_v61 = vsel %vm6583_vm11, %v6576_v45, 920167782  ;;  %v6592_v6 = vsel %vm6580_vm9, %v6570_v54, %v6573_v12  ;;  %vm6744_vm14 = vweird.f32 %v12713_v60 }
 0x394   : > { %v8808_v53 = vadd.s32 4294967294, %v6200_v48  ;;  %v6586_v9 = vsel %vm6582_vm10, %v6570_v54, %v6585_v26  ;;  %v6590_v57 = vsel %vm6582_vm10, %v6573_v12, %v6589_v61  ;;  %v6593_v7 = vsel %vm6583_vm11, %v6579_v34, 1326507024 }
 0x395   : > { %vm12991_vm1 = vcmp.le.f32.partialorder %v6132_v15, 0.7853982  ;;  %v6587_v23 = vsel %vm6581_vm15, %v6584_v8, %v6586_v9  ;;  %v6591_v13 = vsel %vm6581_vm15, %v6588_v52, %v6590_v57  ;;  %v6594_v30 = vsel %vm6582_vm10, %v6576_v45, %v6593_v7 }
 0x396   : > { %v623_v63 = vand.u32 2139095040, %v12946_v55  ;;  %vm8809_vm2 = vcmp.lt.s32.totalorder %v8808_v53, 0  ;;  %v6595_v40 = vsel %vm6581_vm15, %v6592_v6, %v6594_v30  ;;  %v6218_v15 = vsub.s32 4, %v12950_v27 }
 0x397   : > { %v13000_v49 = vmul.u32.u64.low %v6596_v24, %v6591_v13  ;;  %v13001_v3 = vmul.u32.u64.high %v6596_v24, %v6591_v13, %v13000_v49  ;;  %v6203_v29 = vsel %vm8809_vm2, 0, %v8808_v53  ;;  %vm6751_vm3 = vcmp.eq.s32.totalorder %v12948_v20, 2 }
 0x398   : > { %v13005_v0 = vmul.u32.u64.low %v6596_v24, %v6595_v40  ;;  %v13006_v32 = vmul.u32.u64.high %v6596_v24, %v6595_v40, %v13005_v0  ;;  %v6204_v47 = vsub.s32 32, %v6203_v29  ;;  %v6205_v38 = vshll.u32 %v12962_v43, %v6203_v29 }
 0x399   : > { %v6208_v17 = vsub.s32 4294967266, %v6203_v29  ;;  %v624_v37 = vshrl.u32 %v623_v63, 23  ;;  %v9794_v46 = vpop.eup %9793  ;;  %v7021_v36 = vadd.f32 1.0, %v6339_v1  ;;  %v6603_v58 = vmul.u32 %v6596_v24, %v6587_v23 }
 0x39a   : > { %v620_v44 = vand.u32 2147483647, %v12946_v55  ;;  %v9796_v62 = vpop.eup %9795  ;;  %v6752_v28 = vxor.u32 2147483648, %v9794_v46  ;;  %v6206_v18 = vshrl.u32 %v6188_v10, %v6204_v47  ;;  %v6606_v4 = vadd.s32 1, %v13001_v3 }
 0x39b   : > { %v6209_v5 = vadd.s32 127, %v6208_v17  ;;  %v6749_v21 = vxor.u32 2147483648, %v9796_v62  ;;  %v6219_v43 = vsel %vm6134_vm13, %v6218_v15, %v12950_v27  ;;  %vm6605_vm4 = vc.u32 %v13006_v32, %v13000_v49 }
 0x39c   : > { %v8594_v2 = vadd.s32 4294967169, %v624_v37  ;;  %v6753_v59 = vsel %vm6751_vm3, %v6752_v28, %v9796_v62  ;;  %v6207_v22 = vor.u32 %v6206_v18, %v6205_v38  ;;  %v6607_v54 = vsel %vm6605_vm4, %v6606_v4, %v13001_v3 }
 0x39d   : > { %v6210_v56 = vshll.u32 %v6209_v5, 23  ;;  %v6750_v12 = vsel %vm6748_vm12, %v9794_v46, %v6749_v21  ;;  %v7142_v45 = vmul.f32 1.442695, %v7021_v36  ;;  %v6608_v42 = vadd.s32 %v6607_v54, %v6603_v58 }
 0x39e   : > { %v630_v10 = vadd.s32 1, %v8594_v2  ;;  %v6754_v25 = vsel %vm6747_vm0, %v6750_v12, %v6753_v59  ;;  %v6214_v34 = vcvt.s32.f32 %v6207_v22  ;;  %v6221_v24 = vsel %vm12991_vm1, 0, %v6219_v43 }
 0x39f   : > { %v6211_v27 = vor.u32 4788187, %v6210_v56  ;;  %v6755_v1 = vsel %vm6744_vm14, nan, %v6754_v25  ;;  %v6609_v48 = vadd.s32 536870912, %v6608_v42  ;;  %v627_v8 = vand.u32 8388607, %v620_v44 }
 0x3a0   : > { %vm631_vm5 = vcmp.gt.s32.totalorder %v630_v10, 0  ;;  %v7025_v26 = vadd.f32 1.0, %v6755_v1  ;;  %v13029_v61 = vmul.f32 %v187_v19, %v187_v19  ;;  %9797 = vpow2.f32 %v7142_v45 }
 0x3a1   : > { %v6212_v52 = vand.u32 2147483647, %v6211_v27  ;;  %v632_v6 = vsel %vm631_vm5, %v630_v10, 0  ;;  %v6610_v20 = vshrl.u32 %v6609_v48, 30  ;;  %v13031_v7 = vadd.s32 3, %v6221_v24 }
 0x3a2   : > { %v634_v53 = vand.u32 31, %v632_v6  ;;  %v7150_v9 = vmul.f32 1.442695, %v7025_v26  ;;  %v628_v60 = vor.u32 8388608, %v627_v8  ;;  %v1036_v30 = vand.u32 2147483647, %v13029_v61 }
 0x3a3   : > { %v6215_v57 = vmul.f32 %v6214_v34, %v6212_v52  ;;  %v6611_v23 = vshll.u32 %v6610_v20, 30  ;;  %v1039_v3 = vand.u32 2139095040, %v13029_v61  ;;  %v633_v15 = vshrl.u32 %v632_v6, 5 }
 0x3a4   : > { %v635_v13 = vsub.s32 32, %v634_v53  ;;  %9799 = vpow2.f32 %v7150_v9  ;;  %v637_v40 = vshll.u32 %v15844_v31, %v634_v53  ;;  %v640_v47 = vshll.u32 %v15831_v33, %v634_v53 }
 0x3a5   : > { %v6216_v63 = vxor.u32 2147483648, %v6215_v57  ;;  %v13036_v29 = vsub.s32 %v6608_v42, %v6611_v23  ;;  %vm6550_vm6 = vcmp.lt.s32.totalorder %v12890_v16, 0  ;;  %v643_v37 = vshll.u32 %v15833_v35, %v634_v53 }
 0x3a6   : > { %v638_v0 = vshrl.u32 %v15831_v33, %v635_v13  ;;  %v641_v17 = vshrl.u32 %v15833_v35, %v635_v13  ;;  %v644_v46 = vshrl.u32 %v15835_v39, %v635_v13  ;;  %v6604_v58 = vadd.s32 %v13000_v49, %v13006_v32 }
 0x3a7   : > { %v6217_v38 = vsel %vm6134_vm13, %v6216_v63, %v6215_v57  ;;  %v6614_v62 = vsub.s32 0, %v13036_v29  ;;  %v13052_v28 = vshll.u32 %v628_v60, 8  ;;  %v636_v18 = vshrl.u32 %v15844_v31, %v635_v13 }
 0x3a8   : > { %v6220_v36 = vsel %vm12991_vm1, %v12785_v14, %v6217_v38  ;;  %v639_v5 = vor.u32 %v638_v0, %v637_v40  ;;  %v646_v4 = vshll.u32 %v15835_v39, %v634_v53  ;;  %v1040_v21 = vshrl.u32 %v1039_v3, 23 }
 0x3a9   : > { %9801 = vcosq.f32 %v6220_v36  ;;  %v8823_v43 = vmin.u32 %v6614_v62, %v13036_v29  ;;  %v642_v2 = vor.u32 %v641_v17, %v640_v47  ;;  %v647_v50 = vshrl.u32 %v15842_v41, %v635_v13 }
 0x3aa   : > { %vm13060_vm7 = vcmp.le.f32.partialorder %v6548_v11, 0.7853982  ;;  %v645_v32 = vor.u32 %v644_v46, %v643_v37  ;;  %v649_v59 = vshll.u32 %v15842_v41, %v634_v53  ;;  %v650_v22 = vshrl.u32 %v15838_v51, %v635_v13  ;;  %v9798_v12 = vpop.eup %9797 }
 0x3ab   : > { %vm652_vm8 = vcmp.lt.s32.totalorder %v633_v15, 1  ;;  %9803 = vsinq.f32 %v6220_v36  ;;  %v6616_v56 = vclz %v8823_v43  ;;  %v6634_v54 = vsub.s32 4, %v6610_v20 }
 0x3ac   : > { %vm653_vm9 = vcmp.lt.s32.totalorder %v633_v15, 2  ;;  %v648_v45 = vor.u32 %v647_v50, %v646_v4  ;;  %v651_v42 = vor.u32 %v650_v22, %v649_v59  ;;  %vm654_vm10 = vcmp.lt.s32.totalorder %v633_v15, 3 }
 0x3ad   : > { %vm655_vm11 = vcmp.lt.s32.totalorder %v633_v15, 4  ;;  %v8824_v19 = vadd.s32 4294967294, %v6616_v56  ;;  %v656_v11 = vsel %vm652_vm8, %v636_v18, %v639_v5  ;;  %v660_v25 = vsel %vm652_vm8, %v639_v5, %v642_v2 }
 0x3ae   : > { %v657_v10 = vsel %vm655_vm11, %v645_v32, 2102212464  ;;  %v9800_v27 = vpop.eup %9799  ;;  %v661_v24 = vsel %vm655_vm11, %v648_v45, 920167782  ;;  %v664_v1 = vsel %vm652_vm8, %v642_v2, %v645_v32  ;;  %v665_v48 = vsel %vm655_vm11, %v651_v42, 1326507024 }
 0x3af   : > { %v658_v34 = vsel %vm654_vm10, %v642_v2, %v657_v10  ;;  %v7185_v8 = vpack.c.bf16 %v9800_v27, %v9798_v12  ;;  %vm8825_vm12 = vcmp.lt.s32.totalorder %v8824_v19, 0  ;;  %v6635_v26 = vsel %vm6550_vm6, %v6634_v54, %v6610_v20 }
 0x3b0   : > { %v662_v52 = vsel %vm654_vm10, %v645_v32, %v661_v24  ;;  %v6619_v6 = vsel %vm8825_vm12, 0, %v8824_v19  ;;  %v659_v53 = vsel %vm653_vm9, %v656_v11, %v658_v34  ;;  %v666_v57 = vsel %vm654_vm10, %v648_v45, %v665_v48 }
 0x3b1   : > { %v663_v9 = vsel %vm653_vm9, %v660_v25, %v662_v52  ;;  %8058 = vmatprep.mubr.bf16.mxu0 %v7185_v8  ;;  %8284 = vmatprep.mubr.bf16.mxu1 %v7185_v8  ;;  %v6620_v23 = vsub.s32 32, %v6619_v6  ;;  %v6621_v60 = vshll.u32 %v13036_v29, %v6619_v6  ;;  %v6624_v13 = vsub.s32 4294967266, %v6619_v6 }
 0x3b2   : > { %v667_v63 = vsel %vm653_vm9, %v664_v1, %v666_v57  ;;  %v13083_v3 = vmul.u32.u64.low %v13052_v28, %v663_v9  ;;  %v13084_v0 = vmul.u32.u64.high %v13052_v28, %v663_v9, %v13083_v3  ;;  %v6637_v37 = vsel %vm13060_vm7, 0, %v6635_v26 }
 0x3b3   : > { %v13079_v40 = vmul.u32.u64.low %v13052_v28, %v667_v63  ;;  %v13080_v20 = vmul.u32.u64.high %v13052_v28, %v667_v63, %v13079_v40  ;;  %v9802_v47 = vpop.eup %9801  ;;  %v6622_v38 = vshrl.u32 %v6604_v58, %v6620_v23  ;;  %v6625_v17 = vadd.s32 127, %v6624_v13 }
 0x3b4   : > { %v8610_v46 = vadd.s32 4294967169, %v1040_v21  ;;  %v6226_v29 = vand.u32 3, %v13031_v7  ;;  %v675_v18 = vmul.u32 %v13052_v28, %v659_v53  ;;  %v6641_v4 = vadd.s32 3, %v6637_v37  ;;  %v182_v28 = vld [vmem:[%s10310_s3 + $0x10] sm:$0xff] }
 0x3b5   : > { %v9804_v15 = vpop.eup %9803  ;;  %v6623_v36 = vor.u32 %v6622_v38, %v6621_v60  ;;  %v6626_v62 = vshll.u32 %v6625_v17, 23  ;;  %vm677_vm13 = vc.u32 %v13080_v20, %v13083_v3  ;;  %v678_v58 = vadd.s32 1, %v13084_v0 }
 0x3b6   : > { %v1046_v5 = vadd.s32 1, %v8610_v46  ;;  %v1043_v43 = vand.u32 8388607, %v1036_v30  ;;  %v6232_v2 = vxor.u32 2147483648, %v9802_v47  ;;  %v6229_v7 = vxor.u32 2147483648, %v9804_v15 }
 0x3b7   : > { %v6627_v21 = vor.u32 4788187, %v6626_v62  ;;  %v6630_v50 = vcvt.s32.f32 %v6623_v36  ;;  %vm6231_vm0 = vcmp.eq.s32.totalorder %v6226_v29, 2  ;;  %v679_v32 = vsel %vm677_vm13, %v678_v58, %v13084_v0 }
 0x3b8   : > { %vm1047_vm15 = vcmp.gt.s32.totalorder %v1046_v5, 0  ;;  %vm6228_vm14 = vcmp.eq.s32.totalorder %v6226_v29, 0  ;;  %v680_v56 = vadd.s32 %v679_v32, %v675_v18  ;;  %vm6227_vm1 = vcmp.lt.s32.totalorder %v6226_v29, 2 }
 0x3b9   : > { %v1048_v59 = vsel %vm1047_vm15, %v1046_v5, 0  ;;  %v6628_v22 = vand.u32 2147483647, %v6627_v21  ;;  %v13098_v54 = vand.u32 3, %v6641_v4  ;;  %v1044_v12 = vor.u32 8388608, %v1043_v43 }
 0x3ba   : > { %v1050_v45 = vand.u32 31, %v1048_v59  ;;  %v6233_v42 = vsel %vm6231_vm0, %v6232_v2, %v9804_v15  ;;  %v681_v11 = vadd.s32 536870912, %v680_v56  ;;  %v13100_v10 = vmul.f32 %v182_v28, %v182_v28 }
 0x3bb   : > { %v6631_v19 = vmul.f32 %v6630_v50, %v6628_v22  ;;  %v6230_v25 = vsel %vm6228_vm14, %v9802_v47, %v6229_v7  ;;  %v1049_v27 = vshrl.u32 %v1048_v59, 5  ;;  %vm6224_vm2 = vweird.f32 %v12785_v14 }
 0x3bc   : > { %v1051_v34 = vsub.s32 32, %v1050_v45  ;;  %v1053_v24 = vshll.u32 %v15844_v31, %v1050_v45  ;;  %v13104_v48 = vshrl.u32 %v681_v11, 30  ;;  %v1056_v8 = vshll.u32 %v15831_v33, %v1050_v45 }
 0x3bd   : > { %v6632_v1 = vxor.u32 2147483648, %v6631_v19  ;;  %v1062_v26 = vshll.u32 %v15835_v39, %v1050_v45  ;;  %v1059_v53 = vshll.u32 %v15833_v35, %v1050_v45  ;;  %v6234_v57 = vsel %vm6227_vm1, %v6230_v25, %v6233_v42 }
 0x3be   : > { %v1054_v52 = vshrl.u32 %v15831_v33, %v1051_v34  ;;  %v1057_v6 = vshrl.u32 %v15833_v35, %v1051_v34  ;;  %v1060_v9 = vshrl.u32 %v15835_v39, %v1051_v34  ;;  %v683_v60 = vshll.u32 %v13104_v48, 30 }
 0x3bf   : > { %v6633_v23 = vsel %vm6550_vm6, %v6632_v1, %v6631_v19  ;;  %v1063_v13 = vshrl.u32 %v15842_v41, %v1051_v34  ;;  %v1052_v40 = vshrl.u32 %v15844_v31, %v1051_v34  ;;  %vm1068_vm3 = vcmp.lt.s32.totalorder %v1049_v27, 1 }
 0x3c0   : > { %v6636_v63 = vsel %vm13060_vm7, %v12890_v16, %v6633_v23  ;;  %v1055_v0 = vor.u32 %v1054_v52, %v1053_v24  ;;  %v13121_v47 = vsub.s32 %v680_v56, %v683_v60  ;;  %v1058_v38 = vor.u32 %v1057_v6, %v1056_v8 }
 0x3c1   : > { %9805 = vcosq.f32 %v6636_v63  ;;  %v1064_v17 = vor.u32 %v1063_v13, %v1062_v26  ;;  %v1061_v37 = vor.u32 %v1060_v9, %v1059_v53  ;;  %v1065_v46 = vshll.u32 %v15842_v41, %v1050_v45 }
 0x3c2   : > { %9807 = vsinq.f32 %v6636_v63  ;;  %v1066_v29 = vshrl.u32 %v15838_v51, %v1051_v34  ;;  %v686_v15 = vsub.s32 0, %v13121_v47  ;;  %vm1070_vm4 = vcmp.lt.s32.totalorder %v1049_v27, 3 }
 0x3c3   : > { %v1084_v49 = vshll.u32 %v1044_v12, 8  ;;  %v519_v36 = vand.u32 2139095040, %v13100_v10  ;;  %vm1069_vm5 = vcmp.lt.s32.totalorder %v1049_v27, 2  ;;  %vm1071_vm6 = vcmp.lt.s32.totalorder %v1049_v27, 4 }
 0x3c4   : > { %v1067_v62 = vor.u32 %v1066_v29, %v1065_v46  ;;  %v1072_v18 = vsel %vm1068_vm3, %v1052_v40, %v1055_v0  ;;  %v8595_v5 = vmin.u32 %v686_v15, %v13121_v47  ;;  %v1073_v4 = vsel %vm1071_vm6, %v1061_v37, 2102212464 }
 0x3c5   : > { %v1076_v58 = vsel %vm1068_vm3, %v1055_v0, %v1058_v38  ;;  %v1077_v43 = vsel %vm1071_vm6, %v1064_v17, 920167782  ;;  %vm6640_vm7 = vweird.f32 %v12890_v16  ;;  %v1074_v2 = vsel %vm1070_vm4, %v1058_v38, %v1073_v4 }
 0x3c6   : > { %v1078_v21 = vsel %vm1070_vm4, %v1061_v37, %v1077_v43  ;;  %v1080_v50 = vsel %vm1068_vm3, %v1058_v38, %v1061_v37  ;;  %v1081_v7 = vsel %vm1071_vm6, %v1067_v62, 1326507024  ;;  %vm6643_vm8 = vcmp.lt.s32.totalorder %v13098_v54, 2  ;;  %v186_v62 = vld [vmem:[%s10310_s3 + $0x30] sm:$0xff] }
 0x3c7   : > { %vm6644_vm9 = vcmp.eq.s32.totalorder %v13098_v54, 0  ;;  %vm622_vm10 = vcmp.lt.s32.totalorder %v12946_v55, 0  ;;  %v688_v32 = vclz %v8595_v5  ;;  %v6235_v59 = vsel %vm6224_vm2, nan, %v6234_v57 }
 0x3c8   : > { %v1075_v28 = vsel %vm1069_vm5, %v1072_v18, %v1074_v2  ;;  %v1079_v22 = vsel %vm1069_vm5, %v1076_v58, %v1078_v21  ;;  %v1082_v56 = vsel %vm1070_vm4, %v1064_v17, %v1081_v7  ;;  %vm13144_vm11 = vcmp.le.f32.partialorder %v620_v44, 0.7853982 }
 0x3c9   : > { %v8596_v45 = vadd.s32 4294967294, %v688_v32  ;;  %v1083_v42 = vsel %vm1069_vm5, %v1080_v50, %v1082_v56  ;;  %v13149_v19 = vmul.u32.u64.low %v1084_v49, %v1079_v22  ;;  %v13150_v11 = vmul.u32.u64.high %v1084_v49, %v1079_v22, %v13149_v19 }
 0x3ca   : > { %vm6647_vm12 = vcmp.eq.s32.totalorder %v13098_v54, 2  ;;  %v13154_v14 = vmul.u32.u64.low %v1084_v49, %v1083_v42  ;;  %v13155_v25 = vmul.u32.u64.high %v1084_v49, %v1083_v42, %v13154_v14  ;;  %v520_v34 = vshrl.u32 %v519_v36, 23 }
 0x3cb   : > { %v9806_v24 = vpop.eup %9805  ;;  %v7020_v1 = vadd.f32 1.0, %v6235_v59  ;;  %v676_v44 = vadd.s32 %v13083_v3, %v13080_v20  ;;  %vm8597_vm13 = vcmp.lt.s32.totalorder %v8596_v45, 0  ;;  %v706_v8 = vsub.s32 4, %v13104_v48 }
 0x3cc   : > { %v9808_v27 = vpop.eup %9807  ;;  %v6648_v26 = vxor.u32 2147483648, %v9806_v24  ;;  %v691_v52 = vsel %vm8597_vm13, 0, %v8596_v45  ;;  %v1091_v6 = vmul.u32 %v1084_v49, %v1075_v28  ;;  %v8590_v53 = vadd.s32 4294967169, %v520_v34 }
 0x3cd   : > { %v6645_v9 = vxor.u32 2147483648, %v9808_v27  ;;  %v692_v57 = vsub.s32 32, %v691_v52  ;;  %v693_v23 = vshll.u32 %v13121_v47, %v691_v52  ;;  %v696_v60 = vsub.s32 4294967266, %v691_v52 }
 0x3ce   : > { %v6649_v13 = vsel %vm6647_vm12, %v6648_v26, %v9808_v27  ;;  %vm1093_vm15 = vc.u32 %v13155_v25, %v13149_v19  ;;  %v1094_v20 = vadd.s32 1, %v13150_v11  ;;  %v516_v3 = vand.u32 2147483647, %v13100_v10 }
 0x3cf   : > { %v6646_v63 = vsel %vm6644_vm9, %v9806_v24, %v6645_v9  ;;  %v694_v40 = vshrl.u32 %v676_v44, %v692_v57  ;;  %v697_v0 = vadd.s32 127, %v696_v60  ;;  %v707_v47 = vsel %vm622_vm10, %v706_v8, %v13104_v48 }
 0x3d0   : > { %v6650_v38 = vsel %vm6643_vm8, %v6646_v63, %v6649_v13  ;;  %v7140_v17 = vmul.f32 1.442695, %v7020_v1  ;;  %v1095_v37 = vsel %vm1093_vm15, %v1094_v20, %v13150_v11  ;;  %v526_v46 = vadd.s32 1, %v8590_v53 }
 0x3d1   : > { %v6651_v29 = vsel %vm6640_vm7, nan, %v6650_v38  ;;  %v695_v15 = vor.u32 %v694_v40, %v693_v23  ;;  %v698_v49 = vshll.u32 %v697_v0, 23  ;;  %v1096_v36 = vadd.s32 %v1095_v37, %v1091_v6 }
 0x3d2   : > { %v7024_v18 = vadd.f32 1.0, %v6651_v29  ;;  %v709_v5 = vsel %vm13144_vm11, 0, %v707_v47  ;;  %v523_v48 = vand.u32 8388607, %v516_v3  ;;  %vm527_vm0 = vcmp.gt.s32.totalorder %v526_v46, 0 }
 0x3d3   : > { %v699_v54 = vor.u32 4788187, %v698_v49  ;;  %v702_v4 = vcvt.s32.f32 %v695_v15  ;;  %v1097_v58 = vadd.s32 536870912, %v1096_v36  ;;  %v528_v43 = vsel %vm527_vm0, %v526_v46, 0 }
 0x3d4   : > { %9809 = vpow2.f32 %v7140_v17  ;;  %v7148_v2 = vmul.f32 1.442695, %v7024_v18  ;;  %v13182_v16 = vmul.f32 %v186_v62, %v186_v62  ;;  %v530_v21 = vand.u32 31, %v528_v43 }
 0x3d5   : > { %v700_v50 = vand.u32 2147483647, %v699_v54  ;;  %v13184_v7 = vadd.s32 3, %v709_v5  ;;  %v1098_v32 = vshrl.u32 %v1097_v58, 30  ;;  %v524_v42 = vor.u32 8388608, %v523_v48 }
 0x3d6   : > { %9811 = vpow2.f32 %v7148_v2  ;;  %v531_v59 = vsub.s32 32, %v530_v21  ;;  %v533_v28 = vshll.u32 %v15844_v31, %v530_v21  ;;  %v932_v22 = vand.u32 2147483647, %v13182_v16 }
 0x3d7   : > { %v703_v56 = vmul.f32 %v702_v4, %v700_v50  ;;  %v1099_v45 = vshll.u32 %v1098_v32, 30  ;;  %v536_v11 = vshll.u32 %v15831_v33, %v530_v21  ;;  %v539_v24 = vshll.u32 %v15833_v35, %v530_v21 }
 0x3d8   : > { %v534_v14 = vshrl.u32 %v15831_v33, %v531_v59  ;;  %v537_v34 = vshrl.u32 %v15833_v35, %v531_v59  ;;  %v540_v1 = vshrl.u32 %v15835_v39, %v531_v59  ;;  %v529_v27 = vshrl.u32 %v528_v43, 5 }
 0x3d9   : > { %v704_v44 = vxor.u32 2147483648, %v703_v56  ;;  %v13193_v8 = vsub.s32 %v1096_v36, %v1099_v45  ;;  %v542_v26 = vshll.u32 %v15835_v39, %v530_v21  ;;  %vm1038_vm14 = vcmp.lt.s32.totalorder %v13029_v61, 0 }
 0x3da   : > { %v1092_v52 = vadd.s32 %v13149_v19, %v13155_v25  ;;  %v532_v6 = vshrl.u32 %v15844_v31, %v531_v59  ;;  %v535_v53 = vor.u32 %v534_v14, %v533_v28  ;;  %v935_v9 = vand.u32 2139095040, %v13182_v16 }
 0x3db   : > { %v705_v57 = vsel %vm622_vm10, %v704_v44, %v703_v56  ;;  %v1102_v23 = vsub.s32 0, %v13193_v8  ;;  %v538_v60 = vor.u32 %v537_v34, %v536_v11  ;;  %v543_v13 = vshrl.u32 %v15842_v41, %v531_v59 }
 0x3dc   : > { %v708_v20 = vsel %vm13144_vm11, %v12946_v55, %v705_v57  ;;  %v541_v63 = vor.u32 %v540_v1, %v539_v24  ;;  %v545_v19 = vshll.u32 %v15842_v41, %v530_v21  ;;  %v546_v25 = vshrl.u32 %v15838_v51, %v531_v59 }
 0x3dd   : > { %vm13212_vm1 = vcmp.le.f32.partialorder %v1036_v30, 0.7853982  ;;  %v8611_v0 = vmin.u32 %v1102_v23, %v13193_v8  ;;  %v544_v47 = vor.u32 %v543_v13, %v542_v26  ;;  %vm548_vm2 = vcmp.lt.s32.totalorder %v529_v27, 1 }
 0x3de   : > { %v13217_v38 = vshll.u32 %v524_v42, 8  ;;  %v9810_v17 = vpop.eup %9809  ;;  %9813 = vcosq.f32 %v708_v20  ;;  %v1122_v12 = vsub.s32 4, %v1098_v32  ;;  %v547_v37 = vor.u32 %v546_v25, %v545_v19 }
 0x3df   : > { %v936_v46 = vshrl.u32 %v935_v9, 23  ;;  %9815 = vsinq.f32 %v708_v20  ;;  %v1104_v29 = vclz %v8611_v0  ;;  %vm549_vm3 = vcmp.lt.s32.totalorder %v529_v27, 2 }
 0x3e0   : > { %vm550_vm4 = vcmp.lt.s32.totalorder %v529_v27, 3  ;;  %v9812_v15 = vpop.eup %9811  ;;  %vm551_vm5 = vcmp.lt.s32.totalorder %v529_v27, 4  ;;  %v552_v30 = vsel %vm548_vm2, %v532_v6, %v535_v53  ;;  %v556_v49 = vsel %vm548_vm2, %v535_v53, %v538_v60 }
 0x3e1   : > { %v560_v36 = vsel %vm548_vm2, %v538_v60, %v541_v63  ;;  %v7184_v62 = vpack.c.bf16 %v9812_v15, %v9810_v17  ;;  %v8612_v18 = vadd.s32 4294967294, %v1104_v29  ;;  %v553_v5 = vsel %vm551_vm5, %v541_v63, 2102212464 }
 0x3e2   : > { %v557_v48 = vsel %vm551_vm5, %v544_v47, 920167782  ;;  %v554_v54 = vsel %vm550_vm4, %v538_v60, %v553_v5  ;;  %v561_v58 = vsel %vm551_vm5, %v547_v37, 1326507024  ;;  %v8606_v43 = vadd.s32 4294967169, %v936_v46 }
 0x3e3   : > { %v558_v4 = vsel %vm550_vm4, %v541_v63, %v557_v48  ;;  %8059 = vmatmul.mubr.bf16.gmra.mrb[28].mxu0 %v7184_v62  ;;  %8285 = vmatmul.mubr.bf16.gmra.mrb[28].mxu1 %v7184_v62  ;;  %vm8613_vm6 = vcmp.lt.s32.totalorder %v8612_v18, 0  ;;  %v1123_v2 = vsel %vm1038_vm14, %v1122_v12, %v1098_v32  ;;  %v562_v50 = vsel %vm550_vm4, %v544_v47, %v561_v58 }
 0x3e4   : > { %v559_v21 = vsel %vm549_vm3, %v556_v49, %v558_v4  ;;  %v1107_v59 = vsel %vm8613_vm6, 0, %v8612_v18  ;;  %v563_v28 = vsel %vm549_vm3, %v560_v36, %v562_v50  ;;  %v555_v34 = vsel %vm549_vm3, %v552_v30, %v554_v54 }
 0x3e5   : > { %v13227_v56 = vmul.u32.u64.low %v13217_v38, %v559_v21  ;;  %v13228_v45 = vmul.u32.u64.high %v13217_v38, %v559_v21, %v13227_v56  ;;  %v1108_v42 = vsub.s32 32, %v1107_v59  ;;  %v1109_v11 = vshll.u32 %v13193_v8, %v1107_v59 }
 0x3e6   : > { %v1112_v14 = vsub.s32 4294967266, %v1107_v59  ;;  %v1125_v32 = vsel %vm13212_vm1, 0, %v1123_v2  ;;  %v13236_v24 = vmul.u32.u64.low %v13217_v38, %v563_v28  ;;  %v13237_v1 = vmul.u32.u64.high %v13217_v38, %v563_v28, %v13236_v24 }
 0x3e7   : > { %v942_v44 = vadd.s32 1, %v8606_v43  ;;  %v13240_v26 = vand.u32 3, %v13184_v7  ;;  %v1110_v6 = vshrl.u32 %v1092_v52, %v1108_v42  ;;  %v571_v8 = vmul.u32 %v13217_v38, %v555_v34  ;;  %v191_v7 = vld [vmem:[%s10310_s3 + $0x58] sm:$0xff] }
 0x3e8   : > { %v1113_v53 = vadd.s32 127, %v1112_v14  ;;  %v9814_v9 = vpop.eup %9813  ;;  %v574_v27 = vadd.s32 1, %v13228_v45  ;;  %v939_v57 = vand.u32 8388607, %v932_v22  ;;  %v1129_v20 = vadd.s32 3, %v1125_v32 }
 0x3e9   : > { %vm943_vm7 = vcmp.gt.s32.totalorder %v942_v44, 0  ;;  %v9816_v23 = vpop.eup %9815  ;;  %v1111_v60 = vor.u32 %v1110_v6, %v1109_v11  ;;  %vm573_vm8 = vc.u32 %v13237_v1, %v13227_v56  ;;  %vm716_vm9 = vcmp.eq.s32.totalorder %v13240_v26, 0 }
 0x3ea   : > { %v1114_v13 = vshll.u32 %v1113_v53, 23  ;;  %v944_v63 = vsel %vm943_vm7, %v942_v44, 0  ;;  %v575_v25 = vsel %vm573_vm8, %v574_v27, %v13228_v45  ;;  %vm719_vm10 = vcmp.eq.s32.totalorder %v13240_v26, 2 }
 0x3eb   : > { %v1118_v19 = vcvt.s32.f32 %v1111_v60  ;;  %v720_v0 = vxor.u32 2147483648, %v9814_v9  ;;  %v576_v47 = vadd.s32 %v575_v25, %v571_v8  ;;  %v946_v38 = vand.u32 31, %v944_v63 }
 0x3ec   : > { %v1115_v52 = vor.u32 4788187, %v1114_v13  ;;  %vm715_vm11 = vcmp.lt.s32.totalorder %v13240_v26, 2  ;;  %v13253_v12 = vand.u32 3, %v1129_v20  ;;  %v940_v37 = vor.u32 8388608, %v939_v57 }
 0x3ed   : > { %v13255_v46 = vmul.f32 %v191_v7, %v191_v7  ;;  %v717_v29 = vxor.u32 2147483648, %v9816_v23  ;;  %v577_v15 = vadd.s32 536870912, %v576_v47  ;;  %v945_v30 = vshrl.u32 %v944_v63, 5 }
 0x3ee   : > { %v1116_v17 = vand.u32 2147483647, %v1115_v52  ;;  %v947_v49 = vsub.s32 32, %v946_v38  ;;  %v949_v62 = vshll.u32 %v15844_v31, %v946_v38  ;;  %v952_v18 = vshll.u32 %v15831_v33, %v946_v38 }
 0x3ef   : > { %v958_v5 = vshll.u32 %v15835_v39, %v946_v38  ;;  %vm712_vm12 = vweird.f32 %v12946_v55  ;;  %v721_v48 = vsel %vm719_vm10, %v720_v0, %v9816_v23  ;;  %v13263_v54 = vshrl.u32 %v577_v15, 30 }
 0x3f0   : > { %v1119_v36 = vmul.f32 %v1118_v19, %v1116_v17  ;;  %v950_v4 = vshrl.u32 %v15831_v33, %v947_v49  ;;  %v955_v58 = vshll.u32 %v15833_v35, %v946_v38  ;;  %v953_v2 = vshrl.u32 %v15833_v35, %v947_v49 }
 0x3f1   : > { %v956_v21 = vshrl.u32 %v15835_v39, %v947_v49  ;;  %v959_v50 = vshrl.u32 %v15842_v41, %v947_v49  ;;  %v718_v59 = vsel %vm716_vm9, %v9814_v9, %v717_v29  ;;  %v579_v28 = vshll.u32 %v13263_v54, 30 }
 0x3f2   : > { %v1120_v43 = vxor.u32 2147483648, %v1119_v36  ;;  %v948_v45 = vshrl.u32 %v15844_v31, %v947_v49  ;;  %vm964_vm13 = vcmp.lt.s32.totalorder %v945_v30, 1  ;;  %v951_v11 = vor.u32 %v950_v4, %v949_v62 }
 0x3f3   : > { %v954_v14 = vor.u32 %v953_v2, %v952_v18  ;;  %v960_v34 = vor.u32 %v959_v50, %v958_v5  ;;  %v13279_v24 = vsub.s32 %v576_v47, %v579_v28  ;;  %v957_v44 = vor.u32 %v956_v21, %v955_v58 }
 0x3f4   : > { %v1121_v42 = vsel %vm1038_vm14, %v1120_v43, %v1119_v36  ;;  %v961_v6 = vshll.u32 %v15842_v41, %v946_v38  ;;  %v962_v53 = vshrl.u32 %v15838_v51, %v947_v49  ;;  %vm966_vm15 = vcmp.lt.s32.totalorder %v945_v30, 3 }
 0x3f5   : > { %v1124_v32 = vsel %vm13212_vm1, %v13029_v61, %v1121_v42  ;;  %vm967_vm0 = vcmp.lt.s32.totalorder %v945_v30, 4  ;;  %v582_v9 = vsub.s32 0, %v13279_v24  ;;  %vm965_vm14 = vcmp.lt.s32.totalorder %v945_v30, 2 }
 0x3f6   : > { %9817 = vcosq.f32 %v1124_v32  ;;  %v980_v8 = vshll.u32 %v940_v37, 8  ;;  %v963_v27 = vor.u32 %v962_v53, %v961_v6  ;;  %v969_v57 = vsel %vm967_vm0, %v957_v44, 2102212464 }
 0x3f7   : > { %9819 = vsinq.f32 %v1124_v32  ;;  %v972_v40 = vsel %vm964_vm13, %v951_v11, %v954_v14  ;;  %v973_v23 = vsel %vm967_vm0, %v960_v34, 920167782  ;;  %v722_v60 = vsel %vm715_vm11, %v718_v59, %v721_v48 }
 0x3f8   : > { %v8591_v13 = vmin.u32 %v582_v9, %v13279_v24  ;;  %v968_v20 = vsel %vm964_vm13, %v948_v45, %v951_v11  ;;  %v974_v63 = vsel %vm966_vm15, %v957_v44, %v973_v23  ;;  %v970_v7 = vsel %vm966_vm15, %v954_v14, %v969_v57 }
 0x3f9   : > { %v975_v52 = vsel %vm965_vm14, %v972_v40, %v974_v63  ;;  %v976_v19 = vsel %vm964_vm13, %v954_v14, %v957_v44  ;;  %v977_v25 = vsel %vm967_vm0, %v963_v27, 1326507024  ;;  %vm1128_vm1 = vweird.f32 %v13029_v61  ;;  %v195_v27 = vld [vmem:[%s10310_s3 + $0x78] sm:$0xff] }
 0x3fa   : > { %vm1131_vm2 = vcmp.lt.s32.totalorder %v13253_v12, 2  ;;  %vm518_vm3 = vcmp.lt.s32.totalorder %v13100_v10, 0  ;;  %v584_v26 = vclz %v8591_v13  ;;  %v723_v0 = vsel %vm712_vm12, nan, %v722_v60 }
 0x3fb   : > { %vm13303_vm4 = vcmp.le.f32.partialorder %v516_v3, 0.7853982  ;;  %v978_v38 = vsel %vm966_vm15, %v960_v34, %v977_v25  ;;  %v13308_v17 = vmul.u32.u64.low %v980_v8, %v975_v52  ;;  %v13309_v37 = vmul.u32.u64.high %v980_v8, %v975_v52, %v13308_v17 }
 0x3fc   : > { %vm1132_vm5 = vcmp.eq.s32.totalorder %v13253_v12, 0  ;;  %v8592_v29 = vadd.s32 4294967294, %v584_v26  ;;  %v971_v15 = vsel %vm965_vm14, %v968_v20, %v970_v7  ;;  %v979_v55 = vsel %vm965_vm14, %v976_v19, %v978_v38 }
 0x3fd   : > { %v602_v49 = vsub.s32 4, %v13263_v54  ;;  %v13316_v36 = vmul.u32.u64.low %v980_v8, %v979_v55  ;;  %v13317_v3 = vmul.u32.u64.high %v980_v8, %v979_v55, %v13316_v36  ;;  %v1455_v62 = vand.u32 2139095040, %v13255_v46 }
 0x3fe   : > { %vm1135_vm6 = vcmp.eq.s32.totalorder %v13253_v12, 2  ;;  %v6967_v18 = vadd.f32 1.0, %v723_v0  ;;  %v572_v5 = vadd.s32 %v13227_v56, %v13237_v1  ;;  %vm8593_vm7 = vcmp.lt.s32.totalorder %v8592_v29, 0 }
 0x3ff   : > { %v587_v4 = vsel %vm8593_vm7, 0, %v8592_v29  ;;  %v987_v58 = vmul.u32 %v980_v8, %v971_v15  ;;  %v990_v30 = vadd.s32 1, %v13309_v37  ;;  %v1456_v43 = vshrl.u32 %v1455_v62, 23 }
 0x400   : > { %v9818_v48 = vpop.eup %9817  ;;  %v588_v50 = vsub.s32 32, %v587_v4  ;;  %v589_v59 = vshll.u32 %v13279_v24, %v587_v4  ;;  %v592_v28 = vsub.s32 4294967266, %v587_v4  ;;  %v603_v42 = vsel %vm518_vm3, %v602_v49, %v13263_v54 }
 0x401   : > { %v9820_v2 = vpop.eup %9819  ;;  %v1136_v21 = vxor.u32 2147483648, %v9818_v48  ;;  %vm989_vm8 = vc.u32 %v13317_v3, %v13308_v17  ;;  %v8626_v56 = vadd.s32 4294967169, %v1456_v43  ;;  %v7034_v24 = vmul.f32 1.442695, %v6967_v18 }
 0x402   : > { %v1133_v45 = vxor.u32 2147483648, %v9820_v2  ;;  %v590_v11 = vshrl.u32 %v572_v5, %v588_v50  ;;  %v593_v14 = vadd.s32 127, %v592_v28  ;;  %v991_v34 = vsel %vm989_vm8, %v990_v30, %v13309_v37 }
 0x403   : > { %v1137_v1 = vsel %vm1135_vm6, %v1136_v21, %v9820_v2  ;;  %v992_v44 = vadd.s32 %v991_v34, %v987_v58  ;;  %v1462_v6 = vadd.s32 1, %v8626_v56  ;;  %v605_v8 = vsel %vm13303_vm4, 0, %v603_v42 }
 0x404   : > { %v1134_v32 = vsel %vm1132_vm5, %v9818_v48, %v1133_v45  ;;  %v591_v53 = vor.u32 %v590_v11, %v589_v59  ;;  %v594_v9 = vshll.u32 %v593_v14, 23  ;;  %v1452_v23 = vand.u32 2147483647, %v13255_v46 }
 0x405   : > { %v1138_v54 = vsel %vm1131_vm2, %v1134_v32, %v1137_v1  ;;  %v993_v40 = vadd.s32 536870912, %v992_v44  ;;  %vm1463_vm9 = vcmp.gt.s32.totalorder %v1462_v6, 0  ;;  %v13345_v12 = vmul.f32 %v195_v27, %v195_v27 }
 0x406   : > { %v1139_v57 = vsel %vm1128_vm1, nan, %v1138_v54  ;;  %v595_v13 = vor.u32 4788187, %v594_v9  ;;  %v598_v20 = vcvt.s32.f32 %v591_v53  ;;  %v1464_v63 = vsel %vm1463_vm9, %v1462_v6, 0 }
 0x407   : > { %v6971_v60 = vadd.f32 1.0, %v1139_v57  ;;  %v13343_v7 = vshrl.u32 %v993_v40, 30  ;;  %v1466_v52 = vand.u32 31, %v1464_v63  ;;  %9821 = vpow2.f32 %v7034_v24 }
 0x408   : > { %v596_v25 = vand.u32 2147483647, %v595_v13  ;;  %v13347_v26 = vadd.s32 3, %v605_v8  ;;  %v1459_v0 = vand.u32 8388607, %v1452_v23  ;;  %v988_v49 = vadd.s32 %v13308_v17, %v13317_v3 }
 0x409   : > { %v7042_v19 = vmul.f32 1.442695, %v6971_v60  ;;  %v995_v61 = vshll.u32 %v13343_v7, 30  ;;  %v1467_v38 = vsub.s32 32, %v1466_v52  ;;  %v1868_v37 = vand.u32 2147483647, %v13345_v12 }
 0x40a   : > { %v599_v29 = vmul.f32 %v598_v20, %v596_v25  ;;  %v1469_v15 = vshll.u32 %v15844_v31, %v1466_v52  ;;  %v1472_v55 = vshll.u32 %v15831_v33, %v1466_v52  ;;  %v1475_v18 = vshll.u32 %v15833_v35, %v1466_v52 }
 0x40b   : > { %9823 = vpow2.f32 %v7042_v19  ;;  %v13357_v36 = vsub.s32 %v992_v44, %v995_v61  ;;  %v1470_v62 = vshrl.u32 %v15831_v33, %v1467_v38  ;;  %v1465_v48 = vshrl.u32 %v1464_v63, 5 }
 0x40c   : > { %v600_v5 = vxor.u32 2147483648, %v599_v29  ;;  %v1473_v4 = vshrl.u32 %v15833_v35, %v1467_v38  ;;  %v1476_v58 = vshrl.u32 %v15835_v39, %v1467_v38  ;;  %v1460_v43 = vor.u32 8388608, %v1459_v0 }
 0x40d   : > { %v998_v30 = vsub.s32 0, %v13357_v36  ;;  %v1468_v2 = vshrl.u32 %v15844_v31, %v1467_v38  ;;  %v1478_v21 = vshll.u32 %v15835_v39, %v1466_v52  ;;  %v1471_v3 = vor.u32 %v1470_v62, %v1469_v15 }
 0x40e   : > { %v601_v17 = vsel %vm518_vm3, %v600_v5, %v599_v29  ;;  %v1474_v50 = vor.u32 %v1473_v4, %v1472_v55  ;;  %v1479_v59 = vshrl.u32 %v15842_v41, %v1467_v38  ;;  %v1477_v42 = vor.u32 %v1476_v58, %v1475_v18 }
 0x40f   : > { %v604_v28 = vsel %vm13303_vm4, %v13100_v10, %v601_v17  ;;  %v8607_v45 = vmin.u32 %v998_v30, %v13357_v36  ;;  %v1481_v56 = vshll.u32 %v15842_v41, %v1466_v52  ;;  %vm934_vm10 = vcmp.lt.s32.totalorder %v13182_v16, 0 }
 0x410   : > { %9825 = vcosq.f32 %v604_v28  ;;  %v1480_v1 = vor.u32 %v1479_v59, %v1478_v21  ;;  %v1482_v11 = vshrl.u32 %v15838_v51, %v1467_v38  ;;  %vm1484_vm11 = vcmp.lt.s32.totalorder %v1465_v48, 1 }
 0x411   : > { %9827 = vsinq.f32 %v604_v28  ;;  %v1000_v14 = vclz %v8607_v45  ;;  %v1500_v34 = vshll.u32 %v1460_v43, 8  ;;  %v1871_v32 = vand.u32 2139095040, %v13345_v12  ;;  %v9822_v24 = vpop.eup %9821 }
 0x412   : > { %v1018_v47 = vsub.s32 4, %v13343_v7  ;;  %v1483_v44 = vor.u32 %v1482_v11, %v1481_v56  ;;  %vm1485_vm12 = vcmp.lt.s32.totalorder %v1465_v48, 2  ;;  %vm1486_vm13 = vcmp.lt.s32.totalorder %v1465_v48, 3 }
 0x413   : > { %v8608_v6 = vadd.s32 4294967294, %v1000_v14  ;;  %vm1487_vm15 = vcmp.lt.s32.totalorder %v1465_v48, 4  ;;  %v1488_v54 = vsel %vm1484_vm11, %v1468_v2, %v1471_v3  ;;  %v1492_v53 = vsel %vm1484_vm11, %v1471_v3, %v1474_v50 }
 0x414   : > { %v1489_v8 = vsel %vm1487_vm15, %v1477_v42, 2102212464  ;;  %v1493_v27 = vsel %vm1487_vm15, %v1480_v1, 920167782  ;;  %v1496_v57 = vsel %vm1484_vm11, %v1474_v50, %v1477_v42  ;;  %v1497_v40 = vsel %vm1487_vm15, %v1483_v44, 1326507024 }
 0x415   : > { %v9824_v9 = vpop.eup %9823  ;;  %vm8609_vm0 = vcmp.lt.s32.totalorder %v8608_v6, 0  ;;  %v1490_v13 = vsel %vm1486_vm13, %v1474_v50, %v1489_v8  ;;  %v1494_v20 = vsel %vm1486_vm13, %v1477_v42, %v1493_v27  ;;  %v1498_v25 = vsel %vm1486_vm13, %v1480_v1, %v1497_v40 }
 0x416   : > { %v7159_v60 = vpack.c.bf16 %v9824_v9, %v9822_v24  ;;  %v1003_v63 = vsel %vm8609_vm0, 0, %v8608_v6  ;;  %v1491_v52 = vsel %vm1485_vm12, %v1488_v54, %v1490_v13  ;;  %v1495_v19 = vsel %vm1485_vm12, %v1492_v53, %v1494_v20  ;;  %v190_v24 = vld [vmem:[%s10310_s3 + $0x50] sm:$0xff] }
 0x417   : > { %v1004_v61 = vsub.s32 32, %v1003_v63  ;;  %v1005_v0 = vshll.u32 %v13357_v36, %v1003_v63  ;;  %v1008_v38 = vsub.s32 4294967266, %v1003_v63  ;;  %v1499_v29 = vsel %vm1485_vm12, %v1496_v57, %v1498_v25 }
 0x418   : > { %8101 = vmatprep.mubr.bf16.mxu0 %v7159_v60  ;;  %8327 = vmatprep.mubr.bf16.mxu1 %v7159_v60  ;;  %v13388_v15 = vmul.u32.u64.low %v1500_v34, %v1499_v29  ;;  %v13389_v55 = vmul.u32.u64.high %v1500_v34, %v1499_v29, %v13388_v15  ;;  %v13391_v62 = vmul.u32.u64.low %v1500_v34, %v1495_v19  ;;  %v13392_v18 = vmul.u32.u64.high %v1500_v34, %v1495_v19, %v13391_v62 }
 0x419   : > { %v1006_v5 = vshrl.u32 %v988_v49, %v1004_v61  ;;  %v1009_v4 = vadd.s32 127, %v1008_v38  ;;  %v1019_v58 = vsel %vm934_vm10, %v1018_v47, %v13343_v7  ;;  %v1872_v30 = vshrl.u32 %v1871_v32, 23 }
 0x41a   : > { %v9826_v43 = vpop.eup %9825  ;;  %v610_v2 = vand.u32 3, %v13347_v26  ;;  %vm13400_vm14 = vcmp.le.f32.partialorder %v932_v22, 0.7853982  ;;  %v1875_v48 = vand.u32 8388607, %v1868_v37  ;;  %v1507_v3 = vmul.u32 %v1500_v34, %v1491_v52 }
 0x41b   : > { %v9828_v21 = vpop.eup %9827  ;;  %v1007_v49 = vor.u32 %v1006_v5, %v1005_v0  ;;  %v1010_v17 = vshll.u32 %v1009_v4, 23  ;;  %v8642_v50 = vadd.s32 4294967169, %v1872_v30  ;;  %v616_v59 = vxor.u32 2147483648, %v9826_v43 }
 0x41c   : > { %v1021_v7 = vsel %vm13400_vm14, 0, %v1019_v58  ;;  %vm1509_vm1 = vc.u32 %v13389_v55, %v13391_v62  ;;  %v1510_v22 = vadd.s32 1, %v13392_v18  ;;  %v613_v26 = vxor.u32 2147483648, %v9828_v21 }
 0x41d   : > { %v1011_v28 = vor.u32 4788187, %v1010_v17  ;;  %v1014_v45 = vcvt.s32.f32 %v1007_v49  ;;  %v1878_v42 = vadd.s32 1, %v8642_v50  ;;  %vm612_vm2 = vcmp.eq.s32.totalorder %v610_v2, 0 }
 0x41e   : > { %vm615_vm3 = vcmp.eq.s32.totalorder %v610_v2, 2  ;;  %v1511_v56 = vsel %vm1509_vm1, %v1510_v22, %v13392_v18  ;;  %v1025_v11 = vadd.s32 3, %v1021_v7  ;;  %vm611_vm5 = vcmp.lt.s32.totalorder %v610_v2, 2 }
 0x41f   : > { %v1012_v1 = vand.u32 2147483647, %v1011_v28  ;;  %v1512_v14 = vadd.s32 %v1511_v56, %v1507_v3  ;;  %vm1879_vm4 = vcmp.gt.s32.totalorder %v1878_v42, 0  ;;  %v1876_v34 = vor.u32 8388608, %v1875_v48 }
 0x420   : > { %v1880_v32 = vsel %vm1879_vm4, %v1878_v42, 0  ;;  %v614_v47 = vsel %vm612_vm2, %v9826_v43, %v613_v26  ;;  %v617_v44 = vsel %vm615_vm3, %v616_v59, %v9828_v21  ;;  %vm608_vm6 = vweird.f32 %v13100_v10 }
 0x421   : > { %v1015_v6 = vmul.f32 %v1014_v45, %v1012_v1  ;;  %v1513_v54 = vadd.s32 536870912, %v1512_v14  ;;  %v1882_v53 = vand.u32 31, %v1880_v32  ;;  %v13413_v8 = vand.u32 3, %v1025_v11 }
 0x422   : > { %v13417_v57 = vmul.f32 %v190_v24, %v190_v24  ;;  %v618_v40 = vsel %vm611_vm5, %v614_v47, %v617_v44  ;;  %v13420_v60 = vadd.s32 %v13391_v62, %v13389_v55  ;;  %v13422_v20 = vshll.u32 %v1876_v34, 8 }
 0x423   : > { %v1016_v9 = vxor.u32 2147483648, %v1015_v6  ;;  %v13415_v27 = vshrl.u32 %v1513_v54, 30  ;;  %v1883_v13 = vsub.s32 32, %v1882_v53  ;;  %v1885_v19 = vshll.u32 %v15844_v31, %v1882_v53 }
 0x424   : > { %v1888_v25 = vshll.u32 %v15831_v33, %v1882_v53  ;;  %v1891_v29 = vshll.u32 %v15833_v35, %v1882_v53  ;;  %v1881_v55 = vshrl.u32 %v1880_v32, 5  ;;  %v619_v18 = vsel %vm608_vm6, nan, %v618_v40 }
 0x425   : > { %v1017_v63 = vsel %vm934_vm10, %v1016_v9, %v1015_v6  ;;  %v1515_v52 = vshll.u32 %v13415_v27, 30  ;;  %v1886_v0 = vshrl.u32 %v15831_v33, %v1883_v13  ;;  %v1889_v38 = vshrl.u32 %v15833_v35, %v1883_v13 }
 0x426   : > { %v1020_v61 = vsel %vm13400_vm14, %v13182_v16, %v1017_v63  ;;  %v1892_v62 = vshrl.u32 %v15835_v39, %v1883_v13  ;;  %v1884_v5 = vshrl.u32 %v15844_v31, %v1883_v13  ;;  %v1348_v4 = vand.u32 2147483647, %v13417_v57 }
 0x427   : > { %9829 = vcosq.f32 %v1020_v61  ;;  %v13435_v15 = vsub.s32 %v1512_v14, %v1515_v52  ;;  %vm1031_vm7 = vcmp.eq.s32.totalorder %v13413_v8, 2  ;;  %v1887_v30 = vor.u32 %v1886_v0, %v1885_v19 }
 0x428   : > { %9831 = vsinq.f32 %v1020_v61  ;;  %v1890_v43 = vor.u32 %v1889_v38, %v1888_v25  ;;  %v1894_v2 = vshll.u32 %v15835_v39, %v1882_v53  ;;  %vm1028_vm8 = vcmp.eq.s32.totalorder %v13413_v8, 0 }
 0x429   : > { %v1518_v58 = vsub.s32 0, %v13435_v15  ;;  %v1893_v36 = vor.u32 %v1892_v62, %v1891_v29  ;;  %v1895_v48 = vshrl.u32 %v15842_v41, %v1883_v13  ;;  %v1897_v10 = vshll.u32 %v15842_v41, %v1882_v53 }
 0x42a   : > { %v1898_v21 = vshrl.u32 %v15838_v51, %v1883_v13  ;;  %vm1027_vm9 = vcmp.lt.s32.totalorder %v13413_v8, 2  ;;  %vm1900_vm10 = vcmp.lt.s32.totalorder %v1881_v55, 1  ;;  %vm1903_vm11 = vcmp.lt.s32.totalorder %v1881_v55, 4 }
 0x42b   : > { %v8627_v49 = vmin.u32 %v1518_v58, %v13435_v15  ;;  %v1351_v17 = vand.u32 2139095040, %v13417_v57  ;;  %vm1024_vm12 = vweird.f32 %v13182_v16  ;;  %v1896_v3 = vor.u32 %v1895_v48, %v1894_v2 }
 0x42c   : > { %v1899_v50 = vor.u32 %v1898_v21, %v1897_v10  ;;  %vm1902_vm13 = vcmp.lt.s32.totalorder %v1881_v55, 3  ;;  %v1905_v59 = vsel %vm1903_vm11, %v1893_v36, 2102212464  ;;  %v6966_v7 = vadd.f32 1.0, %v619_v18 }
 0x42d   : > { %v1520_v22 = vclz %v8627_v49  ;;  %vm1901_vm15 = vcmp.lt.s32.totalorder %v1881_v55, 2  ;;  %v1904_v26 = vsel %vm1900_vm10, %v1884_v5, %v1887_v30  ;;  %v1906_v28 = vsel %vm1902_vm13, %v1890_v43, %v1905_v59 }
 0x42e   : > { %v1908_v45 = vsel %vm1900_vm10, %v1887_v30, %v1890_v43  ;;  %v1909_v42 = vsel %vm1903_vm11, %v1896_v3, 920167782  ;;  %v1912_v56 = vsel %vm1900_vm10, %v1890_v43, %v1893_v36  ;;  %vm1454_vm0 = vcmp.lt.s32.totalorder %v13255_v46, 0 }
 0x42f   : > { %v8628_v1 = vadd.s32 4294967294, %v1520_v22  ;;  %v1910_v11 = vsel %vm1902_vm13, %v1893_v36, %v1909_v42  ;;  %v1913_v14 = vsel %vm1903_vm11, %v1899_v50, 1326507024  ;;  %v13461_v34 = vand.u32 8388607, %v1348_v4 }
 0x430   : > { %v1907_v32 = vsel %vm1901_vm15, %v1904_v26, %v1906_v28  ;;  %v1911_v24 = vsel %vm1901_vm15, %v1908_v45, %v1910_v11  ;;  %v1914_v47 = vsel %vm1902_vm13, %v1896_v3, %v1913_v14  ;;  %v1352_v44 = vshrl.u32 %v1351_v17, 23 }
 0x431   : > { %v9830_v6 = vpop.eup %9829  ;;  %vm8629_vm14 = vcmp.lt.s32.totalorder %v8628_v1, 0  ;;  %v1915_v54 = vsel %vm1901_vm15, %v1912_v56, %v1914_v47  ;;  %v13468_v53 = vmul.u32.u64.low %v13422_v20, %v1911_v24  ;;  %v13469_v9 = vmul.u32.u64.high %v13422_v20, %v1911_v24, %v13468_v53  ;;  %v194_v56 = vld [vmem:[%s10310_s3 + $0x70] sm:$0xff] }
 0x432   : > { %v9832_v40 = vpop.eup %9831  ;;  %v1032_v13 = vxor.u32 2147483648, %v9830_v6  ;;  %v1523_v63 = vsel %vm8629_vm14, 0, %v8628_v1  ;;  %v13472_v52 = vmul.u32.u64.low %v13422_v20, %v1915_v54  ;;  %v13473_v19 = vmul.u32.u64.high %v13422_v20, %v1915_v54, %v13472_v52 }
 0x433   : > { %v1029_v25 = vxor.u32 2147483648, %v9832_v40  ;;  %v1524_v61 = vsub.s32 32, %v1523_v63  ;;  %v1525_v0 = vshll.u32 %v13435_v15, %v1523_v63  ;;  %v1528_v38 = vsub.s32 4294967266, %v1523_v63 }
 0x434   : > { %v1033_v29 = vsel %vm1031_vm7, %v1032_v13, %v9832_v40  ;;  %v1538_v55 = vsub.s32 4, %v13415_v27  ;;  %v1923_v62 = vmul.u32 %v13422_v20, %v1907_v32  ;;  %v8622_v18 = vadd.s32 4294967169, %v1352_v44 }
 0x435   : > { %v1030_v5 = vsel %vm1028_vm8, %v9830_v6, %v1029_v25  ;;  %v1526_v58 = vshrl.u32 %v13420_v60, %v1524_v61  ;;  %v1529_v30 = vadd.s32 127, %v1528_v38  ;;  %v1926_v43 = vadd.s32 1, %v13469_v9 }
 0x436   : > { %v1034_v15 = vsel %vm1027_vm9, %v1030_v5, %v1033_v29  ;;  %v7032_v2 = vmul.f32 1.442695, %v6966_v7  ;;  %vm1925_vm1 = vc.u32 %v13473_v19, %v13468_v53  ;;  %v1358_v36 = vadd.s32 1, %v8622_v18 }
 0x437   : > { %v1035_v48 = vsel %vm1024_vm12, nan, %v1034_v15  ;;  %v1527_v20 = vor.u32 %v1526_v58, %v1525_v0  ;;  %v1530_v10 = vshll.u32 %v1529_v30, 23  ;;  %v1927_v21 = vsel %vm1925_vm1, %v1926_v43, %v13469_v9 }
 0x438   : > { %v6970_v49 = vadd.f32 1.0, %v1035_v48  ;;  %v1539_v60 = vsel %vm1454_vm0, %v1538_v55, %v13415_v27  ;;  %v1928_v17 = vadd.s32 %v1927_v21, %v1923_v62  ;;  %vm1359_vm2 = vcmp.gt.s32.totalorder %v1358_v36, 0 }
 0x439   : > { %vm13495_vm3 = vcmp.le.f32.partialorder %v1452_v23, 0.7853982  ;;  %v1531_v16 = vor.u32 4788187, %v1530_v10  ;;  %v1534_v3 = vcvt.s32.f32 %v1527_v20  ;;  %v1360_v50 = vsel %vm1359_vm2, %v1358_v36, 0 }
 0x43a   : > { %9833 = vpow2.f32 %v7032_v2  ;;  %v7040_v59 = vmul.f32 1.442695, %v6970_v49  ;;  %v1929_v7 = vadd.s32 536870912, %v1928_v17  ;;  %v1362_v22 = vand.u32 31, %v1360_v50 }
 0x43b   : > { %v1532_v26 = vand.u32 2147483647, %v1531_v16  ;;  %v1541_v27 = vsel %vm13495_vm3, 0, %v1539_v60  ;;  %v1356_v45 = vor.u32 8388608, %v13461_v34  ;;  %v1361_v1 = vshrl.u32 %v1360_v50, 5 }
 0x43c   : > { %9835 = vpow2.f32 %v7040_v59  ;;  %v13501_v28 = vshrl.u32 %v1929_v7, 30  ;;  %v1363_v23 = vsub.s32 32, %v1362_v22  ;;  %v1365_v11 = vshll.u32 %v15844_v31, %v1362_v22 }
 0x43d   : > { %v1535_v42 = vmul.f32 %v1534_v3, %v1532_v26  ;;  %v1368_v14 = vshll.u32 %v15831_v33, %v1362_v22  ;;  %v1371_v47 = vshll.u32 %v15833_v35, %v1362_v22  ;;  %v1374_v44 = vshll.u32 %v15835_v39, %v1362_v22 }
 0x43e   : > { %v1931_v32 = vshll.u32 %v13501_v28, 30  ;;  %v1366_v24 = vshrl.u32 %v15831_v33, %v1363_v23  ;;  %v1369_v54 = vshrl.u32 %v15833_v35, %v1363_v23  ;;  %v1372_v34 = vshrl.u32 %v15835_v39, %v1363_v23 }
 0x43f   : > { %v1536_v6 = vxor.u32 2147483648, %v1535_v42  ;;  %v1375_v9 = vshrl.u32 %v15842_v41, %v1363_v23  ;;  %v13514_v40 = vadd.s32 3, %v1541_v27  ;;  %v1924_v13 = vadd.s32 %v13468_v53, %v13473_v19 }
 0x440   : > { %v13517_v63 = vsub.s32 %v1928_v17, %v1931_v32  ;;  %v13519_v52 = vmul.f32 %v194_v56, %v194_v56  ;;  %v1364_v61 = vshrl.u32 %v15844_v31, %v1363_v23  ;;  %v1377_v0 = vshll.u32 %v15842_v41, %v1362_v22 }
 0x441   : > { %v1537_v25 = vsel %vm1454_vm0, %v1536_v6, %v1535_v42  ;;  %v13525_v38 = vshll.u32 %v1356_v45, 8  ;;  %vm1870_vm4 = vcmp.lt.s32.totalorder %v13345_v12, 0  ;;  %v1367_v19 = vor.u32 %v1366_v24, %v1365_v11 }
 0x442   : > { %v1540_v29 = vsel %vm13495_vm3, %v13255_v46, %v1537_v25  ;;  %v1934_v53 = vsub.s32 0, %v13517_v63  ;;  %v1370_v55 = vor.u32 %v1369_v54, %v1368_v14  ;;  %v1373_v62 = vor.u32 %v1372_v34, %v1371_v47 }
 0x443   : > { %v1376_v18 = vor.u32 %v1375_v9, %v1374_v44  ;;  %v1378_v5 = vshrl.u32 %v15838_v51, %v1363_v23  ;;  %vm1380_vm5 = vcmp.lt.s32.totalorder %v1361_v1, 1  ;;  %9837 = vcosq.f32 %v1540_v29 }
 0x444   : > { %v9834_v58 = vpop.eup %9833  ;;  %v8643_v30 = vmin.u32 %v1934_v53, %v13517_v63  ;;  %v1954_v43 = vsub.s32 4, %v13501_v28  ;;  %v1767_v15 = vand.u32 2139095040, %v13519_v52  ;;  %9839 = vsinq.f32 %v1540_v29 }
 0x445   : > { %v1379_v2 = vor.u32 %v1378_v5, %v1377_v0  ;;  %vm1382_vm6 = vcmp.lt.s32.totalorder %v1361_v1, 3  ;;  %vm1383_vm7 = vcmp.lt.s32.totalorder %v1361_v1, 4  ;;  %vm1381_vm8 = vcmp.lt.s32.totalorder %v1361_v1, 2 }
 0x446   : > { %v9836_v36 = vpop.eup %9835  ;;  %v1936_v48 = vclz %v8643_v30  ;;  %v1384_v20 = vsel %vm1380_vm5, %v1364_v61, %v1367_v19  ;;  %v1388_v10 = vsel %vm1380_vm5, %v1367_v19, %v1370_v55  ;;  %v1385_v49 = vsel %vm1383_vm7, %v1373_v62, 2102212464 }
 0x447   : > { %v7158_v21 = vpack.c.bf16 %v9836_v36, %v9834_v58  ;;  %v1389_v60 = vsel %vm1383_vm7, %v1376_v18, 920167782  ;;  %v1392_v17 = vsel %vm1380_vm5, %v1370_v55, %v1373_v62  ;;  %v1386_v16 = vsel %vm1382_vm6, %v1370_v55, %v1385_v49 }
 0x448   : > { %v8644_v8 = vadd.s32 4294967294, %v1936_v48  ;;  %v1390_v3 = vsel %vm1382_vm6, %v1373_v62, %v1389_v60  ;;  %v1393_v50 = vsel %vm1383_vm7, %v1379_v2, 1326507024  ;;  %v1387_v59 = vsel %vm1381_vm8, %v1384_v20, %v1386_v16  ;;  %v199_v62 = vld [vmem:[%s10310_s3 + $0x98] sm:$0xff] }
 0x449   : > { %8102 = vmatmul.mubr.bf16.vlgmr.msra.gmra.mrb[0].mxu0 %v7158_v21  ;;  %8328 = vmatmul.mubr.bf16.vlgmr.msra.gmra.mrb[0].mxu1 %v7158_v21  ;;  %v1391_v7 = vsel %vm1381_vm8, %v1388_v10, %v1390_v3  ;;  %v1394_v22 = vsel %vm1382_vm6, %v1376_v18, %v1393_v50  ;;  %v1768_v26 = vshrl.u32 %v1767_v15, 23  ;;  %v1955_v56 = vsel %vm1870_vm4, %v1954_v43, %v13501_v28 }
 0x44a   : > { %vm8645_vm9 = vcmp.lt.s32.totalorder %v8644_v8, 0  ;;  %v1395_v27 = vsel %vm1381_vm8, %v1392_v17, %v1394_v22  ;;  %v13546_v45 = vmul.u32.u64.low %v13525_v38, %v1391_v7  ;;  %v13547_v23 = vmul.u32.u64.high %v13525_v38, %v1391_v7, %v13546_v45 }
 0x44b   : > { %v1939_v42 = vsel %vm8645_vm9, 0, %v8644_v8  ;;  %v13554_v11 = vmul.u32.u64.low %v13525_v38, %v1395_v27  ;;  %v13555_v14 = vmul.u32.u64.high %v13525_v38, %v1395_v27, %v13554_v11  ;;  %v8638_v1 = vadd.s32 4294967169, %v1768_v26 }
 0x44c   : > { %v1940_v32 = vsub.s32 32, %v1939_v42  ;;  %v1941_v24 = vshll.u32 %v13517_v63, %v1939_v42  ;;  %v1944_v47 = vsub.s32 4294967266, %v1939_v42  ;;  %vm13560_vm10 = vcmp.le.f32.partialorder %v1868_v37, 0.7853982 }
 0x44d   : > { %v1403_v6 = vmul.u32 %v13525_v38, %v1387_v59  ;;  %v9838_v54 = vpop.eup %9837  ;;  %v1957_v9 = vsel %vm13560_vm10, 0, %v1955_v56  ;;  %v1406_v25 = vadd.s32 1, %v13547_v23  ;;  %v1546_v61 = vand.u32 3, %v13514_v40 }
 0x44e   : > { %v1942_v34 = vshrl.u32 %v1924_v13, %v1940_v32  ;;  %v1945_v28 = vadd.s32 127, %v1944_v47  ;;  %v9840_v63 = vpop.eup %9839  ;;  %vm1405_vm11 = vc.u32 %v13555_v14, %v13546_v45  ;;  %v1774_v37 = vadd.s32 1, %v8638_v1 }
 0x44f   : > { %v1407_v38 = vsel %vm1405_vm11, %v1406_v25, %v13547_v23  ;;  %v1764_v13 = vand.u32 2147483647, %v13519_v52  ;;  %v1552_v53 = vxor.u32 2147483648, %v9838_v54  ;;  %v1961_v19 = vadd.s32 3, %v1957_v9 }
 0x450   : > { %v1943_v0 = vor.u32 %v1942_v34, %v1941_v24  ;;  %v1946_v29 = vshll.u32 %v1945_v28, 23  ;;  %v1408_v55 = vadd.s32 %v1407_v38, %v1403_v6  ;;  %vm1775_vm12 = vcmp.gt.s32.totalorder %v1774_v37, 0 }
 0x451   : > { %v1549_v18 = vxor.u32 2147483648, %v9840_v63  ;;  %v1776_v30 = vsel %vm1775_vm12, %v1774_v37, 0  ;;  %vm1548_vm13 = vcmp.eq.s32.totalorder %v1546_v61, 0  ;;  %vm1551_vm15 = vcmp.eq.s32.totalorder %v1546_v61, 2 }
 0x452   : > { %v1947_v5 = vor.u32 4788187, %v1946_v29  ;;  %v1950_v58 = vcvt.s32.f32 %v1943_v0  ;;  %v1409_v40 = vadd.s32 536870912, %v1408_v55  ;;  %v1778_v43 = vand.u32 31, %v1776_v30 }
 0x453   : > { %vm1544_vm0 = vweird.f32 %v13255_v46  ;;  %vm1547_vm14 = vcmp.lt.s32.totalorder %v1546_v61, 2  ;;  %v13575_v2 = vmul.f32 %v199_v62, %v199_v62  ;;  %v13577_v36 = vand.u32 3, %v1961_v19 }
 0x454   : > { %v1948_v15 = vand.u32 2147483647, %v1947_v5  ;;  %v13579_v48 = vshrl.u32 %v1409_v40, 30  ;;  %v1771_v20 = vand.u32 8388607, %v1764_v13  ;;  %v1779_v10 = vsub.s32 32, %v1778_v43 }
 0x455   : > { %v1550_v21 = vsel %vm1548_vm13, %v9838_v54, %v1549_v18  ;;  %v1553_v49 = vsel %vm1551_vm15, %v1552_v53, %v9840_v63  ;;  %v1781_v17 = vshll.u32 %v15844_v31, %v1778_v43  ;;  %v1784_v3 = vshll.u32 %v15831_v33, %v1778_v43 }
 0x456   : > { %v1951_v60 = vmul.f32 %v1950_v58, %v1948_v15  ;;  %v1411_v8 = vshll.u32 %v13579_v48, 30  ;;  %v1782_v16 = vshrl.u32 %v15831_v33, %v1779_v10  ;;  %v1787_v50 = vshll.u32 %v15833_v35, %v1778_v43 }
 0x457   : > { %v1785_v7 = vshrl.u32 %v15833_v35, %v1779_v10  ;;  %v1788_v22 = vshrl.u32 %v15835_v39, %v1779_v10  ;;  %v1790_v26 = vshll.u32 %v15835_v39, %v1778_v43  ;;  %v1772_v23 = vor.u32 8388608, %v1771_v20 }
 0x458   : > { %v1952_v59 = vxor.u32 2147483648, %v1951_v60  ;;  %v13591_v27 = vsub.s32 %v1408_v55, %v1411_v8  ;;  %v1777_v42 = vshrl.u32 %v1776_v30, 5  ;;  %v1791_v56 = vshrl.u32 %v15842_v41, %v1779_v10 }
 0x459   : > { %v1554_v11 = vsel %vm1547_vm14, %v1550_v21, %v1553_v49  ;;  %v1780_v24 = vshrl.u32 %v15844_v31, %v1779_v10  ;;  %v1783_v47 = vor.u32 %v1782_v16, %v1781_v17  ;;  %v1786_v54 = vor.u32 %v1785_v7, %v1784_v3 }
 0x45a   : > { %v1953_v32 = vsel %vm1870_vm4, %v1952_v59, %v1951_v60  ;;  %v1414_v6 = vsub.s32 0, %v13591_v27  ;;  %v1789_v34 = vor.u32 %v1788_v22, %v1787_v50  ;;  %v1792_v28 = vor.u32 %v1791_v56, %v1790_v26 }
 0x45b   : > { %v1956_v1 = vsel %vm13560_vm10, %v13345_v12, %v1953_v32  ;;  %v1793_v9 = vshll.u32 %v15842_v41, %v1778_v43  ;;  %v1794_v25 = vshrl.u32 %v15838_v51, %v1779_v10  ;;  %v1404_v63 = vadd.s32 %v13546_v45, %v13555_v14 }
 0x45c   : > { %9841 = vcosq.f32 %v1956_v1  ;;  %v8623_v61 = vmin.u32 %v1414_v6, %v13591_v27  ;;  %vm1796_vm1 = vcmp.lt.s32.totalorder %v1777_v42, 1  ;;  %vm1798_vm2 = vcmp.lt.s32.totalorder %v1777_v42, 3 }
 0x45d   : > { %9843 = vsinq.f32 %v1956_v1  ;;  %v1795_v37 = vor.u32 %v1794_v25, %v1793_v9  ;;  %vm1799_vm3 = vcmp.lt.s32.totalorder %v1777_v42, 4  ;;  %v1812_v44 = vshll.u32 %v1772_v23, 8  ;;  %v203_v25 = vld [vmem:[%s10310_s3 + $0xb8] sm:$0xff] }
 0x45e   : > { %v1555_v0 = vsel %vm1544_vm0, nan, %v1554_v11  ;;  %vm1964_vm4 = vcmp.eq.s32.totalorder %v13577_v36, 0  ;;  %vm1350_vm5 = vcmp.lt.s32.totalorder %v13417_v57, 0  ;;  %v1416_v29 = vclz %v8623_v61 }
 0x45f   : > { %vm1797_vm6 = vcmp.lt.s32.totalorder %v1777_v42, 2  ;;  %v1800_v38 = vsel %vm1796_vm1, %v1780_v24, %v1783_v47  ;;  %vm1963_vm7 = vcmp.lt.s32.totalorder %v13577_v36, 2  ;;  %v1801_v45 = vsel %vm1799_vm3, %v1789_v34, 2102212464 }
 0x460   : > { %v1804_v14 = vsel %vm1796_vm1, %v1783_v47, %v1786_v54  ;;  %v1805_v53 = vsel %vm1799_vm3, %v1792_v28, 920167782  ;;  %v1808_v19 = vsel %vm1796_vm1, %v1786_v54, %v1789_v34  ;;  %vm1960_vm8 = vweird.f32 %v13345_v12 }
 0x461   : > { %v8624_v55 = vadd.s32 4294967294, %v1416_v29  ;;  %v1802_v46 = vsel %vm1798_vm2, %v1786_v54, %v1801_v45  ;;  %v1806_v62 = vsel %vm1798_vm2, %v1789_v34, %v1805_v53  ;;  %v1809_v18 = vsel %vm1799_vm3, %v1795_v37, 1326507024 }
 0x462   : > { %vm13620_vm9 = vcmp.le.f32.partialorder %v1348_v4, 0.7853982  ;;  %v1803_v58 = vsel %vm1797_vm6, %v1800_v38, %v1802_v46  ;;  %v1807_v30 = vsel %vm1797_vm6, %v1804_v14, %v1806_v62  ;;  %v1810_v40 = vsel %vm1798_vm2, %v1792_v28, %v1809_v18 }
 0x463   : > { %v2287_v43 = vand.u32 2139095040, %v13575_v2  ;;  %vm8625_vm10 = vcmp.lt.s32.totalorder %v8624_v55, 0  ;;  %v1811_v15 = vsel %vm1797_vm6, %v1808_v19, %v1810_v40  ;;  %v1434_v4 = vsub.s32 4, %v13579_v48 }
 0x464   : > { %v13629_v20 = vmul.u32.u64.low %v1812_v44, %v1807_v30  ;;  %v13630_v10 = vmul.u32.u64.high %v1812_v44, %v1807_v30, %v13629_v20  ;;  %v1419_v21 = vsel %vm8625_vm10, 0, %v8624_v55  ;;  %vm1967_vm11 = vcmp.eq.s32.totalorder %v13577_v36, 2 }
 0x465   : > { %v13634_v49 = vmul.u32.u64.low %v1812_v44, %v1811_v15  ;;  %v13635_v60 = vmul.u32.u64.high %v1812_v44, %v1811_v15, %v13634_v49  ;;  %v1420_v17 = vsub.s32 32, %v1419_v21  ;;  %v1421_v8 = vshll.u32 %v13591_v27, %v1419_v21 }
 0x466   : > { %v1424_v16 = vsub.s32 4294967266, %v1419_v21  ;;  %v2288_v3 = vshrl.u32 %v2287_v43, 23  ;;  %v9842_v50 = vpop.eup %9841  ;;  %v6975_v59 = vadd.f32 1.0, %v1555_v0  ;;  %v1819_v7 = vmul.u32 %v1812_v44, %v1803_v58 }
 0x467   : > { %v2284_v22 = vand.u32 2147483647, %v13575_v2  ;;  %v9844_v26 = vpop.eup %9843  ;;  %v1968_v23 = vxor.u32 2147483648, %v9842_v50  ;;  %v1422_v42 = vshrl.u32 %v1404_v63, %v1420_v17  ;;  %v1822_v11 = vadd.s32 1, %v13630_v10 }
 0x468   : > { %v1425_v56 = vadd.s32 127, %v1424_v16  ;;  %v1965_v32 = vxor.u32 2147483648, %v9844_v26  ;;  %v1435_v27 = vsel %vm1350_vm5, %v1434_v4, %v13579_v48  ;;  %vm1821_vm12 = vc.u32 %v13635_v60, %v13629_v20 }
 0x469   : > { %v8658_v24 = vadd.s32 4294967169, %v2288_v3  ;;  %v1969_v47 = vsel %vm1967_vm11, %v1968_v23, %v9844_v26  ;;  %v1423_v1 = vor.u32 %v1422_v42, %v1421_v8  ;;  %v1823_v54 = vsel %vm1821_vm12, %v1822_v11, %v13630_v10 }
 0x46a   : > { %v1426_v6 = vshll.u32 %v1425_v56, 23  ;;  %v1966_v34 = vsel %vm1964_vm4, %v9842_v50, %v1965_v32  ;;  %v7050_v28 = vmul.f32 1.442695, %v6975_v59  ;;  %v1824_v9 = vadd.s32 %v1823_v54, %v1819_v7 }
 0x46b   : > { %v2294_v63 = vadd.s32 1, %v8658_v24  ;;  %v1970_v61 = vsel %vm1963_vm7, %v1966_v34, %v1969_v47  ;;  %v1430_v37 = vcvt.s32.f32 %v1423_v1  ;;  %v1437_v44 = vsel %vm13620_vm9, 0, %v1435_v27 }
 0x46c   : > { %v1427_v48 = vor.u32 4788187, %v1426_v6  ;;  %v1971_v0 = vsel %vm1960_vm8, nan, %v1970_v61  ;;  %v1825_v29 = vadd.s32 536870912, %v1824_v9  ;;  %v2291_v38 = vand.u32 8388607, %v2284_v22 }
 0x46d   : > { %vm2295_vm13 = vcmp.gt.s32.totalorder %v2294_v63, 0  ;;  %v6979_v45 = vadd.f32 1.0, %v1971_v0  ;;  %v13658_v53 = vmul.f32 %v203_v25, %v203_v25  ;;  %9845 = vpow2.f32 %v7050_v28 }
 0x46e   : > { %v1428_v14 = vand.u32 2147483647, %v1427_v48  ;;  %v2296_v19 = vsel %vm2295_vm13, %v2294_v63, 0  ;;  %v1826_v36 = vshrl.u32 %v1825_v29, 30  ;;  %v13660_v18 = vadd.s32 3, %v1437_v44 }
 0x46f   : > { %v2298_v55 = vand.u32 31, %v2296_v19  ;;  %v7058_v46 = vmul.f32 1.442695, %v6979_v45  ;;  %v2292_v12 = vor.u32 8388608, %v2291_v38  ;;  %v2700_v40 = vand.u32 2147483647, %v13658_v53 }
 0x470   : > { %v1431_v62 = vmul.f32 %v1430_v37, %v1428_v14  ;;  %v1827_v58 = vshll.u32 %v1826_v36, 30  ;;  %v2703_v10 = vand.u32 2139095040, %v13658_v53  ;;  %v2297_v4 = vshrl.u32 %v2296_v19, 5 }
 0x471   : > { %v2299_v30 = vsub.s32 32, %v2298_v55  ;;  %9847 = vpow2.f32 %v7058_v46  ;;  %v2301_v15 = vshll.u32 %v15844_v31, %v2298_v55  ;;  %v2304_v17 = vshll.u32 %v15831_v33, %v2298_v55 }
 0x472   : > { %v1432_v43 = vxor.u32 2147483648, %v1431_v62  ;;  %v13665_v21 = vsub.s32 %v1824_v9, %v1827_v58  ;;  %vm1766_vm15 = vcmp.lt.s32.totalorder %v13519_v52, 0  ;;  %v2307_v3 = vshll.u32 %v15833_v35, %v2298_v55 }
 0x473   : > { %v2302_v49 = vshrl.u32 %v15831_v33, %v2299_v30  ;;  %v2305_v16 = vshrl.u32 %v15833_v35, %v2299_v30  ;;  %v2308_v50 = vshrl.u32 %v15835_v39, %v2299_v30  ;;  %v1820_v7 = vadd.s32 %v13629_v20, %v13635_v60 }
 0x474   : > { %v1433_v8 = vsel %vm1350_vm5, %v1432_v43, %v1431_v62  ;;  %v1830_v26 = vsub.s32 0, %v13665_v21  ;;  %v13681_v23 = vshll.u32 %v2292_v12, 8  ;;  %v2300_v42 = vshrl.u32 %v15844_v31, %v2299_v30 }
 0x475   : > { %v1436_v59 = vsel %vm13620_vm9, %v13417_v57, %v1433_v8  ;;  %v2303_v56 = vor.u32 %v2302_v49, %v2301_v15  ;;  %v2310_v11 = vshll.u32 %v15835_v39, %v2298_v55  ;;  %v2704_v32 = vshrl.u32 %v2703_v10, 23 }
 0x476   : > { %9849 = vcosq.f32 %v1436_v59  ;;  %v8639_v27 = vmin.u32 %v1830_v26, %v13665_v21  ;;  %v2306_v24 = vor.u32 %v2305_v16, %v2304_v17  ;;  %v2311_v5 = vshrl.u32 %v15842_v41, %v2299_v30 }
 0x477   : > { %vm13689_vm0 = vcmp.le.f32.partialorder %v1764_v13, 0.7853982  ;;  %v2309_v60 = vor.u32 %v2308_v50, %v2307_v3  ;;  %v2313_v47 = vshll.u32 %v15842_v41, %v2298_v55  ;;  %v2314_v1 = vshrl.u32 %v15838_v51, %v2299_v30  ;;  %v9846_v34 = vpop.eup %9845 }
 0x478   : > { %vm2316_vm14 = vcmp.lt.s32.totalorder %v2297_v4, 1  ;;  %9851 = vsinq.f32 %v1436_v59  ;;  %v1832_v6 = vclz %v8639_v27  ;;  %v1850_v54 = vsub.s32 4, %v1826_v36 }
 0x479   : > { %vm2317_vm1 = vcmp.lt.s32.totalorder %v2297_v4, 2  ;;  %v2312_v28 = vor.u32 %v2311_v5, %v2310_v11  ;;  %v2315_v9 = vor.u32 %v2314_v1, %v2313_v47  ;;  %vm2318_vm2 = vcmp.lt.s32.totalorder %v2297_v4, 3 }
 0x47a   : > { %vm2319_vm3 = vcmp.lt.s32.totalorder %v2297_v4, 4  ;;  %v8640_v25 = vadd.s32 4294967294, %v1832_v6  ;;  %v2320_v13 = vsel %vm2316_vm14, %v2300_v42, %v2303_v56  ;;  %v2324_v61 = vsel %vm2316_vm14, %v2303_v56, %v2306_v24 }
 0x47b   : > { %v2321_v63 = vsel %vm2319_vm3, %v2309_v60, 2102212464  ;;  %v9848_v48 = vpop.eup %9847  ;;  %v2325_v44 = vsel %vm2319_vm3, %v2312_v28, 920167782  ;;  %v2328_v0 = vsel %vm2316_vm14, %v2306_v24, %v2309_v60  ;;  %v2329_v29 = vsel %vm2319_vm3, %v2315_v9, 1326507024 }
 0x47c   : > { %v2322_v37 = vsel %vm2318_vm2, %v2306_v24, %v2321_v63  ;;  %v7163_v38 = vpack.c.bf16 %v9848_v48, %v9846_v34  ;;  %vm8641_vm4 = vcmp.lt.s32.totalorder %v8640_v25, 0  ;;  %v1851_v45 = vsel %vm1766_vm15, %v1850_v54, %v1826_v36 }
 0x47d   : > { %v2326_v14 = vsel %vm2318_vm2, %v2309_v60, %v2325_v44  ;;  %v1835_v19 = vsel %vm8641_vm4, 0, %v8640_v25  ;;  %v2323_v55 = vsel %vm2317_vm1, %v2320_v13, %v2322_v37  ;;  %v2330_v62 = vsel %vm2318_vm2, %v2312_v28, %v2329_v29 }
 0x47e   : > { %v2327_v46 = vsel %vm2317_vm1, %v2324_v61, %v2326_v14  ;;  %8111 = vmatprep.mubr.bf16.mxu0 %v7163_v38  ;;  %8337 = vmatprep.mubr.bf16.mxu1 %v7163_v38  ;;  %v1836_v58 = vsub.s32 32, %v1835_v19  ;;  %v1837_v12 = vshll.u32 %v13665_v21, %v1835_v19  ;;  %v1840_v30 = vsub.s32 4294967266, %v1835_v19 }
 0x47f   : > { %v2331_v43 = vsel %vm2317_vm1, %v2328_v0, %v2330_v62  ;;  %v13712_v10 = vmul.u32.u64.low %v13681_v23, %v2327_v46  ;;  %v13713_v49 = vmul.u32.u64.high %v13681_v23, %v2327_v46, %v13712_v10  ;;  %v1853_v3 = vsel %vm13689_vm0, 0, %v1851_v45 }
 0x480   : > { %v13708_v15 = vmul.u32.u64.low %v13681_v23, %v2331_v43  ;;  %v13709_v36 = vmul.u32.u64.high %v13681_v23, %v2331_v43, %v13708_v15  ;;  %v9850_v17 = vpop.eup %9849  ;;  %v1838_v8 = vshrl.u32 %v1820_v7, %v1836_v58  ;;  %v1841_v16 = vadd.s32 127, %v1840_v30 }
 0x481   : > { %v8674_v50 = vadd.s32 4294967169, %v2704_v32  ;;  %v1442_v21 = vand.u32 3, %v13660_v18  ;;  %v2339_v42 = vmul.u32 %v13681_v23, %v2323_v55  ;;  %v1857_v11 = vadd.s32 3, %v1853_v3  ;;  %v198_v23 = vld [vmem:[%s10310_s3 + $0x90] sm:$0xff] }
 0x482   : > { %v9852_v4 = vpop.eup %9851  ;;  %v1839_v59 = vor.u32 %v1838_v8, %v1837_v12  ;;  %v1842_v26 = vshll.u32 %v1841_v16, 23  ;;  %vm2341_vm5 = vc.u32 %v13709_v36, %v13712_v10  ;;  %v2342_v7 = vadd.s32 1, %v13713_v49 }
 0x483   : > { %v2710_v56 = vadd.s32 1, %v8674_v50  ;;  %v2707_v27 = vand.u32 8388607, %v2700_v40  ;;  %v1448_v24 = vxor.u32 2147483648, %v9850_v17  ;;  %v1445_v18 = vxor.u32 2147483648, %v9852_v4 }
 0x484   : > { %v1843_v32 = vor.u32 4788187, %v1842_v26  ;;  %v1846_v5 = vcvt.s32.f32 %v1839_v59  ;;  %vm1447_vm7 = vcmp.eq.s32.totalorder %v1442_v21, 2  ;;  %v2343_v60 = vsel %vm2341_vm5, %v2342_v7, %v13713_v49 }
 0x485   : > { %vm2711_vm6 = vcmp.gt.s32.totalorder %v2710_v56, 0  ;;  %vm1444_vm8 = vcmp.eq.s32.totalorder %v1442_v21, 0  ;;  %v2344_v6 = vadd.s32 %v2343_v60, %v2339_v42  ;;  %vm1443_vm9 = vcmp.lt.s32.totalorder %v1442_v21, 2 }
 0x486   : > { %v2712_v47 = vsel %vm2711_vm6, %v2710_v56, 0  ;;  %v1844_v1 = vand.u32 2147483647, %v1843_v32  ;;  %v13727_v54 = vand.u32 3, %v1857_v11  ;;  %v2708_v34 = vor.u32 8388608, %v2707_v27 }
 0x487   : > { %v2714_v28 = vand.u32 31, %v2712_v47  ;;  %v1449_v9 = vsel %vm1447_vm7, %v1448_v24, %v9852_v4  ;;  %v2345_v13 = vadd.s32 536870912, %v2344_v6  ;;  %v13729_v63 = vmul.f32 %v198_v23, %v198_v23 }
 0x488   : > { %v1847_v25 = vmul.f32 %v1846_v5, %v1844_v1  ;;  %v1446_v61 = vsel %vm1444_vm8, %v9850_v17, %v1445_v18  ;;  %v2713_v48 = vshrl.u32 %v2712_v47, 5  ;;  %vm1440_vm10 = vweird.f32 %v13417_v57 }
 0x489   : > { %v2715_v37 = vsub.s32 32, %v2714_v28  ;;  %v2717_v44 = vshll.u32 %v15844_v31, %v2714_v28  ;;  %v13733_v29 = vshrl.u32 %v2345_v13, 30  ;;  %v2720_v38 = vshll.u32 %v15831_v33, %v2714_v28 }
 0x48a   : > { %v1848_v0 = vxor.u32 2147483648, %v1847_v25  ;;  %v2726_v45 = vshll.u32 %v15835_v39, %v2714_v28  ;;  %v2723_v55 = vshll.u32 %v15833_v35, %v2714_v28  ;;  %v1450_v62 = vsel %vm1443_vm9, %v1446_v61, %v1449_v9 }
 0x48b   : > { %v2718_v14 = vshrl.u32 %v15831_v33, %v2715_v37  ;;  %v2721_v19 = vshrl.u32 %v15833_v35, %v2715_v37  ;;  %v2724_v46 = vshrl.u32 %v15835_v39, %v2715_v37  ;;  %v2347_v12 = vshll.u32 %v13733_v29, 30 }
 0x48c   : > { %v1849_v58 = vsel %vm1766_vm15, %v1848_v0, %v1847_v25  ;;  %v2727_v30 = vshrl.u32 %v15842_v41, %v2715_v37  ;;  %v2716_v15 = vshrl.u32 %v15844_v31, %v2715_v37  ;;  %vm2732_vm11 = vcmp.lt.s32.totalorder %v2713_v48, 1 }
 0x48d   : > { %v1852_v43 = vsel %vm13689_vm0, %v13519_v52, %v1849_v58  ;;  %v2719_v49 = vor.u32 %v2718_v14, %v2717_v44  ;;  %v13750_v17 = vsub.s32 %v2344_v6, %v2347_v12  ;;  %v2722_v8 = vor.u32 %v2721_v19, %v2720_v38 }
 0x48e   : > { %9853 = vcosq.f32 %v1852_v43  ;;  %v2728_v16 = vor.u32 %v2727_v30, %v2726_v45  ;;  %v2725_v3 = vor.u32 %v2724_v46, %v2723_v55  ;;  %v2729_v50 = vshll.u32 %v15842_v41, %v2714_v28 }
 0x48f   : > { %9855 = vsinq.f32 %v1852_v43  ;;  %v2730_v21 = vshrl.u32 %v15838_v51, %v2715_v37  ;;  %v2350_v4 = vsub.s32 0, %v13750_v17  ;;  %vm2734_vm12 = vcmp.lt.s32.totalorder %v2713_v48, 3 }
 0x490   : > { %v2748_v20 = vshll.u32 %v2708_v34, 8  ;;  %v2183_v59 = vand.u32 2139095040, %v13729_v63  ;;  %vm2733_vm13 = vcmp.lt.s32.totalorder %v2713_v48, 2  ;;  %vm2735_vm15 = vcmp.lt.s32.totalorder %v2713_v48, 4 }
 0x491   : > { %v2731_v26 = vor.u32 %v2730_v21, %v2729_v50  ;;  %v2736_v42 = vsel %vm2732_vm11, %v2716_v15, %v2719_v49  ;;  %v8659_v56 = vmin.u32 %v2350_v4, %v13750_v17  ;;  %v2737_v11 = vsel %vm2735_vm15, %v2725_v3, 2102212464 }
 0x492   : > { %v2740_v7 = vsel %vm2732_vm11, %v2719_v49, %v2722_v8  ;;  %v2741_v27 = vsel %vm2735_vm15, %v2728_v16, 920167782  ;;  %vm1856_vm0 = vweird.f32 %v13519_v52  ;;  %v2738_v24 = vsel %vm2734_vm12, %v2722_v8, %v2737_v11 }
 0x493   : > { %v2742_v32 = vsel %vm2734_vm12, %v2725_v3, %v2741_v27  ;;  %v2744_v5 = vsel %vm2732_vm11, %v2722_v8, %v2725_v3  ;;  %v2745_v18 = vsel %vm2735_vm15, %v2731_v26, 1326507024  ;;  %vm1859_vm14 = vcmp.lt.s32.totalorder %v13727_v54, 2  ;;  %v202_v26 = vld [vmem:[%s10310_s3 + $0xb0] sm:$0xff] }
 0x494   : > { %vm1860_vm1 = vcmp.eq.s32.totalorder %v13727_v54, 0  ;;  %vm2286_vm2 = vcmp.lt.s32.totalorder %v13575_v2, 0  ;;  %v2352_v60 = vclz %v8659_v56  ;;  %v1451_v47 = vsel %vm1440_vm10, nan, %v1450_v62 }
 0x495   : > { %v2739_v23 = vsel %vm2733_vm13, %v2736_v42, %v2738_v24  ;;  %v2743_v1 = vsel %vm2733_vm13, %v2740_v7, %v2742_v32  ;;  %v2746_v6 = vsel %vm2734_vm12, %v2728_v16, %v2745_v18  ;;  %vm13773_vm3 = vcmp.le.f32.partialorder %v2284_v22, 0.7853982 }
 0x496   : > { %v8660_v28 = vadd.s32 4294967294, %v2352_v60  ;;  %v2747_v9 = vsel %vm2733_vm13, %v2744_v5, %v2746_v6  ;;  %v13778_v25 = vmul.u32.u64.low %v2748_v20, %v2743_v1  ;;  %v13779_v13 = vmul.u32.u64.high %v2748_v20, %v2743_v1, %v13778_v25 }
 0x497   : > { %vm1863_vm4 = vcmp.eq.s32.totalorder %v13727_v54, 2  ;;  %v13783_v57 = vmul.u32.u64.low %v2748_v20, %v2747_v9  ;;  %v13784_v61 = vmul.u32.u64.high %v2748_v20, %v2747_v9, %v13783_v57  ;;  %v2184_v37 = vshrl.u32 %v2183_v59, 23 }
 0x498   : > { %v9854_v44 = vpop.eup %9853  ;;  %v6974_v0 = vadd.f32 1.0, %v1451_v47  ;;  %v2340_v22 = vadd.s32 %v13712_v10, %v13709_v36  ;;  %vm8661_vm5 = vcmp.lt.s32.totalorder %v8660_v28, 0  ;;  %v2370_v38 = vsub.s32 4, %v13733_v29 }
 0x499   : > { %v9856_v48 = vpop.eup %9855  ;;  %v1864_v45 = vxor.u32 2147483648, %v9854_v44  ;;  %v2355_v14 = vsel %vm8661_vm5, 0, %v8660_v28  ;;  %v2755_v19 = vmul.u32 %v2748_v20, %v2739_v23  ;;  %v8654_v55 = vadd.s32 4294967169, %v2184_v37 }
 0x49a   : > { %v1861_v46 = vxor.u32 2147483648, %v9856_v48  ;;  %v2356_v62 = vsub.s32 32, %v2355_v14  ;;  %v2357_v58 = vshll.u32 %v13750_v17, %v2355_v14  ;;  %v2360_v12 = vsub.s32 4294967266, %v2355_v14 }
 0x49b   : > { %v1865_v30 = vsel %vm1863_vm4, %v1864_v45, %v9856_v48  ;;  %vm2757_vm6 = vc.u32 %v13784_v61, %v13778_v25  ;;  %v2758_v36 = vadd.s32 1, %v13779_v13  ;;  %v2180_v10 = vand.u32 2147483647, %v13729_v63 }
 0x49c   : > { %v1862_v43 = vsel %vm1860_vm1, %v9854_v44, %v1861_v46  ;;  %v2358_v15 = vshrl.u32 %v2340_v22, %v2356_v62  ;;  %v2361_v49 = vadd.s32 127, %v2360_v12  ;;  %v2371_v17 = vsel %vm2286_vm2, %v2370_v38, %v13733_v29 }
 0x49d   : > { %v1866_v8 = vsel %vm1859_vm14, %v1862_v43, %v1865_v30  ;;  %v7048_v16 = vmul.f32 1.442695, %v6974_v0  ;;  %v2759_v3 = vsel %vm2757_vm6, %v2758_v36, %v13779_v13  ;;  %v2190_v50 = vadd.s32 1, %v8654_v55 }
 0x49e   : > { %v1867_v21 = vsel %vm1856_vm0, nan, %v1866_v8  ;;  %v2359_v4 = vor.u32 %v2358_v15, %v2357_v58  ;;  %v2362_v20 = vshll.u32 %v2361_v49, 23  ;;  %v2760_v59 = vadd.s32 %v2759_v3, %v2755_v19 }
 0x49f   : > { %v6978_v42 = vadd.f32 1.0, %v1867_v21  ;;  %v2373_v56 = vsel %vm13773_vm3, 0, %v2371_v17  ;;  %v2187_v29 = vand.u32 8388607, %v2180_v10  ;;  %vm2191_vm7 = vcmp.gt.s32.totalorder %v2190_v50, 0 }
 0x4a0   : > { %v2363_v54 = vor.u32 4788187, %v2362_v20  ;;  %v2366_v11 = vcvt.s32.f32 %v2359_v4  ;;  %v2761_v7 = vadd.s32 536870912, %v2760_v59  ;;  %v2192_v27 = vsel %vm2191_vm7, %v2190_v50, 0 }
 0x4a1   : > { %9857 = vpow2.f32 %v7048_v16  ;;  %v7056_v24 = vmul.f32 1.442695, %v6978_v42  ;;  %v13811_v52 = vmul.f32 %v202_v26, %v202_v26  ;;  %v2194_v32 = vand.u32 31, %v2192_v27 }
 0x4a2   : > { %v2364_v5 = vand.u32 2147483647, %v2363_v54  ;;  %v13813_v18 = vadd.s32 3, %v2373_v56  ;;  %v2762_v60 = vshrl.u32 %v2761_v7, 30  ;;  %v2188_v9 = vor.u32 8388608, %v2187_v29 }
 0x4a3   : > { %9859 = vpow2.f32 %v7056_v24  ;;  %v2195_v47 = vsub.s32 32, %v2194_v32  ;;  %v2197_v23 = vshll.u32 %v15844_v31, %v2194_v32  ;;  %v2596_v1 = vand.u32 2147483647, %v13811_v52 }
 0x4a4   : > { %v2367_v6 = vmul.f32 %v2366_v11, %v2364_v5  ;;  %v2763_v28 = vshll.u32 %v2762_v60, 30  ;;  %v2200_v13 = vshll.u32 %v15831_v33, %v2194_v32  ;;  %v2203_v44 = vshll.u32 %v15833_v35, %v2194_v32 }
 0x4a5   : > { %v2198_v57 = vshrl.u32 %v15831_v33, %v2195_v47  ;;  %v2201_v37 = vshrl.u32 %v15833_v35, %v2195_v47  ;;  %v2204_v0 = vshrl.u32 %v15835_v39, %v2195_v47  ;;  %v2193_v48 = vshrl.u32 %v2192_v27, 5 }
 0x4a6   : > { %v2368_v22 = vxor.u32 2147483648, %v2367_v6  ;;  %v13822_v38 = vsub.s32 %v2760_v59, %v2763_v28  ;;  %v2206_v45 = vshll.u32 %v15835_v39, %v2194_v32  ;;  %vm2702_vm8 = vcmp.lt.s32.totalorder %v13658_v53, 0 }
 0x4a7   : > { %v2756_v14 = vadd.s32 %v13778_v25, %v13784_v61  ;;  %v2196_v19 = vshrl.u32 %v15844_v31, %v2195_v47  ;;  %v2199_v55 = vor.u32 %v2198_v57, %v2197_v23  ;;  %v2599_v46 = vand.u32 2139095040, %v13811_v52 }
 0x4a8   : > { %v2369_v62 = vsel %vm2286_vm2, %v2368_v22, %v2367_v6  ;;  %v2766_v58 = vsub.s32 0, %v13822_v38  ;;  %v2202_v12 = vor.u32 %v2201_v37, %v2200_v13  ;;  %v2207_v30 = vshrl.u32 %v15842_v41, %v2195_v47 }
 0x4a9   : > { %v2372_v36 = vsel %vm13773_vm3, %v13575_v2, %v2369_v62  ;;  %v2205_v43 = vor.u32 %v2204_v0, %v2203_v44  ;;  %v2209_v25 = vshll.u32 %v15842_v41, %v2194_v32  ;;  %v2210_v61 = vshrl.u32 %v15838_v51, %v2195_v47 }
 0x4aa   : > { %vm13841_vm9 = vcmp.le.f32.partialorder %v2700_v40, 0.7853982  ;;  %v8675_v49 = vmin.u32 %v2766_v58, %v13822_v38  ;;  %v2208_v17 = vor.u32 %v2207_v30, %v2206_v45  ;;  %vm2212_vm10 = vcmp.lt.s32.totalorder %v2193_v48, 1 }
 0x4ab   : > { %v13846_v8 = vshll.u32 %v2188_v9, 8  ;;  %v9858_v16 = vpop.eup %9857  ;;  %9861 = vcosq.f32 %v2372_v36  ;;  %v2786_v34 = vsub.s32 4, %v2762_v60  ;;  %v2211_v3 = vor.u32 %v2210_v61, %v2209_v25 }
 0x4ac   : > { %v2600_v50 = vshrl.u32 %v2599_v46, 23  ;;  %9863 = vsinq.f32 %v2372_v36  ;;  %v2768_v21 = vclz %v8675_v49  ;;  %vm2213_vm11 = vcmp.lt.s32.totalorder %v2193_v48, 2 }
 0x4ad   : > { %vm2214_vm12 = vcmp.lt.s32.totalorder %v2193_v48, 3  ;;  %v9860_v4 = vpop.eup %9859  ;;  %vm2215_vm13 = vcmp.lt.s32.totalorder %v2193_v48, 4  ;;  %v2216_v40 = vsel %vm2212_vm10, %v2196_v19, %v2199_v55  ;;  %v2220_v20 = vsel %vm2212_vm10, %v2199_v55, %v2202_v12 }
 0x4ae   : > { %v2224_v59 = vsel %vm2212_vm10, %v2202_v12, %v2205_v43  ;;  %v7162_v26 = vpack.c.bf16 %v9860_v4, %v9858_v16  ;;  %v8676_v42 = vadd.s32 4294967294, %v2768_v21  ;;  %v2217_v56 = vsel %vm2215_vm13, %v2205_v43, 2102212464 }
 0x4af   : > { %v2221_v29 = vsel %vm2215_vm13, %v2208_v17, 920167782  ;;  %v2218_v54 = vsel %vm2214_vm12, %v2202_v12, %v2217_v56  ;;  %v2225_v7 = vsel %vm2215_vm13, %v2211_v3, 1326507024  ;;  %v8670_v27 = vadd.s32 4294967169, %v2600_v50 }
 0x4b0   : > { %v2222_v11 = vsel %vm2214_vm12, %v2205_v43, %v2221_v29  ;;  %8112 = vmatmul.mubr.bf16.gmra.mrb[4].mxu0 %v7162_v26  ;;  %8338 = vmatmul.mubr.bf16.gmra.mrb[4].mxu1 %v7162_v26  ;;  %vm8677_vm15 = vcmp.lt.s32.totalorder %v8676_v42, 0  ;;  %v2787_v24 = vsel %vm2702_vm8, %v2786_v34, %v2762_v60  ;;  %v2226_v5 = vsel %vm2214_vm12, %v2208_v17, %v2225_v7 }
 0x4b1   : > { %v2223_v32 = vsel %vm2213_vm11, %v2220_v20, %v2222_v11  ;;  %v2771_v47 = vsel %vm8677_vm15, 0, %v8676_v42  ;;  %v2227_v23 = vsel %vm2213_vm11, %v2224_v59, %v2226_v5  ;;  %v2219_v37 = vsel %vm2213_vm11, %v2216_v40, %v2218_v54 }
 0x4b2   : > { %v13856_v6 = vmul.u32.u64.low %v13846_v8, %v2223_v32  ;;  %v13857_v28 = vmul.u32.u64.high %v13846_v8, %v2223_v32, %v13856_v6  ;;  %v2772_v9 = vsub.s32 32, %v2771_v47  ;;  %v2773_v13 = vshll.u32 %v13822_v38, %v2771_v47 }
 0x4b3   : > { %v2776_v57 = vsub.s32 4294967266, %v2771_v47  ;;  %v2789_v60 = vsel %vm13841_vm9, 0, %v2787_v24  ;;  %v13865_v44 = vmul.u32.u64.low %v13846_v8, %v2227_v23  ;;  %v13866_v0 = vmul.u32.u64.high %v13846_v8, %v2227_v23, %v13865_v44 }
 0x4b4   : > { %v2606_v22 = vadd.s32 1, %v8670_v27  ;;  %v13869_v45 = vand.u32 3, %v13813_v18  ;;  %v2774_v19 = vshrl.u32 %v2756_v14, %v2772_v9  ;;  %v2235_v38 = vmul.u32 %v13846_v8, %v2219_v37  ;;  %v207_v18 = vld [vmem:[%s10310_s3 + $0xd8] sm:$0xff] }
 0x4b5   : > { %v2777_v55 = vadd.s32 127, %v2776_v57  ;;  %v9862_v46 = vpop.eup %9861  ;;  %v2238_v48 = vadd.s32 1, %v13857_v28  ;;  %v2603_v62 = vand.u32 8388607, %v2596_v1  ;;  %v2793_v36 = vadd.s32 3, %v2789_v60 }
 0x4b6   : > { %vm2607_vm0 = vcmp.gt.s32.totalorder %v2606_v22, 0  ;;  %v9864_v58 = vpop.eup %9863  ;;  %v2775_v12 = vor.u32 %v2774_v19, %v2773_v13  ;;  %vm2237_vm14 = vc.u32 %v13866_v0, %v13856_v6  ;;  %vm2380_vm1 = vcmp.eq.s32.totalorder %v13869_v45, 0 }
 0x4b7   : > { %v2778_v30 = vshll.u32 %v2777_v55, 23  ;;  %v2608_v43 = vsel %vm2607_vm0, %v2606_v22, 0  ;;  %v2239_v61 = vsel %vm2237_vm14, %v2238_v48, %v13857_v28  ;;  %vm2383_vm2 = vcmp.eq.s32.totalorder %v13869_v45, 2 }
 0x4b8   : > { %v2782_v25 = vcvt.s32.f32 %v2775_v12  ;;  %v2384_v49 = vxor.u32 2147483648, %v9862_v46  ;;  %v2240_v17 = vadd.s32 %v2239_v61, %v2235_v38  ;;  %v2610_v8 = vand.u32 31, %v2608_v43 }
 0x4b9   : > { %v2779_v14 = vor.u32 4788187, %v2778_v30  ;;  %vm2379_vm3 = vcmp.lt.s32.totalorder %v13869_v45, 2  ;;  %v13882_v34 = vand.u32 3, %v2793_v36  ;;  %v2604_v3 = vor.u32 8388608, %v2603_v62 }
 0x4ba   : > { %v13884_v50 = vmul.f32 %v207_v18, %v207_v18  ;;  %v2381_v21 = vxor.u32 2147483648, %v9864_v58  ;;  %v2241_v4 = vadd.s32 536870912, %v2240_v17  ;;  %v2609_v40 = vshrl.u32 %v2608_v43, 5 }
 0x4bb   : > { %v2780_v16 = vand.u32 2147483647, %v2779_v14  ;;  %v2611_v20 = vsub.s32 32, %v2610_v8  ;;  %v2613_v26 = vshll.u32 %v15844_v31, %v2610_v8  ;;  %v2616_v42 = vshll.u32 %v15831_v33, %v2610_v8 }
 0x4bc   : > { %v2622_v56 = vshll.u32 %v15835_v39, %v2610_v8  ;;  %vm2376_vm4 = vweird.f32 %v13575_v2  ;;  %v2385_v29 = vsel %vm2383_vm2, %v2384_v49, %v9864_v58  ;;  %v13892_v54 = vshrl.u32 %v2241_v4, 30 }
 0x4bd   : > { %v2783_v59 = vmul.f32 %v2782_v25, %v2780_v16  ;;  %v2614_v11 = vshrl.u32 %v15831_v33, %v2611_v20  ;;  %v2619_v7 = vshll.u32 %v15833_v35, %v2610_v8  ;;  %v2617_v24 = vshrl.u32 %v15833_v35, %v2611_v20 }
 0x4be   : > { %v2620_v32 = vshrl.u32 %v15835_v39, %v2611_v20  ;;  %v2623_v5 = vshrl.u32 %v15842_v41, %v2611_v20  ;;  %v2382_v47 = vsel %vm2380_vm1, %v9862_v46, %v2381_v21  ;;  %v2243_v23 = vshll.u32 %v13892_v54, 30 }
 0x4bf   : > { %v2784_v27 = vxor.u32 2147483648, %v2783_v59  ;;  %v2612_v28 = vshrl.u32 %v15844_v31, %v2611_v20  ;;  %vm2628_vm5 = vcmp.lt.s32.totalorder %v2609_v40, 1  ;;  %v2615_v13 = vor.u32 %v2614_v11, %v2613_v26 }
 0x4c0   : > { %v2618_v57 = vor.u32 %v2617_v24, %v2616_v42  ;;  %v2624_v37 = vor.u32 %v2623_v5, %v2622_v56  ;;  %v13908_v44 = vsub.s32 %v2240_v17, %v2243_v23  ;;  %v2621_v22 = vor.u32 %v2620_v32, %v2619_v7 }
 0x4c1   : > { %v2785_v9 = vsel %vm2702_vm8, %v2784_v27, %v2783_v59  ;;  %v2625_v19 = vshll.u32 %v15842_v41, %v2610_v8  ;;  %v2626_v55 = vshrl.u32 %v15838_v51, %v2611_v20  ;;  %vm2630_vm6 = vcmp.lt.s32.totalorder %v2609_v40, 3 }
 0x4c2   : > { %v2788_v60 = vsel %vm13841_vm9, %v13658_v53, %v2785_v9  ;;  %vm2631_vm7 = vcmp.lt.s32.totalorder %v2609_v40, 4  ;;  %v2246_v46 = vsub.s32 0, %v13908_v44  ;;  %vm2629_vm8 = vcmp.lt.s32.totalorder %v2609_v40, 2 }
 0x4c3   : > { %9865 = vcosq.f32 %v2788_v60  ;;  %v2644_v38 = vshll.u32 %v2604_v3, 8  ;;  %v2627_v48 = vor.u32 %v2626_v55, %v2625_v19  ;;  %v2633_v62 = vsel %vm2631_vm7, %v2621_v22, 2102212464 }
 0x4c4   : > { %9867 = vsinq.f32 %v2788_v60  ;;  %v2636_v15 = vsel %vm2628_vm5, %v2615_v13, %v2618_v57  ;;  %v2637_v58 = vsel %vm2631_vm7, %v2624_v37, 920167782  ;;  %v2386_v12 = vsel %vm2379_vm3, %v2382_v47, %v2385_v29 }
 0x4c5   : > { %v8655_v30 = vmin.u32 %v2246_v46, %v13908_v44  ;;  %v2632_v36 = vsel %vm2628_vm5, %v2612_v28, %v2615_v13  ;;  %v2638_v43 = vsel %vm2630_vm6, %v2621_v22, %v2637_v58  ;;  %v2634_v18 = vsel %vm2630_vm6, %v2618_v57, %v2633_v62 }
 0x4c6   : > { %v2639_v14 = vsel %vm2629_vm8, %v2636_v15, %v2638_v43  ;;  %v2640_v25 = vsel %vm2628_vm5, %v2618_v57, %v2621_v22  ;;  %v2641_v61 = vsel %vm2631_vm7, %v2627_v48, 1326507024  ;;  %vm2792_vm9 = vweird.f32 %v13658_v53  ;;  %v211_v48 = vld [vmem:[%s10310_s3 + $0xf8] sm:$0xff] }
 0x4c7   : > { %vm2795_vm10 = vcmp.lt.s32.totalorder %v13882_v34, 2  ;;  %vm2182_vm11 = vcmp.lt.s32.totalorder %v13729_v63, 0  ;;  %v2248_v45 = vclz %v8655_v30  ;;  %v2387_v49 = vsel %vm2376_vm4, nan, %v2386_v12 }
 0x4c8   : > { %vm13932_vm12 = vcmp.le.f32.partialorder %v2180_v10, 0.7853982  ;;  %v2642_v8 = vsel %vm2630_vm6, %v2624_v37, %v2641_v61  ;;  %v13937_v16 = vmul.u32.u64.low %v2644_v38, %v2639_v14  ;;  %v13938_v3 = vmul.u32.u64.high %v2644_v38, %v2639_v14, %v13937_v16 }
 0x4c9   : > { %vm2796_vm13 = vcmp.eq.s32.totalorder %v13882_v34, 0  ;;  %v8656_v21 = vadd.s32 4294967294, %v2248_v45  ;;  %v2635_v4 = vsel %vm2629_vm8, %v2632_v36, %v2634_v18  ;;  %v2643_v2 = vsel %vm2629_vm8, %v2640_v25, %v2642_v8 }
 0x4ca   : > { %v2266_v20 = vsub.s32 4, %v13892_v54  ;;  %v13945_v59 = vmul.u32.u64.low %v2644_v38, %v2643_v2  ;;  %v13946_v10 = vmul.u32.u64.high %v2644_v38, %v2643_v2, %v13945_v59  ;;  %v3119_v26 = vand.u32 2139095040, %v13884_v50 }
 0x4cb   : > { %vm2799_vm15 = vcmp.eq.s32.totalorder %v13882_v34, 2  ;;  %v6983_v42 = vadd.f32 1.0, %v2387_v49  ;;  %v2236_v56 = vadd.s32 %v13856_v6, %v13866_v0  ;;  %vm8657_vm0 = vcmp.lt.s32.totalorder %v8656_v21, 0 }
 0x4cc   : > { %v2251_v11 = vsel %vm8657_vm0, 0, %v8656_v21  ;;  %v2651_v7 = vmul.u32 %v2644_v38, %v2635_v4  ;;  %v2654_v40 = vadd.s32 1, %v13938_v3  ;;  %v3120_v27 = vshrl.u32 %v3119_v26, 23 }
 0x4cd   : > { %v9866_v29 = vpop.eup %9865  ;;  %v2252_v5 = vsub.s32 32, %v2251_v11  ;;  %v2253_v47 = vshll.u32 %v13908_v44, %v2251_v11  ;;  %v2256_v23 = vsub.s32 4294967266, %v2251_v11  ;;  %v2267_v9 = vsel %vm2182_vm11, %v2266_v20, %v13892_v54 }
 0x4ce   : > { %v9868_v24 = vpop.eup %9867  ;;  %v2800_v32 = vxor.u32 2147483648, %v9866_v29  ;;  %vm2653_vm14 = vc.u32 %v13946_v10, %v13937_v16  ;;  %v8690_v6 = vadd.s32 4294967169, %v3120_v27  ;;  %v7066_v44 = vmul.f32 1.442695, %v6983_v42 }
 0x4cf   : > { %v2797_v28 = vxor.u32 2147483648, %v9868_v24  ;;  %v2254_v13 = vshrl.u32 %v2236_v56, %v2252_v5  ;;  %v2257_v57 = vadd.s32 127, %v2256_v23  ;;  %v2655_v37 = vsel %vm2653_vm14, %v2654_v40, %v13938_v3 }
 0x4d0   : > { %v2801_v0 = vsel %vm2799_vm15, %v2800_v32, %v9868_v24  ;;  %v2656_v22 = vadd.s32 %v2655_v37, %v2651_v7  ;;  %v3126_v19 = vadd.s32 1, %v8690_v6  ;;  %v2269_v38 = vsel %vm13932_vm12, 0, %v2267_v9 }
 0x4d1   : > { %v2798_v60 = vsel %vm2796_vm13, %v9866_v29, %v2797_v28  ;;  %v2255_v55 = vor.u32 %v2254_v13, %v2253_v47  ;;  %v2258_v46 = vshll.u32 %v2257_v57, 23  ;;  %v3116_v58 = vand.u32 2147483647, %v13884_v50 }
 0x4d2   : > { %v2802_v54 = vsel %vm2795_vm10, %v2798_v60, %v2801_v0  ;;  %v2657_v15 = vadd.s32 536870912, %v2656_v22  ;;  %vm3127_vm1 = vcmp.gt.s32.totalorder %v3126_v19, 0  ;;  %v13974_v34 = vmul.f32 %v211_v48, %v211_v48 }
 0x4d3   : > { %v2803_v62 = vsel %vm2792_vm9, nan, %v2802_v54  ;;  %v2259_v30 = vor.u32 4788187, %v2258_v46  ;;  %v2262_v36 = vcvt.s32.f32 %v2255_v55  ;;  %v3128_v43 = vsel %vm3127_vm1, %v3126_v19, 0 }
 0x4d4   : > { %v6987_v12 = vadd.f32 1.0, %v2803_v62  ;;  %v13972_v18 = vshrl.u32 %v2657_v15, 30  ;;  %v3130_v14 = vand.u32 31, %v3128_v43  ;;  %9869 = vpow2.f32 %v7066_v44 }
 0x4d5   : > { %v2260_v61 = vand.u32 2147483647, %v2259_v30  ;;  %v13976_v45 = vadd.s32 3, %v2269_v38  ;;  %v3123_v49 = vand.u32 8388607, %v3116_v58  ;;  %v2652_v20 = vadd.s32 %v13937_v16, %v13946_v10 }
 0x4d6   : > { %v7074_v25 = vmul.f32 1.442695, %v6987_v12  ;;  %v2659_v53 = vshll.u32 %v13972_v18, 30  ;;  %v3131_v8 = vsub.s32 32, %v3130_v14  ;;  %v3532_v3 = vand.u32 2147483647, %v13974_v34 }
 0x4d7   : > { %v2263_v21 = vmul.f32 %v2262_v36, %v2260_v61  ;;  %v3133_v4 = vshll.u32 %v15844_v31, %v3130_v14  ;;  %v3136_v2 = vshll.u32 %v15831_v33, %v3130_v14  ;;  %v3139_v42 = vshll.u32 %v15833_v35, %v3130_v14 }
 0x4d8   : > { %9871 = vpow2.f32 %v7074_v25  ;;  %v13986_v59 = vsub.s32 %v2656_v22, %v2659_v53  ;;  %v3134_v26 = vshrl.u32 %v15831_v33, %v3131_v8  ;;  %v3129_v29 = vshrl.u32 %v3128_v43, 5 }
 0x4d9   : > { %v2264_v56 = vxor.u32 2147483648, %v2263_v21  ;;  %v3137_v11 = vshrl.u32 %v15833_v35, %v3131_v8  ;;  %v3140_v7 = vshrl.u32 %v15835_v39, %v3131_v8  ;;  %v3124_v27 = vor.u32 8388608, %v3123_v49 }
 0x4da   : > { %v2662_v40 = vsub.s32 0, %v13986_v59  ;;  %v3132_v24 = vshrl.u32 %v15844_v31, %v3131_v8  ;;  %v3142_v32 = vshll.u32 %v15835_v39, %v3130_v14  ;;  %v3135_v10 = vor.u32 %v3134_v26, %v3133_v4 }
 0x4db   : > { %v2265_v16 = vsel %vm2182_vm11, %v2264_v56, %v2263_v21  ;;  %v3138_v5 = vor.u32 %v3137_v11, %v3136_v2  ;;  %v3143_v47 = vshrl.u32 %v15842_v41, %v3131_v8  ;;  %v3141_v9 = vor.u32 %v3140_v7, %v3139_v42 }
 0x4dc   : > { %v2268_v23 = vsel %vm13932_vm12, %v13729_v63, %v2265_v16  ;;  %v8671_v28 = vmin.u32 %v2662_v40, %v13986_v59  ;;  %v3145_v6 = vshll.u32 %v15842_v41, %v3130_v14  ;;  %vm2598_vm2 = vcmp.lt.s32.totalorder %v13811_v52, 0 }
 0x4dd   : > { %9873 = vcosq.f32 %v2268_v23  ;;  %v3144_v0 = vor.u32 %v3143_v47, %v3142_v32  ;;  %v3146_v13 = vshrl.u32 %v15838_v51, %v3131_v8  ;;  %vm3148_vm3 = vcmp.lt.s32.totalorder %v3129_v29, 1 }
 0x4de   : > { %9875 = vsinq.f32 %v2268_v23  ;;  %v2664_v57 = vclz %v8671_v28  ;;  %v3164_v37 = vshll.u32 %v3124_v27, 8  ;;  %v3535_v60 = vand.u32 2139095040, %v13974_v34  ;;  %v9870_v44 = vpop.eup %9869 }
 0x4df   : > { %v2682_v17 = vsub.s32 4, %v13972_v18  ;;  %v3147_v22 = vor.u32 %v3146_v13, %v3145_v6  ;;  %vm3149_vm4 = vcmp.lt.s32.totalorder %v3129_v29, 2  ;;  %vm3150_vm5 = vcmp.lt.s32.totalorder %v3129_v29, 3 }
 0x4e0   : > { %v8672_v19 = vadd.s32 4294967294, %v2664_v57  ;;  %vm3151_vm6 = vcmp.lt.s32.totalorder %v3129_v29, 4  ;;  %v3152_v54 = vsel %vm3148_vm3, %v3132_v24, %v3135_v10  ;;  %v3156_v55 = vsel %vm3148_vm3, %v3135_v10, %v3138_v5 }
 0x4e1   : > { %v3153_v38 = vsel %vm3151_vm6, %v3141_v9, 2102212464  ;;  %v3157_v48 = vsel %vm3151_vm6, %v3144_v0, 920167782  ;;  %v3160_v62 = vsel %vm3148_vm3, %v3138_v5, %v3141_v9  ;;  %v3161_v15 = vsel %vm3151_vm6, %v3147_v22, 1326507024 }
 0x4e2   : > { %v9872_v46 = vpop.eup %9871  ;;  %vm8673_vm7 = vcmp.lt.s32.totalorder %v8672_v19, 0  ;;  %v3154_v30 = vsel %vm3150_vm5, %v3138_v5, %v3153_v38  ;;  %v3158_v36 = vsel %vm3150_vm5, %v3141_v9, %v3157_v48  ;;  %v3162_v61 = vsel %vm3150_vm5, %v3144_v0, %v3161_v15 }
 0x4e3   : > { %v7167_v12 = vpack.c.bf16 %v9872_v46, %v9870_v44  ;;  %v2667_v43 = vsel %vm8673_vm7, 0, %v8672_v19  ;;  %v3155_v14 = vsel %vm3149_vm4, %v3152_v54, %v3154_v30  ;;  %v3159_v25 = vsel %vm3149_vm4, %v3156_v55, %v3158_v36  ;;  %v206_v44 = vld [vmem:[%s10310_s3 + $0xd0] sm:$0xff] }
 0x4e4   : > { %v2668_v53 = vsub.s32 32, %v2667_v43  ;;  %v2669_v49 = vshll.u32 %v13986_v59, %v2667_v43  ;;  %v2672_v8 = vsub.s32 4294967266, %v2667_v43  ;;  %v3163_v21 = vsel %vm3149_vm4, %v3160_v62, %v3162_v61 }
 0x4e5   : > { %8121 = vmatprep.mubr.bf16.mxu0 %v7167_v12  ;;  %8347 = vmatprep.mubr.bf16.mxu1 %v7167_v12  ;;  %v14017_v4 = vmul.u32.u64.low %v3164_v37, %v3163_v21  ;;  %v14018_v2 = vmul.u32.u64.high %v3164_v37, %v3163_v21, %v14017_v4  ;;  %v14020_v26 = vmul.u32.u64.low %v3164_v37, %v3159_v25  ;;  %v14021_v42 = vmul.u32.u64.high %v3164_v37, %v3159_v25, %v14020_v26 }
 0x4e6   : > { %v2670_v56 = vshrl.u32 %v2652_v20, %v2668_v53  ;;  %v2673_v11 = vadd.s32 127, %v2672_v8  ;;  %v2683_v7 = vsel %vm2598_vm2, %v2682_v17, %v13972_v18  ;;  %v3536_v40 = vshrl.u32 %v3535_v60, 23 }
 0x4e7   : > { %v9874_v27 = vpop.eup %9873  ;;  %v2274_v24 = vand.u32 3, %v13976_v45  ;;  %vm14029_vm8 = vcmp.le.f32.partialorder %v2596_v1, 0.7853982  ;;  %v3539_v29 = vand.u32 8388607, %v3532_v3  ;;  %v3171_v10 = vmul.u32 %v3164_v37, %v3155_v14 }
 0x4e8   : > { %v9876_v32 = vpop.eup %9875  ;;  %v2671_v20 = vor.u32 %v2670_v56, %v2669_v49  ;;  %v2674_v16 = vshll.u32 %v2673_v11, 23  ;;  %v8706_v5 = vadd.s32 4294967169, %v3536_v40  ;;  %v2280_v47 = vxor.u32 2147483648, %v9874_v27 }
 0x4e9   : > { %v2685_v18 = vsel %vm14029_vm8, 0, %v2683_v7  ;;  %vm3173_vm9 = vc.u32 %v14018_v2, %v14020_v26  ;;  %v3174_v1 = vadd.s32 1, %v14021_v42  ;;  %v2277_v45 = vxor.u32 2147483648, %v9876_v32 }
 0x4ea   : > { %v2675_v23 = vor.u32 4788187, %v2674_v16  ;;  %v2678_v28 = vcvt.s32.f32 %v2671_v20  ;;  %v3542_v9 = vadd.s32 1, %v8706_v5  ;;  %vm2276_vm10 = vcmp.eq.s32.totalorder %v2274_v24, 0 }
 0x4eb   : > { %vm2279_vm11 = vcmp.eq.s32.totalorder %v2274_v24, 2  ;;  %v3175_v6 = vsel %vm3173_vm9, %v3174_v1, %v14021_v42  ;;  %v2689_v13 = vadd.s32 3, %v2685_v18  ;;  %vm2275_vm13 = vcmp.lt.s32.totalorder %v2274_v24, 2 }
 0x4ec   : > { %v2676_v0 = vand.u32 2147483647, %v2675_v23  ;;  %v3176_v57 = vadd.s32 %v3175_v6, %v3171_v10  ;;  %vm3543_vm12 = vcmp.gt.s32.totalorder %v3542_v9, 0  ;;  %v3540_v37 = vor.u32 8388608, %v3539_v29 }
 0x4ed   : > { %v3544_v60 = vsel %vm3543_vm12, %v3542_v9, 0  ;;  %v2278_v17 = vsel %vm2276_vm10, %v9874_v27, %v2277_v45  ;;  %v2281_v22 = vsel %vm2279_vm11, %v2280_v47, %v9876_v32  ;;  %vm2272_vm15 = vweird.f32 %v13729_v63 }
 0x4ee   : > { %v2679_v19 = vmul.f32 %v2678_v28, %v2676_v0  ;;  %v3177_v54 = vadd.s32 536870912, %v3176_v57  ;;  %v3546_v55 = vand.u32 31, %v3544_v60  ;;  %v14042_v38 = vand.u32 3, %v2689_v13 }
 0x4ef   : > { %v14046_v62 = vmul.f32 %v206_v44, %v206_v44  ;;  %v2282_v15 = vsel %vm2275_vm13, %v2278_v17, %v2281_v22  ;;  %v14049_v12 = vadd.s32 %v14020_v26, %v14018_v2  ;;  %v14051_v36 = vshll.u32 %v3540_v37, 8 }
 0x4f0   : > { %v2680_v46 = vxor.u32 2147483648, %v2679_v19  ;;  %v14044_v48 = vshrl.u32 %v3177_v54, 30  ;;  %v3547_v30 = vsub.s32 32, %v3546_v55  ;;  %v3549_v25 = vshll.u32 %v15844_v31, %v3546_v55 }
 0x4f1   : > { %v3552_v61 = vshll.u32 %v15831_v33, %v3546_v55  ;;  %v3555_v21 = vshll.u32 %v15833_v35, %v3546_v55  ;;  %v3545_v2 = vshrl.u32 %v3544_v60, 5  ;;  %v2283_v42 = vsel %vm2272_vm15, nan, %v2282_v15 }
 0x4f2   : > { %v2681_v43 = vsel %vm2598_vm2, %v2680_v46, %v2679_v19  ;;  %v3179_v14 = vshll.u32 %v14044_v48, 30  ;;  %v3550_v49 = vshrl.u32 %v15831_v33, %v3547_v30  ;;  %v3553_v8 = vshrl.u32 %v15833_v35, %v3547_v30 }
 0x4f3   : > { %v2684_v53 = vsel %vm14029_vm8, %v13811_v52, %v2681_v43  ;;  %v3556_v26 = vshrl.u32 %v15835_v39, %v3547_v30  ;;  %v3548_v56 = vshrl.u32 %v15844_v31, %v3547_v30  ;;  %v3012_v11 = vand.u32 2147483647, %v14046_v62 }
 0x4f4   : > { %9877 = vcosq.f32 %v2684_v53  ;;  %v14064_v4 = vsub.s32 %v3176_v57, %v3179_v14  ;;  %vm2695_vm0 = vcmp.eq.s32.totalorder %v14042_v38, 2  ;;  %v3551_v40 = vor.u32 %v3550_v49, %v3549_v25 }
 0x4f5   : > { %9879 = vsinq.f32 %v2684_v53  ;;  %v3554_v27 = vor.u32 %v3553_v8, %v3552_v61  ;;  %v3558_v24 = vshll.u32 %v15835_v39, %v3546_v55  ;;  %vm2692_vm14 = vcmp.eq.s32.totalorder %v14042_v38, 0 }
 0x4f6   : > { %v3182_v7 = vsub.s32 0, %v14064_v4  ;;  %v3557_v59 = vor.u32 %v3556_v26, %v3555_v21  ;;  %v3559_v29 = vshrl.u32 %v15842_v41, %v3547_v30  ;;  %v3561_v63 = vshll.u32 %v15842_v41, %v3546_v55 }
 0x4f7   : > { %v3562_v32 = vshrl.u32 %v15838_v51, %v3547_v30  ;;  %vm2691_vm1 = vcmp.lt.s32.totalorder %v14042_v38, 2  ;;  %vm3564_vm2 = vcmp.lt.s32.totalorder %v3545_v2, 1  ;;  %vm3567_vm3 = vcmp.lt.s32.totalorder %v3545_v2, 4 }
 0x4f8   : > { %v8691_v20 = vmin.u32 %v3182_v7, %v14064_v4  ;;  %v3015_v16 = vand.u32 2139095040, %v14046_v62  ;;  %vm2688_vm4 = vweird.f32 %v13811_v52  ;;  %v3560_v10 = vor.u32 %v3559_v29, %v3558_v24 }
 0x4f9   : > { %v3563_v5 = vor.u32 %v3562_v32, %v3561_v63  ;;  %vm3566_vm5 = vcmp.lt.s32.totalorder %v3545_v2, 3  ;;  %v3569_v47 = vsel %vm3567_vm3, %v3557_v59, 2102212464  ;;  %v6982_v18 = vadd.f32 1.0, %v2283_v42 }
 0x4fa   : > { %v3184_v1 = vclz %v8691_v20  ;;  %vm3565_vm6 = vcmp.lt.s32.totalorder %v3545_v2, 2  ;;  %v3568_v45 = vsel %vm3564_vm2, %v3548_v56, %v3551_v40  ;;  %v3570_v23 = vsel %vm3566_vm5, %v3554_v27, %v3569_v47 }
 0x4fb   : > { %v3572_v28 = vsel %vm3564_vm2, %v3551_v40, %v3554_v27  ;;  %v3573_v9 = vsel %vm3567_vm3, %v3560_v10, 920167782  ;;  %v3576_v6 = vsel %vm3564_vm2, %v3554_v27, %v3557_v59  ;;  %vm3118_vm7 = vcmp.lt.s32.totalorder %v13884_v50, 0 }
 0x4fc   : > { %v8692_v0 = vadd.s32 4294967294, %v3184_v1  ;;  %v3574_v13 = vsel %vm3566_vm5, %v3557_v59, %v3573_v9  ;;  %v3577_v57 = vsel %vm3567_vm3, %v3563_v5, 1326507024  ;;  %v14090_v37 = vand.u32 8388607, %v3012_v11 }
 0x4fd   : > { %v3571_v60 = vsel %vm3565_vm6, %v3568_v45, %v3570_v23  ;;  %v3575_v44 = vsel %vm3565_vm6, %v3572_v28, %v3574_v13  ;;  %v3578_v17 = vsel %vm3566_vm5, %v3560_v10, %v3577_v57  ;;  %v3016_v22 = vshrl.u32 %v3015_v16, 23 }
 0x4fe   : > { %v9878_v19 = vpop.eup %9877  ;;  %vm8693_vm8 = vcmp.lt.s32.totalorder %v8692_v0, 0  ;;  %v3579_v54 = vsel %vm3565_vm6, %v3576_v6, %v3578_v17  ;;  %v14097_v55 = vmul.u32.u64.low %v14051_v36, %v3575_v44  ;;  %v14098_v46 = vmul.u32.u64.high %v14051_v36, %v3575_v44, %v14097_v55  ;;  %v210_v6 = vld [vmem:[%s10310_s3 + $0xf0] sm:$0xff] }
 0x4ff   : > { %v9880_v15 = vpop.eup %9879  ;;  %v2696_v30 = vxor.u32 2147483648, %v9878_v19  ;;  %v3187_v43 = vsel %vm8693_vm8, 0, %v8692_v0  ;;  %v14101_v14 = vmul.u32.u64.low %v14051_v36, %v3579_v54  ;;  %v14102_v25 = vmul.u32.u64.high %v14051_v36, %v3579_v54, %v14101_v14 }
 0x500   : > { %v2693_v61 = vxor.u32 2147483648, %v9880_v15  ;;  %v3188_v53 = vsub.s32 32, %v3187_v43  ;;  %v3189_v49 = vshll.u32 %v14064_v4, %v3187_v43  ;;  %v3192_v8 = vsub.s32 4294967266, %v3187_v43 }
 0x501   : > { %v2697_v21 = vsel %vm2695_vm0, %v2696_v30, %v9880_v15  ;;  %v3202_v2 = vsub.s32 4, %v14044_v48  ;;  %v3587_v26 = vmul.u32 %v14051_v36, %v3571_v60  ;;  %v8686_v42 = vadd.s32 4294967169, %v3016_v22 }
 0x502   : > { %v2694_v56 = vsel %vm2692_vm14, %v9878_v19, %v2693_v61  ;;  %v3190_v7 = vshrl.u32 %v14049_v12, %v3188_v53  ;;  %v3193_v40 = vadd.s32 127, %v3192_v8  ;;  %v3590_v27 = vadd.s32 1, %v14098_v46 }
 0x503   : > { %v2698_v4 = vsel %vm2691_vm1, %v2694_v56, %v2697_v21  ;;  %v7064_v24 = vmul.f32 1.442695, %v6982_v18  ;;  %vm3589_vm9 = vc.u32 %v14102_v25, %v14097_v55  ;;  %v3022_v59 = vadd.s32 1, %v8686_v42 }
 0x504   : > { %v2699_v29 = vsel %vm2688_vm4, nan, %v2698_v4  ;;  %v3191_v36 = vor.u32 %v3190_v7, %v3189_v49  ;;  %v3194_v63 = vshll.u32 %v3193_v40, 23  ;;  %v3591_v32 = vsel %vm3589_vm9, %v3590_v27, %v14098_v46 }
 0x505   : > { %v6986_v20 = vadd.f32 1.0, %v2699_v29  ;;  %v3203_v12 = vsel %vm3118_vm7, %v3202_v2, %v14044_v48  ;;  %v3592_v16 = vadd.s32 %v3591_v32, %v3587_v26  ;;  %vm3023_vm10 = vcmp.gt.s32.totalorder %v3022_v59, 0 }
 0x506   : > { %vm14124_vm11 = vcmp.le.f32.partialorder %v3116_v58, 0.7853982  ;;  %v3195_v52 = vor.u32 4788187, %v3194_v63  ;;  %v3198_v10 = vcvt.s32.f32 %v3191_v36  ;;  %v3024_v5 = vsel %vm3023_vm10, %v3022_v59, 0 }
 0x507   : > { %9881 = vpow2.f32 %v7064_v24  ;;  %v7072_v47 = vmul.f32 1.442695, %v6986_v20  ;;  %v3593_v18 = vadd.s32 536870912, %v3592_v16  ;;  %v3026_v1 = vand.u32 31, %v3024_v5 }
 0x508   : > { %v3196_v45 = vand.u32 2147483647, %v3195_v52  ;;  %v3205_v48 = vsel %vm14124_vm11, 0, %v3203_v12  ;;  %v3020_v28 = vor.u32 8388608, %v14090_v37  ;;  %v3025_v0 = vshrl.u32 %v3024_v5, 5 }
 0x509   : > { %9883 = vpow2.f32 %v7072_v47  ;;  %v14130_v23 = vshrl.u32 %v3593_v18, 30  ;;  %v3027_v58 = vsub.s32 32, %v3026_v1  ;;  %v3029_v13 = vshll.u32 %v15844_v31, %v3026_v1 }
 0x50a   : > { %v3199_v9 = vmul.f32 %v3198_v10, %v3196_v45  ;;  %v3032_v57 = vshll.u32 %v15831_v33, %v3026_v1  ;;  %v3035_v17 = vshll.u32 %v15833_v35, %v3026_v1  ;;  %v3038_v22 = vshll.u32 %v15835_v39, %v3026_v1 }
 0x50b   : > { %v3595_v60 = vshll.u32 %v14130_v23, 30  ;;  %v3030_v44 = vshrl.u32 %v15831_v33, %v3027_v58  ;;  %v3033_v54 = vshrl.u32 %v15833_v35, %v3027_v58  ;;  %v3036_v37 = vshrl.u32 %v15835_v39, %v3027_v58 }
 0x50c   : > { %v3200_v19 = vxor.u32 2147483648, %v3199_v9  ;;  %v3039_v46 = vshrl.u32 %v15842_v41, %v3027_v58  ;;  %v14143_v15 = vadd.s32 3, %v3205_v48  ;;  %v3588_v30 = vadd.s32 %v14097_v55, %v14102_v25 }
 0x50d   : > { %v14146_v43 = vsub.s32 %v3592_v16, %v3595_v60  ;;  %v14148_v14 = vmul.f32 %v210_v6, %v210_v6  ;;  %v3028_v53 = vshrl.u32 %v15844_v31, %v3027_v58  ;;  %v3041_v49 = vshll.u32 %v15842_v41, %v3026_v1 }
 0x50e   : > { %v3201_v61 = vsel %vm3118_vm7, %v3200_v19, %v3199_v9  ;;  %v14154_v8 = vshll.u32 %v3020_v28, 8  ;;  %vm3534_vm12 = vcmp.lt.s32.totalorder %v13974_v34, 0  ;;  %v3031_v25 = vor.u32 %v3030_v44, %v3029_v13 }
 0x50f   : > { %v3204_v21 = vsel %vm14124_vm11, %v13884_v50, %v3201_v61  ;;  %v3598_v55 = vsub.s32 0, %v14146_v43  ;;  %v3034_v2 = vor.u32 %v3033_v54, %v3032_v57  ;;  %v3037_v26 = vor.u32 %v3036_v37, %v3035_v17 }
 0x510   : > { %v3040_v42 = vor.u32 %v3039_v46, %v3038_v22  ;;  %v3042_v56 = vshrl.u32 %v15838_v51, %v3027_v58  ;;  %vm3044_vm13 = vcmp.lt.s32.totalorder %v3025_v0, 1  ;;  %9885 = vcosq.f32 %v3204_v21 }
 0x511   : > { %v9882_v7 = vpop.eup %9881  ;;  %v8707_v40 = vmin.u32 %v3598_v55, %v14146_v43  ;;  %v3618_v27 = vsub.s32 4, %v14130_v23  ;;  %v3431_v4 = vand.u32 2139095040, %v14148_v14  ;;  %9887 = vsinq.f32 %v3204_v21 }
 0x512   : > { %v3043_v24 = vor.u32 %v3042_v56, %v3041_v49  ;;  %vm3046_vm15 = vcmp.lt.s32.totalorder %v3025_v0, 3  ;;  %vm3047_vm0 = vcmp.lt.s32.totalorder %v3025_v0, 4  ;;  %vm3045_vm14 = vcmp.lt.s32.totalorder %v3025_v0, 2 }
 0x513   : > { %v9884_v59 = vpop.eup %9883  ;;  %v3600_v29 = vclz %v8707_v40  ;;  %v3048_v36 = vsel %vm3044_vm13, %v3028_v53, %v3031_v25  ;;  %v3052_v63 = vsel %vm3044_vm13, %v3031_v25, %v3034_v2  ;;  %v3049_v20 = vsel %vm3047_vm0, %v3037_v26, 2102212464 }
 0x514   : > { %v7166_v32 = vpack.c.bf16 %v9884_v59, %v9882_v7  ;;  %v3053_v12 = vsel %vm3047_vm0, %v3040_v42, 920167782  ;;  %v3056_v16 = vsel %vm3044_vm13, %v3034_v2, %v3037_v26  ;;  %v3050_v52 = vsel %vm3046_vm15, %v3034_v2, %v3049_v20 }
 0x515   : > { %v8708_v38 = vadd.s32 4294967294, %v3600_v29  ;;  %v3054_v10 = vsel %vm3046_vm15, %v3037_v26, %v3053_v12  ;;  %v3057_v5 = vsel %vm3047_vm0, %v3043_v24, 1326507024  ;;  %v3051_v47 = vsel %vm3045_vm14, %v3048_v36, %v3050_v52  ;;  %v215_v26 = vld [vmem:[%s10310_s3 + $0x118] sm:$0xff] }
 0x516   : > { %8122 = vmatmul.mubr.bf16.gmra.mrb[8].mxu0 %v7166_v32  ;;  %8348 = vmatmul.mubr.bf16.gmra.mrb[8].mxu1 %v7166_v32  ;;  %v3055_v18 = vsel %vm3045_vm14, %v3052_v63, %v3054_v10  ;;  %v3058_v1 = vsel %vm3046_vm15, %v3040_v42, %v3057_v5  ;;  %v3432_v45 = vshrl.u32 %v3431_v4, 23  ;;  %v3619_v6 = vsel %vm3534_vm12, %v3618_v27, %v14130_v23 }
 0x517   : > { %vm8709_vm1 = vcmp.lt.s32.totalorder %v8708_v38, 0  ;;  %v3059_v48 = vsel %vm3045_vm14, %v3056_v16, %v3058_v1  ;;  %v14175_v28 = vmul.u32.u64.low %v14154_v8, %v3055_v18  ;;  %v14176_v58 = vmul.u32.u64.high %v14154_v8, %v3055_v18, %v14175_v28 }
 0x518   : > { %v3603_v9 = vsel %vm8709_vm1, 0, %v8708_v38  ;;  %v14183_v13 = vmul.u32.u64.low %v14154_v8, %v3059_v48  ;;  %v14184_v57 = vmul.u32.u64.high %v14154_v8, %v3059_v48, %v14183_v13  ;;  %v8702_v0 = vadd.s32 4294967169, %v3432_v45 }
 0x519   : > { %v3604_v60 = vsub.s32 32, %v3603_v9  ;;  %v3605_v44 = vshll.u32 %v14146_v43, %v3603_v9  ;;  %v3608_v17 = vsub.s32 4294967266, %v3603_v9  ;;  %vm14189_vm2 = vcmp.le.f32.partialorder %v3532_v3, 0.7853982 }
 0x51a   : > { %v3067_v19 = vmul.u32 %v14154_v8, %v3051_v47  ;;  %v9886_v54 = vpop.eup %9885  ;;  %v3621_v46 = vsel %vm14189_vm2, 0, %v3619_v6  ;;  %v3070_v61 = vadd.s32 1, %v14176_v58  ;;  %v3210_v53 = vand.u32 3, %v14143_v15 }
 0x51b   : > { %v3606_v37 = vshrl.u32 %v3588_v30, %v3604_v60  ;;  %v3609_v23 = vadd.s32 127, %v3608_v17  ;;  %v9888_v43 = vpop.eup %9887  ;;  %vm3069_vm3 = vc.u32 %v14184_v57, %v14175_v28  ;;  %v3438_v3 = vadd.s32 1, %v8702_v0 }
 0x51c   : > { %v3071_v8 = vsel %vm3069_vm3, %v3070_v61, %v14176_v58  ;;  %v3428_v30 = vand.u32 2147483647, %v14148_v14  ;;  %v3216_v55 = vxor.u32 2147483648, %v9886_v54  ;;  %v3625_v25 = vadd.s32 3, %v3621_v46 }
 0x51d   : > { %v3607_v49 = vor.u32 %v3606_v37, %v3605_v44  ;;  %v3610_v21 = vshll.u32 %v3609_v23, 23  ;;  %v3072_v2 = vadd.s32 %v3071_v8, %v3067_v19  ;;  %vm3439_vm4 = vcmp.gt.s32.totalorder %v3438_v3, 0 }
 0x51e   : > { %v3213_v42 = vxor.u32 2147483648, %v9888_v43  ;;  %v3440_v40 = vsel %vm3439_vm4, %v3438_v3, 0  ;;  %vm3212_vm5 = vcmp.eq.s32.totalorder %v3210_v53, 0  ;;  %vm3215_vm6 = vcmp.eq.s32.totalorder %v3210_v53, 2 }
 0x51f   : > { %v3611_v56 = vor.u32 4788187, %v3610_v21  ;;  %v3614_v7 = vcvt.s32.f32 %v3607_v49  ;;  %v3073_v15 = vadd.s32 536870912, %v3072_v2  ;;  %v3442_v27 = vand.u32 31, %v3440_v40 }
 0x520   : > { %vm3208_vm7 = vweird.f32 %v13884_v50  ;;  %vm3211_vm8 = vcmp.lt.s32.totalorder %v3210_v53, 2  ;;  %v14204_v24 = vmul.f32 %v215_v26, %v215_v26  ;;  %v14206_v59 = vand.u32 3, %v3625_v25 }
 0x521   : > { %v3612_v4 = vand.u32 2147483647, %v3611_v56  ;;  %v14208_v29 = vshrl.u32 %v3073_v15, 30  ;;  %v3435_v36 = vand.u32 8388607, %v3428_v30  ;;  %v3443_v63 = vsub.s32 32, %v3442_v27 }
 0x522   : > { %v3214_v32 = vsel %vm3212_vm5, %v9886_v54, %v3213_v42  ;;  %v3217_v20 = vsel %vm3215_vm6, %v3216_v55, %v9888_v43  ;;  %v3445_v16 = vshll.u32 %v15844_v31, %v3442_v27  ;;  %v3448_v10 = vshll.u32 %v15831_v33, %v3442_v27 }
 0x523   : > { %v3615_v12 = vmul.f32 %v3614_v7, %v3612_v4  ;;  %v3075_v38 = vshll.u32 %v14208_v29, 30  ;;  %v3446_v52 = vshrl.u32 %v15831_v33, %v3443_v63  ;;  %v3451_v5 = vshll.u32 %v15833_v35, %v3442_v27 }
 0x524   : > { %v3449_v18 = vshrl.u32 %v15833_v35, %v3443_v63  ;;  %v3452_v1 = vshrl.u32 %v15835_v39, %v3443_v63  ;;  %v3454_v45 = vshll.u32 %v15835_v39, %v3442_v27  ;;  %v3436_v58 = vor.u32 8388608, %v3435_v36 }
 0x525   : > { %v3616_v47 = vxor.u32 2147483648, %v3615_v12  ;;  %v14220_v48 = vsub.s32 %v3072_v2, %v3075_v38  ;;  %v3441_v9 = vshrl.u32 %v3440_v40, 5  ;;  %v3455_v6 = vshrl.u32 %v15842_v41, %v3443_v63 }
 0x526   : > { %v3218_v13 = vsel %vm3211_vm8, %v3214_v32, %v3217_v20  ;;  %v3444_v44 = vshrl.u32 %v15844_v31, %v3443_v63  ;;  %v3447_v17 = vor.u32 %v3446_v52, %v3445_v16  ;;  %v3450_v54 = vor.u32 %v3449_v18, %v3448_v10 }
 0x527   : > { %v3617_v60 = vsel %vm3534_vm12, %v3616_v47, %v3615_v12  ;;  %v3078_v19 = vsub.s32 0, %v14220_v48  ;;  %v3453_v37 = vor.u32 %v3452_v1, %v3451_v5  ;;  %v3456_v23 = vor.u32 %v3455_v6, %v3454_v45 }
 0x528   : > { %v3620_v0 = vsel %vm14189_vm2, %v13974_v34, %v3617_v60  ;;  %v3457_v46 = vshll.u32 %v15842_v41, %v3442_v27  ;;  %v3458_v61 = vshrl.u32 %v15838_v51, %v3443_v63  ;;  %v3068_v43 = vadd.s32 %v14175_v28, %v14184_v57 }
 0x529   : > { %9889 = vcosq.f32 %v3620_v0  ;;  %v8687_v53 = vmin.u32 %v3078_v19, %v14220_v48  ;;  %vm3460_vm9 = vcmp.lt.s32.totalorder %v3441_v9, 1  ;;  %vm3462_vm10 = vcmp.lt.s32.totalorder %v3441_v9, 3 }
 0x52a   : > { %9891 = vsinq.f32 %v3620_v0  ;;  %v3459_v3 = vor.u32 %v3458_v61, %v3457_v46  ;;  %vm3463_vm11 = vcmp.lt.s32.totalorder %v3441_v9, 4  ;;  %v3476_v22 = vshll.u32 %v3436_v58, 8  ;;  %v219_v61 = vld [vmem:[%s10310_s3 + $0x138] sm:$0xff] }
 0x52b   : > { %v3219_v49 = vsel %vm3208_vm7, nan, %v3218_v13  ;;  %vm3628_vm12 = vcmp.eq.s32.totalorder %v14206_v59, 0  ;;  %vm3014_vm13 = vcmp.lt.s32.totalorder %v14046_v62, 0  ;;  %v3080_v21 = vclz %v8687_v53 }
 0x52c   : > { %vm3461_vm15 = vcmp.lt.s32.totalorder %v3441_v9, 2  ;;  %v3464_v8 = vsel %vm3460_vm9, %v3444_v44, %v3447_v17  ;;  %vm3627_vm0 = vcmp.lt.s32.totalorder %v14206_v59, 2  ;;  %v3465_v28 = vsel %vm3463_vm11, %v3453_v37, 2102212464 }
 0x52d   : > { %v3468_v57 = vsel %vm3460_vm9, %v3447_v17, %v3450_v54  ;;  %v3469_v55 = vsel %vm3463_vm11, %v3456_v23, 920167782  ;;  %v3472_v25 = vsel %vm3460_vm9, %v3450_v54, %v3453_v37  ;;  %vm3624_vm14 = vweird.f32 %v13974_v34 }
 0x52e   : > { %v8688_v2 = vadd.s32 4294967294, %v3080_v21  ;;  %v3466_v50 = vsel %vm3462_vm10, %v3450_v54, %v3465_v28  ;;  %v3470_v26 = vsel %vm3462_vm10, %v3453_v37, %v3469_v55  ;;  %v3473_v42 = vsel %vm3463_vm11, %v3459_v3, 1326507024 }
 0x52f   : > { %vm14249_vm1 = vcmp.le.f32.partialorder %v3012_v11, 0.7853982  ;;  %v3467_v7 = vsel %vm3461_vm15, %v3464_v8, %v3466_v50  ;;  %v3471_v40 = vsel %vm3461_vm15, %v3468_v57, %v3470_v26  ;;  %v3474_v15 = vsel %vm3462_vm10, %v3456_v23, %v3473_v42 }
 0x530   : > { %v3951_v27 = vand.u32 2139095040, %v14204_v24  ;;  %vm8689_vm2 = vcmp.lt.s32.totalorder %v8688_v2, 0  ;;  %v3475_v4 = vsel %vm3461_vm15, %v3472_v25, %v3474_v15  ;;  %v3098_v11 = vsub.s32 4, %v14208_v29 }
 0x531   : > { %v14258_v36 = vmul.u32.u64.low %v3476_v22, %v3471_v40  ;;  %v14259_v63 = vmul.u32.u64.high %v3476_v22, %v3471_v40, %v14258_v36  ;;  %v3083_v32 = vsel %vm8689_vm2, 0, %v8688_v2  ;;  %vm3631_vm3 = vcmp.eq.s32.totalorder %v14206_v59, 2 }
 0x532   : > { %v14263_v20 = vmul.u32.u64.low %v3476_v22, %v3475_v4  ;;  %v14264_v12 = vmul.u32.u64.high %v3476_v22, %v3475_v4, %v14263_v20  ;;  %v3084_v16 = vsub.s32 32, %v3083_v32  ;;  %v3085_v38 = vshll.u32 %v14220_v48, %v3083_v32 }
 0x533   : > { %v3088_v52 = vsub.s32 4294967266, %v3083_v32  ;;  %v3952_v10 = vshrl.u32 %v3951_v27, 23  ;;  %v9890_v5 = vpop.eup %9889  ;;  %v6991_v47 = vadd.f32 1.0, %v3219_v49  ;;  %v3483_v18 = vmul.u32 %v3476_v22, %v3467_v7 }
 0x534   : > { %v3948_v1 = vand.u32 2147483647, %v14204_v24  ;;  %v9892_v45 = vpop.eup %9891  ;;  %v3632_v58 = vxor.u32 2147483648, %v9890_v5  ;;  %v3086_v9 = vshrl.u32 %v3068_v43, %v3084_v16  ;;  %v3486_v13 = vadd.s32 1, %v14259_v63 }
 0x535   : > { %v3089_v6 = vadd.s32 127, %v3088_v52  ;;  %v3629_v60 = vxor.u32 2147483648, %v9892_v45  ;;  %v3099_v48 = vsel %vm3014_vm13, %v3098_v11, %v14208_v29  ;;  %vm3485_vm4 = vc.u32 %v14264_v12, %v14258_v36 }
 0x536   : > { %v8722_v44 = vadd.s32 4294967169, %v3952_v10  ;;  %v3633_v17 = vsel %vm3631_vm3, %v3632_v58, %v9892_v45  ;;  %v3087_v0 = vor.u32 %v3086_v9, %v3085_v38  ;;  %v3487_v54 = vsel %vm3485_vm4, %v3486_v13, %v14259_v63 }
 0x537   : > { %v3090_v19 = vshll.u32 %v3089_v6, 23  ;;  %v3630_v37 = vsel %vm3628_vm12, %v9890_v5, %v3629_v60  ;;  %v7082_v23 = vmul.f32 1.442695, %v6991_v47  ;;  %v3488_v46 = vadd.s32 %v3487_v54, %v3483_v18 }
 0x538   : > { %v3958_v43 = vadd.s32 1, %v8722_v44  ;;  %v3634_v53 = vsel %vm3627_vm0, %v3630_v37, %v3633_v17  ;;  %v3094_v3 = vcvt.s32.f32 %v3087_v0  ;;  %v3101_v22 = vsel %vm14249_vm1, 0, %v3099_v48 }
 0x539   : > { %v3091_v29 = vor.u32 4788187, %v3090_v19  ;;  %v3635_v49 = vsel %vm3624_vm14, nan, %v3634_v53  ;;  %v3489_v21 = vadd.s32 536870912, %v3488_v46  ;;  %v3955_v8 = vand.u32 8388607, %v3948_v1 }
 0x53a   : > { %vm3959_vm5 = vcmp.gt.s32.totalorder %v3958_v43, 0  ;;  %v6995_v28 = vadd.f32 1.0, %v3635_v49  ;;  %v14287_v55 = vmul.f32 %v219_v61, %v219_v61  ;;  %9893 = vpow2.f32 %v7082_v23 }
 0x53b   : > { %v3092_v57 = vand.u32 2147483647, %v3091_v29  ;;  %v3960_v25 = vsel %vm3959_vm5, %v3958_v43, 0  ;;  %v3490_v59 = vshrl.u32 %v3489_v21, 30  ;;  %v14289_v42 = vadd.s32 3, %v3101_v22 }
 0x53c   : > { %v3962_v2 = vand.u32 31, %v3960_v25  ;;  %v7090_v50 = vmul.f32 1.442695, %v6995_v28  ;;  %v3956_v34 = vor.u32 8388608, %v3955_v8  ;;  %v4364_v15 = vand.u32 2147483647, %v14287_v55 }
 0x53d   : > { %v3095_v26 = vmul.f32 %v3094_v3, %v3092_v57  ;;  %v3491_v7 = vshll.u32 %v3490_v59, 30  ;;  %v4367_v63 = vand.u32 2139095040, %v14287_v55  ;;  %v3961_v11 = vshrl.u32 %v3960_v25, 5 }
 0x53e   : > { %v3963_v40 = vsub.s32 32, %v3962_v2  ;;  %9895 = vpow2.f32 %v7090_v50  ;;  %v3965_v4 = vshll.u32 %v15844_v31, %v3962_v2  ;;  %v3968_v16 = vshll.u32 %v15831_v33, %v3962_v2 }
 0x53f   : > { %v3096_v27 = vxor.u32 2147483648, %v3095_v26  ;;  %v14294_v32 = vsub.s32 %v3488_v46, %v3491_v7  ;;  %vm3430_vm6 = vcmp.lt.s32.totalorder %v14148_v14, 0  ;;  %v3971_v10 = vshll.u32 %v15833_v35, %v3962_v2 }
 0x540   : > { %v3966_v20 = vshrl.u32 %v15831_v33, %v3963_v40  ;;  %v3969_v52 = vshrl.u32 %v15833_v35, %v3963_v40  ;;  %v3972_v5 = vshrl.u32 %v15835_v39, %v3963_v40  ;;  %v3484_v18 = vadd.s32 %v14258_v36, %v14264_v12 }
 0x541   : > { %v3097_v38 = vsel %vm3014_vm13, %v3096_v27, %v3095_v26  ;;  %v3494_v45 = vsub.s32 0, %v14294_v32  ;;  %v14310_v58 = vshll.u32 %v3956_v34, 8  ;;  %v3964_v9 = vshrl.u32 %v15844_v31, %v3963_v40 }
 0x542   : > { %v3100_v47 = vsel %vm14249_vm1, %v14046_v62, %v3097_v38  ;;  %v3967_v6 = vor.u32 %v3966_v20, %v3965_v4  ;;  %v3974_v13 = vshll.u32 %v15835_v39, %v3962_v2  ;;  %v4368_v60 = vshrl.u32 %v4367_v63, 23 }
 0x543   : > { %9897 = vcosq.f32 %v3100_v47  ;;  %v8703_v48 = vmin.u32 %v3494_v45, %v14294_v32  ;;  %v3970_v44 = vor.u32 %v3969_v52, %v3968_v16  ;;  %v3975_v56 = vshrl.u32 %v15842_v41, %v3963_v40 }
 0x544   : > { %vm14318_vm7 = vcmp.le.f32.partialorder %v3428_v30, 0.7853982  ;;  %v3973_v12 = vor.u32 %v3972_v5, %v3971_v10  ;;  %v3977_v17 = vshll.u32 %v15842_v41, %v3962_v2  ;;  %v3978_v0 = vshrl.u32 %v15838_v51, %v3963_v40  ;;  %v9894_v37 = vpop.eup %9893 }
 0x545   : > { %vm3980_vm8 = vcmp.lt.s32.totalorder %v3961_v11, 1  ;;  %9899 = vsinq.f32 %v3100_v47  ;;  %v3496_v19 = vclz %v8703_v48  ;;  %v3514_v54 = vsub.s32 4, %v3490_v59 }
 0x546   : > { %vm3981_vm9 = vcmp.lt.s32.totalorder %v3961_v11, 2  ;;  %v3976_v23 = vor.u32 %v3975_v56, %v3974_v13  ;;  %v3979_v46 = vor.u32 %v3978_v0, %v3977_v17  ;;  %vm3982_vm10 = vcmp.lt.s32.totalorder %v3961_v11, 3 }
 0x547   : > { %vm3983_vm11 = vcmp.lt.s32.totalorder %v3961_v11, 4  ;;  %v8704_v61 = vadd.s32 4294967294, %v3496_v19  ;;  %v3984_v30 = vsel %vm3980_vm8, %v3964_v9, %v3967_v6  ;;  %v3988_v53 = vsel %vm3980_vm8, %v3967_v6, %v3970_v44 }
 0x548   : > { %v3985_v43 = vsel %vm3983_vm11, %v3973_v12, 2102212464  ;;  %v9896_v29 = vpop.eup %9895  ;;  %v3989_v22 = vsel %vm3983_vm11, %v3976_v23, 920167782  ;;  %v3992_v49 = vsel %vm3980_vm8, %v3970_v44, %v3973_v12  ;;  %v3993_v21 = vsel %vm3983_vm11, %v3979_v46, 1326507024 }
 0x549   : > { %v3986_v3 = vsel %vm3982_vm10, %v3970_v44, %v3985_v43  ;;  %v7171_v8 = vpack.c.bf16 %v9896_v29, %v9894_v37  ;;  %vm8705_vm12 = vcmp.lt.s32.totalorder %v8704_v61, 0  ;;  %v3515_v28 = vsel %vm3430_vm6, %v3514_v54, %v3490_v59 }
 0x54a   : > { %v3990_v57 = vsel %vm3982_vm10, %v3973_v12, %v3989_v22  ;;  %v3499_v25 = vsel %vm8705_vm12, 0, %v8704_v61  ;;  %v3987_v2 = vsel %vm3981_vm9, %v3984_v30, %v3986_v3  ;;  %v3994_v26 = vsel %vm3982_vm10, %v3976_v23, %v3993_v21 }
 0x54b   : > { %v3991_v50 = vsel %vm3981_vm9, %v3988_v53, %v3990_v57  ;;  %8131 = vmatprep.mubr.bf16.mxu0 %v7171_v8  ;;  %8357 = vmatprep.mubr.bf16.mxu1 %v7171_v8  ;;  %v3500_v7 = vsub.s32 32, %v3499_v25  ;;  %v3501_v34 = vshll.u32 %v14294_v32, %v3499_v25  ;;  %v3504_v40 = vsub.s32 4294967266, %v3499_v25 }
 0x54c   : > { %v3995_v27 = vsel %vm3981_vm9, %v3992_v49, %v3994_v26  ;;  %v14341_v63 = vmul.u32.u64.low %v14310_v58, %v3991_v50  ;;  %v14342_v20 = vmul.u32.u64.high %v14310_v58, %v3991_v50, %v14341_v63  ;;  %v3517_v10 = vsel %vm14318_vm7, 0, %v3515_v28 }
 0x54d   : > { %v14337_v4 = vmul.u32.u64.low %v14310_v58, %v3995_v27  ;;  %v14338_v59 = vmul.u32.u64.high %v14310_v58, %v3995_v27, %v14337_v4  ;;  %v9898_v16 = vpop.eup %9897  ;;  %v3502_v38 = vshrl.u32 %v3484_v18, %v3500_v7  ;;  %v3505_v52 = vadd.s32 127, %v3504_v40 }
 0x54e   : > { %v8738_v5 = vadd.s32 4294967169, %v4368_v60  ;;  %v3106_v32 = vand.u32 3, %v14289_v42  ;;  %v4003_v9 = vmul.u32 %v14310_v58, %v3987_v2  ;;  %v3521_v13 = vadd.s32 3, %v3517_v10  ;;  %v214_v58 = vld [vmem:[%s10310_s3 + $0x110] sm:$0xff] }
 0x54f   : > { %v9900_v11 = vpop.eup %9899  ;;  %v3503_v47 = vor.u32 %v3502_v38, %v3501_v34  ;;  %v3506_v45 = vshll.u32 %v3505_v52, 23  ;;  %vm4005_vm13 = vc.u32 %v14338_v59, %v14341_v63  ;;  %v4006_v18 = vadd.s32 1, %v14342_v20 }
 0x550   : > { %v4374_v6 = vadd.s32 1, %v8738_v5  ;;  %v4371_v48 = vand.u32 8388607, %v4364_v15  ;;  %v3112_v44 = vxor.u32 2147483648, %v9898_v16  ;;  %v3109_v42 = vxor.u32 2147483648, %v9900_v11 }
 0x551   : > { %v3507_v60 = vor.u32 4788187, %v3506_v45  ;;  %v3510_v56 = vcvt.s32.f32 %v3503_v47  ;;  %vm3111_vm0 = vcmp.eq.s32.totalorder %v3106_v32, 2  ;;  %v4007_v12 = vsel %vm4005_vm13, %v4006_v18, %v14342_v20 }
 0x552   : > { %vm4375_vm15 = vcmp.gt.s32.totalorder %v4374_v6, 0  ;;  %vm3108_vm14 = vcmp.eq.s32.totalorder %v3106_v32, 0  ;;  %v4008_v19 = vadd.s32 %v4007_v12, %v4003_v9  ;;  %vm3107_vm1 = vcmp.lt.s32.totalorder %v3106_v32, 2 }
 0x553   : > { %v4376_v17 = vsel %vm4375_vm15, %v4374_v6, 0  ;;  %v3508_v0 = vand.u32 2147483647, %v3507_v60  ;;  %v14356_v54 = vand.u32 3, %v3521_v13  ;;  %v4372_v37 = vor.u32 8388608, %v4371_v48 }
 0x554   : > { %v4378_v23 = vand.u32 31, %v4376_v17  ;;  %v3113_v46 = vsel %vm3111_vm0, %v3112_v44, %v9900_v11  ;;  %v4009_v30 = vadd.s32 536870912, %v4008_v19  ;;  %v14358_v43 = vmul.f32 %v214_v58, %v214_v58 }
 0x555   : > { %v3511_v61 = vmul.f32 %v3510_v56, %v3508_v0  ;;  %v3110_v53 = vsel %vm3108_vm14, %v9898_v16, %v3109_v42  ;;  %v4377_v29 = vshrl.u32 %v4376_v17, 5  ;;  %vm3104_vm2 = vweird.f32 %v14046_v62 }
 0x556   : > { %v4379_v3 = vsub.s32 32, %v4378_v23  ;;  %v4381_v22 = vshll.u32 %v15844_v31, %v4378_v23  ;;  %v14362_v21 = vshrl.u32 %v4009_v30, 30  ;;  %v4384_v8 = vshll.u32 %v15831_v33, %v4378_v23 }
 0x557   : > { %v3512_v49 = vxor.u32 2147483648, %v3511_v61  ;;  %v4390_v28 = vshll.u32 %v15835_v39, %v4378_v23  ;;  %v4387_v2 = vshll.u32 %v15833_v35, %v4378_v23  ;;  %v3114_v26 = vsel %vm3107_vm1, %v3110_v53, %v3113_v46 }
 0x558   : > { %v4382_v57 = vshrl.u32 %v15831_v33, %v4379_v3  ;;  %v4385_v25 = vshrl.u32 %v15833_v35, %v4379_v3  ;;  %v4388_v50 = vshrl.u32 %v15835_v39, %v4379_v3  ;;  %v4011_v34 = vshll.u32 %v14362_v21, 30 }
 0x559   : > { %v3513_v7 = vsel %vm3430_vm6, %v3512_v49, %v3511_v61  ;;  %v4391_v40 = vshrl.u32 %v15842_v41, %v4379_v3  ;;  %v4380_v4 = vshrl.u32 %v15844_v31, %v4379_v3  ;;  %vm4396_vm3 = vcmp.lt.s32.totalorder %v4377_v29, 1 }
 0x55a   : > { %v3516_v27 = vsel %vm14318_vm7, %v14148_v14, %v3513_v7  ;;  %v4383_v20 = vor.u32 %v4382_v57, %v4381_v22  ;;  %v14379_v16 = vsub.s32 %v4008_v19, %v4011_v34  ;;  %v4386_v38 = vor.u32 %v4385_v25, %v4384_v8 }
 0x55b   : > { %9901 = vcosq.f32 %v3516_v27  ;;  %v4392_v52 = vor.u32 %v4391_v40, %v4390_v28  ;;  %v4389_v10 = vor.u32 %v4388_v50, %v4387_v2  ;;  %v4393_v5 = vshll.u32 %v15842_v41, %v4378_v23 }
 0x55c   : > { %9903 = vsinq.f32 %v3516_v27  ;;  %v4394_v32 = vshrl.u32 %v15838_v51, %v4379_v3  ;;  %v4014_v11 = vsub.s32 0, %v14379_v16  ;;  %vm4398_vm4 = vcmp.lt.s32.totalorder %v4377_v29, 3 }
 0x55d   : > { %v4412_v36 = vshll.u32 %v4372_v37, 8  ;;  %v3847_v47 = vand.u32 2139095040, %v14358_v43  ;;  %vm4397_vm5 = vcmp.lt.s32.totalorder %v4377_v29, 2  ;;  %vm4399_vm6 = vcmp.lt.s32.totalorder %v4377_v29, 4 }
 0x55e   : > { %v4395_v45 = vor.u32 %v4394_v32, %v4393_v5  ;;  %v4400_v9 = vsel %vm4396_vm3, %v4380_v4, %v4383_v20  ;;  %v8723_v6 = vmin.u32 %v4014_v11, %v14379_v16  ;;  %v4401_v13 = vsel %vm4399_vm6, %v4389_v10, 2102212464 }
 0x55f   : > { %v4404_v18 = vsel %vm4396_vm3, %v4383_v20, %v4386_v38  ;;  %v4405_v48 = vsel %vm4399_vm6, %v4392_v52, 920167782  ;;  %vm3520_vm7 = vweird.f32 %v14148_v14  ;;  %v4402_v44 = vsel %vm4398_vm4, %v4386_v38, %v4401_v13 }
 0x560   : > { %v4406_v60 = vsel %vm4398_vm4, %v4389_v10, %v4405_v48  ;;  %v4408_v56 = vsel %vm4396_vm3, %v4386_v38, %v4389_v10  ;;  %v4409_v42 = vsel %vm4399_vm6, %v4395_v45, 1326507024  ;;  %vm3523_vm8 = vcmp.lt.s32.totalorder %v14356_v54, 2  ;;  %v218_v45 = vld [vmem:[%s10310_s3 + $0x130] sm:$0xff] }
 0x561   : > { %vm3524_vm9 = vcmp.eq.s32.totalorder %v14356_v54, 0  ;;  %vm3950_vm10 = vcmp.lt.s32.totalorder %v14204_v24, 0  ;;  %v4016_v12 = vclz %v8723_v6  ;;  %v3115_v17 = vsel %vm3104_vm2, nan, %v3114_v26 }
 0x562   : > { %v4403_v58 = vsel %vm4397_vm5, %v4400_v9, %v4402_v44  ;;  %v4407_v0 = vsel %vm4397_vm5, %v4404_v18, %v4406_v60  ;;  %v4410_v19 = vsel %vm4398_vm4, %v4392_v52, %v4409_v42  ;;  %vm14402_vm11 = vcmp.le.f32.partialorder %v3948_v1, 0.7853982 }
 0x563   : > { %v8724_v23 = vadd.s32 4294967294, %v4016_v12  ;;  %v4411_v46 = vsel %vm4397_vm5, %v4408_v56, %v4410_v19  ;;  %v14407_v61 = vmul.u32.u64.low %v4412_v36, %v4407_v0  ;;  %v14408_v30 = vmul.u32.u64.high %v4412_v36, %v4407_v0, %v14407_v61 }
 0x564   : > { %vm3527_vm12 = vcmp.eq.s32.totalorder %v14356_v54, 2  ;;  %v14412_v62 = vmul.u32.u64.low %v4412_v36, %v4411_v46  ;;  %v14413_v53 = vmul.u32.u64.high %v4412_v36, %v4411_v46, %v14412_v62  ;;  %v3848_v3 = vshrl.u32 %v3847_v47, 23 }
 0x565   : > { %v9902_v22 = vpop.eup %9901  ;;  %v6990_v49 = vadd.f32 1.0, %v3115_v17  ;;  %v4004_v1 = vadd.s32 %v14341_v63, %v14338_v59  ;;  %vm8725_vm13 = vcmp.lt.s32.totalorder %v8724_v23, 0  ;;  %v4034_v8 = vsub.s32 4, %v14362_v21 }
 0x566   : > { %v9904_v29 = vpop.eup %9903  ;;  %v3528_v28 = vxor.u32 2147483648, %v9902_v22  ;;  %v4019_v57 = vsel %vm8725_vm13, 0, %v8724_v23  ;;  %v4419_v25 = vmul.u32 %v4412_v36, %v4403_v58  ;;  %v8718_v2 = vadd.s32 4294967169, %v3848_v3 }
 0x567   : > { %v3525_v50 = vxor.u32 2147483648, %v9904_v29  ;;  %v4020_v26 = vsub.s32 32, %v4019_v57  ;;  %v4021_v7 = vshll.u32 %v14379_v16, %v4019_v57  ;;  %v4024_v34 = vsub.s32 4294967266, %v4019_v57 }
 0x568   : > { %v3529_v40 = vsel %vm3527_vm12, %v3528_v28, %v9904_v29  ;;  %vm4421_vm15 = vc.u32 %v14413_v53, %v14407_v61  ;;  %v4422_v59 = vadd.s32 1, %v14408_v30  ;;  %v3844_v63 = vand.u32 2147483647, %v14358_v43 }
 0x569   : > { %v3526_v27 = vsel %vm3524_vm9, %v9902_v22, %v3525_v50  ;;  %v4022_v4 = vshrl.u32 %v4004_v1, %v4020_v26  ;;  %v4025_v20 = vadd.s32 127, %v4024_v34  ;;  %v4035_v16 = vsel %vm3950_vm10, %v4034_v8, %v14362_v21 }
 0x56a   : > { %v3530_v38 = vsel %vm3523_vm8, %v3526_v27, %v3529_v40  ;;  %v7080_v52 = vmul.f32 1.442695, %v6990_v49  ;;  %v4423_v10 = vsel %vm4421_vm15, %v4422_v59, %v14408_v30  ;;  %v3854_v5 = vadd.s32 1, %v8718_v2 }
 0x56b   : > { %v3531_v32 = vsel %vm3520_vm7, nan, %v3530_v38  ;;  %v4023_v11 = vor.u32 %v4022_v4, %v4021_v7  ;;  %v4026_v36 = vshll.u32 %v4025_v20, 23  ;;  %v4424_v47 = vadd.s32 %v4423_v10, %v4419_v25 }
 0x56c   : > { %v6994_v9 = vadd.f32 1.0, %v3531_v32  ;;  %v4037_v6 = vsel %vm14402_vm11, 0, %v4035_v16  ;;  %v3851_v21 = vand.u32 8388607, %v3844_v63  ;;  %vm3855_vm0 = vcmp.gt.s32.totalorder %v3854_v5, 0 }
 0x56d   : > { %v4027_v54 = vor.u32 4788187, %v4026_v36  ;;  %v4030_v13 = vcvt.s32.f32 %v4023_v11  ;;  %v4425_v18 = vadd.s32 536870912, %v4424_v47  ;;  %v3856_v48 = vsel %vm3855_vm0, %v3854_v5, 0 }
 0x56e   : > { %9905 = vpow2.f32 %v7080_v52  ;;  %v7088_v44 = vmul.f32 1.442695, %v6994_v9  ;;  %v14440_v14 = vmul.f32 %v218_v45, %v218_v45  ;;  %v3858_v60 = vand.u32 31, %v3856_v48 }
 0x56f   : > { %v4028_v56 = vand.u32 2147483647, %v4027_v54  ;;  %v14442_v42 = vadd.s32 3, %v4037_v6  ;;  %v4426_v12 = vshrl.u32 %v4425_v18, 30  ;;  %v3852_v46 = vor.u32 8388608, %v3851_v21 }
 0x570   : > { %9907 = vpow2.f32 %v7088_v44  ;;  %v3859_v17 = vsub.s32 32, %v3858_v60  ;;  %v3861_v58 = vshll.u32 %v15844_v31, %v3858_v60  ;;  %v4260_v0 = vand.u32 2147483647, %v14440_v14 }
 0x571   : > { %v4031_v19 = vmul.f32 %v4030_v13, %v4028_v56  ;;  %v4427_v23 = vshll.u32 %v4426_v12, 30  ;;  %v3864_v30 = vshll.u32 %v15831_v33, %v3858_v60  ;;  %v3867_v22 = vshll.u32 %v15833_v35, %v3858_v60 }
 0x572   : > { %v3862_v62 = vshrl.u32 %v15831_v33, %v3859_v17  ;;  %v3865_v3 = vshrl.u32 %v15833_v35, %v3859_v17  ;;  %v3868_v49 = vshrl.u32 %v15835_v39, %v3859_v17  ;;  %v3857_v29 = vshrl.u32 %v3856_v48, 5 }
 0x573   : > { %v4032_v1 = vxor.u32 2147483648, %v4031_v19  ;;  %v14451_v8 = vsub.s32 %v4424_v47, %v4427_v23  ;;  %v3870_v28 = vshll.u32 %v15835_v39, %v3858_v60  ;;  %vm4366_vm14 = vcmp.lt.s32.totalorder %v14287_v55, 0 }
 0x574   : > { %v4420_v57 = vadd.s32 %v14407_v61, %v14413_v53  ;;  %v3860_v25 = vshrl.u32 %v15844_v31, %v3859_v17  ;;  %v3863_v2 = vor.u32 %v3862_v62, %v3861_v58  ;;  %v4263_v50 = vand.u32 2139095040, %v14440_v14 }
 0x575   : > { %v4033_v26 = vsel %vm3950_vm10, %v4032_v1, %v4031_v19  ;;  %v4430_v7 = vsub.s32 0, %v14451_v8  ;;  %v3866_v34 = vor.u32 %v3865_v3, %v3864_v30  ;;  %v3871_v40 = vshrl.u32 %v15842_v41, %v3859_v17 }
 0x576   : > { %v4036_v59 = vsel %vm14402_vm11, %v14204_v24, %v4033_v26  ;;  %v3869_v27 = vor.u32 %v3868_v49, %v3867_v22  ;;  %v3873_v61 = vshll.u32 %v15842_v41, %v3858_v60  ;;  %v3874_v53 = vshrl.u32 %v15838_v51, %v3859_v17 }
 0x577   : > { %vm14470_vm1 = vcmp.le.f32.partialorder %v4364_v15, 0.7853982  ;;  %v8739_v20 = vmin.u32 %v4430_v7, %v14451_v8  ;;  %v3872_v16 = vor.u32 %v3871_v40, %v3870_v28  ;;  %vm3876_vm2 = vcmp.lt.s32.totalorder %v3857_v29, 1 }
 0x578   : > { %v14475_v38 = vshll.u32 %v3852_v46, 8  ;;  %v9906_v52 = vpop.eup %9905  ;;  %9909 = vcosq.f32 %v4036_v59  ;;  %v4450_v37 = vsub.s32 4, %v4426_v12  ;;  %v3875_v10 = vor.u32 %v3874_v53, %v3873_v61 }
 0x579   : > { %v4264_v5 = vshrl.u32 %v4263_v50, 23  ;;  %9911 = vsinq.f32 %v4036_v59  ;;  %v4432_v32 = vclz %v8739_v20  ;;  %vm3877_vm3 = vcmp.lt.s32.totalorder %v3857_v29, 2 }
 0x57a   : > { %vm3878_vm4 = vcmp.lt.s32.totalorder %v3857_v29, 3  ;;  %v9908_v11 = vpop.eup %9907  ;;  %vm3879_vm5 = vcmp.lt.s32.totalorder %v3857_v29, 4  ;;  %v3880_v15 = vsel %vm3876_vm2, %v3860_v25, %v3863_v2  ;;  %v3884_v36 = vsel %vm3876_vm2, %v3863_v2, %v3866_v34 }
 0x57b   : > { %v3888_v47 = vsel %vm3876_vm2, %v3866_v34, %v3869_v27  ;;  %v7170_v45 = vpack.c.bf16 %v9908_v11, %v9906_v52  ;;  %v8740_v9 = vadd.s32 4294967294, %v4432_v32  ;;  %v3881_v6 = vsel %vm3879_vm5, %v3869_v27, 2102212464 }
 0x57c   : > { %v3885_v21 = vsel %vm3879_vm5, %v3872_v16, 920167782  ;;  %v3882_v54 = vsel %vm3878_vm4, %v3866_v34, %v3881_v6  ;;  %v3889_v18 = vsel %vm3879_vm5, %v3875_v10, 1326507024  ;;  %v8734_v48 = vadd.s32 4294967169, %v4264_v5 }
 0x57d   : > { %v3886_v13 = vsel %vm3878_vm4, %v3869_v27, %v3885_v21  ;;  %8132 = vmatmul.mubr.bf16.gmra.mrb[12].mxu0 %v7170_v45  ;;  %8358 = vmatmul.mubr.bf16.gmra.mrb[12].mxu1 %v7170_v45  ;;  %vm8741_vm6 = vcmp.lt.s32.totalorder %v8740_v9, 0  ;;  %v4451_v44 = vsel %vm4366_vm14, %v4450_v37, %v4426_v12  ;;  %v3890_v56 = vsel %vm3878_vm4, %v3872_v16, %v3889_v18 }
 0x57e   : > { %v3887_v60 = vsel %vm3877_vm3, %v3884_v36, %v3886_v13  ;;  %v4435_v17 = vsel %vm8741_vm6, 0, %v8740_v9  ;;  %v3891_v58 = vsel %vm3877_vm3, %v3888_v47, %v3890_v56  ;;  %v3883_v3 = vsel %vm3877_vm3, %v3880_v15, %v3882_v54 }
 0x57f   : > { %v14485_v19 = vmul.u32.u64.low %v14475_v38, %v3887_v60  ;;  %v14486_v23 = vmul.u32.u64.high %v14475_v38, %v3887_v60, %v14485_v19  ;;  %v4436_v46 = vsub.s32 32, %v4435_v17  ;;  %v4437_v30 = vshll.u32 %v14451_v8, %v4435_v17 }
 0x580   : > { %v4440_v62 = vsub.s32 4294967266, %v4435_v17  ;;  %v4453_v12 = vsel %vm14470_vm1, 0, %v4451_v44  ;;  %v14494_v22 = vmul.u32.u64.low %v14475_v38, %v3891_v58  ;;  %v14495_v49 = vmul.u32.u64.high %v14475_v38, %v3891_v58, %v14494_v22 }
 0x581   : > { %v4270_v1 = vadd.s32 1, %v8734_v48  ;;  %v14498_v28 = vand.u32 3, %v14442_v42  ;;  %v4438_v25 = vshrl.u32 %v4420_v57, %v4436_v46  ;;  %v3899_v8 = vmul.u32 %v14475_v38, %v3883_v3  ;;  %v223_v42 = vld [vmem:[%s10310_s3 + $0x158] sm:$0xff] }
 0x582   : > { %v4441_v2 = vadd.s32 127, %v4440_v62  ;;  %v9910_v50 = vpop.eup %9909  ;;  %v3902_v29 = vadd.s32 1, %v14486_v23  ;;  %v4267_v26 = vand.u32 8388607, %v4260_v0  ;;  %v4457_v59 = vadd.s32 3, %v4453_v12 }
 0x583   : > { %vm4271_vm7 = vcmp.gt.s32.totalorder %v4270_v1, 0  ;;  %v9912_v7 = vpop.eup %9911  ;;  %v4439_v34 = vor.u32 %v4438_v25, %v4437_v30  ;;  %vm3901_vm8 = vc.u32 %v14495_v49, %v14485_v19  ;;  %vm4044_vm9 = vcmp.eq.s32.totalorder %v14498_v28, 0 }
 0x584   : > { %v4442_v40 = vshll.u32 %v4441_v2, 23  ;;  %v4272_v27 = vsel %vm4271_vm7, %v4270_v1, 0  ;;  %v3903_v53 = vsel %vm3901_vm8, %v3902_v29, %v14486_v23  ;;  %vm4047_vm10 = vcmp.eq.s32.totalorder %v14498_v28, 2 }
 0x585   : > { %v4446_v61 = vcvt.s32.f32 %v4439_v34  ;;  %v4048_v20 = vxor.u32 2147483648, %v9910_v50  ;;  %v3904_v16 = vadd.s32 %v3903_v53, %v3899_v8  ;;  %v4274_v38 = vand.u32 31, %v4272_v27 }
 0x586   : > { %v4443_v57 = vor.u32 4788187, %v4442_v40  ;;  %vm4043_vm11 = vcmp.lt.s32.totalorder %v14498_v28, 2  ;;  %v14511_v37 = vand.u32 3, %v4457_v59  ;;  %v4268_v10 = vor.u32 8388608, %v4267_v26 }
 0x587   : > { %v14513_v5 = vmul.f32 %v223_v42, %v223_v42  ;;  %v4045_v32 = vxor.u32 2147483648, %v9912_v7  ;;  %v3905_v11 = vadd.s32 536870912, %v3904_v16  ;;  %v4273_v15 = vshrl.u32 %v4272_v27, 5 }
 0x588   : > { %v4444_v52 = vand.u32 2147483647, %v4443_v57  ;;  %v4275_v36 = vsub.s32 32, %v4274_v38  ;;  %v4277_v45 = vshll.u32 %v15844_v31, %v4274_v38  ;;  %v4280_v9 = vshll.u32 %v15831_v33, %v4274_v38 }
 0x589   : > { %v4286_v6 = vshll.u32 %v15835_v39, %v4274_v38  ;;  %vm4040_vm12 = vweird.f32 %v14204_v24  ;;  %v4049_v21 = vsel %vm4047_vm10, %v4048_v20, %v9912_v7  ;;  %v14521_v54 = vshrl.u32 %v3905_v11, 30 }
 0x58a   : > { %v4447_v47 = vmul.f32 %v4446_v61, %v4444_v52  ;;  %v4278_v13 = vshrl.u32 %v15831_v33, %v4275_v36  ;;  %v4283_v18 = vshll.u32 %v15833_v35, %v4274_v38  ;;  %v4281_v44 = vshrl.u32 %v15833_v35, %v4275_v36 }
 0x58b   : > { %v4284_v60 = vshrl.u32 %v15835_v39, %v4275_v36  ;;  %v4287_v56 = vshrl.u32 %v15842_v41, %v4275_v36  ;;  %v4046_v17 = vsel %vm4044_vm9, %v9910_v50, %v4045_v32  ;;  %v3907_v58 = vshll.u32 %v14521_v54, 30 }
 0x58c   : > { %v4448_v48 = vxor.u32 2147483648, %v4447_v47  ;;  %v4276_v23 = vshrl.u32 %v15844_v31, %v4275_v36  ;;  %vm4292_vm13 = vcmp.lt.s32.totalorder %v4273_v15, 1  ;;  %v4279_v30 = vor.u32 %v4278_v13, %v4277_v45 }
 0x58d   : > { %v4282_v62 = vor.u32 %v4281_v44, %v4280_v9  ;;  %v4288_v3 = vor.u32 %v4287_v56, %v4286_v6  ;;  %v14537_v22 = vsub.s32 %v3904_v16, %v3907_v58  ;;  %v4285_v1 = vor.u32 %v4284_v60, %v4283_v18 }
 0x58e   : > { %v4449_v46 = vsel %vm4366_vm14, %v4448_v48, %v4447_v47  ;;  %v4289_v25 = vshll.u32 %v15842_v41, %v4274_v38  ;;  %v4290_v2 = vshrl.u32 %v15838_v51, %v4275_v36  ;;  %vm4294_vm15 = vcmp.lt.s32.totalorder %v4273_v15, 3 }
 0x58f   : > { %v4452_v12 = vsel %vm14470_vm1, %v14287_v55, %v4449_v46  ;;  %vm4295_vm0 = vcmp.lt.s32.totalorder %v4273_v15, 4  ;;  %v3910_v50 = vsub.s32 0, %v14537_v22  ;;  %vm4293_vm14 = vcmp.lt.s32.totalorder %v4273_v15, 2 }
 0x590   : > { %9913 = vcosq.f32 %v4452_v12  ;;  %v4308_v8 = vshll.u32 %v4268_v10, 8  ;;  %v4291_v29 = vor.u32 %v4290_v2, %v4289_v25  ;;  %v4297_v26 = vsel %vm4295_vm0, %v4285_v1, 2102212464 }
 0x591   : > { %9915 = vsinq.f32 %v4452_v12  ;;  %v4300_v4 = vsel %vm4292_vm13, %v4279_v30, %v4282_v62  ;;  %v4301_v7 = vsel %vm4295_vm0, %v4288_v3, 920167782  ;;  %v4050_v34 = vsel %vm4043_vm11, %v4046_v17, %v4049_v21 }
 0x592   : > { %v8719_v40 = vmin.u32 %v3910_v50, %v14537_v22  ;;  %v4296_v59 = vsel %vm4292_vm13, %v4276_v23, %v4279_v30  ;;  %v4302_v27 = vsel %vm4294_vm15, %v4285_v1, %v4301_v7  ;;  %v4298_v42 = vsel %vm4294_vm15, %v4282_v62, %v4297_v26 }
 0x593   : > { %v4303_v57 = vsel %vm4293_vm14, %v4300_v4, %v4302_v27  ;;  %v4304_v61 = vsel %vm4292_vm13, %v4282_v62, %v4285_v1  ;;  %v4305_v53 = vsel %vm4295_vm0, %v4291_v29, 1326507024  ;;  %vm4456_vm1 = vweird.f32 %v14287_v55  ;;  %v227_v29 = vld [vmem:[%s10310_s3 + $0x178] sm:$0xff] }
 0x594   : > { %vm4459_vm2 = vcmp.lt.s32.totalorder %v14511_v37, 2  ;;  %vm3846_vm3 = vcmp.lt.s32.totalorder %v14358_v43, 0  ;;  %v3912_v28 = vclz %v8719_v40  ;;  %v4051_v20 = vsel %vm4040_vm12, nan, %v4050_v34 }
 0x595   : > { %vm14561_vm4 = vcmp.le.f32.partialorder %v3844_v63, 0.7853982  ;;  %v4306_v38 = vsel %vm4294_vm15, %v4288_v3, %v4305_v53  ;;  %v14566_v52 = vmul.u32.u64.low %v4308_v8, %v4303_v57  ;;  %v14567_v10 = vmul.u32.u64.high %v4308_v8, %v4303_v57, %v14566_v52 }
 0x596   : > { %vm4460_vm5 = vcmp.eq.s32.totalorder %v14511_v37, 0  ;;  %v8720_v32 = vadd.s32 4294967294, %v3912_v28  ;;  %v4299_v11 = vsel %vm4293_vm14, %v4296_v59, %v4298_v42  ;;  %v4307_v24 = vsel %vm4293_vm14, %v4304_v61, %v4306_v38 }
 0x597   : > { %v3930_v36 = vsub.s32 4, %v14521_v54  ;;  %v14574_v47 = vmul.u32.u64.low %v4308_v8, %v4307_v24  ;;  %v14575_v63 = vmul.u32.u64.high %v4308_v8, %v4307_v24, %v14574_v47  ;;  %v4783_v45 = vand.u32 2139095040, %v14513_v5 }
 0x598   : > { %vm4463_vm6 = vcmp.eq.s32.totalorder %v14511_v37, 2  ;;  %v6999_v9 = vadd.f32 1.0, %v4051_v20  ;;  %v3900_v6 = vadd.s32 %v14485_v19, %v14495_v49  ;;  %vm8721_vm7 = vcmp.lt.s32.totalorder %v8720_v32, 0 }
 0x599   : > { %v3915_v13 = vsel %vm8721_vm7, 0, %v8720_v32  ;;  %v4315_v18 = vmul.u32 %v4308_v8, %v4299_v11  ;;  %v4318_v15 = vadd.s32 1, %v14567_v10  ;;  %v4784_v48 = vshrl.u32 %v4783_v45, 23 }
 0x59a   : > { %v9914_v21 = vpop.eup %9913  ;;  %v3916_v56 = vsub.s32 32, %v3915_v13  ;;  %v3917_v17 = vshll.u32 %v14537_v22, %v3915_v13  ;;  %v3920_v58 = vsub.s32 4294967266, %v3915_v13  ;;  %v3931_v46 = vsel %vm3846_vm3, %v3930_v36, %v14521_v54 }
 0x59b   : > { %v9916_v44 = vpop.eup %9915  ;;  %v4464_v60 = vxor.u32 2147483648, %v9914_v21  ;;  %vm4317_vm8 = vc.u32 %v14575_v63, %v14566_v52  ;;  %v8754_v19 = vadd.s32 4294967169, %v4784_v48  ;;  %v7098_v22 = vmul.f32 1.442695, %v6999_v9 }
 0x59c   : > { %v4461_v23 = vxor.u32 2147483648, %v9916_v44  ;;  %v3918_v30 = vshrl.u32 %v3900_v6, %v3916_v56  ;;  %v3921_v62 = vadd.s32 127, %v3920_v58  ;;  %v4319_v3 = vsel %vm4317_vm8, %v4318_v15, %v14567_v10 }
 0x59d   : > { %v4465_v49 = vsel %vm4463_vm6, %v4464_v60, %v9916_v44  ;;  %v4320_v1 = vadd.s32 %v4319_v3, %v4315_v18  ;;  %v4790_v25 = vadd.s32 1, %v8754_v19  ;;  %v3933_v8 = vsel %vm14561_vm4, 0, %v3931_v46 }
 0x59e   : > { %v4462_v12 = vsel %vm4460_vm5, %v9914_v21, %v4461_v23  ;;  %v3919_v2 = vor.u32 %v3918_v30, %v3917_v17  ;;  %v3922_v50 = vshll.u32 %v3921_v62, 23  ;;  %v4780_v7 = vand.u32 2147483647, %v14513_v5 }
 0x59f   : > { %v4466_v54 = vsel %vm4459_vm2, %v4462_v12, %v4465_v49  ;;  %v4321_v4 = vadd.s32 536870912, %v4320_v1  ;;  %vm4791_vm9 = vcmp.gt.s32.totalorder %v4790_v25, 0  ;;  %v14603_v37 = vmul.f32 %v227_v29, %v227_v29 }
 0x5a0   : > { %v4467_v26 = vsel %vm4456_vm1, nan, %v4466_v54  ;;  %v3923_v40 = vor.u32 4788187, %v3922_v50  ;;  %v3926_v59 = vcvt.s32.f32 %v3919_v2  ;;  %v4792_v27 = vsel %vm4791_vm9, %v4790_v25, 0 }
 0x5a1   : > { %v7003_v34 = vadd.f32 1.0, %v4467_v26  ;;  %v14601_v42 = vshrl.u32 %v4321_v4, 30  ;;  %v4794_v57 = vand.u32 31, %v4792_v27  ;;  %9917 = vpow2.f32 %v7098_v22 }
 0x5a2   : > { %v3924_v53 = vand.u32 2147483647, %v3923_v40  ;;  %v14605_v28 = vadd.s32 3, %v3933_v8  ;;  %v4787_v20 = vand.u32 8388607, %v4780_v7  ;;  %v4316_v36 = vadd.s32 %v14566_v52, %v14575_v63 }
 0x5a3   : > { %v7106_v61 = vmul.f32 1.442695, %v7003_v34  ;;  %v4323_v55 = vshll.u32 %v14601_v42, 30  ;;  %v4795_v38 = vsub.s32 32, %v4794_v57  ;;  %v5196_v10 = vand.u32 2147483647, %v14603_v37 }
 0x5a4   : > { %v3927_v32 = vmul.f32 %v3926_v59, %v3924_v53  ;;  %v4797_v11 = vshll.u32 %v15844_v31, %v4794_v57  ;;  %v4800_v24 = vshll.u32 %v15831_v33, %v4794_v57  ;;  %v4803_v9 = vshll.u32 %v15833_v35, %v4794_v57 }
 0x5a5   : > { %9919 = vpow2.f32 %v7106_v61  ;;  %v14615_v47 = vsub.s32 %v4320_v1, %v4323_v55  ;;  %v4798_v45 = vshrl.u32 %v15831_v33, %v4795_v38  ;;  %v4793_v21 = vshrl.u32 %v4792_v27, 5 }
 0x5a6   : > { %v3928_v6 = vxor.u32 2147483648, %v3927_v32  ;;  %v4801_v13 = vshrl.u32 %v15833_v35, %v4795_v38  ;;  %v4804_v18 = vshrl.u32 %v15835_v39, %v4795_v38  ;;  %v4788_v48 = vor.u32 8388608, %v4787_v20 }
 0x5a7   : > { %v4326_v15 = vsub.s32 0, %v14615_v47  ;;  %v4796_v44 = vshrl.u32 %v15844_v31, %v4795_v38  ;;  %v4806_v60 = vshll.u32 %v15835_v39, %v4794_v57  ;;  %v4799_v63 = vor.u32 %v4798_v45, %v4797_v11 }
 0x5a8   : > { %v3929_v52 = vsel %vm3846_vm3, %v3928_v6, %v3927_v32  ;;  %v4802_v56 = vor.u32 %v4801_v13, %v4800_v24  ;;  %v4807_v17 = vshrl.u32 %v15842_v41, %v4795_v38  ;;  %v4805_v46 = vor.u32 %v4804_v18, %v4803_v9 }
 0x5a9   : > { %v3932_v58 = vsel %vm14561_vm4, %v14358_v43, %v3929_v52  ;;  %v8735_v23 = vmin.u32 %v4326_v15, %v14615_v47  ;;  %v4809_v19 = vshll.u32 %v15842_v41, %v4794_v57  ;;  %vm4262_vm10 = vcmp.lt.s32.totalorder %v14440_v14, 0 }
 0x5aa   : > { %9921 = vcosq.f32 %v3932_v58  ;;  %v4808_v49 = vor.u32 %v4807_v17, %v4806_v60  ;;  %v4810_v30 = vshrl.u32 %v15838_v51, %v4795_v38  ;;  %vm4812_vm11 = vcmp.lt.s32.totalorder %v4793_v21, 1 }
 0x5ab   : > { %9923 = vsinq.f32 %v3932_v58  ;;  %v4328_v62 = vclz %v8735_v23  ;;  %v4828_v3 = vshll.u32 %v4788_v48, 8  ;;  %v5199_v12 = vand.u32 2139095040, %v14603_v37  ;;  %v9918_v22 = vpop.eup %9917 }
 0x5ac   : > { %v4346_v16 = vsub.s32 4, %v14601_v42  ;;  %v4811_v1 = vor.u32 %v4810_v30, %v4809_v19  ;;  %vm4813_vm12 = vcmp.lt.s32.totalorder %v4793_v21, 2  ;;  %vm4814_vm13 = vcmp.lt.s32.totalorder %v4793_v21, 3 }
 0x5ad   : > { %v8736_v25 = vadd.s32 4294967294, %v4328_v62  ;;  %vm4815_vm15 = vcmp.lt.s32.totalorder %v4793_v21, 4  ;;  %v4816_v54 = vsel %vm4812_vm11, %v4796_v44, %v4799_v63  ;;  %v4820_v2 = vsel %vm4812_vm11, %v4799_v63, %v4802_v56 }
 0x5ae   : > { %v4817_v8 = vsel %vm4815_vm15, %v4805_v46, 2102212464  ;;  %v4821_v29 = vsel %vm4815_vm15, %v4808_v49, 920167782  ;;  %v4824_v26 = vsel %vm4812_vm11, %v4802_v56, %v4805_v46  ;;  %v4825_v4 = vsel %vm4815_vm15, %v4811_v1, 1326507024 }
 0x5af   : > { %v9920_v50 = vpop.eup %9919  ;;  %vm8737_vm0 = vcmp.lt.s32.totalorder %v8736_v25, 0  ;;  %v4818_v40 = vsel %vm4814_vm13, %v4802_v56, %v4817_v8  ;;  %v4822_v59 = vsel %vm4814_vm13, %v4805_v46, %v4821_v29  ;;  %v4826_v53 = vsel %vm4814_vm13, %v4808_v49, %v4825_v4 }
 0x5b0   : > { %v7175_v34 = vpack.c.bf16 %v9920_v50, %v9918_v22  ;;  %v4331_v27 = vsel %vm8737_vm0, 0, %v8736_v25  ;;  %v4819_v57 = vsel %vm4813_vm12, %v4816_v54, %v4818_v40  ;;  %v4823_v61 = vsel %vm4813_vm12, %v4820_v2, %v4822_v59  ;;  %v222_v22 = vld [vmem:[%s10310_s3 + $0x150] sm:$0xff] }
 0x5b1   : > { %v4332_v55 = vsub.s32 32, %v4331_v27  ;;  %v4333_v20 = vshll.u32 %v14615_v47, %v4331_v27  ;;  %v4336_v38 = vsub.s32 4294967266, %v4331_v27  ;;  %v4827_v32 = vsel %vm4813_vm12, %v4824_v26, %v4826_v53 }
 0x5b2   : > { %8141 = vmatprep.mubr.bf16.mxu0 %v7175_v34  ;;  %8367 = vmatprep.mubr.bf16.mxu1 %v7175_v34  ;;  %v14646_v11 = vmul.u32.u64.low %v4828_v3, %v4827_v32  ;;  %v14647_v24 = vmul.u32.u64.high %v4828_v3, %v4827_v32, %v14646_v11  ;;  %v14649_v45 = vmul.u32.u64.low %v4828_v3, %v4823_v61  ;;  %v14650_v9 = vmul.u32.u64.high %v4828_v3, %v4823_v61, %v14649_v45 }
 0x5b3   : > { %v4334_v6 = vshrl.u32 %v4316_v36, %v4332_v55  ;;  %v4337_v13 = vadd.s32 127, %v4336_v38  ;;  %v4347_v18 = vsel %vm4262_vm10, %v4346_v16, %v14601_v42  ;;  %v5200_v15 = vshrl.u32 %v5199_v12, 23 }
 0x5b4   : > { %v9922_v48 = vpop.eup %9921  ;;  %v3938_v44 = vand.u32 3, %v14605_v28  ;;  %vm14658_vm14 = vcmp.le.f32.partialorder %v4260_v0, 0.7853982  ;;  %v5203_v21 = vand.u32 8388607, %v5196_v10  ;;  %v4835_v63 = vmul.u32 %v4828_v3, %v4819_v57 }
 0x5b5   : > { %v9924_v60 = vpop.eup %9923  ;;  %v4335_v36 = vor.u32 %v4334_v6, %v4333_v20  ;;  %v4338_v52 = vshll.u32 %v4337_v13, 23  ;;  %v8770_v56 = vadd.s32 4294967169, %v5200_v15  ;;  %v3944_v17 = vxor.u32 2147483648, %v9922_v48 }
 0x5b6   : > { %v4349_v42 = vsel %vm14658_vm14, 0, %v4347_v18  ;;  %vm4837_vm1 = vc.u32 %v14647_v24, %v14649_v45  ;;  %v4838_v0 = vadd.s32 1, %v14650_v9  ;;  %v3941_v28 = vxor.u32 2147483648, %v9924_v60 }
 0x5b7   : > { %v4339_v58 = vor.u32 4788187, %v4338_v52  ;;  %v4342_v23 = vcvt.s32.f32 %v4335_v36  ;;  %v5206_v46 = vadd.s32 1, %v8770_v56  ;;  %vm3940_vm2 = vcmp.eq.s32.totalorder %v3938_v44, 0 }
 0x5b8   : > { %vm3943_vm3 = vcmp.eq.s32.totalorder %v3938_v44, 2  ;;  %v4839_v19 = vsel %vm4837_vm1, %v4838_v0, %v14650_v9  ;;  %v4353_v30 = vadd.s32 3, %v4349_v42  ;;  %vm3939_vm5 = vcmp.lt.s32.totalorder %v3938_v44, 2 }
 0x5b9   : > { %v4340_v49 = vand.u32 2147483647, %v4339_v58  ;;  %v4840_v62 = vadd.s32 %v4839_v19, %v4835_v63  ;;  %vm5207_vm4 = vcmp.gt.s32.totalorder %v5206_v46, 0  ;;  %v5204_v3 = vor.u32 8388608, %v5203_v21 }
 0x5ba   : > { %v5208_v12 = vsel %vm5207_vm4, %v5206_v46, 0  ;;  %v3942_v16 = vsel %vm3940_vm2, %v9922_v48, %v3941_v28  ;;  %v3945_v1 = vsel %vm3943_vm3, %v3944_v17, %v9924_v60  ;;  %vm3936_vm6 = vweird.f32 %v14358_v43 }
 0x5bb   : > { %v4343_v25 = vmul.f32 %v4342_v23, %v4340_v49  ;;  %v4841_v54 = vadd.s32 536870912, %v4840_v62  ;;  %v5210_v2 = vand.u32 31, %v5208_v12  ;;  %v14671_v8 = vand.u32 3, %v4353_v30 }
 0x5bc   : > { %v14675_v26 = vmul.f32 %v222_v22, %v222_v22  ;;  %v3946_v4 = vsel %vm3939_vm5, %v3942_v16, %v3945_v1  ;;  %v14678_v34 = vadd.s32 %v14649_v45, %v14647_v24  ;;  %v14680_v59 = vshll.u32 %v5204_v3, 8 }
 0x5bd   : > { %v4344_v50 = vxor.u32 2147483648, %v4343_v25  ;;  %v14673_v29 = vshrl.u32 %v4841_v54, 30  ;;  %v5211_v40 = vsub.s32 32, %v5210_v2  ;;  %v5213_v61 = vshll.u32 %v15844_v31, %v5210_v2 }
 0x5be   : > { %v5216_v53 = vshll.u32 %v15831_v33, %v5210_v2  ;;  %v5219_v32 = vshll.u32 %v15833_v35, %v5210_v2  ;;  %v5209_v24 = vshrl.u32 %v5208_v12, 5  ;;  %v3947_v9 = vsel %vm3936_vm6, nan, %v3946_v4 }
 0x5bf   : > { %v4345_v27 = vsel %vm4262_vm10, %v4344_v50, %v4343_v25  ;;  %v4843_v57 = vshll.u32 %v14673_v29, 30  ;;  %v5214_v20 = vshrl.u32 %v15831_v33, %v5211_v40  ;;  %v5217_v38 = vshrl.u32 %v15833_v35, %v5211_v40 }
 0x5c0   : > { %v4348_v55 = vsel %vm14658_vm14, %v14440_v14, %v4345_v27  ;;  %v5220_v45 = vshrl.u32 %v15835_v39, %v5211_v40  ;;  %v5212_v6 = vshrl.u32 %v15844_v31, %v5211_v40  ;;  %v4676_v13 = vand.u32 2147483647, %v14675_v26 }
 0x5c1   : > { %9925 = vcosq.f32 %v4348_v55  ;;  %v14693_v11 = vsub.s32 %v4840_v62, %v4843_v57  ;;  %vm4359_vm7 = vcmp.eq.s32.totalorder %v14671_v8, 2  ;;  %v5215_v15 = vor.u32 %v5214_v20, %v5213_v61 }
 0x5c2   : > { %9927 = vsinq.f32 %v4348_v55  ;;  %v5218_v48 = vor.u32 %v5217_v38, %v5216_v53  ;;  %v5222_v44 = vshll.u32 %v15835_v39, %v5210_v2  ;;  %vm4356_vm8 = vcmp.eq.s32.totalorder %v14671_v8, 0 }
 0x5c3   : > { %v4846_v18 = vsub.s32 0, %v14693_v11  ;;  %v5221_v47 = vor.u32 %v5220_v45, %v5219_v32  ;;  %v5223_v21 = vshrl.u32 %v15842_v41, %v5211_v40  ;;  %v5225_v43 = vshll.u32 %v15842_v41, %v5210_v2 }
 0x5c4   : > { %v5226_v60 = vshrl.u32 %v15838_v51, %v5211_v40  ;;  %vm4355_vm9 = vcmp.lt.s32.totalorder %v14671_v8, 2  ;;  %vm5228_vm10 = vcmp.lt.s32.totalorder %v5209_v24, 1  ;;  %vm5231_vm11 = vcmp.lt.s32.totalorder %v5209_v24, 4 }
 0x5c5   : > { %v8755_v36 = vmin.u32 %v4846_v18, %v14693_v11  ;;  %v4679_v52 = vand.u32 2139095040, %v14675_v26  ;;  %vm4352_vm12 = vweird.f32 %v14440_v14  ;;  %v5224_v63 = vor.u32 %v5223_v21, %v5222_v44 }
 0x5c6   : > { %v5227_v56 = vor.u32 %v5226_v60, %v5225_v43  ;;  %vm5230_vm13 = vcmp.lt.s32.totalorder %v5209_v24, 3  ;;  %v5233_v17 = vsel %vm5231_vm11, %v5221_v47, 2102212464  ;;  %v6998_v42 = vadd.f32 1.0, %v3947_v9 }
 0x5c7   : > { %v4848_v0 = vclz %v8755_v36  ;;  %vm5229_vm15 = vcmp.lt.s32.totalorder %v5209_v24, 2  ;;  %v5232_v28 = vsel %vm5228_vm10, %v5212_v6, %v5215_v15  ;;  %v5234_v58 = vsel %vm5230_vm13, %v5218_v48, %v5233_v17 }
 0x5c8   : > { %v5236_v23 = vsel %vm5228_vm10, %v5215_v15, %v5218_v48  ;;  %v5237_v46 = vsel %vm5231_vm11, %v5224_v63, 920167782  ;;  %v5240_v19 = vsel %vm5228_vm10, %v5218_v48, %v5221_v47  ;;  %vm4782_vm0 = vcmp.lt.s32.totalorder %v14513_v5, 0 }
 0x5c9   : > { %v8756_v49 = vadd.s32 4294967294, %v4848_v0  ;;  %v5238_v30 = vsel %vm5230_vm13, %v5221_v47, %v5237_v46  ;;  %v5241_v62 = vsel %vm5231_vm11, %v5227_v56, 1326507024  ;;  %v14719_v3 = vand.u32 8388607, %v4676_v13 }
 0x5ca   : > { %v5235_v12 = vsel %vm5229_vm15, %v5232_v28, %v5234_v58  ;;  %v5239_v22 = vsel %vm5229_vm15, %v5236_v23, %v5238_v30  ;;  %v5242_v16 = vsel %vm5230_vm13, %v5224_v63, %v5241_v62  ;;  %v4680_v1 = vshrl.u32 %v4679_v52, 23 }
 0x5cb   : > { %v9926_v25 = vpop.eup %9925  ;;  %vm8757_vm14 = vcmp.lt.s32.totalorder %v8756_v49, 0  ;;  %v5243_v54 = vsel %vm5229_vm15, %v5240_v19, %v5242_v16  ;;  %v14726_v2 = vmul.u32.u64.low %v14680_v59, %v5239_v22  ;;  %v14727_v50 = vmul.u32.u64.high %v14680_v59, %v5239_v22, %v14726_v2  ;;  %v226_v19 = vld [vmem:[%s10310_s3 + $0x170] sm:$0xff] }
 0x5cc   : > { %v9928_v4 = vpop.eup %9927  ;;  %v4360_v40 = vxor.u32 2147483648, %v9926_v25  ;;  %v4851_v27 = vsel %vm8757_vm14, 0, %v8756_v49  ;;  %v14730_v57 = vmul.u32.u64.low %v14680_v59, %v5243_v54  ;;  %v14731_v61 = vmul.u32.u64.high %v14680_v59, %v5243_v54, %v14730_v57 }
 0x5cd   : > { %v4357_v53 = vxor.u32 2147483648, %v9928_v4  ;;  %v4852_v55 = vsub.s32 32, %v4851_v27  ;;  %v4853_v20 = vshll.u32 %v14693_v11, %v4851_v27  ;;  %v4856_v38 = vsub.s32 4294967266, %v4851_v27 }
 0x5ce   : > { %v4361_v32 = vsel %vm4359_vm7, %v4360_v40, %v9928_v4  ;;  %v4866_v24 = vsub.s32 4, %v14673_v29  ;;  %v5251_v45 = vmul.u32 %v14680_v59, %v5235_v12  ;;  %v8750_v9 = vadd.s32 4294967169, %v4680_v1 }
 0x5cf   : > { %v4358_v6 = vsel %vm4356_vm8, %v9926_v25, %v4357_v53  ;;  %v4854_v18 = vshrl.u32 %v14678_v34, %v4852_v55  ;;  %v4857_v15 = vadd.s32 127, %v4856_v38  ;;  %v5254_v48 = vadd.s32 1, %v14727_v50 }
 0x5d0   : > { %v4362_v11 = vsel %vm4355_vm9, %v4358_v6, %v4361_v32  ;;  %v7096_v44 = vmul.f32 1.442695, %v6998_v42  ;;  %vm5253_vm1 = vc.u32 %v14731_v61, %v14726_v2  ;;  %v4686_v47 = vadd.s32 1, %v8750_v9 }
 0x5d1   : > { %v4363_v21 = vsel %vm4352_vm12, nan, %v4362_v11  ;;  %v4855_v59 = vor.u32 %v4854_v18, %v4853_v20  ;;  %v4858_v43 = vshll.u32 %v4857_v15, 23  ;;  %v5255_v60 = vsel %vm5253_vm1, %v5254_v48, %v14727_v50 }
 0x5d2   : > { %v7002_v36 = vadd.f32 1.0, %v4363_v21  ;;  %v4867_v34 = vsel %vm4782_vm0, %v4866_v24, %v14673_v29  ;;  %v5256_v52 = vadd.s32 %v5255_v60, %v5251_v45  ;;  %vm4687_vm2 = vcmp.gt.s32.totalorder %v4686_v47, 0 }
 0x5d3   : > { %vm14753_vm3 = vcmp.le.f32.partialorder %v4780_v7, 0.7853982  ;;  %v4859_v14 = vor.u32 4788187, %v4858_v43  ;;  %v4862_v63 = vcvt.s32.f32 %v4855_v59  ;;  %v4688_v56 = vsel %vm4687_vm2, %v4686_v47, 0 }
 0x5d4   : > { %9929 = vpow2.f32 %v7096_v44  ;;  %v7104_v17 = vmul.f32 1.442695, %v7002_v36  ;;  %v5257_v42 = vadd.s32 536870912, %v5256_v52  ;;  %v4690_v0 = vand.u32 31, %v4688_v56 }
 0x5d5   : > { %v4860_v28 = vand.u32 2147483647, %v4859_v14  ;;  %v4869_v29 = vsel %vm14753_vm3, 0, %v4867_v34  ;;  %v4684_v23 = vor.u32 8388608, %v14719_v3  ;;  %v4689_v49 = vshrl.u32 %v4688_v56, 5 }
 0x5d6   : > { %9931 = vpow2.f32 %v7104_v17  ;;  %v14759_v58 = vshrl.u32 %v5257_v42, 30  ;;  %v4691_v7 = vsub.s32 32, %v4690_v0  ;;  %v4693_v30 = vshll.u32 %v15844_v31, %v4690_v0 }
 0x5d7   : > { %v4863_v46 = vmul.f32 %v4862_v63, %v4860_v28  ;;  %v4696_v62 = vshll.u32 %v15831_v33, %v4690_v0  ;;  %v4699_v16 = vshll.u32 %v15833_v35, %v4690_v0  ;;  %v4702_v1 = vshll.u32 %v15835_v39, %v4690_v0 }
 0x5d8   : > { %v5259_v12 = vshll.u32 %v14759_v58, 30  ;;  %v4694_v22 = vshrl.u32 %v15831_v33, %v4691_v7  ;;  %v4697_v54 = vshrl.u32 %v15833_v35, %v4691_v7  ;;  %v4700_v3 = vshrl.u32 %v15835_v39, %v4691_v7 }
 0x5d9   : > { %v4864_v25 = vxor.u32 2147483648, %v4863_v46  ;;  %v4703_v50 = vshrl.u32 %v15842_v41, %v4691_v7  ;;  %v14772_v4 = vadd.s32 3, %v4869_v29  ;;  %v5252_v40 = vadd.s32 %v14726_v2, %v14731_v61 }
 0x5da   : > { %v14775_v27 = vsub.s32 %v5256_v52, %v5259_v12  ;;  %v14777_v57 = vmul.f32 %v226_v19, %v226_v19  ;;  %v4692_v55 = vshrl.u32 %v15844_v31, %v4691_v7  ;;  %v4705_v20 = vshll.u32 %v15842_v41, %v4690_v0 }
 0x5db   : > { %v4865_v53 = vsel %vm4782_vm0, %v4864_v25, %v4863_v46  ;;  %v14783_v38 = vshll.u32 %v4684_v23, 8  ;;  %vm5198_vm4 = vcmp.lt.s32.totalorder %v14603_v37, 0  ;;  %v4695_v61 = vor.u32 %v4694_v22, %v4693_v30 }
 0x5dc   : > { %v4868_v32 = vsel %vm14753_vm3, %v14513_v5, %v4865_v53  ;;  %v5262_v2 = vsub.s32 0, %v14775_v27  ;;  %v4698_v24 = vor.u32 %v4697_v54, %v4696_v62  ;;  %v4701_v45 = vor.u32 %v4700_v3, %v4699_v16 }
 0x5dd   : > { %v4704_v9 = vor.u32 %v4703_v50, %v4702_v1  ;;  %v4706_v6 = vshrl.u32 %v15838_v51, %v4691_v7  ;;  %vm4708_vm5 = vcmp.lt.s32.totalorder %v4689_v49, 1  ;;  %9933 = vcosq.f32 %v4868_v32 }
 0x5de   : > { %v9930_v18 = vpop.eup %9929  ;;  %v8771_v15 = vmin.u32 %v5262_v2, %v14775_v27  ;;  %v5282_v48 = vsub.s32 4, %v14759_v58  ;;  %v5095_v11 = vand.u32 2139095040, %v14777_v57  ;;  %9935 = vsinq.f32 %v4868_v32 }
 0x5df   : > { %v4707_v44 = vor.u32 %v4706_v6, %v4705_v20  ;;  %vm4710_vm6 = vcmp.lt.s32.totalorder %v4689_v49, 3  ;;  %vm4711_vm7 = vcmp.lt.s32.totalorder %v4689_v49, 4  ;;  %vm4709_vm8 = vcmp.lt.s32.totalorder %v4689_v49, 2 }
 0x5e0   : > { %v9932_v47 = vpop.eup %9931  ;;  %v5264_v21 = vclz %v8771_v15  ;;  %v4712_v59 = vsel %vm4708_vm5, %v4692_v55, %v4695_v61  ;;  %v4716_v43 = vsel %vm4708_vm5, %v4695_v61, %v4698_v24  ;;  %v4713_v36 = vsel %vm4711_vm7, %v4701_v45, 2102212464 }
 0x5e1   : > { %v7174_v60 = vpack.c.bf16 %v9932_v47, %v9930_v18  ;;  %v4717_v34 = vsel %vm4711_vm7, %v4704_v9, 920167782  ;;  %v4720_v52 = vsel %vm4708_vm5, %v4698_v24, %v4701_v45  ;;  %v4714_v14 = vsel %vm4710_vm6, %v4698_v24, %v4713_v36 }
 0x5e2   : > { %v8772_v8 = vadd.s32 4294967294, %v5264_v21  ;;  %v4718_v63 = vsel %vm4710_vm6, %v4701_v45, %v4717_v34  ;;  %v4721_v56 = vsel %vm4711_vm7, %v4707_v44, 1326507024  ;;  %v4715_v17 = vsel %vm4709_vm8, %v4712_v59, %v4714_v14  ;;  %v231_v45 = vld [vmem:[%s10310_s3 + $0x198] sm:$0xff] }
 0x5e3   : > { %8142 = vmatmul.mubr.bf16.gmra.mrb[16].mxu0 %v7174_v60  ;;  %8368 = vmatmul.mubr.bf16.gmra.mrb[16].mxu1 %v7174_v60  ;;  %v4719_v42 = vsel %vm4709_vm8, %v4716_v43, %v4718_v63  ;;  %v4722_v0 = vsel %vm4710_vm6, %v4704_v9, %v4721_v56  ;;  %v5096_v28 = vshrl.u32 %v5095_v11, 23  ;;  %v5283_v19 = vsel %vm5198_vm4, %v5282_v48, %v14759_v58 }
 0x5e4   : > { %vm8773_vm9 = vcmp.lt.s32.totalorder %v8772_v8, 0  ;;  %v4723_v29 = vsel %vm4709_vm8, %v4720_v52, %v4722_v0  ;;  %v14804_v23 = vmul.u32.u64.low %v14783_v38, %v4719_v42  ;;  %v14805_v7 = vmul.u32.u64.high %v14783_v38, %v4719_v42, %v14804_v23 }
 0x5e5   : > { %v5267_v46 = vsel %vm8773_vm9, 0, %v8772_v8  ;;  %v14812_v30 = vmul.u32.u64.low %v14783_v38, %v4723_v29  ;;  %v14813_v62 = vmul.u32.u64.high %v14783_v38, %v4723_v29, %v14812_v30  ;;  %v8766_v49 = vadd.s32 4294967169, %v5096_v28 }
 0x5e6   : > { %v5268_v12 = vsub.s32 32, %v5267_v46  ;;  %v5269_v22 = vshll.u32 %v14775_v27, %v5267_v46  ;;  %v5272_v16 = vsub.s32 4294967266, %v5267_v46  ;;  %vm14818_vm10 = vcmp.le.f32.partialorder %v5196_v10, 0.7853982 }
 0x5e7   : > { %v4731_v25 = vmul.u32 %v14783_v38, %v4715_v17  ;;  %v9934_v54 = vpop.eup %9933  ;;  %v5285_v50 = vsel %vm14818_vm10, 0, %v5283_v19  ;;  %v4734_v53 = vadd.s32 1, %v14805_v7  ;;  %v4874_v55 = vand.u32 3, %v14772_v4 }
 0x5e8   : > { %v5270_v3 = vshrl.u32 %v5252_v40, %v5268_v12  ;;  %v5273_v58 = vadd.s32 127, %v5272_v16  ;;  %v9936_v27 = vpop.eup %9935  ;;  %vm4733_vm11 = vc.u32 %v14813_v62, %v14804_v23  ;;  %v5102_v10 = vadd.s32 1, %v8766_v49 }
 0x5e9   : > { %v4735_v38 = vsel %vm4733_vm11, %v4734_v53, %v14805_v7  ;;  %v5092_v40 = vand.u32 2147483647, %v14777_v57  ;;  %v4880_v2 = vxor.u32 2147483648, %v9934_v54  ;;  %v5289_v61 = vadd.s32 3, %v5285_v50 }
 0x5ea   : > { %v5271_v20 = vor.u32 %v5270_v3, %v5269_v22  ;;  %v5274_v32 = vshll.u32 %v5273_v58, 23  ;;  %v4736_v24 = vadd.s32 %v4735_v38, %v4731_v25  ;;  %vm5103_vm12 = vcmp.gt.s32.totalorder %v5102_v10, 0 }
 0x5eb   : > { %v4877_v9 = vxor.u32 2147483648, %v9936_v27  ;;  %v5104_v15 = vsel %vm5103_vm12, %v5102_v10, 0  ;;  %vm4876_vm13 = vcmp.eq.s32.totalorder %v4874_v55, 0  ;;  %vm4879_vm15 = vcmp.eq.s32.totalorder %v4874_v55, 2 }
 0x5ec   : > { %v5275_v6 = vor.u32 4788187, %v5274_v32  ;;  %v5278_v18 = vcvt.s32.f32 %v5271_v20  ;;  %v4737_v4 = vadd.s32 536870912, %v4736_v24  ;;  %v5106_v48 = vand.u32 31, %v5104_v15 }
 0x5ed   : > { %vm4872_vm0 = vweird.f32 %v14513_v5  ;;  %vm4875_vm14 = vcmp.lt.s32.totalorder %v4874_v55, 2  ;;  %v14833_v44 = vmul.f32 %v231_v45, %v231_v45  ;;  %v14835_v47 = vand.u32 3, %v5289_v61 }
 0x5ee   : > { %v5276_v11 = vand.u32 2147483647, %v5275_v6  ;;  %v14837_v21 = vshrl.u32 %v4737_v4, 30  ;;  %v5099_v59 = vand.u32 8388607, %v5092_v40  ;;  %v5107_v43 = vsub.s32 32, %v5106_v48 }
 0x5ef   : > { %v4878_v60 = vsel %vm4876_vm13, %v9934_v54, %v4877_v9  ;;  %v4881_v36 = vsel %vm4879_vm15, %v4880_v2, %v9936_v27  ;;  %v5109_v52 = vshll.u32 %v15844_v31, %v5106_v48  ;;  %v5112_v63 = vshll.u32 %v15831_v33, %v5106_v48 }
 0x5f0   : > { %v5279_v34 = vmul.f32 %v5278_v18, %v5276_v11  ;;  %v4739_v8 = vshll.u32 %v14837_v21, 30  ;;  %v5110_v14 = vshrl.u32 %v15831_v33, %v5107_v43  ;;  %v5115_v56 = vshll.u32 %v15833_v35, %v5106_v48 }
 0x5f1   : > { %v5113_v42 = vshrl.u32 %v15833_v35, %v5107_v43  ;;  %v5116_v0 = vshrl.u32 %v15835_v39, %v5107_v43  ;;  %v5118_v28 = vshll.u32 %v15835_v39, %v5106_v48  ;;  %v5100_v7 = vor.u32 8388608, %v5099_v59 }
 0x5f2   : > { %v5280_v17 = vxor.u32 2147483648, %v5279_v34  ;;  %v14849_v29 = vsub.s32 %v4736_v24, %v4739_v8  ;;  %v5105_v46 = vshrl.u32 %v5104_v15, 5  ;;  %v5119_v19 = vshrl.u32 %v15842_v41, %v5107_v43 }
 0x5f3   : > { %v4882_v30 = vsel %vm4875_vm14, %v4878_v60, %v4881_v36  ;;  %v5108_v22 = vshrl.u32 %v15844_v31, %v5107_v43  ;;  %v5111_v16 = vor.u32 %v5110_v14, %v5109_v52  ;;  %v5114_v54 = vor.u32 %v5113_v42, %v5112_v63 }
 0x5f4   : > { %v5281_v12 = vsel %vm5198_vm4, %v5280_v17, %v5279_v34  ;;  %v4742_v25 = vsub.s32 0, %v14849_v29  ;;  %v5117_v3 = vor.u32 %v5116_v0, %v5115_v56  ;;  %v5120_v58 = vor.u32 %v5119_v19, %v5118_v28 }
 0x5f5   : > { %v5284_v49 = vsel %vm14818_vm10, %v14603_v37, %v5281_v12  ;;  %v5121_v50 = vshll.u32 %v15842_v41, %v5106_v48  ;;  %v5122_v53 = vshrl.u32 %v15838_v51, %v5107_v43  ;;  %v4732_v27 = vadd.s32 %v14804_v23, %v14813_v62 }
 0x5f6   : > { %9937 = vcosq.f32 %v5284_v49  ;;  %v8751_v55 = vmin.u32 %v4742_v25, %v14849_v29  ;;  %vm5124_vm1 = vcmp.lt.s32.totalorder %v5105_v46, 1  ;;  %vm5126_vm2 = vcmp.lt.s32.totalorder %v5105_v46, 3 }
 0x5f7   : > { %9939 = vsinq.f32 %v5284_v49  ;;  %v5123_v10 = vor.u32 %v5122_v53, %v5121_v50  ;;  %vm5127_vm3 = vcmp.lt.s32.totalorder %v5105_v46, 4  ;;  %v5140_v1 = vshll.u32 %v5100_v7, 8  ;;  %v235_v53 = vld [vmem:[%s10310_s3 + $0x1b8] sm:$0xff] }
 0x5f8   : > { %v4883_v20 = vsel %vm4872_vm0, nan, %v4882_v30  ;;  %vm5292_vm4 = vcmp.eq.s32.totalorder %v14835_v47, 0  ;;  %vm4678_vm5 = vcmp.lt.s32.totalorder %v14675_v26, 0  ;;  %v4744_v32 = vclz %v8751_v55 }
 0x5f9   : > { %vm5125_vm6 = vcmp.lt.s32.totalorder %v5105_v46, 2  ;;  %v5128_v38 = vsel %vm5124_vm1, %v5108_v22, %v5111_v16  ;;  %vm5291_vm7 = vcmp.lt.s32.totalorder %v14835_v47, 2  ;;  %v5129_v23 = vsel %vm5127_vm3, %v5117_v3, 2102212464 }
 0x5fa   : > { %v5132_v62 = vsel %vm5124_vm1, %v5111_v16, %v5114_v54  ;;  %v5133_v2 = vsel %vm5127_vm3, %v5120_v58, 920167782  ;;  %v5136_v61 = vsel %vm5124_vm1, %v5114_v54, %v5117_v3  ;;  %vm5288_vm8 = vweird.f32 %v14603_v37 }
 0x5fb   : > { %v8752_v24 = vadd.s32 4294967294, %v4744_v32  ;;  %v5130_v5 = vsel %vm5126_vm2, %v5114_v54, %v5129_v23  ;;  %v5134_v45 = vsel %vm5126_vm2, %v5117_v3, %v5133_v2  ;;  %v5137_v9 = vsel %vm5127_vm3, %v5123_v10, 1326507024 }
 0x5fc   : > { %vm14878_vm9 = vcmp.le.f32.partialorder %v4676_v13, 0.7853982  ;;  %v5131_v18 = vsel %vm5125_vm6, %v5128_v38, %v5130_v5  ;;  %v5135_v15 = vsel %vm5125_vm6, %v5132_v62, %v5134_v45  ;;  %v5138_v4 = vsel %vm5126_vm2, %v5120_v58, %v5137_v9 }
 0x5fd   : > { %v5615_v48 = vand.u32 2139095040, %v14833_v44  ;;  %vm8753_vm10 = vcmp.lt.s32.totalorder %v8752_v24, 0  ;;  %v5139_v11 = vsel %vm5125_vm6, %v5136_v61, %v5138_v4  ;;  %v4762_v13 = vsub.s32 4, %v14837_v21 }
 0x5fe   : > { %v14887_v59 = vmul.u32.u64.low %v5140_v1, %v5135_v15  ;;  %v14888_v43 = vmul.u32.u64.high %v5140_v1, %v5135_v15, %v14887_v59  ;;  %v4747_v60 = vsel %vm8753_vm10, 0, %v8752_v24  ;;  %vm5295_vm11 = vcmp.eq.s32.totalorder %v14835_v47, 2 }
 0x5ff   : > { %v14892_v36 = vmul.u32.u64.low %v5140_v1, %v5139_v11  ;;  %v14893_v34 = vmul.u32.u64.high %v5140_v1, %v5139_v11, %v14892_v36  ;;  %v4748_v52 = vsub.s32 32, %v4747_v60  ;;  %v4749_v8 = vshll.u32 %v14849_v29, %v4747_v60 }
 0x600   : > { %v4752_v14 = vsub.s32 4294967266, %v4747_v60  ;;  %v5616_v63 = vshrl.u32 %v5615_v48, 23  ;;  %v9938_v56 = vpop.eup %9937  ;;  %v7007_v17 = vadd.f32 1.0, %v4883_v20  ;;  %v5147_v42 = vmul.u32 %v5140_v1, %v5131_v18 }
 0x601   : > { %v5612_v0 = vand.u32 2147483647, %v14833_v44  ;;  %v9940_v28 = vpop.eup %9939  ;;  %v5296_v7 = vxor.u32 2147483648, %v9938_v56  ;;  %v4750_v46 = vshrl.u32 %v4732_v27, %v4748_v52  ;;  %v5150_v30 = vadd.s32 1, %v14888_v43 }
 0x602   : > { %v4753_v19 = vadd.s32 127, %v4752_v14  ;;  %v5293_v12 = vxor.u32 2147483648, %v9940_v28  ;;  %v4763_v29 = vsel %vm4678_vm5, %v4762_v13, %v14837_v21  ;;  %vm5149_vm12 = vc.u32 %v14893_v34, %v14887_v59 }
 0x603   : > { %v8786_v22 = vadd.s32 4294967169, %v5616_v63  ;;  %v5297_v16 = vsel %vm5295_vm11, %v5296_v7, %v9940_v28  ;;  %v4751_v49 = vor.u32 %v4750_v46, %v4749_v8  ;;  %v5151_v54 = vsel %vm5149_vm12, %v5150_v30, %v14888_v43 }
 0x604   : > { %v4754_v25 = vshll.u32 %v4753_v19, 23  ;;  %v5294_v3 = vsel %vm5292_vm4, %v9938_v56, %v5293_v12  ;;  %v7114_v58 = vmul.f32 1.442695, %v7007_v17  ;;  %v5152_v50 = vadd.s32 %v5151_v54, %v5147_v42 }
 0x605   : > { %v5622_v27 = vadd.s32 1, %v8786_v22  ;;  %v5298_v55 = vsel %vm5291_vm7, %v5294_v3, %v5297_v16  ;;  %v4758_v10 = vcvt.s32.f32 %v4751_v49  ;;  %v4765_v1 = vsel %vm14878_vm9, 0, %v4763_v29 }
 0x606   : > { %v4755_v21 = vor.u32 4788187, %v4754_v25  ;;  %v5299_v20 = vsel %vm5288_vm8, nan, %v5298_v55  ;;  %v5153_v32 = vadd.s32 536870912, %v5152_v50  ;;  %v5619_v38 = vand.u32 8388607, %v5612_v0 }
 0x607   : > { %vm5623_vm13 = vcmp.gt.s32.totalorder %v5622_v27, 0  ;;  %v7011_v23 = vadd.f32 1.0, %v5299_v20  ;;  %v14916_v2 = vmul.f32 %v235_v53, %v235_v53  ;;  %9941 = vpow2.f32 %v7114_v58 }
 0x608   : > { %v4756_v62 = vand.u32 2147483647, %v4755_v21  ;;  %v5624_v61 = vsel %vm5623_vm13, %v5622_v27, 0  ;;  %v5154_v47 = vshrl.u32 %v5153_v32, 30  ;;  %v14918_v9 = vadd.s32 3, %v4765_v1 }
 0x609   : > { %v5626_v24 = vand.u32 31, %v5624_v61  ;;  %v7122_v5 = vmul.f32 1.442695, %v7011_v23  ;;  %v5620_v37 = vor.u32 8388608, %v5619_v38  ;;  %v6028_v4 = vand.u32 2147483647, %v14916_v2 }
 0x60a   : > { %v4759_v45 = vmul.f32 %v4758_v10, %v4756_v62  ;;  %v5155_v18 = vshll.u32 %v5154_v47, 30  ;;  %v6031_v43 = vand.u32 2139095040, %v14916_v2  ;;  %v5625_v13 = vshrl.u32 %v5624_v61, 5 }
 0x60b   : > { %v5627_v15 = vsub.s32 32, %v5626_v24  ;;  %9943 = vpow2.f32 %v7122_v5  ;;  %v5629_v11 = vshll.u32 %v15844_v31, %v5626_v24  ;;  %v5632_v52 = vshll.u32 %v15831_v33, %v5626_v24 }
 0x60c   : > { %v4760_v48 = vxor.u32 2147483648, %v4759_v45  ;;  %v14923_v60 = vsub.s32 %v5152_v50, %v5155_v18  ;;  %vm5094_vm15 = vcmp.lt.s32.totalorder %v14777_v57, 0  ;;  %v5635_v63 = vshll.u32 %v15833_v35, %v5626_v24 }
 0x60d   : > { %v5630_v36 = vshrl.u32 %v15831_v33, %v5627_v15  ;;  %v5633_v14 = vshrl.u32 %v15833_v35, %v5627_v15  ;;  %v5636_v56 = vshrl.u32 %v15835_v39, %v5627_v15  ;;  %v5148_v42 = vadd.s32 %v14887_v59, %v14893_v34 }
 0x60e   : > { %v4761_v8 = vsel %vm4678_vm5, %v4760_v48, %v4759_v45  ;;  %v5158_v28 = vsub.s32 0, %v14923_v60  ;;  %v14939_v7 = vshll.u32 %v5620_v37, 8  ;;  %v5628_v46 = vshrl.u32 %v15844_v31, %v5627_v15 }
 0x60f   : > { %v4764_v17 = vsel %vm14878_vm9, %v14675_v26, %v4761_v8  ;;  %v5631_v19 = vor.u32 %v5630_v36, %v5629_v11  ;;  %v5638_v30 = vshll.u32 %v15835_v39, %v5626_v24  ;;  %v6032_v12 = vshrl.u32 %v6031_v43, 23 }
 0x610   : > { %9945 = vcosq.f32 %v4764_v17  ;;  %v8767_v29 = vmin.u32 %v5158_v28, %v14923_v60  ;;  %v5634_v22 = vor.u32 %v5633_v14, %v5632_v52  ;;  %v5639_v6 = vshrl.u32 %v15842_v41, %v5627_v15 }
 0x611   : > { %vm14947_vm0 = vcmp.le.f32.partialorder %v5092_v40, 0.7853982  ;;  %v5637_v34 = vor.u32 %v5636_v56, %v5635_v63  ;;  %v5641_v16 = vshll.u32 %v15842_v41, %v5626_v24  ;;  %v5642_v49 = vshrl.u32 %v15838_v51, %v5627_v15  ;;  %v9942_v3 = vpop.eup %9941 }
 0x612   : > { %vm5644_vm14 = vcmp.lt.s32.totalorder %v5625_v13, 1  ;;  %9947 = vsinq.f32 %v4764_v17  ;;  %v5160_v25 = vclz %v8767_v29  ;;  %v5178_v54 = vsub.s32 4, %v5154_v47 }
 0x613   : > { %vm5645_vm1 = vcmp.lt.s32.totalorder %v5625_v13, 2  ;;  %v5640_v58 = vor.u32 %v5639_v6, %v5638_v30  ;;  %v5643_v50 = vor.u32 %v5642_v49, %v5641_v16  ;;  %vm5646_vm2 = vcmp.lt.s32.totalorder %v5625_v13, 3 }
 0x614   : > { %vm5647_vm3 = vcmp.lt.s32.totalorder %v5625_v13, 4  ;;  %v8768_v53 = vadd.s32 4294967294, %v5160_v25  ;;  %v5648_v40 = vsel %vm5644_vm14, %v5628_v46, %v5631_v19  ;;  %v5652_v55 = vsel %vm5644_vm14, %v5631_v19, %v5634_v22 }
 0x615   : > { %v5649_v27 = vsel %vm5647_vm3, %v5637_v34, 2102212464  ;;  %v9944_v21 = vpop.eup %9943  ;;  %v5653_v1 = vsel %vm5647_vm3, %v5640_v58, 920167782  ;;  %v5656_v20 = vsel %vm5644_vm14, %v5634_v22, %v5637_v34  ;;  %v5657_v32 = vsel %vm5647_vm3, %v5643_v50, 1326507024 }
 0x616   : > { %v5650_v10 = vsel %vm5646_vm2, %v5634_v22, %v5649_v27  ;;  %v7179_v38 = vpack.c.bf16 %v9944_v21, %v9942_v3  ;;  %vm8769_vm4 = vcmp.lt.s32.totalorder %v8768_v53, 0  ;;  %v5179_v23 = vsel %vm5094_vm15, %v5178_v54, %v5154_v47 }
 0x617   : > { %v5654_v62 = vsel %vm5646_vm2, %v5637_v34, %v5653_v1  ;;  %v5163_v61 = vsel %vm8769_vm4, 0, %v8768_v53  ;;  %v5651_v24 = vsel %vm5645_vm1, %v5648_v40, %v5650_v10  ;;  %v5658_v45 = vsel %vm5646_vm2, %v5640_v58, %v5657_v32 }
 0x618   : > { %v5655_v5 = vsel %vm5645_vm1, %v5652_v55, %v5654_v62  ;;  %8151 = vmatprep.mubr.bf16.mxu0 %v7179_v38  ;;  %8377 = vmatprep.mubr.bf16.mxu1 %v7179_v38  ;;  %v5164_v18 = vsub.s32 32, %v5163_v61  ;;  %v5165_v37 = vshll.u32 %v14923_v60, %v5163_v61  ;;  %v5168_v15 = vsub.s32 4294967266, %v5163_v61 }
 0x619   : > { %v5659_v48 = vsel %vm5645_vm1, %v5656_v20, %v5658_v45  ;;  %v14970_v43 = vmul.u32.u64.low %v14939_v7, %v5655_v5  ;;  %v14971_v36 = vmul.u32.u64.high %v14939_v7, %v5655_v5, %v14970_v43  ;;  %v5181_v63 = vsel %vm14947_vm0, 0, %v5179_v23 }
 0x61a   : > { %v14966_v11 = vmul.u32.u64.low %v14939_v7, %v5659_v48  ;;  %v14967_v47 = vmul.u32.u64.high %v14939_v7, %v5659_v48, %v14966_v11  ;;  %v9946_v52 = vpop.eup %9945  ;;  %v5166_v8 = vshrl.u32 %v5148_v42, %v5164_v18  ;;  %v5169_v14 = vadd.s32 127, %v5168_v15 }
 0x61b   : > { %v8802_v56 = vadd.s32 4294967169, %v6032_v12  ;;  %v4770_v60 = vand.u32 3, %v14918_v9  ;;  %v5667_v46 = vmul.u32 %v14939_v7, %v5651_v24  ;;  %v5185_v30 = vadd.s32 3, %v5181_v63  ;;  %v230_v7 = vld [vmem:[%s10310_s3 + $0x190] sm:$0xff] }
 0x61c   : > { %v9948_v13 = vpop.eup %9947  ;;  %v5167_v17 = vor.u32 %v5166_v8, %v5165_v37  ;;  %v5170_v28 = vshll.u32 %v5169_v14, 23  ;;  %vm5669_vm5 = vc.u32 %v14967_v47, %v14970_v43  ;;  %v5670_v42 = vadd.s32 1, %v14971_v36 }
 0x61d   : > { %v6038_v19 = vadd.s32 1, %v8802_v56  ;;  %v6035_v29 = vand.u32 8388607, %v6028_v4  ;;  %v4776_v22 = vxor.u32 2147483648, %v9946_v52  ;;  %v4773_v9 = vxor.u32 2147483648, %v9948_v13 }
 0x61e   : > { %v5171_v12 = vor.u32 4788187, %v5170_v28  ;;  %v5174_v6 = vcvt.s32.f32 %v5167_v17  ;;  %vm4775_vm7 = vcmp.eq.s32.totalorder %v4770_v60, 2  ;;  %v5671_v34 = vsel %vm5669_vm5, %v5670_v42, %v14971_v36 }
 0x61f   : > { %vm6039_vm6 = vcmp.gt.s32.totalorder %v6038_v19, 0  ;;  %vm4772_vm8 = vcmp.eq.s32.totalorder %v4770_v60, 0  ;;  %v5672_v25 = vadd.s32 %v5671_v34, %v5667_v46  ;;  %vm4771_vm9 = vcmp.lt.s32.totalorder %v4770_v60, 2 }
 0x620   : > { %v6040_v16 = vsel %vm6039_vm6, %v6038_v19, 0  ;;  %v5172_v49 = vand.u32 2147483647, %v5171_v12  ;;  %v14985_v54 = vand.u32 3, %v5185_v30  ;;  %v6036_v3 = vor.u32 8388608, %v6035_v29 }
 0x621   : > { %v6042_v58 = vand.u32 31, %v6040_v16  ;;  %v4777_v50 = vsel %vm4775_vm7, %v4776_v22, %v9948_v13  ;;  %v5673_v40 = vadd.s32 536870912, %v5672_v25  ;;  %v14987_v27 = vmul.f32 %v230_v7, %v230_v7 }
 0x622   : > { %v5175_v53 = vmul.f32 %v5174_v6, %v5172_v49  ;;  %v4774_v55 = vsel %vm4772_vm8, %v9946_v52, %v4773_v9  ;;  %v6041_v21 = vshrl.u32 %v6040_v16, 5  ;;  %vm4768_vm10 = vweird.f32 %v14675_v26 }
 0x623   : > { %v6043_v10 = vsub.s32 32, %v6042_v58  ;;  %v6045_v1 = vshll.u32 %v15844_v31, %v6042_v58  ;;  %v14991_v32 = vshrl.u32 %v5673_v40, 30  ;;  %v6048_v38 = vshll.u32 %v15831_v33, %v6042_v58 }
 0x624   : > { %v5176_v20 = vxor.u32 2147483648, %v5175_v53  ;;  %v6054_v23 = vshll.u32 %v15835_v39, %v6042_v58  ;;  %v6051_v24 = vshll.u32 %v15833_v35, %v6042_v58  ;;  %v4778_v45 = vsel %vm4771_vm9, %v4774_v55, %v4777_v50 }
 0x625   : > { %v6046_v62 = vshrl.u32 %v15831_v33, %v6043_v10  ;;  %v6049_v61 = vshrl.u32 %v15833_v35, %v6043_v10  ;;  %v6052_v5 = vshrl.u32 %v15835_v39, %v6043_v10  ;;  %v5675_v37 = vshll.u32 %v14991_v32, 30 }
 0x626   : > { %v5177_v18 = vsel %vm5094_vm15, %v5176_v20, %v5175_v53  ;;  %v6055_v15 = vshrl.u32 %v15842_v41, %v6043_v10  ;;  %v6044_v11 = vshrl.u32 %v15844_v31, %v6043_v10  ;;  %vm6060_vm11 = vcmp.lt.s32.totalorder %v6041_v21, 1 }
 0x627   : > { %v5180_v48 = vsel %vm14947_vm0, %v14777_v57, %v5177_v18  ;;  %v6047_v36 = vor.u32 %v6046_v62, %v6045_v1  ;;  %v15008_v52 = vsub.s32 %v5672_v25, %v5675_v37  ;;  %v6050_v8 = vor.u32 %v6049_v61, %v6048_v38 }
 0x628   : > { %9949 = vcosq.f32 %v5180_v48  ;;  %v6056_v14 = vor.u32 %v6055_v15, %v6054_v23  ;;  %v6053_v63 = vor.u32 %v6052_v5, %v6051_v24  ;;  %v6057_v56 = vshll.u32 %v15842_v41, %v6042_v58 }
 0x629   : > { %9951 = vsinq.f32 %v5180_v48  ;;  %v6058_v60 = vshrl.u32 %v15838_v51, %v6043_v10  ;;  %v5678_v13 = vsub.s32 0, %v15008_v52  ;;  %vm6062_vm12 = vcmp.lt.s32.totalorder %v6041_v21, 3 }
 0x62a   : > { %v6076_v59 = vshll.u32 %v6036_v3, 8  ;;  %v5511_v17 = vand.u32 2139095040, %v14987_v27  ;;  %vm6061_vm13 = vcmp.lt.s32.totalorder %v6041_v21, 2  ;;  %vm6063_vm15 = vcmp.lt.s32.totalorder %v6041_v21, 4 }
 0x62b   : > { %v6059_v28 = vor.u32 %v6058_v60, %v6057_v56  ;;  %v6064_v46 = vsel %vm6060_vm11, %v6044_v11, %v6047_v36  ;;  %v8787_v19 = vmin.u32 %v5678_v13, %v15008_v52  ;;  %v6065_v30 = vsel %vm6063_vm15, %v6053_v63, 2102212464 }
 0x62c   : > { %v6068_v42 = vsel %vm6060_vm11, %v6047_v36, %v6050_v8  ;;  %v6069_v29 = vsel %vm6063_vm15, %v6056_v14, 920167782  ;;  %vm5184_vm0 = vweird.f32 %v14777_v57  ;;  %v6066_v22 = vsel %vm6062_vm12, %v6050_v8, %v6065_v30 }
 0x62d   : > { %v6070_v12 = vsel %vm6062_vm12, %v6053_v63, %v6069_v29  ;;  %v6072_v6 = vsel %vm6060_vm11, %v6050_v8, %v6053_v63  ;;  %v6073_v9 = vsel %vm6063_vm15, %v6059_v28, 1326507024  ;;  %vm5187_vm14 = vcmp.lt.s32.totalorder %v14985_v54, 2  ;;  %v234_v28 = vld [vmem:[%s10310_s3 + $0x1b0] sm:$0xff] }
 0x62e   : > { %vm5188_vm1 = vcmp.eq.s32.totalorder %v14985_v54, 0  ;;  %vm5614_vm2 = vcmp.lt.s32.totalorder %v14833_v44, 0  ;;  %v5680_v34 = vclz %v8787_v19  ;;  %v4779_v16 = vsel %vm4768_vm10, nan, %v4778_v45 }
 0x62f   : > { %v6067_v7 = vsel %vm6061_vm13, %v6064_v46, %v6066_v22  ;;  %v6071_v49 = vsel %vm6061_vm13, %v6068_v42, %v6070_v12  ;;  %v6074_v25 = vsel %vm6062_vm12, %v6056_v14, %v6073_v9  ;;  %vm15031_vm3 = vcmp.le.f32.partialorder %v5612_v0, 0.7853982 }
 0x630   : > { %v8788_v58 = vadd.s32 4294967294, %v5680_v34  ;;  %v6075_v50 = vsel %vm6061_vm13, %v6072_v6, %v6074_v25  ;;  %v15036_v53 = vmul.u32.u64.low %v6076_v59, %v6071_v49  ;;  %v15037_v40 = vmul.u32.u64.high %v6076_v59, %v6071_v49, %v15036_v53 }
 0x631   : > { %vm5191_vm4 = vcmp.eq.s32.totalorder %v14985_v54, 2  ;;  %v15041_v26 = vmul.u32.u64.low %v6076_v59, %v6075_v50  ;;  %v15042_v55 = vmul.u32.u64.high %v6076_v59, %v6075_v50, %v15041_v26  ;;  %v5512_v10 = vshrl.u32 %v5511_v17, 23 }
 0x632   : > { %v9950_v1 = vpop.eup %9949  ;;  %v7006_v20 = vadd.f32 1.0, %v4779_v16  ;;  %v5668_v0 = vadd.s32 %v14970_v43, %v14967_v47  ;;  %vm8789_vm5 = vcmp.lt.s32.totalorder %v8788_v58, 0  ;;  %v5698_v38 = vsub.s32 4, %v14991_v32 }
 0x633   : > { %v9952_v21 = vpop.eup %9951  ;;  %v5192_v23 = vxor.u32 2147483648, %v9950_v1  ;;  %v5683_v62 = vsel %vm8789_vm5, 0, %v8788_v58  ;;  %v6083_v61 = vmul.u32 %v6076_v59, %v6067_v7  ;;  %v8782_v24 = vadd.s32 4294967169, %v5512_v10 }
 0x634   : > { %v5189_v5 = vxor.u32 2147483648, %v9952_v21  ;;  %v5684_v45 = vsub.s32 32, %v5683_v62  ;;  %v5685_v18 = vshll.u32 %v15008_v52, %v5683_v62  ;;  %v5688_v37 = vsub.s32 4294967266, %v5683_v62 }
 0x635   : > { %v5193_v15 = vsel %vm5191_vm4, %v5192_v23, %v9952_v21  ;;  %vm6085_vm6 = vc.u32 %v15042_v55, %v15036_v53  ;;  %v6086_v47 = vadd.s32 1, %v15037_v40  ;;  %v5508_v43 = vand.u32 2147483647, %v14987_v27 }
 0x636   : > { %v5190_v48 = vsel %vm5188_vm1, %v9950_v1, %v5189_v5  ;;  %v5686_v11 = vshrl.u32 %v5668_v0, %v5684_v45  ;;  %v5689_v36 = vadd.s32 127, %v5688_v37  ;;  %v5699_v52 = vsel %vm5614_vm2, %v5698_v38, %v14991_v32 }
 0x637   : > { %v5194_v8 = vsel %vm5187_vm14, %v5190_v48, %v5193_v15  ;;  %v7112_v14 = vmul.f32 1.442695, %v7006_v20  ;;  %v6087_v63 = vsel %vm6085_vm6, %v6086_v47, %v15037_v40  ;;  %v5518_v56 = vadd.s32 1, %v8782_v24 }
 0x638   : > { %v5195_v60 = vsel %vm5184_vm0, nan, %v5194_v8  ;;  %v5687_v13 = vor.u32 %v5686_v11, %v5685_v18  ;;  %v5690_v59 = vshll.u32 %v5689_v36, 23  ;;  %v6088_v17 = vadd.s32 %v6087_v63, %v6083_v61 }
 0x639   : > { %v7010_v46 = vadd.f32 1.0, %v5195_v60  ;;  %v5701_v19 = vsel %vm15031_vm3, 0, %v5699_v52  ;;  %v5515_v32 = vand.u32 8388607, %v5508_v43  ;;  %vm5519_vm7 = vcmp.gt.s32.totalorder %v5518_v56, 0 }
 0x63a   : > { %v5691_v54 = vor.u32 4788187, %v5690_v59  ;;  %v5694_v30 = vcvt.s32.f32 %v5687_v13  ;;  %v6089_v42 = vadd.s32 536870912, %v6088_v17  ;;  %v5520_v29 = vsel %vm5519_vm7, %v5518_v56, 0 }
 0x63b   : > { %9953 = vpow2.f32 %v7112_v14  ;;  %v7120_v22 = vmul.f32 1.442695, %v7010_v46  ;;  %v15069_v57 = vmul.f32 %v234_v28, %v234_v28  ;;  %v5522_v12 = vand.u32 31, %v5520_v29 }
 0x63c   : > { %v5692_v6 = vand.u32 2147483647, %v5691_v54  ;;  %v15071_v9 = vadd.s32 3, %v5701_v19  ;;  %v6090_v34 = vshrl.u32 %v6089_v42, 30  ;;  %v5516_v50 = vor.u32 8388608, %v5515_v32 }
 0x63d   : > { %9955 = vpow2.f32 %v7120_v22  ;;  %v5523_v16 = vsub.s32 32, %v5522_v12  ;;  %v5525_v7 = vshll.u32 %v15844_v31, %v5522_v12  ;;  %v5924_v49 = vand.u32 2147483647, %v15069_v57 }
 0x63e   : > { %v5695_v25 = vmul.f32 %v5694_v30, %v5692_v6  ;;  %v6091_v58 = vshll.u32 %v6090_v34, 30  ;;  %v5528_v40 = vshll.u32 %v15831_v33, %v5522_v12  ;;  %v5531_v1 = vshll.u32 %v15833_v35, %v5522_v12 }
 0x63f   : > { %v5526_v26 = vshrl.u32 %v15831_v33, %v5523_v16  ;;  %v5529_v10 = vshrl.u32 %v15833_v35, %v5523_v16  ;;  %v5532_v20 = vshrl.u32 %v15835_v39, %v5523_v16  ;;  %v5521_v21 = vshrl.u32 %v5520_v29, 5 }
 0x640   : > { %v5696_v0 = vxor.u32 2147483648, %v5695_v25  ;;  %v15080_v38 = vsub.s32 %v6088_v17, %v6091_v58  ;;  %v5534_v23 = vshll.u32 %v15835_v39, %v5522_v12  ;;  %vm6030_vm8 = vcmp.lt.s32.totalorder %v14916_v2, 0 }
 0x641   : > { %v6084_v62 = vadd.s32 %v15036_v53, %v15042_v55  ;;  %v5524_v61 = vshrl.u32 %v15844_v31, %v5523_v16  ;;  %v5527_v24 = vor.u32 %v5526_v26, %v5525_v7  ;;  %v5927_v5 = vand.u32 2139095040, %v15069_v57 }
 0x642   : > { %v5697_v45 = vsel %vm5614_vm2, %v5696_v0, %v5695_v25  ;;  %v6094_v18 = vsub.s32 0, %v15080_v38  ;;  %v5530_v37 = vor.u32 %v5529_v10, %v5528_v40  ;;  %v5535_v15 = vshrl.u32 %v15842_v41, %v5523_v16 }
 0x643   : > { %v5700_v47 = vsel %vm15031_vm3, %v14833_v44, %v5697_v45  ;;  %v5533_v48 = vor.u32 %v5532_v20, %v5531_v1  ;;  %v5537_v53 = vshll.u32 %v15842_v41, %v5522_v12  ;;  %v5538_v55 = vshrl.u32 %v15838_v51, %v5523_v16 }
 0x644   : > { %vm15099_vm9 = vcmp.le.f32.partialorder %v6028_v4, 0.7853982  ;;  %v8803_v36 = vmin.u32 %v6094_v18, %v15080_v38  ;;  %v5536_v52 = vor.u32 %v5535_v15, %v5534_v23  ;;  %vm5540_vm10 = vcmp.lt.s32.totalorder %v5521_v21, 1 }
 0x645   : > { %v15104_v8 = vshll.u32 %v5516_v50, 8  ;;  %v9954_v14 = vpop.eup %9953  ;;  %9957 = vcosq.f32 %v5700_v47  ;;  %v6114_v3 = vsub.s32 4, %v6090_v34  ;;  %v5539_v63 = vor.u32 %v5538_v55, %v5537_v53 }
 0x646   : > { %v5928_v56 = vshrl.u32 %v5927_v5, 23  ;;  %9959 = vsinq.f32 %v5700_v47  ;;  %v6096_v60 = vclz %v8803_v36  ;;  %vm5541_vm11 = vcmp.lt.s32.totalorder %v5521_v21, 2 }
 0x647   : > { %vm5542_vm12 = vcmp.lt.s32.totalorder %v5521_v21, 3  ;;  %v9956_v13 = vpop.eup %9955  ;;  %vm5543_vm13 = vcmp.lt.s32.totalorder %v5521_v21, 4  ;;  %v5544_v4 = vsel %vm5540_vm10, %v5524_v61, %v5527_v24  ;;  %v5548_v59 = vsel %vm5540_vm10, %v5527_v24, %v5530_v37 }
 0x648   : > { %v5552_v17 = vsel %vm5540_vm10, %v5530_v37, %v5533_v48  ;;  %v7178_v28 = vpack.c.bf16 %v9956_v13, %v9954_v14  ;;  %v8804_v46 = vadd.s32 4294967294, %v6096_v60  ;;  %v5545_v19 = vsel %vm5543_vm13, %v5533_v48, 2102212464 }
 0x649   : > { %v5549_v32 = vsel %vm5543_vm13, %v5536_v52, 920167782  ;;  %v5546_v54 = vsel %vm5542_vm12, %v5530_v37, %v5545_v19  ;;  %v5553_v42 = vsel %vm5543_vm13, %v5539_v63, 1326507024  ;;  %v8798_v29 = vadd.s32 4294967169, %v5928_v56 }
 0x64a   : > { %v5550_v30 = vsel %vm5542_vm12, %v5533_v48, %v5549_v32  ;;  %8152 = vmatmul.mubr.bf16.gmra.mrb[20].mxu0 %v7178_v28  ;;  %8378 = vmatmul.mubr.bf16.gmra.mrb[20].mxu1 %v7178_v28  ;;  %vm8805_vm15 = vcmp.lt.s32.totalorder %v8804_v46, 0  ;;  %v6115_v22 = vsel %vm6030_vm8, %v6114_v3, %v6090_v34  ;;  %v5554_v6 = vsel %vm5542_vm12, %v5536_v52, %v5553_v42 }
 0x64b   : > { %v5551_v12 = vsel %vm5541_vm11, %v5548_v59, %v5550_v30  ;;  %v6099_v16 = vsel %vm8805_vm15, 0, %v8804_v46  ;;  %v5555_v7 = vsel %vm5541_vm11, %v5552_v17, %v5554_v6  ;;  %v5547_v10 = vsel %vm5541_vm11, %v5544_v4, %v5546_v54 }
 0x64c   : > { %v15114_v25 = vmul.u32.u64.low %v15104_v8, %v5551_v12  ;;  %v15115_v58 = vmul.u32.u64.high %v15104_v8, %v5551_v12, %v15114_v25  ;;  %v6100_v50 = vsub.s32 32, %v6099_v16  ;;  %v6101_v40 = vshll.u32 %v15080_v38, %v6099_v16 }
 0x64d   : > { %v6104_v26 = vsub.s32 4294967266, %v6099_v16  ;;  %v6117_v34 = vsel %vm15099_vm9, 0, %v6115_v22  ;;  %v15123_v1 = vmul.u32.u64.low %v15104_v8, %v5555_v7  ;;  %v15124_v20 = vmul.u32.u64.high %v15104_v8, %v5555_v7, %v15123_v1 }
 0x64e   : > { %v5934_v0 = vadd.s32 1, %v8798_v29  ;;  %v15127_v23 = vand.u32 3, %v15071_v9  ;;  %v6102_v61 = vshrl.u32 %v6084_v62, %v6100_v50  ;;  %v5563_v38 = vmul.u32 %v15104_v8, %v5547_v10  ;;  %v239_v9 = vld [vmem:[%s10310_s3 + $0x1d8] sm:$0xff] }
 0x64f   : > { %v6105_v24 = vadd.s32 127, %v6104_v26  ;;  %v9958_v5 = vpop.eup %9957  ;;  %v5566_v21 = vadd.s32 1, %v15115_v58  ;;  %v5931_v45 = vand.u32 8388607, %v5924_v49  ;;  %v6121_v47 = vadd.s32 3, %v6117_v34 }
 0x650   : > { %vm5935_vm0 = vcmp.gt.s32.totalorder %v5934_v0, 0  ;;  %v9960_v18 = vpop.eup %9959  ;;  %v6103_v37 = vor.u32 %v6102_v61, %v6101_v40  ;;  %vm5565_vm14 = vc.u32 %v15124_v20, %v15114_v25  ;;  %vm5708_vm1 = vcmp.eq.s32.totalorder %v15127_v23, 0 }
 0x651   : > { %v6106_v15 = vshll.u32 %v6105_v24, 23  ;;  %v5936_v48 = vsel %vm5935_vm0, %v5934_v0, 0  ;;  %v5567_v55 = vsel %vm5565_vm14, %v5566_v21, %v15115_v58  ;;  %vm5711_vm2 = vcmp.eq.s32.totalorder %v15127_v23, 2 }
 0x652   : > { %v6110_v53 = vcvt.s32.f32 %v6103_v37  ;;  %v5712_v36 = vxor.u32 2147483648, %v9958_v5  ;;  %v5568_v52 = vadd.s32 %v5567_v55, %v5563_v38  ;;  %v5938_v8 = vand.u32 31, %v5936_v48 }
 0x653   : > { %v6107_v62 = vor.u32 4788187, %v6106_v15  ;;  %vm5707_vm3 = vcmp.lt.s32.totalorder %v15127_v23, 2  ;;  %v15140_v3 = vand.u32 3, %v6121_v47  ;;  %v5932_v63 = vor.u32 8388608, %v5931_v45 }
 0x654   : > { %v15142_v56 = vmul.f32 %v239_v9, %v239_v9  ;;  %v5709_v60 = vxor.u32 2147483648, %v9960_v18  ;;  %v5569_v13 = vadd.s32 536870912, %v5568_v52  ;;  %v5937_v4 = vshrl.u32 %v5936_v48, 5 }
 0x655   : > { %v6108_v14 = vand.u32 2147483647, %v6107_v62  ;;  %v5939_v59 = vsub.s32 32, %v5938_v8  ;;  %v5941_v28 = vshll.u32 %v15844_v31, %v5938_v8  ;;  %v5944_v46 = vshll.u32 %v15831_v33, %v5938_v8 }
 0x656   : > { %v5950_v19 = vshll.u32 %v15835_v39, %v5938_v8  ;;  %vm5704_vm4 = vweird.f32 %v14833_v44  ;;  %v5713_v32 = vsel %vm5711_vm2, %v5712_v36, %v9960_v18  ;;  %v15150_v54 = vshrl.u32 %v5569_v13, 30 }
 0x657   : > { %v6111_v17 = vmul.f32 %v6110_v53, %v6108_v14  ;;  %v5942_v30 = vshrl.u32 %v15831_v33, %v5939_v59  ;;  %v5947_v42 = vshll.u32 %v15833_v35, %v5938_v8  ;;  %v5945_v22 = vshrl.u32 %v15833_v35, %v5939_v59 }
 0x658   : > { %v5948_v12 = vshrl.u32 %v15835_v39, %v5939_v59  ;;  %v5951_v6 = vshrl.u32 %v15842_v41, %v5939_v59  ;;  %v5710_v16 = vsel %vm5708_vm1, %v9958_v5, %v5709_v60  ;;  %v5571_v7 = vshll.u32 %v15150_v54, 30 }
 0x659   : > { %v6112_v29 = vxor.u32 2147483648, %v6111_v17  ;;  %v5940_v58 = vshrl.u32 %v15844_v31, %v5939_v59  ;;  %vm5956_vm5 = vcmp.lt.s32.totalorder %v5937_v4, 1  ;;  %v5943_v40 = vor.u32 %v5942_v30, %v5941_v28 }
 0x65a   : > { %v5946_v26 = vor.u32 %v5945_v22, %v5944_v46  ;;  %v5952_v10 = vor.u32 %v5951_v6, %v5950_v19  ;;  %v15166_v1 = vsub.s32 %v5568_v52, %v5571_v7  ;;  %v5949_v0 = vor.u32 %v5948_v12, %v5947_v42 }
 0x65b   : > { %v6113_v50 = vsel %vm6030_vm8, %v6112_v29, %v6111_v17  ;;  %v5953_v61 = vshll.u32 %v15842_v41, %v5938_v8  ;;  %v5954_v24 = vshrl.u32 %v15838_v51, %v5939_v59  ;;  %vm5958_vm6 = vcmp.lt.s32.totalorder %v5937_v4, 3 }
 0x65c   : > { %v6116_v34 = vsel %vm15099_vm9, %v14916_v2, %v6113_v50  ;;  %vm5959_vm7 = vcmp.lt.s32.totalorder %v5937_v4, 4  ;;  %v5574_v5 = vsub.s32 0, %v15166_v1  ;;  %vm5957_vm8 = vcmp.lt.s32.totalorder %v5937_v4, 2 }
 0x65d   : > { %9961 = vcosq.f32 %v6116_v34  ;;  %v5972_v38 = vshll.u32 %v5932_v63, 8  ;;  %v5955_v21 = vor.u32 %v5954_v24, %v5953_v61  ;;  %v5961_v45 = vsel %vm5959_vm7, %v5949_v0, 2102212464 }
 0x65e   : > { %9963 = vsinq.f32 %v6116_v34  ;;  %v5964_v11 = vsel %vm5956_vm5, %v5943_v40, %v5946_v26  ;;  %v5965_v18 = vsel %vm5959_vm7, %v5952_v10, 920167782  ;;  %v5714_v37 = vsel %vm5707_vm3, %v5710_v16, %v5713_v32 }
 0x65f   : > { %v8783_v15 = vmin.u32 %v5574_v5, %v15166_v1  ;;  %v5960_v47 = vsel %vm5956_vm5, %v5940_v58, %v5943_v40  ;;  %v5966_v48 = vsel %vm5958_vm6, %v5949_v0, %v5965_v18  ;;  %v5962_v9 = vsel %vm5958_vm6, %v5946_v26, %v5961_v45 }
 0x660   : > { %v5967_v62 = vsel %vm5957_vm8, %v5964_v11, %v5966_v48  ;;  %v5968_v53 = vsel %vm5956_vm5, %v5946_v26, %v5949_v0  ;;  %v5969_v55 = vsel %vm5959_vm7, %v5955_v21, 1326507024  ;;  %vm6120_vm9 = vweird.f32 %v14916_v2  ;;  %v243_v21 = vld [vmem:[%s10310_s3 + $0x1f8] sm:$0xff] }
 0x661   : > { %vm6123_vm10 = vcmp.lt.s32.totalorder %v15140_v3, 2  ;;  %vm5510_vm11 = vcmp.lt.s32.totalorder %v14987_v27, 0  ;;  %v5576_v23 = vclz %v8783_v15  ;;  %v5715_v36 = vsel %vm5704_vm4, nan, %v5714_v37 }
 0x662   : > { %vm15190_vm12 = vcmp.le.f32.partialorder %v5508_v43, 0.7853982  ;;  %v5970_v8 = vsel %vm5958_vm6, %v5952_v10, %v5969_v55  ;;  %v15195_v14 = vmul.u32.u64.low %v5972_v38, %v5967_v62  ;;  %v15196_v63 = vmul.u32.u64.high %v5972_v38, %v5967_v62, %v15195_v14 }
 0x663   : > { %vm6124_vm13 = vcmp.eq.s32.totalorder %v15140_v3, 0  ;;  %v8784_v60 = vadd.s32 4294967294, %v5576_v23  ;;  %v5963_v13 = vsel %vm5957_vm8, %v5960_v47, %v5962_v9  ;;  %v5971_v44 = vsel %vm5957_vm8, %v5968_v53, %v5970_v8 }
 0x664   : > { %v5594_v59 = vsub.s32 4, %v15150_v54  ;;  %v15203_v17 = vmul.u32.u64.low %v5972_v38, %v5971_v44  ;;  %v15204_v43 = vmul.u32.u64.high %v5972_v38, %v5971_v44, %v15203_v17  ;;  %v6447_v28 = vand.u32 2139095040, %v15142_v56 }
 0x665   : > { %vm6127_vm15 = vcmp.eq.s32.totalorder %v15140_v3, 2  ;;  %v7015_v46 = vadd.f32 1.0, %v5715_v36  ;;  %v5564_v19 = vadd.s32 %v15114_v25, %v15124_v20  ;;  %vm8785_vm0 = vcmp.lt.s32.totalorder %v8784_v60, 0 }
 0x666   : > { %v5579_v30 = vsel %vm8785_vm0, 0, %v8784_v60  ;;  %v5979_v42 = vmul.u32 %v5972_v38, %v5963_v13  ;;  %v5982_v4 = vadd.s32 1, %v15196_v63  ;;  %v6448_v29 = vshrl.u32 %v6447_v28, 23 }
 0x667   : > { %v9962_v32 = vpop.eup %9961  ;;  %v5580_v6 = vsub.s32 32, %v5579_v30  ;;  %v5581_v16 = vshll.u32 %v15166_v1, %v5579_v30  ;;  %v5584_v7 = vsub.s32 4294967266, %v5579_v30  ;;  %v5595_v50 = vsel %vm5510_vm11, %v5594_v59, %v15150_v54 }
 0x668   : > { %v9964_v22 = vpop.eup %9963  ;;  %v6128_v12 = vxor.u32 2147483648, %v9962_v32  ;;  %vm5981_vm14 = vc.u32 %v15204_v43, %v15195_v14  ;;  %v8818_v25 = vadd.s32 4294967169, %v6448_v29  ;;  %v7130_v1 = vmul.f32 1.442695, %v7015_v46 }
 0x669   : > { %v6125_v58 = vxor.u32 2147483648, %v9964_v22  ;;  %v5582_v40 = vshrl.u32 %v5564_v19, %v5580_v6  ;;  %v5585_v26 = vadd.s32 127, %v5584_v7  ;;  %v5983_v10 = vsel %vm5981_vm14, %v5982_v4, %v15196_v63 }
 0x66a   : > { %v6129_v20 = vsel %vm6127_vm15, %v6128_v12, %v9964_v22  ;;  %v5984_v0 = vadd.s32 %v5983_v10, %v5979_v42  ;;  %v6454_v61 = vadd.s32 1, %v8818_v25  ;;  %v5597_v38 = vsel %vm15190_vm12, 0, %v5595_v50 }
 0x66b   : > { %v6126_v34 = vsel %vm6124_vm13, %v9962_v32, %v6125_v58  ;;  %v5583_v24 = vor.u32 %v5582_v40, %v5581_v16  ;;  %v5586_v5 = vshll.u32 %v5585_v26, 23  ;;  %v6444_v18 = vand.u32 2147483647, %v15142_v56 }
 0x66c   : > { %v6130_v54 = vsel %vm6123_vm10, %v6126_v34, %v6129_v20  ;;  %v5985_v11 = vadd.s32 536870912, %v5984_v0  ;;  %vm6455_vm1 = vcmp.gt.s32.totalorder %v6454_v61, 0  ;;  %v15232_v3 = vmul.f32 %v243_v21, %v243_v21 }
 0x66d   : > { %v6131_v45 = vsel %vm6120_vm9, nan, %v6130_v54  ;;  %v5587_v15 = vor.u32 4788187, %v5586_v5  ;;  %v5590_v47 = vcvt.s32.f32 %v5583_v24  ;;  %v6456_v48 = vsel %vm6455_vm1, %v6454_v61, 0 }
 0x66e   : > { %v7019_v37 = vadd.f32 1.0, %v6131_v45  ;;  %v15230_v9 = vshrl.u32 %v5985_v11, 30  ;;  %v6458_v62 = vand.u32 31, %v6456_v48  ;;  %9965 = vpow2.f32 %v7130_v1 }
 0x66f   : > { %v5588_v55 = vand.u32 2147483647, %v5587_v15  ;;  %v15234_v23 = vadd.s32 3, %v5597_v38  ;;  %v6451_v36 = vand.u32 8388607, %v6444_v18  ;;  %v5980_v59 = vadd.s32 %v15195_v14, %v15204_v43 }
 0x670   : > { %v7138_v53 = vmul.f32 1.442695, %v7019_v37  ;;  %v5987_v2 = vshll.u32 %v15230_v9, 30  ;;  %v6459_v8 = vsub.s32 32, %v6458_v62  ;;  %v15837_v63 = vand.u32 2147483647, %v15232_v3 }
 0x671   : > { %v5591_v60 = vmul.f32 %v5590_v47, %v5588_v55  ;;  %v6461_v13 = vshll.u32 %v15844_v31, %v6458_v62  ;;  %v6464_v44 = vshll.u32 %v15831_v33, %v6458_v62  ;;  %v6467_v46 = vshll.u32 %v15833_v35, %v6458_v62 }
 0x672   : > { %9967 = vpow2.f32 %v7138_v53  ;;  %v15244_v17 = vsub.s32 %v5984_v0, %v5987_v2  ;;  %v6462_v28 = vshrl.u32 %v15831_v33, %v6459_v8  ;;  %v6457_v32 = vshrl.u32 %v6456_v48, 5 }
 0x673   : > { %v5592_v19 = vxor.u32 2147483648, %v5591_v60  ;;  %v6465_v30 = vshrl.u32 %v15833_v35, %v6459_v8  ;;  %v6468_v42 = vshrl.u32 %v15835_v39, %v6459_v8  ;;  %v6452_v29 = vor.u32 8388608, %v6451_v36 }
 0x674   : > { %v5990_v4 = vsub.s32 0, %v15244_v17  ;;  %v6460_v22 = vshrl.u32 %v15844_v31, %v6459_v8  ;;  %v6470_v12 = vshll.u32 %v15835_v39, %v6458_v62  ;;  %v6463_v43 = vor.u32 %v6462_v28, %v6461_v13 }
 0x675   : > { %v5593_v14 = vsel %vm5510_vm11, %v5592_v19, %v5591_v60  ;;  %v6466_v6 = vor.u32 %v6465_v30, %v6464_v44  ;;  %v6471_v16 = vshrl.u32 %v15842_v41, %v6459_v8  ;;  %v6469_v50 = vor.u32 %v6468_v42, %v6467_v46 }
 0x676   : > { %v5596_v7 = vsel %vm15190_vm12, %v14987_v27, %v5593_v14  ;;  %v8799_v58 = vmin.u32 %v5990_v4, %v15244_v17  ;;  %v6473_v25 = vshll.u32 %v15842_v41, %v6458_v62  ;;  %vm5926_vm2 = vcmp.lt.s32.totalorder %v15069_v57, 0 }
 0x677   : > { %9969 = vcosq.f32 %v5596_v7  ;;  %v6472_v20 = vor.u32 %v6471_v16, %v6470_v12  ;;  %v6474_v40 = vshrl.u32 %v15838_v51, %v6459_v8  ;;  %vm6476_vm3 = vcmp.lt.s32.totalorder %v6457_v32, 1 }
 0x678   : > { %9971 = vsinq.f32 %v5596_v7  ;;  %v5992_v26 = vclz %v8799_v58  ;;  %v6492_v10 = vshll.u32 %v6452_v29, 8  ;;  %v6863_v34 = vand.u32 2139095040, %v15232_v3  ;;  %v9966_v1 = vpop.eup %9965 }
 0x679   : > { %v6010_v52 = vsub.s32 4, %v15230_v9  ;;  %v6475_v0 = vor.u32 %v6474_v40, %v6473_v25  ;;  %vm6477_vm4 = vcmp.lt.s32.totalorder %v6457_v32, 2  ;;  %vm6478_vm5 = vcmp.lt.s32.totalorder %v6457_v32, 3 }
 0x67a   : > { %v8800_v61 = vadd.s32 4294967294, %v5992_v26  ;;  %vm6479_vm6 = vcmp.lt.s32.totalorder %v6457_v32, 4  ;;  %v6480_v54 = vsel %vm6476_vm3, %v6460_v22, %v6463_v43  ;;  %v6484_v24 = vsel %vm6476_vm3, %v6463_v43, %v6466_v6 }
 0x67b   : > { %v6481_v38 = vsel %vm6479_vm6, %v6469_v50, 2102212464  ;;  %v6485_v21 = vsel %vm6479_vm6, %v6472_v20, 920167782  ;;  %v6488_v45 = vsel %vm6476_vm3, %v6466_v6, %v6469_v50  ;;  %v6489_v11 = vsel %vm6479_vm6, %v6475_v0, 1326507024 }
 0x67c   : > { %v9968_v5 = vpop.eup %9967  ;;  %vm8801_vm7 = vcmp.lt.s32.totalorder %v8800_v61, 0  ;;  %v6482_v15 = vsel %vm6478_vm5, %v6466_v6, %v6481_v38  ;;  %v6486_v47 = vsel %vm6478_vm5, %v6469_v50, %v6485_v21  ;;  %v6490_v55 = vsel %vm6478_vm5, %v6472_v20, %v6489_v11 }
 0x67d   : > { %v7183_v37 = vpack.c.bf16 %v9968_v5, %v9966_v1  ;;  %v5995_v48 = vsel %vm8801_vm7, 0, %v8800_v61  ;;  %v6483_v62 = vsel %vm6477_vm4, %v6480_v54, %v6482_v15  ;;  %v6487_v53 = vsel %vm6477_vm4, %v6484_v24, %v6486_v47  ;;  %v238_v1 = vld [vmem:[%s10310_s3 + $0x1d0] sm:$0xff] }
 0x67e   : > { %v5996_v2 = vsub.s32 32, %v5995_v48  ;;  %v5997_v36 = vshll.u32 %v15244_v17, %v5995_v48  ;;  %v6000_v8 = vsub.s32 4294967266, %v5995_v48  ;;  %v6491_v60 = vsel %vm6477_vm4, %v6488_v45, %v6490_v55 }
 0x67f   : > { %8161 = vmatprep.mubr.bf16.mxu0 %v7183_v37  ;;  %8387 = vmatprep.mubr.bf16.mxu1 %v7183_v37  ;;  %v15275_v13 = vmul.u32.u64.low %v6492_v10, %v6491_v60  ;;  %v15276_v44 = vmul.u32.u64.high %v6492_v10, %v6491_v60, %v15275_v13  ;;  %v15278_v28 = vmul.u32.u64.low %v6492_v10, %v6487_v53  ;;  %v15279_v46 = vmul.u32.u64.high %v6492_v10, %v6487_v53, %v15278_v28 }
 0x680   : > { %v5998_v19 = vshrl.u32 %v5980_v59, %v5996_v2  ;;  %v6001_v30 = vadd.s32 127, %v6000_v8  ;;  %v6011_v42 = vsel %vm5926_vm2, %v6010_v52, %v15230_v9  ;;  %v6864_v4 = vshrl.u32 %v6863_v34, 23 }
 0x681   : > { %v9970_v29 = vpop.eup %9969  ;;  %v5602_v22 = vand.u32 3, %v15234_v23  ;;  %vm15287_vm8 = vcmp.le.f32.partialorder %v5924_v49, 0.7853982  ;;  %v6867_v32 = vand.u32 8388607, %v15837_v63  ;;  %v6499_v43 = vmul.u32 %v6492_v10, %v6483_v62 }
 0x682   : > { %v9972_v12 = vpop.eup %9971  ;;  %v5999_v59 = vor.u32 %v5998_v19, %v5997_v36  ;;  %v6002_v14 = vshll.u32 %v6001_v30, 23  ;;  %v8834_v6 = vadd.s32 4294967169, %v6864_v4  ;;  %v5608_v16 = vxor.u32 2147483648, %v9970_v29 }
 0x683   : > { %v6013_v9 = vsel %vm15287_vm8, 0, %v6011_v42  ;;  %vm6501_vm9 = vc.u32 %v15276_v44, %v15278_v28  ;;  %v6502_v49 = vadd.s32 1, %v15279_v46  ;;  %v5605_v23 = vxor.u32 2147483648, %v9972_v12 }
 0x684   : > { %v6003_v7 = vor.u32 4788187, %v6002_v14  ;;  %v6006_v58 = vcvt.s32.f32 %v5999_v59  ;;  %v6870_v50 = vadd.s32 1, %v8834_v6  ;;  %vm5604_vm10 = vcmp.eq.s32.totalorder %v5602_v22, 0 }
 0x685   : > { %vm5607_vm11 = vcmp.eq.s32.totalorder %v5602_v22, 2  ;;  %v6503_v25 = vsel %vm6501_vm9, %v6502_v49, %v15279_v46  ;;  %v6017_v40 = vadd.s32 3, %v6013_v9  ;;  %vm5603_vm13 = vcmp.lt.s32.totalorder %v5602_v22, 2 }
 0x686   : > { %v6004_v20 = vand.u32 2147483647, %v6003_v7  ;;  %v6504_v26 = vadd.s32 %v6503_v25, %v6499_v43  ;;  %vm6871_vm12 = vcmp.gt.s32.totalorder %v6870_v50, 0  ;;  %v6868_v10 = vor.u32 8388608, %v6867_v32 }
 0x687   : > { %v6872_v34 = vsel %vm6871_vm12, %v6870_v50, 0  ;;  %v5606_v52 = vsel %vm5604_vm10, %v9970_v29, %v5605_v23  ;;  %v5609_v0 = vsel %vm5607_vm11, %v5608_v16, %v9972_v12  ;;  %vm5600_vm15 = vweird.f32 %v14987_v27 }
 0x688   : > { %v6007_v61 = vmul.f32 %v6006_v58, %v6004_v20  ;;  %v6505_v54 = vadd.s32 536870912, %v6504_v26  ;;  %v6874_v24 = vand.u32 31, %v6872_v34  ;;  %v15300_v38 = vand.u32 3, %v6017_v40 }
 0x689   : > { %v15304_v45 = vmul.f32 %v238_v1, %v238_v1  ;;  %v5610_v11 = vsel %vm5603_vm13, %v5606_v52, %v5609_v0  ;;  %v15307_v37 = vadd.s32 %v15278_v28, %v15276_v44  ;;  %v15309_v47 = vshll.u32 %v6868_v10, 8 }
 0x68a   : > { %v6008_v5 = vxor.u32 2147483648, %v6007_v61  ;;  %v15302_v21 = vshrl.u32 %v6505_v54, 30  ;;  %v6875_v15 = vsub.s32 32, %v6874_v24  ;;  %v6877_v53 = vshll.u32 %v15844_v31, %v6874_v24  ;;  %v15355_v54 = vpop.f32.mrb[0].mxu1 }
 0x68b   : > { %15982 = vst [vmem:[#allocation11_spill] sm:$0xff] %v15304_v45  ;;  %v6880_v55 = vshll.u32 %v15831_v33, %v6874_v24  ;;  %v6883_v60 = vshll.u32 %v15833_v35, %v6874_v24  ;;  %v6873_v44 = vshrl.u32 %v6872_v34, 5  ;;  %v5611_v46 = vsel %vm5600_vm15, nan, %v5610_v11 }
 0x68c   : > { %v6009_v48 = vsel %vm5926_vm2, %v6008_v5, %v6007_v61  ;;  %v6507_v62 = vshll.u32 %v15302_v21, 30  ;;  %v6878_v36 = vshrl.u32 %v15831_v33, %v6875_v15  ;;  %v6881_v8 = vshrl.u32 %v15833_v35, %v6875_v15  ;;  %v15353_v61 = vpop.f32.mrb[0].mxu0 }
 0x68d   : > { %v6012_v2 = vsel %vm15287_vm8, %v15069_v57, %v6009_v48  ;;  %v6884_v28 = vshrl.u32 %v15835_v39, %v6875_v15  ;;  %v6876_v19 = vshrl.u32 %v15844_v31, %v6875_v15  ;;  %v15830_v30 = vand.u32 2147483647, %v15304_v45  ;;  %v15363_v48 = vpop.f32.mrb[1].mxu0 }
 0x68e   : > { %9973 = vcosq.f32 %v6012_v2  ;;  %v15322_v13 = vsub.s32 %v6504_v26, %v6507_v62  ;;  %vm6023_vm0 = vcmp.eq.s32.totalorder %v15300_v38, 2  ;;  %v6879_v4 = vor.u32 %v6878_v36, %v6877_v53  ;;  %v15365_v62 = vpop.f32.mrb[1].mxu1 }
 0x68f   : > { %9975 = vsinq.f32 %v6012_v2  ;;  %v6882_v29 = vor.u32 %v6881_v8, %v6880_v55  ;;  %v6886_v22 = vshll.u32 %v15835_v39, %v6874_v24  ;;  %vm6020_vm14 = vcmp.eq.s32.totalorder %v15300_v38, 0 }
 0x690   : > { %v6510_v42 = vsub.s32 0, %v15322_v13  ;;  %v6885_v17 = vor.u32 %v6884_v28, %v6883_v60  ;;  %v6887_v32 = vshrl.u32 %v15842_v41, %v6875_v15  ;;  %v6889_v27 = vshll.u32 %v15842_v41, %v6874_v24  ;;  %v15371_v60 = vpop.f32.mrb[2].mxu0 }
 0x691   : > { %v6890_v12 = vshrl.u32 %v15838_v51, %v6875_v15  ;;  %vm6019_vm1 = vcmp.lt.s32.totalorder %v15300_v38, 2  ;;  %vm6892_vm2 = vcmp.lt.s32.totalorder %v6873_v44, 1  ;;  %vm6895_vm3 = vcmp.lt.s32.totalorder %v6873_v44, 4 }
 0x692   : > { %v8819_v59 = vmin.u32 %v6510_v42, %v15322_v13  ;;  %v6343_v14 = vand.u32 2139095040, %v15304_v45  ;;  %vm6016_vm4 = vweird.f32 %v15069_v57  ;;  %v6888_v43 = vor.u32 %v6887_v32, %v6886_v22 }
 0x693   : > { %v6891_v6 = vor.u32 %v6890_v12, %v6889_v27  ;;  %vm6894_vm5 = vcmp.lt.s32.totalorder %v6873_v44, 3  ;;  %v6897_v16 = vsel %vm6895_vm3, %v6885_v17, 2102212464  ;;  %v7014_v9 = vadd.f32 1.0, %v5611_v46 }
 0x694   : > { %vm6446_vm6 = vcmp.lt.s32.totalorder %v15142_v56, 0  ;;  %v6512_v49 = vclz %v8819_v59  ;;  %vm6893_vm7 = vcmp.lt.s32.totalorder %v6873_v44, 2  ;;  %v6896_v23 = vsel %vm6892_vm2, %v6876_v19, %v6879_v4  ;;  %v15373_v44 = vpop.f32.mrb[2].mxu1 }
 0x695   : > { %v6898_v7 = vsel %vm6894_vm5, %v6882_v29, %v6897_v16  ;;  %v6900_v58 = vsel %vm6892_vm2, %v6879_v4, %v6882_v29  ;;  %v6901_v50 = vsel %vm6895_vm3, %v6888_v43, 920167782  ;;  %v6904_v25 = vsel %vm6892_vm2, %v6882_v29, %v6885_v17  ;;  %v15376_v4 = vpop.f32.mrb[3].mxu0  ;;  %v15378_v29 = vpop.f32.mrb[3].mxu1 }
 0x696   : > { %v8820_v20 = vadd.s32 4294967294, %v6512_v49  ;;  %v6530_v40 = vsub.s32 4, %v15302_v21  ;;  %v6902_v26 = vsel %vm6894_vm5, %v6885_v17, %v6901_v50  ;;  %v6905_v10 = vsel %vm6895_vm3, %v6891_v6, 1326507024  ;;  %v15383_v12 = vpop.f32.mrb[4].mxu0  ;;  %v15385_v59 = vpop.f32.mrb[4].mxu1 }
 0x697   : > { %v6899_v34 = vsel %vm6893_vm7, %v6896_v23, %v6898_v7  ;;  %v6903_v1 = vsel %vm6893_vm7, %v6900_v58, %v6902_v26  ;;  %v6906_v52 = vsel %vm6894_vm5, %v6888_v43, %v6905_v10  ;;  %v6344_v0 = vshrl.u32 %v6343_v14, 23  ;;  %v15391_v16 = vpop.f32.mrb[5].mxu0  ;;  %v15393_v49 = vpop.f32.mrb[5].mxu1 }
 0x698   : > { %v9974_v24 = vpop.eup %9973  ;;  %vm8821_vm8 = vcmp.lt.s32.totalorder %v8820_v20, 0  ;;  %v6907_v5 = vsel %vm6893_vm7, %v6904_v25, %v6906_v52  ;;  %v15359_v11 = vmul.u32.u64.low %v15309_v47, %v6903_v1  ;;  %v15360_v15 = vmul.u32.u64.high %v15309_v47, %v6903_v1, %v15359_v11  ;;  %v15402_v7 = vpop.f32.mrb[6].mxu0 }
 0x699   : > { %v9976_v53 = vpop.eup %9975  ;;  %v6024_v55 = vxor.u32 2147483648, %v9974_v24  ;;  %v6515_v2 = vsel %vm8821_vm8, 0, %v8820_v20  ;;  %v15368_v36 = vmul.u32.u64.low %v15309_v47, %v6907_v5  ;;  %v15369_v8 = vmul.u32.u64.high %v15309_v47, %v6907_v5, %v15368_v36  ;;  %v242_v20 = vld [vmem:[%s10310_s3 + $0x1f0] sm:$0xff]  ;;  %v15410_v26 = vpop.f32.mrb[7].mxu0 }
 0x69a   : > { %v6021_v28 = vxor.u32 2147483648, %v9976_v53  ;;  %v6516_v46 = vsub.s32 32, %v6515_v2  ;;  %v6517_v19 = vshll.u32 %v15322_v13, %v6515_v2  ;;  %v6520_v42 = vsub.s32 4294967266, %v6515_v2  ;;  %v15420_v57 = vpop.f32.mrb[8].mxu0 }
 0x69b   : > { %v6025_v22 = vsel %vm6023_vm0, %v6024_v55, %v9976_v53  ;;  %v7128_v17 = vmul.f32 1.442695, %v7014_v9  ;;  %v6915_v32 = vmul.u32 %v15309_v47, %v6899_v34  ;;  %v8814_v27 = vadd.s32 4294967169, %v6344_v0 }
 0x69c   : > { %v6022_v14 = vsel %vm6020_vm14, %v9974_v24, %v6021_v28  ;;  %v6518_v13 = vshrl.u32 %v15307_v37, %v6516_v46  ;;  %v6521_v43 = vadd.s32 127, %v6520_v42  ;;  %v6918_v6 = vadd.s32 1, %v15360_v15  ;;  %v15404_v37 = vpop.f32.mrb[6].mxu1 }
 0x69d   : > { %v6026_v47 = vsel %vm6019_vm1, %v6022_v14, %v6025_v22  ;;  %v6531_v9 = vsel %vm6446_vm6, %v6530_v40, %v15302_v21  ;;  %vm6917_vm9 = vc.u32 %v15369_v8, %v15359_v11  ;;  %v6350_v23 = vadd.s32 1, %v8814_v27  ;;  %v15412_v10 = vpop.f32.mrb[7].mxu1 }
 0x69e   : > { %v6027_v58 = vsel %vm6016_vm4, nan, %v6026_v47  ;;  %v6519_v50 = vor.u32 %v6518_v13, %v6517_v19  ;;  %v6522_v25 = vshll.u32 %v6521_v43, 23  ;;  %v6919_v38 = vsel %vm6917_vm9, %v6918_v6, %v15360_v15  ;;  %v15422_v1 = vpop.f32.mrb[8].mxu1  ;;  %v15426_v15 = vpop.f32.mrb[9].mxu0 }
 0x69f   : > { %v7018_v21 = vadd.f32 1.0, %v6027_v58  ;;  %vm15416_vm10 = vcmp.le.f32.partialorder %v6444_v18, 0.7853982  ;;  %v6920_v34 = vadd.s32 %v6919_v38, %v6915_v32  ;;  %vm6351_vm11 = vcmp.gt.s32.totalorder %v6350_v23, 0  ;;  %v15428_v2 = vpop.f32.mrb[9].mxu1  ;;  %v15436_v32 = vpop.f32.mrb[10].mxu0 }
 0x6a0   : > { %v6523_v52 = vor.u32 4788187, %v6522_v25  ;;  %v6526_v0 = vcvt.s32.f32 %v6519_v50  ;;  %v6533_v24 = vsel %vm15416_vm10, 0, %v6531_v9  ;;  %v6352_v5 = vsel %vm6351_vm11, %v6350_v23, 0  ;;  %v15438_v27 = vpop.f32.mrb[10].mxu1  ;;  %v15444_v6 = vpop.f32.mrb[11].mxu0 }
 0x6a1   : > { %9977 = vpow2.f32 %v7128_v17  ;;  %v7136_v53 = vmul.f32 1.442695, %v7018_v21  ;;  %v6921_v18 = vadd.s32 536870912, %v6920_v34  ;;  %v6354_v55 = vand.u32 31, %v6352_v5  ;;  %v15446_v47 = vpop.f32.mrb[11].mxu1  ;;  %v15452_v25 = vpop.f32.mrb[12].mxu0 }
 0x6a2   : > { %v6524_v36 = vand.u32 2147483647, %v6523_v52  ;;  %v15430_v28 = vmul.f32 %v242_v20, %v242_v20  ;;  %v6347_v46 = vand.u32 8388607, %v15830_v30  ;;  %v6537_v19 = vadd.s32 3, %v6533_v24  ;;  %v15454_v38 = vpop.f32.mrb[12].mxu1 }
 0x6a3   : > { %9979 = vpow2.f32 %v7136_v53  ;;  %v15434_v42 = vshrl.u32 %v6921_v18, 30  ;;  %v6355_v22 = vsub.s32 32, %v6354_v55  ;;  %v15440_v14 = vshrl.u32 %v6352_v5, 5  ;;  %v15459_v24 = vpop.f32.mrb[13].mxu0  ;;  %v15461_v5 = vpop.f32.mrb[13].mxu1 }
 0x6a4   : > { %15985 = vst [vmem:[#allocation12_spill] sm:$0xff] %v15430_v28  ;;  %v6527_v17 = vmul.f32 %v6526_v0, %v6524_v36  ;;  %v6357_v13 = vshll.u32 %v15844_v31, %v6354_v55  ;;  %v6360_v43 = vshll.u32 %v15831_v33, %v6354_v55  ;;  %v6363_v58 = vshll.u32 %v15833_v35, %v6354_v55 }
 0x6a5   : > { %v6923_v9 = vshll.u32 %v15434_v42, 30  ;;  %v6358_v23 = vshrl.u32 %v15831_v33, %v6355_v22  ;;  %v6366_v50 = vshll.u32 %v15835_v39, %v6354_v55  ;;  %v6361_v21 = vshrl.u32 %v15833_v35, %v6355_v22  ;;  %15986 = vst [vmem:[#allocation13_spill] sm:$0xff] %v15461_v5  ;;  %v15471_v33 = vpop.f32.mrb[14].mxu0  ;;  %v15473_v35 = vpop.f32.mrb[14].mxu1 }
 0x6a6   : > { %v6528_v20 = vxor.u32 2147483648, %v6527_v17  ;;  %v6364_v52 = vshrl.u32 %v15835_v39, %v6355_v22  ;;  %v6367_v0 = vshrl.u32 %v15842_v41, %v6355_v22  ;;  %v15463_v53 = vand.u32 3, %v6537_v19  ;;  %v15479_v45 = vpop.f32.mrb[15].mxu0  ;;  %v15481_v5 = vpop.f32.mrb[15].mxu1 }
 0x6a7   : > { %v15467_v18 = vadd.s32 %v15359_v11, %v15369_v8  ;;  %v15469_v36 = vsub.s32 %v6920_v34, %v6923_v9  ;;  %v6348_v30 = vor.u32 8388608, %v6347_v46  ;;  %v6356_v63 = vshrl.u32 %v15844_v31, %v6355_v22 }
 0x6a8   : > { %v6529_v39 = vsel %vm6446_vm6, %v6528_v20, %v6527_v17  ;;  %v6359_v51 = vor.u32 %v6358_v23, %v6357_v13  ;;  %v6369_v19 = vshll.u32 %v15842_v41, %v6354_v55  ;;  %vm6862_vm12 = vcmp.lt.s32.totalorder %v15232_v3, 0 }
 0x6a9   : > { %v6532_v11 = vsel %vm15416_vm10, %v15142_v56, %v6529_v39  ;;  %v6926_v8 = vsub.s32 0, %v15469_v36  ;;  %v6362_v34 = vor.u32 %v6361_v21, %v6360_v43  ;;  %v6365_v46 = vor.u32 %v6364_v52, %v6363_v58 }
 0x6aa   : > { %9981 = vcosq.f32 %v6532_v11  ;;  %v6368_v17 = vor.u32 %v6367_v0, %v6366_v50  ;;  %v15987_v9 = vmov 1326507024   ;;  %vm6372_vm13 = vcmp.lt.s32.totalorder %v15440_v14, 1 }
 0x6ab   : > { %v6370_v13 = vshrl.u32 %v15987_v9, %v6355_v22  ;;  %v9978_v55 = vpop.eup %9977  ;;  %9983 = vsinq.f32 %v6532_v11  ;;  %v8835_v23 = vmin.u32 %v6926_v8, %v15469_v36  ;;  %v15491_v20 = vshll.u32 %v6348_v30, 8 }
 0x6ac   : > { %v6759_v39 = vand.u32 2139095040, %v15430_v28  ;;  %v15988_v40 = vand.u32 2147483647, %v15232_v3  ;;  %v6946_v43 = vsub.s32 4, %v15434_v42  ;;  %vm6374_vm0 = vcmp.lt.s32.totalorder %v15440_v14, 3 }
 0x6ad   : > { %v6371_v58 = vor.u32 %v6370_v13, %v6369_v19  ;;  %vm6375_vm14 = vcmp.lt.s32.totalorder %v15440_v14, 4  ;;  %v9980_v22 = vpop.eup %9979  ;;  %v6928_v50 = vclz %v8835_v23  ;;  %vm6373_vm1 = vcmp.lt.s32.totalorder %v15440_v14, 2 }
 0x6ae   : > { %vm15496_vm15 = vcmp.le.f32.partialorder %v15988_v40, 0.7853982  ;;  %v6376_v30 = vsel %vm6372_vm13, %v6356_v63, %v6359_v51  ;;  %v6380_v21 = vsel %vm6372_vm13, %v6359_v51, %v6362_v34  ;;  %v7182_v52 = vpack.c.bf16 %v9980_v22, %v9978_v55 }
 0x6af   : > { %v6377_v0 = vsel %vm6375_vm14, %v6365_v46, 2102212464  ;;  %v6381_v11 = vsel %vm6375_vm14, %v6368_v17, 920167782  ;;  %v6384_v19 = vsel %vm6372_vm13, %v6362_v34, %v6365_v46  ;;  %v8836_v8 = vadd.s32 4294967294, %v6928_v50 }
 0x6b0   : > { %v6378_v13 = vsel %vm6374_vm0, %v6362_v34, %v6377_v0  ;;  %v6382_v23 = vsel %vm6374_vm0, %v6365_v46, %v6381_v11  ;;  %v6385_v40 = vsel %vm6375_vm14, %v6371_v58, 1326507024  ;;  %8162 = vmatmul.mubr.bf16.gmra.mrb[24].mxu0 %v7182_v52  ;;  %8388 = vmatmul.mubr.bf16.gmra.mrb[24].mxu1 %v7182_v52  ;;  %v6760_v22 = vshrl.u32 %v6759_v39, 23 }
 0x6b1   : > { %v6379_v63 = vsel %vm6373_vm1, %v6376_v30, %v6378_v13  ;;  %v6383_v51 = vsel %vm6373_vm1, %v6380_v21, %v6382_v23  ;;  %v6386_v55 = vsel %vm6374_vm0, %v6368_v17, %v6385_v40  ;;  %vm8837_vm2 = vcmp.lt.s32.totalorder %v8836_v8, 0 }
 0x6b2   : > { %v6387_v34 = vsel %vm6373_vm1, %v6384_v19, %v6386_v55  ;;  %v15523_v50 = vmul.u32.u64.low %v15491_v20, %v6383_v51  ;;  %v15524_v46 = vmul.u32.u64.high %v15491_v20, %v6383_v51, %v15523_v50  ;;  %v6931_v58 = vsel %vm8837_vm2, 0, %v8836_v8 }
 0x6b3   : > { %v6947_v30 = vsel %vm6862_vm12, %v6946_v43, %v15434_v42  ;;  %v15531_v21 = vmul.u32.u64.low %v15491_v20, %v6387_v34  ;;  %v15532_v52 = vmul.u32.u64.high %v15491_v20, %v6387_v34, %v15531_v21  ;;  %v6932_v17 = vsub.s32 32, %v6931_v58 }
 0x6b4   : > { %v6933_v39 = vshll.u32 %v15469_v36, %v6931_v58  ;;  %v6936_v0 = vsub.s32 4294967266, %v6931_v58  ;;  %v8830_v14 = vadd.s32 4294967169, %v6760_v22  ;;  %v9982_v11 = vpop.eup %9981  ;;  %vm6540_vm3 = vcmp.eq.s32.totalorder %v15463_v53, 0 }
 0x6b5   : > { %v6395_v19 = vmul.u32 %v15491_v20, %v6379_v63  ;;  %v8976_v8 = vadd.f32 3.0, %v15353_v61  ;;  %v9008_v13 = vadd.f32 3.0, %v15355_v54  ;;  %v9984_v42 = vpop.eup %9983  ;;  %v6934_v43 = vshrl.u32 %v15467_v18, %v6932_v17 }
 0x6b6   : > { %v6937_v23 = vadd.s32 127, %v6936_v0  ;;  %v6949_v40 = vsel %vm15496_vm15, 0, %v6947_v30  ;;  %v6398_v36 = vadd.s32 1, %v15524_v46  ;;  %v6541_v51 = vxor.u32 2147483648, %v9984_v42  ;;  %v15551_v61 = vpop.f32.mrb[16].mxu0  ;;  %v15553_v54 = vpop.f32.mrb[16].mxu1 }
 0x6b7   : > { %v6544_v55 = vxor.u32 2147483648, %v9982_v11  ;;  %vm6397_vm4 = vc.u32 %v15532_v52, %v15523_v50  ;;  %v6766_v22 = vadd.s32 1, %v8830_v14  ;;  %8408 = vst [vmem:[%s15547_s15] sm:$0xff] %v8976_v8  ;;  %8410 = vst [vmem:[%s15547_s15 + $0x10] sm:$0xff] %v9008_v13  ;;  %vm6543_vm5 = vcmp.eq.s32.totalorder %v15463_v53, 2  ;;  %v15557_v34 = vpop.f32.mrb[17].mxu0  ;;  %v15559_v58 = vpop.f32.mrb[17].mxu1 }
 0x6b8   : > { %v6935_v18 = vor.u32 %v6934_v43, %v6933_v39  ;;  %v6938_v20 = vshll.u32 %v6937_v23, 23  ;;  %v6399_v63 = vsel %vm6397_vm4, %v6398_v36, %v15524_v46  ;;  %15991 = vst [vmem:[#allocation14_spill] sm:$0xff] %v15557_v34  ;;  %15992 = vst [vmem:[#allocation15_spill] sm:$0xff] %v15559_v58  ;;  %vm6539_vm6 = vcmp.lt.s32.totalorder %v15463_v53, 2  ;;  %v15563_v17 = vpop.f32.mrb[18].mxu0  ;;  %v15565_v0 = vpop.f32.mrb[18].mxu1 }
 0x6b9   : > { %v6400_v30 = vadd.s32 %v6399_v63, %v6395_v19  ;;  %v15848_v21 = vand.u32 2147483647, %v15430_v28  ;;  %vm6767_vm7 = vcmp.gt.s32.totalorder %v6766_v22, 0  ;;  %15993 = vst [vmem:[#allocation16_spill] sm:$0xff] %v15563_v17  ;;  %15994 = vst [vmem:[#allocation17_spill] sm:$0xff] %v15565_v0  ;;  %v6953_v39 = vadd.s32 3, %v6949_v40 }
 0x6ba   : > { %v6939_v14 = vor.u32 4788187, %v6938_v20  ;;  %v6942_v8 = vcvt.s32.f32 %v6935_v18  ;;  %v6768_v13 = vsel %vm6767_vm7, %v6766_v22, 0  ;;  %v15567_v43 = vpop.f32.mrb[19].mxu0  ;;  %v15569_v46 = vpop.f32.mrb[19].mxu1  ;;  %v6542_v23 = vsel %vm6540_vm3, %v9982_v11, %v6541_v51 }
 0x6bb   : > { %15995 = vst [vmem:[#allocation18_spill] sm:$0xff] %v15567_v43  ;;  %15996 = vst [vmem:[#allocation19_spill] sm:$0xff] %v15569_v46  ;;  %v6545_v19 = vsel %vm6543_vm5, %v6544_v55, %v9984_v42  ;;  %v6401_v36 = vadd.s32 536870912, %v6400_v30  ;;  %v6770_v63 = vand.u32 31, %v6768_v13  ;;  %v8977_v20 = vadd.f32 3.0, %v15363_v48 }
 0x6bc   : > { %v6940_v31 = vand.u32 2147483647, %v6939_v14  ;;  %v9009_v40 = vadd.f32 3.0, %v15365_v62  ;;  %vm6536_vm8 = vweird.f32 %v15142_v56  ;;  %v6763_v18 = vand.u32 8388607, %v15848_v21 }
 0x6bd   : > { %v15578_v22 = vshrl.u32 %v6401_v36, 30  ;;  %v6771_v46 = vsub.s32 32, %v6770_v63  ;;  %v6546_v11 = vsel %vm6539_vm6, %v6542_v23, %v6545_v19  ;;  %v15584_v42 = vand.u32 3, %v6953_v39  ;;  %8409 = vst [vmem:[%s15547_s15 + $0x8] sm:$0xff] %v8977_v20 }
 0x6be   : > { %v6943_v51 = vmul.f32 %v6942_v8, %v6940_v31  ;;  %v15998_v55 = vmov 683565275   ;;  %8411 = vst [vmem:[%s15547_s15 + $0x18] sm:$0xff] %v9009_v40  ;;  %v15999_v62 = vmov 2475754826   ;;  %v6764_v39 = vor.u32 8388608, %v6763_v18 }
 0x6bf   : > { %15997 = vst [vmem:[#allocation20_spill] sm:$0xff] %v15578_v22  ;;  %v6773_v14 = vshll.u32 %v15998_v55, %v6770_v63  ;;  %v6403_v48 = vshll.u32 %v15578_v22, 30  ;;  %v6774_v43 = vshrl.u32 %v15999_v62, %v6771_v46  ;;  %v6776_v36 = vshll.u32 %v15999_v62, %v6770_v63 }
 0x6c0   : > { %v16000_v0 = vmov 2131351028   ;;  %v6944_v21 = vxor.u32 2147483648, %v6943_v51  ;;  %v16001_v53 = vmov 2102212464   ;;  %v6769_v19 = vshrl.u32 %v6768_v13, 5 }
 0x6c1   : > { %v6779_v28 = vshll.u32 %v16000_v0, %v6770_v63  ;;  %v6777_v17 = vshrl.u32 %v16000_v0, %v6771_v46  ;;  %v6780_v23 = vshrl.u32 %v16001_v53, %v6771_v46  ;;  %v6782_v31 = vshll.u32 %v16001_v53, %v6770_v63 }
 0x6c2   : > { %v15596_v8 = vsub.s32 %v6400_v30, %v6403_v48  ;;  %v16002_v20 = vmov 920167782   ;;  %v6547_v22 = vsel %vm6536_vm8, nan, %v6546_v11  ;;  %v6945_v62 = vsel %vm6862_vm12, %v6944_v21, %v6943_v51 }
 0x6c3   : > { %v6783_v40 = vshrl.u32 %v16002_v20, %v6771_v46  ;;  %v6772_v58 = vshrl.u32 %v15998_v55, %v6771_v46  ;;  %v6775_v34 = vor.u32 %v6774_v43, %v6773_v14  ;;  %v6948_v0 = vsel %vm15496_vm15, %v15232_v3, %v6945_v62 }
 0x6c4   : > { %v6406_v30 = vsub.s32 0, %v15596_v8  ;;  %v6778_v48 = vor.u32 %v6777_v17, %v6776_v36  ;;  %v6781_v18 = vor.u32 %v6780_v23, %v6779_v28  ;;  %9985 = vcosq.f32 %v6948_v0 }
 0x6c5   : > { %v6784_v13 = vor.u32 %v6783_v40, %v6782_v31  ;;  %v6785_v53 = vshll.u32 %v16002_v20, %v6770_v63  ;;  %v6786_v56 = vshrl.u32 %v15987_v9, %v6771_v46  ;;  %9987 = vsinq.f32 %v6948_v0 }
 0x6c6   : > { %v6396_v21 = vadd.s32 %v15523_v50, %v15532_v52  ;;  %v8815_v43 = vmin.u32 %v6406_v30, %v15596_v8  ;;  %vm6788_vm9 = vcmp.lt.s32.totalorder %v6769_v19, 1  ;;  %vm6959_vm10 = vcmp.eq.s32.totalorder %v15584_v42, 2 }
 0x6c7   : > { %v6787_v41 = vor.u32 %v6786_v56, %v6785_v53  ;;  %vm6790_vm11 = vcmp.lt.s32.totalorder %v6769_v19, 3  ;;  %vm6791_vm12 = vcmp.lt.s32.totalorder %v6769_v19, 4  ;;  %v6804_v17 = vshll.u32 %v6764_v39, 8 }
 0x6c8   : > { %vm6956_vm13 = vcmp.eq.s32.totalorder %v15584_v42, 0  ;;  %v7023_v28 = vadd.f32 1.0, %v6547_v22  ;;  %v6408_v11 = vclz %v8815_v43  ;;  %vm6789_vm15 = vcmp.lt.s32.totalorder %v6769_v19, 2 }
 0x6c9   : > { %v6792_v63 = vsel %vm6788_vm9, %v6772_v58, %v6775_v34  ;;  %vm6955_vm0 = vcmp.lt.s32.totalorder %v15584_v42, 2  ;;  %v6793_v9 = vsel %vm6791_vm12, %v6781_v18, 2102212464  ;;  %v6796_v50 = vsel %vm6788_vm9, %v6775_v34, %v6778_v48 }
 0x6ca   : > { %v6797_v52 = vsel %vm6791_vm12, %v6784_v13, 920167782  ;;  %v6800_v46 = vsel %vm6788_vm9, %v6778_v48, %v6781_v18  ;;  %vm6952_vm14 = vweird.f32 %v15232_v3  ;;  %v8816_v51 = vadd.s32 4294967294, %v6408_v11 }
 0x6cb   : > { %v6794_v55 = vsel %vm6790_vm11, %v6778_v48, %v6793_v9  ;;  %v6798_v14 = vsel %vm6790_vm11, %v6781_v18, %v6797_v52  ;;  %v6801_v22 = vsel %vm6791_vm12, %v6787_v41, 1326507024  ;;  %v8978_v34 = vadd.f32 3.0, %v15371_v60 }
 0x6cc   : > { %v6795_v58 = vsel %vm6789_vm15, %v6792_v63, %v6794_v55  ;;  %v6799_v36 = vsel %vm6789_vm15, %v6796_v50, %v6798_v14  ;;  %v6802_v23 = vsel %vm6790_vm11, %v6784_v13, %v6801_v22  ;;  %vm8817_vm1 = vcmp.lt.s32.totalorder %v8816_v51, 0 }
 0x6cd   : > { %v6803_v31 = vsel %vm6789_vm15, %v6800_v46, %v6802_v23  ;;  %v15627_v39 = vmul.u32.u64.low %v6804_v17, %v6799_v36  ;;  %v15628_v20 = vmul.u32.u64.high %v6804_v17, %v6799_v36, %v15627_v39  ;;  %v6411_v40 = vsel %vm8817_vm1, 0, %v8816_v51  ;;  %8412 = vst [vmem:[%s15547_s15 + $0x20] sm:$0xff] %v8978_v34 }
 0x6ce   : > { %v15631_v62 = vmul.u32.u64.low %v6804_v17, %v6803_v31  ;;  %v15632_v0 = vmul.u32.u64.high %v6804_v17, %v6803_v31, %v15631_v62  ;;  %v6811_v30 = vmul.u32 %v6804_v17, %v6795_v58  ;;  %v6412_v48 = vsub.s32 32, %v6411_v40  ;;  %v9986_v19 = vpop.eup %9985 }
 0x6cf   : > { %v6413_v18 = vshll.u32 %v15596_v8, %v6411_v40  ;;  %v6416_v13 = vsub.s32 4294967266, %v6411_v40  ;;  %v9010_v60 = vadd.f32 3.0, %v15373_v44  ;;  %v8979_v53 = vadd.f32 3.0, %v15376_v4  ;;  %v9988_v17 = vpop.eup %9987 }
 0x6d0   : > { %v9011_v56 = vadd.f32 3.0, %v15378_v29  ;;  %v8980_v43 = vadd.f32 3.0, %v15383_v12  ;;  %v9012_v41 = vadd.f32 3.0, %v15385_v59  ;;  %v6960_v11 = vxor.u32 2147483648, %v9986_v19 }
 0x6d1   : > { %v6414_v63 = vshrl.u32 %v6396_v21, %v6412_v48  ;;  %v6417_v8 = vadd.s32 127, %v6416_v13  ;;  %v6814_v9 = vadd.s32 1, %v15628_v20  ;;  %8414 = vst [vmem:[%s15547_s15 + $0x30] sm:$0xff] %v9010_v60  ;;  %v6957_v44 = vxor.u32 2147483648, %v9988_v17  ;;  %8413 = vst [vmem:[%s15547_s15 + $0x28] sm:$0xff] %v8979_v53  ;;  %v16004_v60 = vld [vmem:[#allocation11_spill] sm:$0xff] }
 0x6d2   : > { %v7146_v50 = vmul.f32 1.442695, %v7023_v28  ;;  %vm6813_vm2 = vc.u32 %v15632_v0, %v15627_v39  ;;  %8415 = vst [vmem:[%s15547_s15 + $0x38] sm:$0xff] %v9011_v56  ;;  %8416 = vst [vmem:[%s15547_s15 + $0x40] sm:$0xff] %v8980_v43  ;;  %v8981_v4 = vadd.f32 3.0, %v15391_v16  ;;  %v6961_v29 = vsel %vm6959_vm10, %v6960_v11, %v9988_v17  ;;  %v16006_v56 = vld [vmem:[#allocation15_spill] sm:$0xff] }
 0x6d3   : > { %8418 = vst [vmem:[%s15547_s15 + $0x50] sm:$0xff] %v9012_v41  ;;  %v6415_v12 = vor.u32 %v6414_v63, %v6413_v18  ;;  %v6418_v59 = vshll.u32 %v6417_v8, 23  ;;  %v6815_v21 = vsel %vm6813_vm2, %v6814_v9, %v15628_v20  ;;  %v6958_v28 = vsel %vm6956_vm13, %v9986_v19, %v6957_v44  ;;  %v16005_v19 = vld [vmem:[#allocation14_spill] sm:$0xff]  ;;  %v16008_v17 = vld [vmem:[#allocation17_spill] sm:$0xff] }
 0x6d4   : > { %v6816_v52 = vadd.s32 %v6815_v21, %v6811_v30  ;;  %8417 = vst [vmem:[%s15547_s15 + $0x48] sm:$0xff] %v8981_v4  ;;  %v9013_v46 = vadd.f32 3.0, %v15393_v49  ;;  %v8982_v51 = vadd.f32 3.0, %v15402_v7  ;;  %v6962_v16 = vsel %vm6955_vm0, %v6958_v28, %v6961_v29  ;;  %v16003_v30 = vld [vmem:[#allocation13_spill] sm:$0xff]  ;;  %v16009_v11 = vld [vmem:[#allocation18_spill] sm:$0xff]  ;;  %v16014_v21 = vld [vmem:[#allocation20_spill] sm:$0xff] }
 0x6d5   : > { %v6419_v55 = vor.u32 4788187, %v6418_v59  ;;  %v6422_v14 = vcvt.s32.f32 %v6415_v12  ;;  %v9014_v22 = vadd.f32 3.0, %v15404_v37  ;;  %v6963_v58 = vsel %vm6952_vm14, nan, %v6962_v16 }
 0x6d6   : > { %v6817_v36 = vadd.s32 536870912, %v6816_v52  ;;  %8419 = vst [vmem:[%s15547_s15 + $0x58] sm:$0xff] %v9013_v46  ;;  %8420 = vst [vmem:[%s15547_s15 + $0x60] sm:$0xff] %v8982_v51  ;;  %v8983_v49 = vadd.f32 3.0, %v15410_v26  ;;  %v9015_v7 = vadd.f32 3.0, %v15412_v10  ;;  %v7027_v42 = vadd.f32 1.0, %v6963_v58 }
 0x6d7   : > { %v6420_v23 = vand.u32 2147483647, %v6419_v55  ;;  %8422 = vst [vmem:[%s15547_s15 + $0x70] sm:$0xff] %v9014_v22  ;;  %v8984_v34 = vadd.f32 3.0, %v15420_v57  ;;  %v9016_v37 = vadd.f32 3.0, %v15422_v1  ;;  %v8985_v31 = vadd.f32 3.0, %v15426_v15 }
 0x6d8   : > { %v15670_v3 = vshrl.u32 %v6817_v36, 30  ;;  %8421 = vst [vmem:[%s15547_s15 + $0x68] sm:$0xff] %v8983_v49  ;;  %8423 = vst [vmem:[%s15547_s15 + $0x78] sm:$0xff] %v9015_v7  ;;  %v9017_v26 = vadd.f32 3.0, %v15428_v2  ;;  %v8986_v10 = vadd.f32 3.0, %v15436_v32  ;;  %9989 = vpow2.f32 %v7146_v50 }
 0x6d9   : > { %v7154_v20 = vmul.f32 1.442695, %v7027_v42  ;;  %8424 = vst [vmem:[%s15547_s15 + $0x80] sm:$0xff] %v8984_v34  ;;  %8426 = vst [vmem:[%s15547_s15 + $0x90] sm:$0xff] %v9016_v37  ;;  %v9018_v57 = vadd.f32 3.0, %v15438_v27  ;;  %v8987_v1 = vadd.f32 3.0, %v15444_v6  ;;  %v6423_v40 = vmul.f32 %v6422_v14, %v6420_v23 }
 0x6da   : > { %v6819_v62 = vshll.u32 %v15670_v3, 30  ;;  %8425 = vst [vmem:[%s15547_s15 + $0x88] sm:$0xff] %v8985_v31  ;;  %8427 = vst [vmem:[%s15547_s15 + $0x98] sm:$0xff] %v9017_v26  ;;  %v9019_v15 = vadd.f32 3.0, %v15446_v47  ;;  %v8988_v2 = vadd.f32 3.0, %v15452_v25  ;;  %v9020_v32 = vadd.f32 3.0, %v15454_v38 }
 0x6db   : > { %8428 = vst [vmem:[%s15547_s15 + $0xa0] sm:$0xff] %v8986_v10  ;;  %9991 = vpow2.f32 %v7154_v20  ;;  %8430 = vst [vmem:[%s15547_s15 + $0xb0] sm:$0xff] %v9018_v57  ;;  %v8989_v27 = vadd.f32 3.0, %v15459_v24  ;;  %v9021_v48 = vadd.f32 3.0, %v16003_v30  ;;  %v8990_v47 = vadd.f32 3.0, %v15471_v33 }
 0x6dc   : > { %8429 = vst [vmem:[%s15547_s15 + $0xa8] sm:$0xff] %v8987_v1  ;;  %v6820_v6 = vsub.s32 %v6816_v52, %v6819_v62  ;;  %8431 = vst [vmem:[%s15547_s15 + $0xb8] sm:$0xff] %v9019_v15  ;;  %v9022_v25 = vadd.f32 3.0, %v15473_v35  ;;  %v8991_v18 = vadd.f32 3.0, %v15479_v45  ;;  %v6424_v38 = vxor.u32 2147483648, %v6423_v40  ;;  %v16015_v1 = vld [vmem:[#allocation12_spill] sm:$0xff] }
 0x6dd   : > { %8432 = vst [vmem:[%s15547_s15 + $0xc0] sm:$0xff] %v8988_v2  ;;  %8434 = vst [vmem:[%s15547_s15 + $0xd0] sm:$0xff] %v9020_v32  ;;  %v9023_v13 = vadd.f32 3.0, %v15481_v5  ;;  %vm6342_vm3 = vcmp.lt.s32.totalorder %v16004_v60, 0  ;;  %v8992_v33 = vadd.f32 3.0, %v15551_v61  ;;  %v9024_v35 = vadd.f32 3.0, %v15553_v54 }
 0x6de   : > { %8433 = vst [vmem:[%s15547_s15 + $0xc8] sm:$0xff] %v8989_v27  ;;  %v6822_v24 = vsub.s32 0, %v6820_v6  ;;  %8435 = vst [vmem:[%s15547_s15 + $0xd8] sm:$0xff] %v9021_v48  ;;  %v8993_v53 = vadd.f32 3.0, %v16005_v19  ;;  %v9025_v43 = vadd.f32 3.0, %v16006_v56  ;;  %v16007_v5 = vld [vmem:[#allocation16_spill] sm:$0xff]  ;;  %v6425_v50 = vsel %vm6342_vm3, %v6424_v38, %v6423_v40 }
 0x6df   : > { %8436 = vst [vmem:[%s15547_s15 + $0xe0] sm:$0xff] %v8990_v47  ;;  %8438 = vst [vmem:[%s15547_s15 + $0xf0] sm:$0xff] %v9022_v25  ;;  %v8994_v41 = vadd.f32 3.0, %v16007_v5  ;;  %v9026_v61 = vadd.f32 3.0, %v16008_v17  ;;  %v8995_v63 = vadd.f32 3.0, %v16009_v11  ;;  %v16010_v54 = vld [vmem:[#allocation19_spill] sm:$0xff]  ;;  %v6812_v51 = vadd.s32 %v15627_v39, %v15632_v0 }
 0x6e0   : > { %8437 = vst [vmem:[%s15547_s15 + $0xe8] sm:$0xff] %v8991_v18  ;;  %v8831_v45 = vmin.u32 %v6822_v24, %v6820_v6  ;;  %8439 = vst [vmem:[%s15547_s15 + $0xf8] sm:$0xff] %v9023_v13  ;;  %v9027_v8 = vadd.f32 3.0, %v16010_v54  ;;  %v16011_v9 = vand.u32 2147483647, %v16004_v60  ;;  %v6426_v28 = vsub.s32 4, %v16014_v21 }
 0x6e1   : > { %8440 = vst [vmem:[%s15547_s15 + $0x100] sm:$0xff] %v8992_v33  ;;  %8442 = vst [vmem:[%s15547_s15 + $0x110] sm:$0xff] %v9024_v35  ;;  %v6842_v31 = vsub.s32 4, %v15670_v3  ;;  %vm6758_vm6 = vcmp.lt.s32.totalorder %v16015_v1, 0  ;;  %v16016_v40 = vand.u32 2147483647, %v16015_v1  ;;  %vm6432_vm11 = vweird.f32 %v16004_v60 }
 0x6e2   : > { %8441 = vst [vmem:[%s15547_s15 + $0x108] sm:$0xff] %v8993_v53  ;;  %vm15719_vm4 = vcmp.le.f32.partialorder %v16011_v9, 0.7853982  ;;  %v6824_v4 = vclz %v8831_v45  ;;  %8443 = vst [vmem:[%s15547_s15 + $0x118] sm:$0xff] %v9025_v43  ;;  %v9990_v29 = vpop.eup %9989  ;;  %v6427_v58 = vsel %vm6342_vm3, %v6426_v28, %v16014_v21  ;;  %vm6848_vm0 = vweird.f32 %v16015_v1 }
 0x6e3   : > { %8444 = vst [vmem:[%s15547_s15 + $0x120] sm:$0xff] %v8994_v41  ;;  %8446 = vst [vmem:[%s15547_s15 + $0x130] sm:$0xff] %v9026_v61  ;;  %v6428_v52 = vsel %vm15719_vm4, %v16004_v60, %v6425_v50  ;;  %v6429_v7 = vsel %vm15719_vm4, 0, %v6427_v58  ;;  %vm6757_vm7 = vcmp.le.f32.partialorder %v16016_v40, 0.7853982  ;;  %v6843_v15 = vsel %vm6758_vm6, %v6842_v31, %v15670_v3 }
 0x6e4   : > { %8445 = vst [vmem:[%s15547_s15 + $0x128] sm:$0xff] %v8995_v63  ;;  %8447 = vst [vmem:[%s15547_s15 + $0x138] sm:$0xff] %v9027_v8  ;;  %v8832_v12 = vadd.s32 4294967294, %v6824_v4  ;;  %9993 = vcosq.f32 %v6428_v52  ;;  %v6433_v34 = vadd.s32 3, %v6429_v7  ;;  %v6845_v30 = vsel %vm6757_vm7, 0, %v6843_v15 }
 0x6e5   : > { %v9992_v59 = vpop.eup %9991  ;;  %9995 = vsinq.f32 %v6428_v52  ;;  %v6849_v25 = vadd.s32 3, %v6845_v30 }
 0x6e6   : > { %v7187_v46 = vpack.c.bf16 %v9992_v59, %v9990_v29  ;;  %vm8833_vm5 = vcmp.lt.s32.totalorder %v8832_v12, 0  ;;  %v6434_v57 = vand.u32 3, %v6433_v34 }
 0x6e7   : > { %v6827_v16 = vsel %vm8833_vm5, 0, %v8832_v12  ;;  %v6850_v38 = vand.u32 3, %v6849_v25 }
 0x6e8   : > { %8171 = vmatprep.mubr.bf16.mxu0 %v7187_v46  ;;  %8397 = vmatprep.mubr.bf16.mxu1 %v7187_v46  ;;  %v6828_v55 = vsub.s32 32, %v6827_v16  ;;  %v6829_v14 = vshll.u32 %v6820_v6, %v6827_v16  ;;  %v6832_v22 = vsub.s32 4294967266, %v6827_v16  ;;  %vm6436_vm8 = vcmp.eq.s32.totalorder %v6434_v57, 0 }
 0x6e9   : > { %vm6439_vm9 = vcmp.eq.s32.totalorder %v6434_v57, 2  ;;  %vm6435_vm10 = vcmp.lt.s32.totalorder %v6434_v57, 2  ;;  %vm6855_vm12 = vcmp.eq.s32.totalorder %v6850_v38, 2  ;;  %vm6852_vm13 = vcmp.eq.s32.totalorder %v6850_v38, 0 }
 0x6ea   : > { %v6830_v36 = vshrl.u32 %v6812_v51, %v6828_v55  ;;  %v6833_v49 = vadd.s32 127, %v6832_v22  ;;  %vm6851_vm15 = vcmp.lt.s32.totalorder %v6850_v38, 2 }
 0x6ec   : > { %v6831_v42 = vor.u32 %v6830_v36, %v6829_v14  ;;  %v6834_v39 = vshll.u32 %v6833_v49, 23 }
 0x6ee   : > { %v6835_v0 = vor.u32 4788187, %v6834_v39  ;;  %v6838_v23 = vcvt.s32.f32 %v6831_v42  ;;  %v9994_v26 = vpop.eup %9993 }
 0x6ef   : > { %v9996_v20 = vpop.eup %9995  ;;  %v6440_v32 = vxor.u32 2147483648, %v9994_v26 }
 0x6f0   : > { %v6836_v37 = vand.u32 2147483647, %v6835_v0  ;;  %v6437_v2 = vxor.u32 2147483648, %v9996_v20 }
 0x6f1   : > { %v6441_v47 = vsel %vm6439_vm9, %v6440_v32, %v9996_v20 }
 0x6f2   : > { %v6839_v10 = vmul.f32 %v6838_v23, %v6836_v37  ;;  %v6438_v48 = vsel %vm6436_vm8, %v9994_v26, %v6437_v2 }
 0x6f3   : > { %v6442_v18 = vsel %vm6435_vm10, %v6438_v48, %v6441_v47 }
 0x6f4   : > { %v6840_v62 = vxor.u32 2147483648, %v6839_v10  ;;  %v6443_v24 = vsel %vm6432_vm11, nan, %v6442_v18 }
 0x6f5   : > { %v7022_v35 = vadd.f32 1.0, %v6443_v24 }
 0x6f6   : > { %v6841_v27 = vsel %vm6758_vm6, %v6840_v62, %v6839_v10 }
 0x6f7   : > { %v6844_v6 = vsel %vm6757_vm7, %v16015_v1, %v6841_v27  ;;  %v7144_v43 = vmul.f32 1.442695, %v7022_v35 }
 0x6f8   : > { %9997 = vcosq.f32 %v6844_v6 }
 0x6f9   : > { %9999 = vsinq.f32 %v6844_v6 }
 0x6fa   : > { %10001 = vpow2.f32 %v7144_v43 }
 0x702   : > { %v9998_v3 = vpop.eup %9997 }
 0x703   : > { %v10000_v13 = vpop.eup %9999  ;;  %v6856_v33 = vxor.u32 2147483648, %v9998_v3 }
 0x704   : > { %v6853_v19 = vxor.u32 2147483648, %v10000_v13  ;;  %v10002_v17 = vpop.eup %10001 }
 0x705   : > { %v6857_v53 = vsel %vm6855_vm12, %v6856_v33, %v10000_v13 }
 0x706   : > { %v6854_v45 = vsel %vm6852_vm13, %v9998_v3, %v6853_v19 }
 0x707   : > { %v6858_v56 = vsel %vm6851_vm15, %v6854_v45, %v6857_v53 }
 0x708   : > { %v6859_v5 = vsel %vm6848_vm0, nan, %v6858_v56 }
 0x709   : > { %v7026_v41 = vadd.f32 1.0, %v6859_v5 }
 0x70b   : > { %v7152_v60 = vmul.f32 1.442695, %v7026_v41 }
 0x70d   : > { %10003 = vpow2.f32 %v7152_v60 }
 0x717   : > { %v10004_v61 = vpop.eup %10003 }
 0x718   : > { %v7186_v11 = vpack.c.bf16 %v10004_v61, %v10002_v17 }
 0x71a   : > { %8172 = vmatmul.mubr.bf16.gmra.mrb[28].mxu0 %v7186_v11  ;;  %8398 = vmatmul.mubr.bf16.gmra.mrb[28].mxu1 %v7186_v11 }
 0x71d   : > { %v8153_v63 = vpop.f32.mrb[20].mxu0  ;;  %v8379_v54 = vpop.f32.mrb[20].mxu1 }
 0x71e   : > { %v8996_v8 = vadd.f32 3.0, %v8153_v63  ;;  %v9028_v9 = vadd.f32 3.0, %v8379_v54  ;;  %v8155_v44 = vpop.f32.mrb[21].mxu0  ;;  %v8381_v50 = vpop.f32.mrb[21].mxu1 }
 0x71f   : > { %v8997_v4 = vadd.f32 3.0, %v8155_v44  ;;  %v9029_v29 = vadd.f32 3.0, %v8381_v50  ;;  %v8157_v12 = vpop.f32.mrb[22].mxu0  ;;  %v8383_v59 = vpop.f32.mrb[22].mxu1 }
 0x720   : > { %8448 = vst [vmem:[%s15547_s15 + $0x140] sm:$0xff] %v8996_v8  ;;  %8450 = vst [vmem:[%s15547_s15 + $0x150] sm:$0xff] %v9028_v9  ;;  %v8998_v21 = vadd.f32 3.0, %v8157_v12  ;;  %v9030_v28 = vadd.f32 3.0, %v8383_v59  ;;  %v8159_v52 = vpop.f32.mrb[23].mxu0  ;;  %v8385_v46 = vpop.f32.mrb[23].mxu1 }
 0x721   : > { %8449 = vst [vmem:[%s15547_s15 + $0x148] sm:$0xff] %v8997_v4  ;;  %8451 = vst [vmem:[%s15547_s15 + $0x158] sm:$0xff] %v9029_v29  ;;  %v8999_v51 = vadd.f32 3.0, %v8159_v52  ;;  %v9031_v16 = vadd.f32 3.0, %v8385_v46 }
 0x722   : > { %8452 = vst [vmem:[%s15547_s15 + $0x160] sm:$0xff] %v8998_v21  ;;  %8454 = vst [vmem:[%s15547_s15 + $0x170] sm:$0xff] %v9030_v28 }
 0x723   : > { %8453 = vst [vmem:[%s15547_s15 + $0x168] sm:$0xff] %v8999_v51  ;;  %8455 = vst [vmem:[%s15547_s15 + $0x178] sm:$0xff] %v9031_v16 }
 0x783   : > { %v8163_v55 = vpop.f32.mrb[24].mxu0  ;;  %v8389_v14 = vpop.f32.mrb[24].mxu1 }
 0x784   : > { %v9000_v22 = vadd.f32 3.0, %v8163_v55  ;;  %v9032_v58 = vadd.f32 3.0, %v8389_v14  ;;  %v8165_v36 = vpop.f32.mrb[25].mxu0  ;;  %v8391_v49 = vpop.f32.mrb[25].mxu1 }
 0x785   : > { %v9001_v7 = vadd.f32 3.0, %v8165_v36  ;;  %v9033_v42 = vadd.f32 3.0, %v8391_v49  ;;  %v8167_v39 = vpop.f32.mrb[26].mxu0  ;;  %v8393_v0 = vpop.f32.mrb[26].mxu1 }
 0x786   : > { %8456 = vst [vmem:[%s15547_s15 + $0x180] sm:$0xff] %v9000_v22  ;;  %8458 = vst [vmem:[%s15547_s15 + $0x190] sm:$0xff] %v9032_v58  ;;  %v9002_v23 = vadd.f32 3.0, %v8167_v39  ;;  %v9034_v34 = vadd.f32 3.0, %v8393_v0  ;;  %v8169_v37 = vpop.f32.mrb[27].mxu0  ;;  %v8395_v31 = vpop.f32.mrb[27].mxu1 }
 0x787   : > { %8457 = vst [vmem:[%s15547_s15 + $0x188] sm:$0xff] %v9001_v7  ;;  %8459 = vst [vmem:[%s15547_s15 + $0x198] sm:$0xff] %v9033_v42  ;;  %v9003_v26 = vadd.f32 3.0, %v8169_v37  ;;  %v9035_v10 = vadd.f32 3.0, %v8395_v31 }
 0x788   : > { %8460 = vst [vmem:[%s15547_s15 + $0x1a0] sm:$0xff] %v9002_v23  ;;  %8462 = vst [vmem:[%s15547_s15 + $0x1b0] sm:$0xff] %v9034_v34 }
 0x789   : > { %8461 = vst [vmem:[%s15547_s15 + $0x1a8] sm:$0xff] %v9003_v26  ;;  %8463 = vst [vmem:[%s15547_s15 + $0x1b8] sm:$0xff] %v9035_v10 }
 0x7ed   : > { %v8173_v20 = vpop.f32.mrb[28].mxu0  ;;  %v8399_v57 = vpop.f32.mrb[28].mxu1 }
 0x7ee   : > { %v9004_v1 = vadd.f32 3.0, %v8173_v20  ;;  %v9036_v40 = vadd.f32 3.0, %v8399_v57  ;;  %v8175_v62 = vpop.f32.mrb[29].mxu0  ;;  %v8401_v15 = vpop.f32.mrb[29].mxu1 }
 0x7ef   : > { %v9005_v2 = vadd.f32 3.0, %v8175_v62  ;;  %v9037_v32 = vadd.f32 3.0, %v8401_v15  ;;  %v8177_v27 = vpop.f32.mrb[30].mxu0  ;;  %v8403_v6 = vpop.f32.mrb[30].mxu1 }
 0x7f0   : > { %8464 = vst [vmem:[%s15547_s15 + $0x1c0] sm:$0xff] %v9004_v1  ;;  %8466 = vst [vmem:[%s15547_s15 + $0x1d0] sm:$0xff] %v9036_v40  ;;  %v9006_v30 = vadd.f32 3.0, %v8177_v27  ;;  %v9038_v48 = vadd.f32 3.0, %v8403_v6  ;;  %v8179_v47 = vpop.f32.mrb[31].mxu0  ;;  %v8405_v25 = vpop.f32.mrb[31].mxu1 }
 0x7f1   : > { %8465 = vst [vmem:[%s15547_s15 + $0x1c8] sm:$0xff] %v9005_v2  ;;  %8467 = vst [vmem:[%s15547_s15 + $0x1d8] sm:$0xff] %v9037_v32  ;;  %v9007_v18 = vadd.f32 3.0, %v8179_v47  ;;  %v9039_v38 = vadd.f32 3.0, %v8405_v25 }
 0x7f2   : > { %8468 = vst [vmem:[%s15547_s15 + $0x1e0] sm:$0xff] %v9006_v30  ;;  %8470 = vst [vmem:[%s15547_s15 + $0x1f0] sm:$0xff] %v9038_v48 }
 0x7f3   : > { %8469 = vst [vmem:[%s15547_s15 + $0x1e8] sm:$0xff] %v9007_v18  ;;  %8471 = vst [vmem:[%s15547_s15 + $0x1f8] sm:$0xff] %v9039_v38 }
 0x7f4   : > { %10076 = shalt.err (!%p10073_p7)
}
 0x7f5   : > { %s10077_s18 = scalar_lea.hbm %s15772_s23, 8192  ;;  %s10081_s20 = scalar_lea.hbm %s15826_s2, 16384 }
 0x7f6   : > { %p10078_p9 = scmp.ne.s32.totalorder %s15772_s23, %s10077_s18  ;;  %p10082_p5 = scmp.lt.u32.totalorder %s15772_s23, %s15826_s2 }
 0x7f7   : > { %p10083_p11 = scmp.lt.u32.totalorder %s10081_s20, %s10077_s18  ;;  %p10085_p4 = scmp.lt.u32.totalorder %s10077_s18, %s15772_s23 }
 0x7f8   : > { %p10079_p2 = pnand %p10078_p9, %p10256_p12 }
 0x7f9   : > { %p10084_p1 = por %p10083_p11, %p10082_p5 }
 0x7fa   : > { %p10080_p0 = pneg %p10079_p2 }
 0x7fb   : > { %p10086_p6 = por %p10085_p4, %p10084_p1 }
 0x7fd   : > { %p10087_p8 = pnand %p10086_p6, %p10080_p0 }
 0x7ff   : > { %10090 = shalt.err (!%p10087_p8)
}
 0x800   : > { %s10148_s30 = smov 512   ;;  %s10149_s3 = smov 32  }
 0x801   : > { %9366 = dma.vmem_to_hbm [thread:$0]  (%p10256_p12), %s15774_s27, 8192, %s15772_s23, %s8473_s28, %s10148_s30, %s10148_s30, %s10149_s3  }
 0x802 PF: > { %s8502_s15 = sand.u32 1, %s10121_s9   ;;  %p16017_p10 = scmp.ne.s32.totalorder %s15852_s16, 0 }
 0x803   : > { %p16018_p13 = scmp.ge.s32.totalorder %s10133_s12, 2  ;;  %s8503_s17 = scalar_lea.sflag [#allocation4], %s8502_s15 }
 0x805   : > { %p9377_p3 = pnand %p16018_p13, %p16017_p10 }
 0x807   : > { %10116 = dma.done.wait (!%p9377_p3), %s8503_s17, 8192  }
 0x808   : > { %10118 = vsyncadd (!%p9377_p3), %s8503_s17, 4294959104  ;;  %p16_p7 = scmp.ge.s32.totalorder %s10221_s21, 4   ;;  %s16019_s9 = smov %s10125_s10 }
 0x809   : > { %s16020_s10 = smov %s10129_s11  ;;  %s16021_s11 = smov %s10252_s8 }
 0x80a   : > { %s16022_s12 = smov %s10221_s21  ;;  %18 = sbr.rel (!%p16_p7) target bundleno = 6 (0x6), region = 77 }
 0x811   :  { %8508 = vsyncpa [#allocation3], 1 }
 0x812   :  { %8510 = vsyncpa [#allocation3 + $0x1], 1 }
 0x813   :  { %8511 = vsyncpa [#allocation6], 1 }
 0x814   :  { %8512 = vsyncpa [#allocation4], 1 }
 0x815   :  { %8514 = vsyncpa [#allocation4 + $0x1], 1 }

</bundles_post_ra>
